<compile_context>
chip_gen: v6e
topology: v6e:2x2x1
jax: 0.10.0
libtpu: 0.0.40
codegen_flags: <defaults>
</compile_context>

<pallas_src>
from functools import partial

import jax
import jax.numpy as jnp
from jax.experimental import pallas as pl
from jax.experimental.pallas import tpu as pltpu

LANES = 128


def _round_up(x, m):
    return (x + m - 1) // m * m


def conv2_fused_kernel(x_ref, w1_ref, b1_ref, w2_ref, b2_ref, o_ref, y1_ref, *, H, W):
    """Fused [conv3x3 + bias + relu] x 2 for one image.

    Flat "wide" stencil layout (row stride Wp = W+2): tap (kh, kw) of a 3x3 stencil at
    flat row m is simply flat row m + kh*Wp + kw, so each conv is 9 accumulating
    (M, Cp) x (Cp, Cp) matmuls over sublane-offset slices of one flat buffer.

    x_ref : (Min, Cp)    flat zero-padded input; pixel (h, w) at flat row (h+2)*Wp+(w+2)
    w*_ref: (9, Cp, Cp)  per-tap (Cin, Cout) weight matrices, BN scale folded in
    b*_ref: (1, Cp)      folded bias (f32)
    o_ref : (H*Wp, Cp)   final output on the flat wide grid (junk cols dropped in wrapper)
    y1_ref: (M1p, Cp)    VMEM scratch: flat zero-padded stage-1 activation (compute dtype)
    """
    Wp = W + 2
    M1p, Cp = y1_ref.shape
    M2 = o_ref.shape[0]
    cdt = y1_ref.dtype

    # tap (kh, kw) of the 3x3 stencil == flat row offset kh*Wp + kw
    offs = [kh * Wp + kw for kh in range(3) for kw in range(3)]

    # ---- stage 1: conv + bias + relu, computed directly on the padded (y1pad) grid ----
    acc1 = jnp.zeros((M1p, Cp), jnp.float32)
    for t, off in enumerate(offs):
        acc1 += jnp.dot(x_ref[off:off + M1p, :], w1_ref[t],
                        preferred_element_type=jnp.float32)
    y1 = jnp.maximum(acc1 + b1_ref[...], 0.0)

    # Validity mask over the padded grid: flat row e = p*Wp + q is a real pixel iff
    # p in [1, H] and q in [1, W].  Everything else MUST be zeroed: those positions are
    # exactly the spatial zero-padding stage 2 relies on (left/right pad columns,
    # top/bottom pad rows, wrap-around and margin rows).  Do not weaken this mask.
    # floor((e + 0.5) / Wp) avoids vector integer division; all values are small exact
    # integers in f32, so the comparisons are exact.
    ef = jax.lax.broadcasted_iota(jnp.int32, (M1p, 1), 0).astype(jnp.float32)
    pf = jnp.floor((ef + 0.5) * (1.0 / Wp))
    qf = ef - pf * Wp
    valid = (pf >= 1.0) & (pf <= H) & (qf >= 1.0) & (qf <= W)
    # Only the inter-stage hand-off is cast to the (possibly bf16) compute dtype;
    # accumulation above/below stays f32.
    y1_ref[...] = jnp.where(valid, y1, 0.0).astype(cdt)

    # ---- stage 2: conv + bias + relu over the padded stage-1 activation ---------------
    acc2 = jnp.zeros((M2, Cp), jnp.float32)
    for t, off in enumerate(offs):
        acc2 += jnp.dot(y1_ref[off:off + M2, :], w2_ref[t],
                        preferred_element_type=jnp.float32)
    o_ref[...] = jnp.maximum(acc2 + b2_ref[...], 0.0).astype(o_ref.dtype)


def _fold_stage(p, Cp, compute_dtype, eps=1e-5):
    """Fold eval-mode BN into the conv; return (9, Cp, Cp) per-tap weights + (1, Cp) bias."""
    C = p["b"].shape[0]
    scale = p["gamma"] / jnp.sqrt(p["var"] + eps)
    w = p["w"] * scale[None, None, None, :]                  # (3,3,Cin,Cout), scale folded
    w = jnp.pad(w, ((0, 0), (0, 0), (0, Cp - C), (0, Cp - C)))
    w = w.reshape(9, Cp, Cp).astype(compute_dtype)           # tap t = kh*3 + kw
    bias = p["beta"] + (p["b"] - p["mean"]) * scale
    bias = jnp.pad(bias, (0, Cp - C)).reshape(1, Cp).astype(jnp.float32)
    return w, bias


def conv_2_forward(x_nchw, params, *, compute_dtype=jnp.bfloat16):
    """Matches Conv_2.forward (eval-mode BN). Input/output NCHW float32."""
    N, C, H, W = x_nchw.shape
    Cp = _round_up(max(C, LANES), LANES)          # lane-dense channel padding
    Wp = W + 2
    M2 = H * Wp                                   # flat output rows (incl. 2 junk cols/row)
    M1p = _round_up((H + 2) * Wp + 2, 8)          # padded stage-1 rows (stage-2 reads + margin)
    Min = _round_up(M1p + 2 * Wp + 2, 8)          # flat padded-input rows (stage-1 reads + margin)

    # NCHW -> NHWC, channel pad (lane-dense), spatial pre-pad into the flat stencil
    # layout: pixel (h, w) lives at flat row (h+2)*Wp + (w+2); rows [0, 2*Wp) and
    # [(H+2)*Wp, Min) plus the first two columns of every image row are zero.
    x = jnp.transpose(x_nchw, (0, 2, 3, 1))
    x = jnp.pad(x, ((0, 0), (2, 0), (2, 0), (0, Cp - C)))    # (N, H+2, W+2, Cp)
    x = x.reshape(N, (H + 2) * Wp, Cp)
    x = jnp.pad(x, ((0, 0), (0, Min - (H + 2) * Wp), (0, 0))).astype(compute_dtype)

    w1, b1 = _fold_stage(params[0], Cp, compute_dtype)
    w2, b2 = _fold_stage(params[1], Cp, compute_dtype)

    kernel = partial(conv2_fused_kernel, H=H, W=W)

    out = pl.pallas_call(
        kernel,
        out_shape=jax.ShapeDtypeStruct((N, M2, Cp), jnp.float32),
        grid=(N,),
        in_specs=[
            pl.BlockSpec((None, Min, Cp), lambda n: (n, 0, 0)),   # whole (flat) image per step
            pl.BlockSpec((9, Cp, Cp), lambda n: (0, 0, 0)),       # constant operands
            pl.BlockSpec((1, Cp), lambda n: (0, 0)),
            pl.BlockSpec((9, Cp, Cp), lambda n: (0, 0, 0)),
            pl.BlockSpec((1, Cp), lambda n: (0, 0)),
        ],
        out_specs=pl.BlockSpec((None, M2, Cp), lambda n: (n, 0, 0)),
        scratch_shapes=[pltpu.VMEM((M1p, Cp), compute_dtype)],
        compiler_params=pltpu.CompilerParams(
            dimension_semantics=("parallel",),
            vmem_limit_bytes=32 * 1024 * 1024),
    )(x, w1, b1, w2, b2)

    # (N, H*Wp, Cp) -> drop junk cols / padded channels -> (N, H, W, C) -> NCHW
    out = out.reshape(N, H, Wp, Cp)[:, :, :W, :C]
    return jnp.transpose(out, (0, 3, 1, 2))


def make_params(channel, key):
    """Deterministic synthetic parameters matching Conv_2.__init__ shapes."""
    keys = jax.random.split(key, 4)
    params = []
    for i in range(2):
        # PyTorch conv weight layout (Cout, Cin, kh, kw) -> kernel layout (kh, kw, Cin, Cout)
        w_oihw = jax.random.normal(keys[2 * i], (channel, channel, 3, 3), jnp.float32) * 0.1
        b = jax.random.normal(keys[2 * i + 1], (channel,), jnp.float32) * 0.05
        gamma = jnp.linspace(0.8, 1.2, channel, dtype=jnp.float32)
        beta = jnp.linspace(-0.1, 0.1, channel, dtype=jnp.float32)
        mean = jnp.linspace(-0.05, 0.05, channel, dtype=jnp.float32)
        var = jnp.linspace(0.9, 1.1, channel, dtype=jnp.float32)
        params.append(dict(w=jnp.transpose(w_oihw, (2, 3, 1, 0)), w_oihw=w_oihw, b=b,
                           gamma=gamma, beta=beta, mean=mean, var=var))
    return params


def conv_2_reference(x_nchw, params, eps=1e-5):
    """Pure-JAX reference (lax conv + explicit eval-mode BN) for validation."""
    x = x_nchw
    for p in params:
        y = jax.lax.conv_general_dilated(
            x, p["w_oihw"], window_strides=(1, 1), padding=((1, 1), (1, 1)),
            dimension_numbers=("NCHW", "OIHW", "NCHW"))
        y = y + p["b"].reshape(1, -1, 1, 1)
        y = (y - p["mean"].reshape(1, -1, 1, 1)) / jnp.sqrt(p["var"].reshape(1, -1, 1, 1) + eps)
        y = y * p["gamma"].reshape(1, -1, 1, 1) + p["beta"].reshape(1, -1, 1, 1)
        x = jnp.maximum(y, 0.0)
    return x


if __name__ == "__main__":
    key = jax.random.PRNGKey(0)
    k_x, k_p = jax.random.split(key)

    N, C, H, W = 2, 4, 16, 16
    x = jax.random.normal(k_x, (N, C, H, W), jnp.float32)
    params = make_params(C, k_p)

    ref = conv_2_reference(x, params)

    # f32 path: tight check
    out_f32 = jax.block_until_ready(conv_2_forward(x, params, compute_dtype=jnp.float32))
    assert out_f32.shape == (N, C, H, W)
    assert jnp.allclose(out_f32, ref, rtol=1e-4, atol=1e-5), "f32 kernel mismatch vs JAX reference"

    # default bf16 MXU path: bf16 operands / inter-stage hand-off, f32 accumulation
    out_bf16 = jax.block_until_ready(conv_2_forward(x, params))
    assert out_bf16.shape == (N, C, H, W)
    assert jnp.allclose(out_bf16, ref, rtol=8e-2, atol=8e-2), "bf16 kernel mismatch vs JAX reference"

    print("KERNEL_OK")
</pallas_src>

<mosaic_0001>
module attributes {stable_mosaic.version = 11 : i64} {
  func.func @conv2_fused_kernel(%arg0: i32, %arg1: memref<1x368x128xf32, #tpu.memory_space<vmem>>, %arg2: memref<9x128x128xf32, #tpu.memory_space<vmem>>, %arg3: memref<1x128xf32, #tpu.memory_space<vmem>>, %arg4: memref<9x128x128xf32, #tpu.memory_space<vmem>>, %arg5: memref<1x128xf32, #tpu.memory_space<vmem>>, %arg6: memref<1x288x128xf32, #tpu.memory_space<vmem>>, %arg7: memref<328x128xf32, #tpu.memory_space<vmem>>) attributes {dimension_semantics = [#tpu.dimension_semantics<parallel>], iteration_bounds = array<i64: 2>, scalar_prefetch = 0 : i64, scratch_operands = 1 : i64, tpu.core_type = #tpu.core_type<tc>, window_params = [{transform_indices = @transform_0, window_bounds = array<i64: 1, 368, 128>}, {pipeline_mode = #tpu.pipeline_mode<synchronous>, transform_indices = @transform_1, window_bounds = array<i64: 9, 128, 128>}, {pipeline_mode = #tpu.pipeline_mode<synchronous>, transform_indices = @transform_2, window_bounds = array<i64: 1, 128>}, {pipeline_mode = #tpu.pipeline_mode<synchronous>, transform_indices = @transform_3, window_bounds = array<i64: 9, 128, 128>}, {pipeline_mode = #tpu.pipeline_mode<synchronous>, transform_indices = @transform_4, window_bounds = array<i64: 1, 128>}, {transform_indices = @transform_5, window_bounds = array<i64: 1, 288, 128>}]} {
    %cst = arith.constant 0.000000e+00 : f32
    %0 = vector.broadcast %cst : f32 to vector<328x128xf32>
    %c0 = arith.constant 0 : index
    %c0_0 = arith.constant 0 : index
    %c0_1 = arith.constant 0 : index
    %1 = vector.load %arg1[%c0, %c0_0, %c0_1] : memref<1x368x128xf32, #tpu.memory_space<vmem>>, vector<1x328x128xf32>
    %2 = vector.shape_cast %1 : vector<1x328x128xf32> to vector<328x128xf32>
    %c0_2 = arith.constant 0 : index
    %c0_3 = arith.constant 0 : index
    %c0_4 = arith.constant 0 : index
    %3 = vector.load %arg2[%c0_2, %c0_3, %c0_4] : memref<9x128x128xf32, #tpu.memory_space<vmem>>, vector<1x128x128xf32>
    %4 = vector.shape_cast %3 : vector<1x128x128xf32> to vector<128x128xf32>
    %cst_5 = arith.constant dense<0.000000e+00> : vector<328x128xf32>
    %5 = tpu.matmul %2, %4, %cst_5 {dimension_numbers = #tpu.dot_dimension_numbers<[1], [0], [0], [1], [0, 0, 1, 1], [], []>} : vector<328x128xf32>, vector<128x128xf32>, vector<328x128xf32> -> vector<328x128xf32>
    %6 = arith.addf %0, %5 : vector<328x128xf32>
    %c0_6 = arith.constant 0 : index
    %c1 = arith.constant 1 : index
    %c0_7 = arith.constant 0 : index
    %7 = vector.load %arg1[%c0_6, %c1, %c0_7] : memref<1x368x128xf32, #tpu.memory_space<vmem>>, vector<1x328x128xf32>
    %8 = vector.shape_cast %7 : vector<1x328x128xf32> to vector<328x128xf32>
    %c1_8 = arith.constant 1 : index
    %c0_9 = arith.constant 0 : index
    %c0_10 = arith.constant 0 : index
    %9 = vector.load %arg2[%c1_8, %c0_9, %c0_10] : memref<9x128x128xf32, #tpu.memory_space<vmem>>, vector<1x128x128xf32>
    %10 = vector.shape_cast %9 : vector<1x128x128xf32> to vector<128x128xf32>
    %cst_11 = arith.constant dense<0.000000e+00> : vector<328x128xf32>
    %11 = tpu.matmul %8, %10, %cst_11 {dimension_numbers = #tpu.dot_dimension_numbers<[1], [0], [0], [1], [0, 0, 1, 1], [], []>} : vector<328x128xf32>, vector<128x128xf32>, vector<328x128xf32> -> vector<328x128xf32>
    %12 = arith.addf %6, %11 : vector<328x128xf32>
    %c0_12 = arith.constant 0 : index
    %c2 = arith.constant 2 : index
    %c0_13 = arith.constant 0 : index
    %13 = vector.load %arg1[%c0_12, %c2, %c0_13] : memref<1x368x128xf32, #tpu.memory_space<vmem>>, vector<1x328x128xf32>
    %14 = vector.shape_cast %13 : vector<1x328x128xf32> to vector<328x128xf32>
    %c2_14 = arith.constant 2 : index
    %c0_15 = arith.constant 0 : index
    %c0_16 = arith.constant 0 : index
    %15 = vector.load %arg2[%c2_14, %c0_15, %c0_16] : memref<9x128x128xf32, #tpu.memory_space<vmem>>, vector<1x128x128xf32>
    %16 = vector.shape_cast %15 : vector<1x128x128xf32> to vector<128x128xf32>
    %cst_17 = arith.constant dense<0.000000e+00> : vector<328x128xf32>
    %17 = tpu.matmul %14, %16, %cst_17 {dimension_numbers = #tpu.dot_dimension_numbers<[1], [0], [0], [1], [0, 0, 1, 1], [], []>} : vector<328x128xf32>, vector<128x128xf32>, vector<328x128xf32> -> vector<328x128xf32>
    %18 = arith.addf %12, %17 : vector<328x128xf32>
    %c0_18 = arith.constant 0 : index
    %c18 = arith.constant 18 : index
    %c0_19 = arith.constant 0 : index
    %19 = vector.load %arg1[%c0_18, %c18, %c0_19] : memref<1x368x128xf32, #tpu.memory_space<vmem>>, vector<1x328x128xf32>
    %20 = vector.shape_cast %19 : vector<1x328x128xf32> to vector<328x128xf32>
    %c3 = arith.constant 3 : index
    %c0_20 = arith.constant 0 : index
    %c0_21 = arith.constant 0 : index
    %21 = vector.load %arg2[%c3, %c0_20, %c0_21] : memref<9x128x128xf32, #tpu.memory_space<vmem>>, vector<1x128x128xf32>
    %22 = vector.shape_cast %21 : vector<1x128x128xf32> to vector<128x128xf32>
    %cst_22 = arith.constant dense<0.000000e+00> : vector<328x128xf32>
    %23 = tpu.matmul %20, %22, %cst_22 {dimension_numbers = #tpu.dot_dimension_numbers<[1], [0], [0], [1], [0, 0, 1, 1], [], []>} : vector<328x128xf32>, vector<128x128xf32>, vector<328x128xf32> -> vector<328x128xf32>
    %24 = arith.addf %18, %23 : vector<328x128xf32>
    %c0_23 = arith.constant 0 : index
    %c19 = arith.constant 19 : index
    %c0_24 = arith.constant 0 : index
    %25 = vector.load %arg1[%c0_23, %c19, %c0_24] : memref<1x368x128xf32, #tpu.memory_space<vmem>>, vector<1x328x128xf32>
    %26 = vector.shape_cast %25 : vector<1x328x128xf32> to vector<328x128xf32>
    %c4 = arith.constant 4 : index
    %c0_25 = arith.constant 0 : index
    %c0_26 = arith.constant 0 : index
    %27 = vector.load %arg2[%c4, %c0_25, %c0_26] : memref<9x128x128xf32, #tpu.memory_space<vmem>>, vector<1x128x128xf32>
    %28 = vector.shape_cast %27 : vector<1x128x128xf32> to vector<128x128xf32>
    %cst_27 = arith.constant dense<0.000000e+00> : vector<328x128xf32>
    %29 = tpu.matmul %26, %28, %cst_27 {dimension_numbers = #tpu.dot_dimension_numbers<[1], [0], [0], [1], [0, 0, 1, 1], [], []>} : vector<328x128xf32>, vector<128x128xf32>, vector<328x128xf32> -> vector<328x128xf32>
    %30 = arith.addf %24, %29 : vector<328x128xf32>
    %c0_28 = arith.constant 0 : index
    %c20 = arith.constant 20 : index
    %c0_29 = arith.constant 0 : index
    %31 = vector.load %arg1[%c0_28, %c20, %c0_29] : memref<1x368x128xf32, #tpu.memory_space<vmem>>, vector<1x328x128xf32>
    %32 = vector.shape_cast %31 : vector<1x328x128xf32> to vector<328x128xf32>
    %c5 = arith.constant 5 : index
    %c0_30 = arith.constant 0 : index
    %c0_31 = arith.constant 0 : index
    %33 = vector.load %arg2[%c5, %c0_30, %c0_31] : memref<9x128x128xf32, #tpu.memory_space<vmem>>, vector<1x128x128xf32>
    %34 = vector.shape_cast %33 : vector<1x128x128xf32> to vector<128x128xf32>
    %cst_32 = arith.constant dense<0.000000e+00> : vector<328x128xf32>
    %35 = tpu.matmul %32, %34, %cst_32 {dimension_numbers = #tpu.dot_dimension_numbers<[1], [0], [0], [1], [0, 0, 1, 1], [], []>} : vector<328x128xf32>, vector<128x128xf32>, vector<328x128xf32> -> vector<328x128xf32>
    %36 = arith.addf %30, %35 : vector<328x128xf32>
    %c0_33 = arith.constant 0 : index
    %c36 = arith.constant 36 : index
    %c0_34 = arith.constant 0 : index
    %37 = vector.load %arg1[%c0_33, %c36, %c0_34] : memref<1x368x128xf32, #tpu.memory_space<vmem>>, vector<1x328x128xf32>
    %38 = vector.shape_cast %37 : vector<1x328x128xf32> to vector<328x128xf32>
    %c6 = arith.constant 6 : index
    %c0_35 = arith.constant 0 : index
    %c0_36 = arith.constant 0 : index
    %39 = vector.load %arg2[%c6, %c0_35, %c0_36] : memref<9x128x128xf32, #tpu.memory_space<vmem>>, vector<1x128x128xf32>
    %40 = vector.shape_cast %39 : vector<1x128x128xf32> to vector<128x128xf32>
    %cst_37 = arith.constant dense<0.000000e+00> : vector<328x128xf32>
    %41 = tpu.matmul %38, %40, %cst_37 {dimension_numbers = #tpu.dot_dimension_numbers<[1], [0], [0], [1], [0, 0, 1, 1], [], []>} : vector<328x128xf32>, vector<128x128xf32>, vector<328x128xf32> -> vector<328x128xf32>
    %42 = arith.addf %36, %41 : vector<328x128xf32>
    %c0_38 = arith.constant 0 : index
    %c37 = arith.constant 37 : index
    %c0_39 = arith.constant 0 : index
    %43 = vector.load %arg1[%c0_38, %c37, %c0_39] : memref<1x368x128xf32, #tpu.memory_space<vmem>>, vector<1x328x128xf32>
    %44 = vector.shape_cast %43 : vector<1x328x128xf32> to vector<328x128xf32>
    %c7 = arith.constant 7 : index
    %c0_40 = arith.constant 0 : index
    %c0_41 = arith.constant 0 : index
    %45 = vector.load %arg2[%c7, %c0_40, %c0_41] : memref<9x128x128xf32, #tpu.memory_space<vmem>>, vector<1x128x128xf32>
    %46 = vector.shape_cast %45 : vector<1x128x128xf32> to vector<128x128xf32>
    %cst_42 = arith.constant dense<0.000000e+00> : vector<328x128xf32>
    %47 = tpu.matmul %44, %46, %cst_42 {dimension_numbers = #tpu.dot_dimension_numbers<[1], [0], [0], [1], [0, 0, 1, 1], [], []>} : vector<328x128xf32>, vector<128x128xf32>, vector<328x128xf32> -> vector<328x128xf32>
    %48 = arith.addf %42, %47 : vector<328x128xf32>
    %c0_43 = arith.constant 0 : index
    %c38 = arith.constant 38 : index
    %c0_44 = arith.constant 0 : index
    %49 = vector.load %arg1[%c0_43, %c38, %c0_44] : memref<1x368x128xf32, #tpu.memory_space<vmem>>, vector<1x328x128xf32>
    %50 = vector.shape_cast %49 : vector<1x328x128xf32> to vector<328x128xf32>
    %c8 = arith.constant 8 : index
    %c0_45 = arith.constant 0 : index
    %c0_46 = arith.constant 0 : index
    %51 = vector.load %arg2[%c8, %c0_45, %c0_46] : memref<9x128x128xf32, #tpu.memory_space<vmem>>, vector<1x128x128xf32>
    %52 = vector.shape_cast %51 : vector<1x128x128xf32> to vector<128x128xf32>
    %cst_47 = arith.constant dense<0.000000e+00> : vector<328x128xf32>
    %53 = tpu.matmul %50, %52, %cst_47 {dimension_numbers = #tpu.dot_dimension_numbers<[1], [0], [0], [1], [0, 0, 1, 1], [], []>} : vector<328x128xf32>, vector<128x128xf32>, vector<328x128xf32> -> vector<328x128xf32>
    %54 = arith.addf %48, %53 : vector<328x128xf32>
    %c0_48 = arith.constant 0 : index
    %c0_49 = arith.constant 0 : index
    %55 = vector.load %arg3[%c0_48, %c0_49] : memref<1x128xf32, #tpu.memory_space<vmem>>, vector<1x128xf32>
    %56 = vector.broadcast %55 : vector<1x128xf32> to vector<328x128xf32>
    %57 = arith.addf %54, %56 : vector<328x128xf32>
    %cst_50 = arith.constant 0.000000e+00 : f32
    %58 = vector.broadcast %cst_50 : f32 to vector<328x128xf32>
    %59 = arith.maximumf %57, %58 : vector<328x128xf32>
    %60 = tpu.iota {dimensions = array<i32: 0>} : vector<328x1xi32>
    %61 = arith.sitofp %60 : vector<328x1xi32> to vector<328x1xf32>
    %cst_51 = arith.constant 5.000000e-01 : f32
    %62 = vector.broadcast %cst_51 : f32 to vector<328x1xf32>
    %63 = arith.addf %61, %62 : vector<328x1xf32>
    %cst_52 = arith.constant 0.055555556 : f32
    %64 = vector.broadcast %cst_52 : f32 to vector<328x1xf32>
    %65 = arith.mulf %63, %64 : vector<328x1xf32>
    %66 = math.floor %65 : vector<328x1xf32>
    %cst_53 = arith.constant 1.800000e+01 : f32
    %67 = vector.broadcast %cst_53 : f32 to vector<328x1xf32>
    %68 = arith.mulf %66, %67 : vector<328x1xf32>
    %69 = arith.subf %61, %68 : vector<328x1xf32>
    %cst_54 = arith.constant 1.000000e+00 : f32
    %70 = vector.broadcast %cst_54 : f32 to vector<328x1xf32>
    %71 = arith.cmpf oge, %66, %70 : vector<328x1xf32>
    %cst_55 = arith.constant 1.600000e+01 : f32
    %72 = vector.broadcast %cst_55 : f32 to vector<328x1xf32>
    %73 = arith.cmpf ole, %66, %72 : vector<328x1xf32>
    %74 = arith.andi %71, %73 : vector<328x1xi1>
    %cst_56 = arith.constant 1.000000e+00 : f32
    %75 = vector.broadcast %cst_56 : f32 to vector<328x1xf32>
    %76 = arith.cmpf oge, %69, %75 : vector<328x1xf32>
    %77 = arith.andi %74, %76 : vector<328x1xi1>
    %cst_57 = arith.constant 1.600000e+01 : f32
    %78 = vector.broadcast %cst_57 : f32 to vector<328x1xf32>
    %79 = arith.cmpf ole, %69, %78 : vector<328x1xf32>
    %80 = arith.andi %77, %79 : vector<328x1xi1>
    %cst_58 = arith.constant 0.000000e+00 : f32
    %81 = vector.shape_cast %80 : vector<328x1xi1> to vector<328x1xi1>
    %82 = vector.broadcast %81 : vector<328x1xi1> to vector<328x128xi1>
    %83 = vector.broadcast %cst_58 : f32 to vector<328x128xf32>
    %84 = arith.select %82, %59, %83 : vector<328x128xi1>, vector<328x128xf32>
    %c0_59 = arith.constant 0 : index
    %c0_60 = arith.constant 0 : index
    %85 = vector.load %arg7[%c0_59, %c0_60] : memref<328x128xf32, #tpu.memory_space<vmem>>, vector<328x128xf32>
    tpu.vector_store %arg7[%c0_59, %c0_60], %84 {strides = array<i32>} : memref<328x128xf32, #tpu.memory_space<vmem>>, vector<328x128xf32>,
    %cst_61 = arith.constant 0.000000e+00 : f32
    %86 = vector.broadcast %cst_61 : f32 to vector<288x128xf32>
    %c0_62 = arith.constant 0 : index
    %c0_63 = arith.constant 0 : index
    %87 = vector.load %arg7[%c0_62, %c0_63] : memref<328x128xf32, #tpu.memory_space<vmem>>, vector<288x128xf32>
    %c0_64 = arith.constant 0 : index
    %c0_65 = arith.constant 0 : index
    %c0_66 = arith.constant 0 : index
    %88 = vector.load %arg4[%c0_64, %c0_65, %c0_66] : memref<9x128x128xf32, #tpu.memory_space<vmem>>, vector<1x128x128xf32>
    %89 = vector.shape_cast %88 : vector<1x128x128xf32> to vector<128x128xf32>
    %cst_67 = arith.constant dense<0.000000e+00> : vector<288x128xf32>
    %90 = tpu.matmul %87, %89, %cst_67 {dimension_numbers = #tpu.dot_dimension_numbers<[1], [0], [0], [1], [0, 0, 1, 1], [], []>} : vector<288x128xf32>, vector<128x128xf32>, vector<288x128xf32> -> vector<288x128xf32>
    %91 = arith.addf %86, %90 : vector<288x128xf32>
    %c1_68 = arith.constant 1 : index
    %c0_69 = arith.constant 0 : index
    %92 = vector.load %arg7[%c1_68, %c0_69] : memref<328x128xf32, #tpu.memory_space<vmem>>, vector<288x128xf32>
    %c1_70 = arith.constant 1 : index
    %c0_71 = arith.constant 0 : index
    %c0_72 = arith.constant 0 : index
    %93 = vector.load %arg4[%c1_70, %c0_71, %c0_72] : memref<9x128x128xf32, #tpu.memory_space<vmem>>, vector<1x128x128xf32>
    %94 = vector.shape_cast %93 : vector<1x128x128xf32> to vector<128x128xf32>
    %cst_73 = arith.constant dense<0.000000e+00> : vector<288x128xf32>
    %95 = tpu.matmul %92, %94, %cst_73 {dimension_numbers = #tpu.dot_dimension_numbers<[1], [0], [0], [1], [0, 0, 1, 1], [], []>} : vector<288x128xf32>, vector<128x128xf32>, vector<288x128xf32> -> vector<288x128xf32>
    %96 = arith.addf %91, %95 : vector<288x128xf32>
    %c2_74 = arith.constant 2 : index
    %c0_75 = arith.constant 0 : index
    %97 = vector.load %arg7[%c2_74, %c0_75] : memref<328x128xf32, #tpu.memory_space<vmem>>, vector<288x128xf32>
    %c2_76 = arith.constant 2 : index
    %c0_77 = arith.constant 0 : index
    %c0_78 = arith.constant 0 : index
    %98 = vector.load %arg4[%c2_76, %c0_77, %c0_78] : memref<9x128x128xf32, #tpu.memory_space<vmem>>, vector<1x128x128xf32>
    %99 = vector.shape_cast %98 : vector<1x128x128xf32> to vector<128x128xf32>
    %cst_79 = arith.constant dense<0.000000e+00> : vector<288x128xf32>
    %100 = tpu.matmul %97, %99, %cst_79 {dimension_numbers = #tpu.dot_dimension_numbers<[1], [0], [0], [1], [0, 0, 1, 1], [], []>} : vector<288x128xf32>, vector<128x128xf32>, vector<288x128xf32> -> vector<288x128xf32>
    %101 = arith.addf %96, %100 : vector<288x128xf32>
    %c18_80 = arith.constant 18 : index
    %c0_81 = arith.constant 0 : index
    %102 = vector.load %arg7[%c18_80, %c0_81] : memref<328x128xf32, #tpu.memory_space<vmem>>, vector<288x128xf32>
    %c3_82 = arith.constant 3 : index
    %c0_83 = arith.constant 0 : index
    %c0_84 = arith.constant 0 : index
    %103 = vector.load %arg4[%c3_82, %c0_83, %c0_84] : memref<9x128x128xf32, #tpu.memory_space<vmem>>, vector<1x128x128xf32>
    %104 = vector.shape_cast %103 : vector<1x128x128xf32> to vector<128x128xf32>
    %cst_85 = arith.constant dense<0.000000e+00> : vector<288x128xf32>
    %105 = tpu.matmul %102, %104, %cst_85 {dimension_numbers = #tpu.dot_dimension_numbers<[1], [0], [0], [1], [0, 0, 1, 1], [], []>} : vector<288x128xf32>, vector<128x128xf32>, vector<288x128xf32> -> vector<288x128xf32>
    %106 = arith.addf %101, %105 : vector<288x128xf32>
    %c19_86 = arith.constant 19 : index
    %c0_87 = arith.constant 0 : index
    %107 = vector.load %arg7[%c19_86, %c0_87] : memref<328x128xf32, #tpu.memory_space<vmem>>, vector<288x128xf32>
    %c4_88 = arith.constant 4 : index
    %c0_89 = arith.constant 0 : index
    %c0_90 = arith.constant 0 : index
    %108 = vector.load %arg4[%c4_88, %c0_89, %c0_90] : memref<9x128x128xf32, #tpu.memory_space<vmem>>, vector<1x128x128xf32>
    %109 = vector.shape_cast %108 : vector<1x128x128xf32> to vector<128x128xf32>
    %cst_91 = arith.constant dense<0.000000e+00> : vector<288x128xf32>
    %110 = tpu.matmul %107, %109, %cst_91 {dimension_numbers = #tpu.dot_dimension_numbers<[1], [0], [0], [1], [0, 0, 1, 1], [], []>} : vector<288x128xf32>, vector<128x128xf32>, vector<288x128xf32> -> vector<288x128xf32>
    %111 = arith.addf %106, %110 : vector<288x128xf32>
    %c20_92 = arith.constant 20 : index
    %c0_93 = arith.constant 0 : index
    %112 = vector.load %arg7[%c20_92, %c0_93] : memref<328x128xf32, #tpu.memory_space<vmem>>, vector<288x128xf32>
    %c5_94 = arith.constant 5 : index
    %c0_95 = arith.constant 0 : index
    %c0_96 = arith.constant 0 : index
    %113 = vector.load %arg4[%c5_94, %c0_95, %c0_96] : memref<9x128x128xf32, #tpu.memory_space<vmem>>, vector<1x128x128xf32>
    %114 = vector.shape_cast %113 : vector<1x128x128xf32> to vector<128x128xf32>
    %cst_97 = arith.constant dense<0.000000e+00> : vector<288x128xf32>
    %115 = tpu.matmul %112, %114, %cst_97 {dimension_numbers = #tpu.dot_dimension_numbers<[1], [0], [0], [1], [0, 0, 1, 1], [], []>} : vector<288x128xf32>, vector<128x128xf32>, vector<288x128xf32> -> vector<288x128xf32>
    %116 = arith.addf %111, %115 : vector<288x128xf32>
    %c36_98 = arith.constant 36 : index
    %c0_99 = arith.constant 0 : index
    %117 = vector.load %arg7[%c36_98, %c0_99] : memref<328x128xf32, #tpu.memory_space<vmem>>, vector<288x128xf32>
    %c6_100 = arith.constant 6 : index
    %c0_101 = arith.constant 0 : index
    %c0_102 = arith.constant 0 : index
    %118 = vector.load %arg4[%c6_100, %c0_101, %c0_102] : memref<9x128x128xf32, #tpu.memory_space<vmem>>, vector<1x128x128xf32>
    %119 = vector.shape_cast %118 : vector<1x128x128xf32> to vector<128x128xf32>
    %cst_103 = arith.constant dense<0.000000e+00> : vector<288x128xf32>
    %120 = tpu.matmul %117, %119, %cst_103 {dimension_numbers = #tpu.dot_dimension_numbers<[1], [0], [0], [1], [0, 0, 1, 1], [], []>} : vector<288x128xf32>, vector<128x128xf32>, vector<288x128xf32> -> vector<288x128xf32>
    %121 = arith.addf %116, %120 : vector<288x128xf32>
    %c37_104 = arith.constant 37 : index
    %c0_105 = arith.constant 0 : index
    %122 = vector.load %arg7[%c37_104, %c0_105] : memref<328x128xf32, #tpu.memory_space<vmem>>, vector<288x128xf32>
    %c7_106 = arith.constant 7 : index
    %c0_107 = arith.constant 0 : index
    %c0_108 = arith.constant 0 : index
    %123 = vector.load %arg4[%c7_106, %c0_107, %c0_108] : memref<9x128x128xf32, #tpu.memory_space<vmem>>, vector<1x128x128xf32>
    %124 = vector.shape_cast %123 : vector<1x128x128xf32> to vector<128x128xf32>
    %cst_109 = arith.constant dense<0.000000e+00> : vector<288x128xf32>
    %125 = tpu.matmul %122, %124, %cst_109 {dimension_numbers = #tpu.dot_dimension_numbers<[1], [0], [0], [1], [0, 0, 1, 1], [], []>} : vector<288x128xf32>, vector<128x128xf32>, vector<288x128xf32> -> vector<288x128xf32>
    %126 = arith.addf %121, %125 : vector<288x128xf32>
    %c38_110 = arith.constant 38 : index
    %c0_111 = arith.constant 0 : index
    %127 = vector.load %arg7[%c38_110, %c0_111] : memref<328x128xf32, #tpu.memory_space<vmem>>, vector<288x128xf32>
    %c8_112 = arith.constant 8 : index
    %c0_113 = arith.constant 0 : index
    %c0_114 = arith.constant 0 : index
    %128 = vector.load %arg4[%c8_112, %c0_113, %c0_114] : memref<9x128x128xf32, #tpu.memory_space<vmem>>, vector<1x128x128xf32>
    %129 = vector.shape_cast %128 : vector<1x128x128xf32> to vector<128x128xf32>
    %cst_115 = arith.constant dense<0.000000e+00> : vector<288x128xf32>
    %130 = tpu.matmul %127, %129, %cst_115 {dimension_numbers = #tpu.dot_dimension_numbers<[1], [0], [0], [1], [0, 0, 1, 1], [], []>} : vector<288x128xf32>, vector<128x128xf32>, vector<288x128xf32> -> vector<288x128xf32>
    %131 = arith.addf %126, %130 : vector<288x128xf32>
    %c0_116 = arith.constant 0 : index
    %c0_117 = arith.constant 0 : index
    %132 = vector.load %arg5[%c0_116, %c0_117] : memref<1x128xf32, #tpu.memory_space<vmem>>, vector<1x128xf32>
    %133 = vector.broadcast %132 : vector<1x128xf32> to vector<288x128xf32>
    %134 = arith.addf %131, %133 : vector<288x128xf32>
    %cst_118 = arith.constant 0.000000e+00 : f32
    %135 = vector.broadcast %cst_118 : f32 to vector<288x128xf32>
    %136 = arith.maximumf %134, %135 : vector<288x128xf32>
    %c0_119 = arith.constant 0 : index
    %c0_120 = arith.constant 0 : index
    %c0_121 = arith.constant 0 : index
    %137 = vector.load %arg6[%c0_119, %c0_120, %c0_121] : memref<1x288x128xf32, #tpu.memory_space<vmem>>, vector<1x288x128xf32>
    %138 = vector.shape_cast %137 : vector<1x288x128xf32> to vector<288x128xf32>
    %139 = vector.shape_cast %136 : vector<288x128xf32> to vector<1x288x128xf32>
    tpu.vector_store %arg6[%c0_119, %c0_120, %c0_121], %139 {strides = array<i32>} : memref<1x288x128xf32, #tpu.memory_space<vmem>>, vector<1x288x128xf32>,
    return
  }
  func.func @transform_0(%arg0: i32) -> (i32, i32, i32) {
    %c0_i32 = arith.constant 0 : i32
    %c0_i32_0 = arith.constant 0 : i32
    %c0_i32_1 = arith.constant 0 : i32
    return %arg0, %c0_i32, %c0_i32_0 : i32, i32, i32
  }
  func.func @transform_1(%arg0: i32) -> (i32, i32, i32) {
    %c0_i32 = arith.constant 0 : i32
    %c0_i32_0 = arith.constant 0 : i32
    %c0_i32_1 = arith.constant 0 : i32
    %c0_i32_2 = arith.constant 0 : i32
    return %c0_i32, %c0_i32_0, %c0_i32_1 : i32, i32, i32
  }
  func.func @transform_2(%arg0: i32) -> (i32, i32) {
    %c0_i32 = arith.constant 0 : i32
    %c0_i32_0 = arith.constant 0 : i32
    %c0_i32_1 = arith.constant 0 : i32
    return %c0_i32, %c0_i32_0 : i32, i32
  }
  func.func @transform_3(%arg0: i32) -> (i32, i32, i32) {
    %c0_i32 = arith.constant 0 : i32
    %c0_i32_0 = arith.constant 0 : i32
    %c0_i32_1 = arith.constant 0 : i32
    %c0_i32_2 = arith.constant 0 : i32
    return %c0_i32, %c0_i32_0, %c0_i32_1 : i32, i32, i32
  }
  func.func @transform_4(%arg0: i32) -> (i32, i32) {
    %c0_i32 = arith.constant 0 : i32
    %c0_i32_0 = arith.constant 0 : i32
    %c0_i32_1 = arith.constant 0 : i32
    return %c0_i32, %c0_i32_0 : i32, i32
  }
  func.func @transform_5(%arg0: i32) -> (i32, i32, i32) {
    %c0_i32 = arith.constant 0 : i32
    %c0_i32_0 = arith.constant 0 : i32
    %c0_i32_1 = arith.constant 0 : i32
    return %arg0, %c0_i32, %c0_i32_0 : i32, i32, i32
  }
}

</mosaic_0001>

<bundles_post_ra>
// kernel: tpu_custom_call.1
= control target key start
LH: loop header
LB: loop body
LE: loop exit
PB: predicated region body
PF: predicated region fallthrough
CT: control target
= control target key end

     0   :  { %10 = vsyncpa [#allocation4], 0  ;;  %s15430_s0 = inlined_call_operand.hbm [shape: f32[2,368,128], index: 0, kind: input, shape index: {}]   ;;  %s15431_s1 = inlined_call_operand.hbm [shape: f32[9,128,128], index: 1, kind: input, shape index: {}]   ;;  %s15432_s2 = inlined_call_operand.vmem [shape: f32[1,128], index: 2, kind: input, shape index: {}]   ;;  %s15433_s3 = inlined_call_operand.hbm [shape: f32[9,128,128], index: 3, kind: input, shape index: {}]   ;;  %s15434_s4 = inlined_call_operand.vmem [shape: f32[1,128], index: 4, kind: input, shape index: {}]   ;;  %s15435_s5 = inlined_call_operand.hbm [shape: f32[2,288,128], index: 5, kind: output, shape index: {}]  }
   0x1   :  { %12 = vsyncpa [#allocation4 + $0x1], 0 }
   0x2   :  { %13 = vsyncpa [#allocation7], 0 }
   0x3   :  { %14 = vsyncpa [#allocation5], 0 }
   0x4   :  { %16 = vsyncpa [#allocation5 + $0x1], 0  ;;  %s10965_s18 = smov 0   ;;  %s10967_s19 = smov 0  }
   0x5   :  { %s10969_s20 = smov 0   ;;  %s10971_s21 = smov 0  }
   0x6 LB: > { %s10986_s22 = sadd.s32 4294967295, %s10923_s21   ;;  %s7492_s23 = sadd.s32 4294967294, %s10923_s21   ;;  %s10923_s21 = sphi %s10971_s21, %s15952_s21   ;;  %s10919_s20 = sphi %s10969_s20, %s15951_s20   ;;  %s10915_s19 = sphi %s10967_s19, %s15950_s19   ;;  %s10911_s18 = sphi %s10965_s18, %s15949_s18  }
   0x7   : > { %p42_p0 = scmp.ne.s32.totalorder %s10915_s19, %s10911_s18  ;;  %p15437_p1 = scmp.eq.s32.totalorder %s10986_s22, 0 }
   0x8   : > { %p150_p2 = scmp.eq.s32.totalorder %s10986_s22, 1  ;;  %p156_p3 = scmp.eq.s32.totalorder %s7492_s23, 1 }
   0x9   : > { %p10995_p4 = por %p15437_p1, %p42_p0  ;;  %p7493_p5 = scmp.ge.s32.totalorder %s10923_s21, 1 }
   0xa   : > { %p11000_p6 = por %p156_p3, %p42_p0  ;;  %p163_p7 = scmp.lt.s32.totalorder %s10923_s21, 3 }
   0xb   : > { %s15450_s24 = scalar_select %p10995_p4, 1, 0 }
   0xc   : > { %s15451_s25 = scalar_select %p11000_p6, 1, 0 }
   0xd   : > { %p11005_p8 = pnand %p7493_p5, %p163_p7  ;;  %s10925_s27 = smov [#allocation6]  }
   0xe   : > { %s175_s28 = sshll.u32 %s10925_s27, 4  ;;  %s10926_s30 = smov [#allocation8]   ;;  %s176_s28 = int_to_ptr.vmem [resolvable:$true] %s175_s28 }
   0xf   : > { %s15452_s26 = scalar_select %p11005_p8, 1, 0 }
  0x10   : > { %p10705_p9 = pneg %p11005_p8  ;;  %s191_s6 = sshll.u32 %s10926_s30, 4  ;;  %s192_s6 = int_to_ptr.vmem [resolvable:$true] %s191_s6 }
  0x11   : > { %s10786_s7 = scalar_lea.vmem %s176_s28, 18432  ;;  %p10794_p5 = scmp.lt.s32.totalorder %s176_s28, %s176_s28 }
  0x12   : > { %p11014_p11 = pnand %p10705_p9, %p15437_p1  ;;  %p10787_p13 = scmp.ne.s32.totalorder %s176_s28, %s10786_s7 }
  0x13   : > { %p10795_p7 = scmp.lt.s32.totalorder %s10786_s7, %s10786_s7 }
  0x14   : > { %p10777_p12 = pneg %p11014_p11 }
  0x15   : > { %p10796_p10 = por %p10795_p7, %p10794_p5 }
  0x16   : > { %p10789_p0 = pnand %p10787_p13, %p10777_p12 }
  0x18   : > { %p10790_p3 = pneg %p10789_p0 }
  0x1a   : > { %p10797_p9 = pnand %p10796_p10, %p10790_p3 }
  0x1c   : > { %10800 = shalt.err (!%p10797_p9)
}
  0x1d   : > { %s15436_s8 = smov 128   ;;  %s10928_s9 = smov 8  }
  0x1e   : > { %10708 = dma.hbm_to_vmem [thread:$0]  (!%p11014_p11), %s15431_s1, 18432, %s176_s28, [#allocation7], %s15436_s8, %s15436_s8, %s10928_s9  }
  0x1f   : > { %s10812_s12 = scalar_lea.vmem %s192_s6, 18432  ;;  %p10820_p10 = scmp.lt.s32.totalorder %s192_s6, %s192_s6 }
  0x20   : > { %p10813_p13 = scmp.ne.s32.totalorder %s192_s6, %s10812_s12  ;;  %p10821_p3 = scmp.lt.s32.totalorder %s10812_s12, %s10812_s12 }
  0x22   : > { %p10815_p0 = pnand %p10813_p13, %p10777_p12  ;;  %p10822_p7 = por %p10821_p3, %p10820_p10 }
  0x24   : > { %p10816_p5 = pneg %p10815_p0 }
  0x26   : > { %p10823_p9 = pnand %p10822_p7, %p10816_p5 }
  0x28   : > { %10826 = shalt.err (!%p10823_p9)
}
  0x29   : > { %10711 = dma.hbm_to_vmem [thread:$0]  (!%p11014_p11), %s15433_s3, 18432, %s192_s6, [#allocation7], %s15436_s8, %s15436_s8, %s10928_s9  }
  0x2a   : > { %s11043_s15 = sadd.s32 1, %s10923_s21   ;;  %s29_s16 = sadd.s32 1, %s10919_s20 }
  0x2b   : > { %s26_s17 = ssub.s32 %s10923_s21, %s11043_s15  ;;  %p36_p12 = scmp.ne.s32.totalorder %s10919_s20, %s10915_s19 }
  0x2c   : > { %p27_p13 = scmp.eq.s32.totalorder %s26_s17, 0  ;;  %p37_p0 = scmp.eq.s32.totalorder %s10923_s21, 0 }
  0x2d   : > { %p11053_p5 = por %p150_p2, %p36_p12  ;;  %p10722_p10 = scmp.lt.s32.totalorder %s10923_s21, 2 }
  0x2e   : > { %s11059_s27 = scalar_select %p27_p13, %s10919_s20, %s29_s16  }
  0x2f   : > { %s15454_s23 = scalar_select %p11053_p5, 1, 0 }
  0x30   : > { %p38_p3 = por %p37_p0, %p36_p12  ;;  %s208_s28 = sand.u32 1, %s10919_s20  }
  0x31   : > { %s10688_s29 = smul.u32 368, %s208_s28  ;;  %s11074_s14 = scalar_lea.sflag [#allocation4], %s208_s28 }
  0x32   : > { %s10689_s30 = smul.u32 5888, %s10923_s21  ;;  %p11063_p11 = pnand %p10722_p10, %p38_p3 }
  0x33   : > { %s212_s12 = scalar_lea.vmem [#allocation3], %s10688_s29 }
  0x34   : > { %s11070_s11 = scalar_lea.hbm %s15430_s0, %s10689_s30  ;;  %s219_s13 = sshll.u32 %s212_s12, 4  ;;  %s11072_s13 = int_to_ptr.vmem [resolvable:$true] %s219_s13 }
  0x35   : > { %s10827_s16 = scalar_lea.hbm %s11070_s11, 5888  ;;  %p10829_p7 = pneg %p11063_p11 }
  0x36   : > { %p10828_p2 = scmp.ne.s32.totalorder %s11070_s11, %s10827_s16  ;;  %s10832_s30 = scalar_lea.hbm %s15430_s0, 11776 }
  0x37   : > { %p10833_p13 = scmp.lt.s32.totalorder %s11070_s11, %s15430_s0  ;;  %p10834_p0 = scmp.lt.s32.totalorder %s10832_s30, %s10827_s16 }
  0x38   : > { %p10830_p9 = pnand %p10829_p7, %p10828_p2 }
  0x39   : > { %p10835_p10 = por %p10834_p0, %p10833_p13 }
  0x3a   : > { %p10831_p12 = pneg %p10830_p9 }
  0x3c   : > { %p10836_p3 = pnand %p10835_p10, %p10831_p12 }
  0x3e   : > { %10839 = shalt.err (!%p10836_p3)
}
  0x3f   : > { %s10840_s28 = scalar_lea.vmem %s11072_s13, 5888  ;;  %s10929_s29 = smov [#allocation3]  }
  0x40   : > { %p10841_p1 = scmp.ne.s32.totalorder %s11072_s13, %s10840_s28  ;;  %s10845_s12 = sshll.u32 %s10929_s29, 4  ;;  %s10846_s12 = int_to_ptr.vmem [resolvable:$false] %s10845_s12 }
  0x41   : > { %s10847_s17 = scalar_lea.vmem %s10846_s12, 11776  ;;  %p10848_p9 = scmp.lt.s32.totalorder %s11072_s13, %s10846_s12 }
  0x42   : > { %p10843_p6 = pnand %p10841_p1, %p10829_p7  ;;  %p10849_p5 = scmp.lt.s32.totalorder %s10847_s17, %s10840_s28 }
  0x44   : > { %p10844_p2 = pneg %p10843_p6  ;;  %p10850_p4 = por %p10849_p5, %p10848_p9 }
  0x46   : > { %p10851_p8 = pnand %p10850_p4, %p10844_p2 }
  0x48   : > { %10854 = shalt.err (!%p10851_p8)
}
  0x49   : > { %s15456_s8 = smov 128   ;;  %p15457_p1 = scmp.ne.s32.totalorder %s15452_s26, 0 }
  0x4a   : > { %10715 = dma.hbm_to_vmem [thread:$0]  (!%p11063_p11), %s11070_s11, 5888, %s11072_s13, %s11074_s14, %s15456_s8, %s15456_s8, %s10928_s9  }
  0x4b   : > { %231 = sbr.rel (%p15457_p1) target bundleno = 1681 (0x691), region = 40 }
  0x50   : > { %s11101_s16 = sand.u32 1, %s10915_s19   ;;  %p15458_p4 = scmp.ne.s32.totalorder %s15450_s24, 0 }
  0x51   : > { %s10690_s7 = smul.u32 368, %s11101_s16  ;;  %s234_s30 = scalar_lea.sflag [#allocation4], %s11101_s16 }
  0x53   : > { %s11105_s10 = scalar_lea.vmem [#allocation3], %s10690_s7 }
  0x54   : > { %10898 = dma.done.wait (%p15458_p4), %s234_s30, 5888  }
  0x55   : > { %10900 = vsyncadd (%p15458_p4), %s234_s30, 4294961408  ;;  %p15459_p6 = scmp.eq.s32.totalorder %s10986_s22, 0 }
  0x57   : > { %10902 = dma.done.wait (%p15459_p6), [#allocation7], 36864   ;;  %p15460_p8 = pmov %p15459_p6 }
  0x58   : > { %v10930_v0 = vmov 0.0   ;;  %vm10931_vm0 = vmmov 0   ;;  %v386_v1 = vld [vmem:[#allocation6 + $0xf8] sm:$0xff]  ;;  %v385_v3 = vld [vmem:[#allocation6 + $0xf0] sm:$0xff]  ;;  %v384_v5 = vld [vmem:[#allocation6 + $0xe8] sm:$0xff]  ;;  %s10691_s14 = smul.u32 288, %s11101_s16 }
  0x59   : > { %10904 = vsyncadd (%p15460_p8), [#allocation7], 4294930432  ;;  %8487 = vmatprep.subr.mxu0 %v10930_v0  ;;  %8642 = vmatprep.subr.mxu1 %v10930_v0  ;;  %v328_v2 = vld [vmem:[#allocation6 + $0x78] sm:$0xff]  ;;  %v327_v4 = vld [vmem:[#allocation6 + $0x70] sm:$0xff]  ;;  %s10692_s17 = smul.u32 4608, %s10986_s22  ;;  %s7387_s22 = scalar_lea.sflag [#allocation5], %s11101_s16 }
  0x5a   : > { %8519 = vmatprep.mubr.msk.f32.mxu0 %vm10931_vm0, %v10930_v0  ;;  %8674 = vmatprep.mubr.msk.f32.mxu1 %vm10931_vm0, %v10930_v0  ;;  %v326_v6 = vld [vmem:[#allocation6 + $0x68] sm:$0xff]  ;;  %v383_v7 = vld [vmem:[#allocation6 + $0xe0] sm:$0xff]  ;;  %v382_v9 = vld [vmem:[#allocation6 + $0xd8] sm:$0xff]  ;;  %s15173_s12 = scalar_lea.vmem [#allocation9], %s10691_s14  ;;  %p15946_p11 = scmp.ne.s32.totalorder %s15454_s23, 0 }
  0x5b   : > { %8488 = vmatpush3.msra.mxu0 %v386_v1  ;;  %8643 = vmatpush3.msra.mxu1 %v328_v2  ;;  %v325_v8 = vld [vmem:[#allocation6 + $0x60] sm:$0xff]  ;;  %v324_v10 = vld [vmem:[#allocation6 + $0x58] sm:$0xff]  ;;  %v381_v11 = vld [vmem:[#allocation6 + $0xd0] sm:$0xff]  ;;  %s7400_s8 = sshll.u32 %s15173_s12, 4  ;;  %s10932_s26 = smov [#allocation9]   ;;  %s15386_s8 = int_to_ptr.vmem [resolvable:$true] %s7400_s8 }
  0x5c   : > { %8489 = vmatprep.subr.mxu0 %v10930_v0  ;;  %8644 = vmatprep.subr.mxu1 %v10930_v0  ;;  %v323_v12 = vld [vmem:[#allocation6 + $0x50] sm:$0xff]  ;;  %v380_v13 = vld [vmem:[#allocation6 + $0xc8] sm:$0xff]  ;;  %v379_v15 = vld [vmem:[#allocation6 + $0xc0] sm:$0xff]  ;;  %s10855_s24 = scalar_lea.vmem %s15386_s8, 4608  ;;  %s10859_s9 = sshll.u32 %s10932_s26, 4  ;;  %s10860_s9 = int_to_ptr.vmem [resolvable:$false] %s10859_s9 }
  0x5d   : > { %8490 = vmatpush3.msra.mxu0 %v385_v3  ;;  %8645 = vmatpush3.msra.mxu1 %v327_v4  ;;  %v322_v14 = vld [vmem:[#allocation6 + $0x48] sm:$0xff]  ;;  %v321_v16 = vld [vmem:[#allocation6 + $0x40] sm:$0xff]  ;;  %v378_v17 = vld [vmem:[#allocation6 + $0xb8] sm:$0xff]  ;;  %p10856_p5 = scmp.ne.s32.totalorder %s15386_s8, %s10855_s24  ;;  %s10861_s6 = scalar_lea.vmem %s10860_s9, 9216 }
  0x5e   : > { %8491 = vmatprep.subr.mxu0 %v10930_v0  ;;  %8646 = vmatprep.subr.mxu1 %v10930_v0  ;;  %v320_v18 = vld [vmem:[#allocation6 + $0x38] sm:$0xff]  ;;  %v377_v19 = vld [vmem:[#allocation6 + $0xb0] sm:$0xff]  ;;  %v376_v21 = vld [vmem:[#allocation6 + $0xa8] sm:$0xff]  ;;  %p10862_p13 = scmp.lt.s32.totalorder %s15386_s8, %s10860_s9  ;;  %p10863_p0 = scmp.lt.s32.totalorder %s10861_s6, %s10855_s24 }
  0x5f   : > { %8492 = vmatpush3.msra.mxu0 %v384_v5  ;;  %8647 = vmatpush3.msra.mxu1 %v326_v6  ;;  %v319_v20 = vld [vmem:[#allocation6 + $0x30] sm:$0xff]  ;;  %v318_v22 = vld [vmem:[#allocation6 + $0x28] sm:$0xff]  ;;  %v375_v23 = vld [vmem:[#allocation6 + $0xa0] sm:$0xff]  ;;  %p10857_p7 = pnand %p10856_p5, %p15946_p11 }
  0x60   : > { %8493 = vmatprep.subr.mxu0 %v10930_v0  ;;  %8648 = vmatprep.subr.mxu1 %v10930_v0  ;;  %v317_v24 = vld [vmem:[#allocation6 + $0x20] sm:$0xff]  ;;  %v374_v25 = vld [vmem:[#allocation6 + $0x98] sm:$0xff]  ;;  %v373_v27 = vld [vmem:[#allocation6 + $0x90] sm:$0xff]  ;;  %p10864_p10 = por %p10863_p0, %p10862_p13 }
  0x61   : > { %8494 = vmatpush3.msra.mxu0 %v383_v7  ;;  %8649 = vmatpush3.msra.mxu1 %v325_v8  ;;  %v316_v26 = vld [vmem:[#allocation6 + $0x18] sm:$0xff]  ;;  %v315_v28 = vld [vmem:[#allocation6 + $0x10] sm:$0xff]  ;;  %v372_v29 = vld [vmem:[#allocation6 + $0x88] sm:$0xff]  ;;  %p10858_p12 = pneg %p10857_p7 }
  0x62   : > { %8495 = vmatprep.subr.mxu0 %v10930_v0  ;;  %8650 = vmatprep.subr.mxu1 %v10930_v0  ;;  %v314_v30 = vld [vmem:[#allocation6 + $0x8] sm:$0xff]  ;;  %v371_v31 = vld [vmem:[#allocation6 + $0x80] sm:$0xff]  ;;  %v984_v35 = vld [vmem:[#allocation6 + $0x178] sm:$0xff] }
  0x63   : > { %8496 = vmatpush3.msra.mxu0 %v382_v9  ;;  %8651 = vmatpush3.msra.mxu1 %v324_v10  ;;  %v313_v32 = vld [vmem:[#allocation6] sm:$0xff]  ;;  %v273_v37 = vld [vmem:[%s11105_s10 + $0x8] sm:$0xff]  ;;  %v983_v38 = vld [vmem:[#allocation6 + $0x170] sm:$0xff]  ;;  %p10865_p3 = pnand %p10864_p10, %p10858_p12 }
  0x64   : > { %8497 = vmatprep.subr.mxu0 %v10930_v0  ;;  %8652 = vmatprep.subr.mxu1 %v10930_v0  ;;  %v329_v33 = vld [vmem:[%s11105_s10 + $0x1] sm:$0xff]  ;;  %v330_v36 = vld [vmem:[%s11105_s10 + $0x9] sm:$0xff]  ;;  %v331_v39 = vld [vmem:[%s11105_s10 + $0x11] sm:$0xff] }
  0x65   : > { %8498 = vmatpush3.msra.mxu0 %v381_v11  ;;  %8653 = vmatpush3.msra.mxu1 %v323_v12  ;;  %v272_v34 = vld [vmem:[%s11105_s10] sm:$0xff]  ;;  %v274_v40 = vld [vmem:[%s11105_s10 + $0x10] sm:$0xff]  ;;  %v1353_v41 = vld [vmem:[#allocation6 + $0x1f8] sm:$0xff] }
  0x66   : > { %8499 = vmatprep.subr.mxu0 %v10930_v0  ;;  %8654 = vmatprep.subr.mxu1 %v10930_v0  ;;  %v982_v42 = vld [vmem:[#allocation6 + $0x168] sm:$0xff]  ;;  %v1352_v44 = vld [vmem:[#allocation6 + $0x1f0] sm:$0xff]  ;;  %v981_v46 = vld [vmem:[#allocation6 + $0x160] sm:$0xff] }
  0x67   : > { %8500 = vmatpush3.msra.mxu0 %v380_v13  ;;  %8655 = vmatpush3.msra.mxu1 %v322_v14  ;;  %v332_v43 = vld [vmem:[%s11105_s10 + $0x19] sm:$0xff]  ;;  %v333_v48 = vld [vmem:[%s11105_s10 + $0x21] sm:$0xff]  ;;  %v334_v52 = vld [vmem:[%s11105_s10 + $0x29] sm:$0xff] }
  0x68   : > { %8501 = vmatprep.subr.mxu0 %v10930_v0  ;;  %8656 = vmatprep.subr.mxu1 %v10930_v0  ;;  %v275_v45 = vld [vmem:[%s11105_s10 + $0x18] sm:$0xff]  ;;  %v276_v49 = vld [vmem:[%s11105_s10 + $0x20] sm:$0xff]  ;;  %v277_v53 = vld [vmem:[%s11105_s10 + $0x28] sm:$0xff] }
  0x69   : > { %8502 = vmatpush3.msra.mxu0 %v379_v15  ;;  %8657 = vmatpush3.msra.mxu1 %v321_v16  ;;  %v1351_v47 = vld [vmem:[#allocation6 + $0x1e8] sm:$0xff]  ;;  %v980_v50 = vld [vmem:[#allocation6 + $0x158] sm:$0xff]  ;;  %v1350_v51 = vld [vmem:[#allocation6 + $0x1e0] sm:$0xff] }
  0x6a   : > { %8503 = vmatprep.subr.mxu0 %v10930_v0  ;;  %8658 = vmatprep.subr.mxu1 %v10930_v0  ;;  %v979_v54 = vld [vmem:[#allocation6 + $0x150] sm:$0xff]  ;;  %v1349_v55 = vld [vmem:[#allocation6 + $0x1d8] sm:$0xff]  ;;  %v978_v58 = vld [vmem:[#allocation6 + $0x148] sm:$0xff] }
  0x6b   : > { %8504 = vmatpush3.msra.mxu0 %v378_v17  ;;  %8659 = vmatpush3.msra.mxu1 %v320_v18  ;;  %v335_v56 = vld [vmem:[%s11105_s10 + $0x31] sm:$0xff]  ;;  %v336_v60 = vld [vmem:[%s11105_s10 + $0x39] sm:$0xff]  ;;  %v337_v1 = vld [vmem:[%s11105_s10 + $0x41] sm:$0xff] }
  0x6c   : > { %8505 = vmatprep.subr.mxu0 %v10930_v0  ;;  %8660 = vmatprep.subr.mxu1 %v10930_v0  ;;  %v278_v57 = vld [vmem:[%s11105_s10 + $0x30] sm:$0xff]  ;;  %v279_v61 = vld [vmem:[%s11105_s10 + $0x38] sm:$0xff]  ;;  %v280_v2 = vld [vmem:[%s11105_s10 + $0x40] sm:$0xff] }
  0x6d   : > { %8506 = vmatpush3.msra.mxu0 %v377_v19  ;;  %8661 = vmatpush3.msra.mxu1 %v319_v20  ;;  %v1348_v59 = vld [vmem:[#allocation6 + $0x1d0] sm:$0xff]  ;;  %v977_v62 = vld [vmem:[#allocation6 + $0x140] sm:$0xff]  ;;  %v1347_v63 = vld [vmem:[#allocation6 + $0x1c8] sm:$0xff] }
  0x6e   : > { %8507 = vmatprep.subr.mxu0 %v10930_v0  ;;  %8662 = vmatprep.subr.mxu1 %v10930_v0  ;;  %v976_v3 = vld [vmem:[#allocation6 + $0x138] sm:$0xff]  ;;  %v1346_v4 = vld [vmem:[#allocation6 + $0x1c0] sm:$0xff]  ;;  %v975_v7 = vld [vmem:[#allocation6 + $0x130] sm:$0xff] }
  0x6f   : > { %8508 = vmatpush3.msra.mxu0 %v376_v21  ;;  %8663 = vmatpush3.msra.mxu1 %v318_v22  ;;  %v338_v5 = vld [vmem:[%s11105_s10 + $0x49] sm:$0xff]  ;;  %v339_v9 = vld [vmem:[%s11105_s10 + $0x51] sm:$0xff]  ;;  %v340_v13 = vld [vmem:[%s11105_s10 + $0x59] sm:$0xff] }
  0x70   : > { %8509 = vmatprep.subr.mxu0 %v10930_v0  ;;  %8664 = vmatprep.subr.mxu1 %v10930_v0  ;;  %v281_v6 = vld [vmem:[%s11105_s10 + $0x48] sm:$0xff]  ;;  %v282_v10 = vld [vmem:[%s11105_s10 + $0x50] sm:$0xff]  ;;  %v283_v14 = vld [vmem:[%s11105_s10 + $0x58] sm:$0xff] }
  0x71   : > { %8510 = vmatpush3.msra.mxu0 %v375_v23  ;;  %8665 = vmatpush3.msra.mxu1 %v317_v24  ;;  %v1345_v8 = vld [vmem:[#allocation6 + $0x1b8] sm:$0xff]  ;;  %v974_v11 = vld [vmem:[#allocation6 + $0x128] sm:$0xff]  ;;  %v1344_v12 = vld [vmem:[#allocation6 + $0x1b0] sm:$0xff] }
  0x72   : > { %8511 = vmatprep.subr.mxu0 %v10930_v0  ;;  %8666 = vmatprep.subr.mxu1 %v10930_v0  ;;  %v973_v15 = vld [vmem:[#allocation6 + $0x120] sm:$0xff]  ;;  %v1343_v16 = vld [vmem:[#allocation6 + $0x1a8] sm:$0xff]  ;;  %v972_v19 = vld [vmem:[#allocation6 + $0x118] sm:$0xff] }
  0x73   : > { %8512 = vmatpush3.msra.mxu0 %v374_v25  ;;  %8667 = vmatpush3.msra.mxu1 %v316_v26  ;;  %v341_v17 = vld [vmem:[%s11105_s10 + $0x61] sm:$0xff]  ;;  %v342_v21 = vld [vmem:[%s11105_s10 + $0x69] sm:$0xff]  ;;  %v343_v25 = vld [vmem:[%s11105_s10 + $0x71] sm:$0xff] }
  0x74   : > { %8513 = vmatprep.subr.mxu0 %v10930_v0  ;;  %8668 = vmatprep.subr.mxu1 %v10930_v0  ;;  %v284_v18 = vld [vmem:[%s11105_s10 + $0x60] sm:$0xff]  ;;  %v285_v22 = vld [vmem:[%s11105_s10 + $0x68] sm:$0xff]  ;;  %v286_v26 = vld [vmem:[%s11105_s10 + $0x70] sm:$0xff] }
  0x75   : > { %8514 = vmatpush3.msra.mxu0 %v373_v27  ;;  %8669 = vmatpush3.msra.mxu1 %v315_v28  ;;  %v1342_v20 = vld [vmem:[#allocation6 + $0x1a0] sm:$0xff]  ;;  %v971_v23 = vld [vmem:[#allocation6 + $0x110] sm:$0xff]  ;;  %v1341_v24 = vld [vmem:[#allocation6 + $0x198] sm:$0xff] }
  0x76   : > { %8515 = vmatprep.subr.mxu0 %v10930_v0  ;;  %8670 = vmatprep.subr.mxu1 %v10930_v0  ;;  %v970_v27 = vld [vmem:[#allocation6 + $0x108] sm:$0xff]  ;;  %v1340_v28 = vld [vmem:[#allocation6 + $0x190] sm:$0xff] }
  0x77   : > { %8516 = vmatpush3.msra.mxu0 %v372_v29  ;;  %8671 = vmatpush3.msra.mxu1 %v314_v30  ;;  %v344_v29 = vld [vmem:[%s11105_s10 + $0x79] sm:$0xff] }
  0x78   : > { %8517 = vmatprep.subr.mxu0 %v10930_v0  ;;  %8672 = vmatprep.subr.mxu1 %v10930_v0  ;;  %v287_v30 = vld [vmem:[%s11105_s10 + $0x78] sm:$0xff] }
  0x79   : > { %8518 = vmatpush3.msra.mxu0 %v371_v31  ;;  %8673 = vmatpush3.msra.mxu1 %v313_v32  ;;  %v969_v31 = vld [vmem:[#allocation6 + $0x100] sm:$0xff]  ;;  %v1339_v32 = vld [vmem:[#allocation6 + $0x188] sm:$0xff] }
  0x7a   : > { %8520 = vmatmul.mubr.f32.vlgmr.msra.gmra.mxu0 %v329_v33  ;;  %8797 = vmatprep.subr.mxu0 %v10930_v0  ;;  %v345_v33 = vld [vmem:[%s11105_s10 + $0x81] sm:$0xff] }
  0x7b   : > { %8675 = vmatmul.mubr.f32.vlgmr.msra.gmra.mxu1 %v272_v34  ;;  %8798 = vmatpush3.msra.mxu0 %v984_v35  ;;  %v288_v34 = vld [vmem:[%s11105_s10 + $0x80] sm:$0xff] }
  0x7c   : > { %8522 = vmatprep.mubr.msk.f32.mxu0 %vm10931_vm0, %v10930_v0  ;;  %8677 = vmatprep.mubr.msk.f32.mxu1 %vm10931_vm0, %v10930_v0  ;;  %v1338_v35 = vld [vmem:[#allocation6 + $0x180] sm:$0xff] }
  0x7d   : > { %8799 = vmatprep.subr.mxu0 %v10930_v0  ;;  %8952 = vmatprep.subr.mxu1 %v10930_v0 }
  0x7e   : > { %8523 = vmatmul.mubr.f32.gmra.mxu0 %v330_v36  ;;  %8953 = vmatpush3.msra.mxu1 %v1353_v41  ;;  %v346_v36 = vld [vmem:[%s11105_s10 + $0x89] sm:$0xff]  ;;  %v291_v41 = vld [vmem:[%s11105_s10 + $0x98] sm:$0xff] }
  0x7f   : > { %8678 = vmatmul.mubr.f32.gmra.mxu1 %v273_v37  ;;  %8525 = vmatprep.mubr.msk.f32.mxu0 %vm10931_vm0, %v10930_v0  ;;  %v289_v37 = vld [vmem:[%s11105_s10 + $0x88] sm:$0xff] }
  0x80   : > { %8680 = vmatprep.mubr.msk.f32.mxu1 %vm10931_vm0, %v10930_v0  ;;  %8800 = vmatpush3.msra.mxu0 %v983_v38  ;;  %v347_v38 = vld [vmem:[%s11105_s10 + $0x91] sm:$0xff] }
  0x81   : > { %8801 = vmatprep.subr.mxu0 %v10930_v0  ;;  %8954 = vmatprep.subr.mxu1 %v10930_v0 }
  0x82   : > { %8526 = vmatmul.mubr.f32.gmra.mxu0 %v331_v39  ;;  %8955 = vmatpush3.msra.mxu1 %v1352_v44  ;;  %v290_v39 = vld [vmem:[%s11105_s10 + $0x90] sm:$0xff] }
  0x83   : > { %8681 = vmatmul.mubr.f32.gmra.mxu1 %v274_v40  ;;  %8528 = vmatprep.mubr.msk.f32.mxu0 %vm10931_vm0, %v10930_v0  ;;  %v348_v40 = vld [vmem:[%s11105_s10 + $0x99] sm:$0xff]  ;;  %v350_v44 = vld [vmem:[%s11105_s10 + $0xa9] sm:$0xff] }
  0x84   : > { %8683 = vmatprep.mubr.msk.f32.mxu1 %vm10931_vm0, %v10930_v0  ;;  %8802 = vmatpush3.msra.mxu0 %v982_v42  ;;  %v349_v42 = vld [vmem:[%s11105_s10 + $0xa1] sm:$0xff] }
  0x85   : > { %8803 = vmatprep.subr.mxu0 %v10930_v0  ;;  %8956 = vmatprep.subr.mxu1 %v10930_v0 }
  0x86   : > { %8529 = vmatmul.mubr.f32.gmra.mxu0 %v332_v43  ;;  %8957 = vmatpush3.msra.mxu1 %v1351_v47  ;;  %v292_v43 = vld [vmem:[%s11105_s10 + $0xa0] sm:$0xff]  ;;  %v294_v47 = vld [vmem:[%s11105_s10 + $0xb0] sm:$0xff] }
  0x87   : > { %8684 = vmatmul.mubr.f32.gmra.mxu1 %v275_v45  ;;  %8531 = vmatprep.mubr.msk.f32.mxu0 %vm10931_vm0, %v10930_v0  ;;  %v293_v45 = vld [vmem:[%s11105_s10 + $0xa8] sm:$0xff] }
  0x88   : > { %8686 = vmatprep.mubr.msk.f32.mxu1 %vm10931_vm0, %v10930_v0  ;;  %8804 = vmatpush3.msra.mxu0 %v981_v46  ;;  %v351_v46 = vld [vmem:[%s11105_s10 + $0xb1] sm:$0xff] }
  0x89   : > { %8805 = vmatprep.subr.mxu0 %v10930_v0  ;;  %8958 = vmatprep.subr.mxu1 %v10930_v0 }
  0x8a   : > { %8532 = vmatmul.mubr.f32.gmra.mxu0 %v333_v48  ;;  %8959 = vmatpush3.msra.mxu1 %v1350_v51  ;;  %v352_v48 = vld [vmem:[%s11105_s10 + $0xb9] sm:$0xff] }
  0x8b   : > { %8687 = vmatmul.mubr.f32.gmra.mxu1 %v276_v49  ;;  %8534 = vmatprep.mubr.msk.f32.mxu0 %vm10931_vm0, %v10930_v0  ;;  %v295_v49 = vld [vmem:[%s11105_s10 + $0xb8] sm:$0xff]  ;;  %v296_v51 = vld [vmem:[%s11105_s10 + $0xc0] sm:$0xff] }
  0x8c   : > { %8689 = vmatprep.mubr.msk.f32.mxu1 %vm10931_vm0, %v10930_v0  ;;  %8806 = vmatpush3.msra.mxu0 %v980_v50  ;;  %v353_v50 = vld [vmem:[%s11105_s10 + $0xc1] sm:$0xff] }
  0x8d   : > { %8807 = vmatprep.subr.mxu0 %v10930_v0  ;;  %8960 = vmatprep.subr.mxu1 %v10930_v0 }
  0x8e   : > { %8535 = vmatmul.mubr.f32.gmra.mxu0 %v334_v52  ;;  %8961 = vmatpush3.msra.mxu1 %v1349_v55  ;;  %v354_v52 = vld [vmem:[%s11105_s10 + $0xc9] sm:$0xff] }
  0x8f   : > { %8690 = vmatmul.mubr.f32.gmra.mxu1 %v277_v53  ;;  %8537 = vmatprep.mubr.msk.f32.mxu0 %vm10931_vm0, %v10930_v0  ;;  %v297_v53 = vld [vmem:[%s11105_s10 + $0xc8] sm:$0xff]  ;;  %v298_v55 = vld [vmem:[%s11105_s10 + $0xd0] sm:$0xff] }
  0x90   : > { %8692 = vmatprep.mubr.msk.f32.mxu1 %vm10931_vm0, %v10930_v0  ;;  %8808 = vmatpush3.msra.mxu0 %v979_v54  ;;  %v355_v54 = vld [vmem:[%s11105_s10 + $0xd1] sm:$0xff] }
  0x91   : > { %8809 = vmatprep.subr.mxu0 %v10930_v0  ;;  %8962 = vmatprep.subr.mxu1 %v10930_v0 }
  0x92   : > { %8538 = vmatmul.mubr.f32.gmra.mxu0 %v335_v56  ;;  %8963 = vmatpush3.msra.mxu1 %v1348_v59  ;;  %v356_v56 = vld [vmem:[%s11105_s10 + $0xd9] sm:$0xff] }
  0x93   : > { %8693 = vmatmul.mubr.f32.gmra.mxu1 %v278_v57  ;;  %8540 = vmatprep.mubr.msk.f32.mxu0 %vm10931_vm0, %v10930_v0  ;;  %v299_v57 = vld [vmem:[%s11105_s10 + $0xd8] sm:$0xff]  ;;  %v300_v59 = vld [vmem:[%s11105_s10 + $0xe0] sm:$0xff] }
  0x94   : > { %8695 = vmatprep.mubr.msk.f32.mxu1 %vm10931_vm0, %v10930_v0  ;;  %8810 = vmatpush3.msra.mxu0 %v978_v58  ;;  %v357_v58 = vld [vmem:[%s11105_s10 + $0xe1] sm:$0xff] }
  0x95   : > { %8811 = vmatprep.subr.mxu0 %v10930_v0  ;;  %8964 = vmatprep.subr.mxu1 %v10930_v0 }
  0x96   : > { %8541 = vmatmul.mubr.f32.gmra.mxu0 %v336_v60  ;;  %8965 = vmatpush3.msra.mxu1 %v1347_v63  ;;  %v358_v60 = vld [vmem:[%s11105_s10 + $0xe9] sm:$0xff] }
  0x97   : > { %8696 = vmatmul.mubr.f32.gmra.mxu1 %v279_v61  ;;  %8543 = vmatprep.mubr.msk.f32.mxu0 %vm10931_vm0, %v10930_v0  ;;  %v301_v61 = vld [vmem:[%s11105_s10 + $0xe8] sm:$0xff]  ;;  %v302_v63 = vld [vmem:[%s11105_s10 + $0xf0] sm:$0xff] }
  0x98   : > { %8698 = vmatprep.mubr.msk.f32.mxu1 %vm10931_vm0, %v10930_v0  ;;  %8812 = vmatpush3.msra.mxu0 %v977_v62  ;;  %v359_v62 = vld [vmem:[%s11105_s10 + $0xf1] sm:$0xff] }
  0x99   : > { %8813 = vmatprep.subr.mxu0 %v10930_v0  ;;  %8966 = vmatprep.subr.mxu1 %v10930_v0 }
  0x9a   : > { %8544 = vmatmul.mubr.f32.gmra.mxu0 %v337_v1  ;;  %8967 = vmatpush3.msra.mxu1 %v1346_v4  ;;  %v360_v1 = vld [vmem:[%s11105_s10 + $0xf9] sm:$0xff] }
  0x9b   : > { %8699 = vmatmul.mubr.f32.gmra.mxu1 %v280_v2  ;;  %8546 = vmatprep.mubr.msk.f32.mxu0 %vm10931_vm0, %v10930_v0  ;;  %v303_v2 = vld [vmem:[%s11105_s10 + $0xf8] sm:$0xff]  ;;  %v304_v4 = vld [vmem:[%s11105_s10 + $0x100] sm:$0xff] }
  0x9c   : > { %8701 = vmatprep.mubr.msk.f32.mxu1 %vm10931_vm0, %v10930_v0  ;;  %8814 = vmatpush3.msra.mxu0 %v976_v3  ;;  %v361_v3 = vld [vmem:[%s11105_s10 + $0x101] sm:$0xff] }
  0x9d   : > { %8815 = vmatprep.subr.mxu0 %v10930_v0  ;;  %8968 = vmatprep.subr.mxu1 %v10930_v0 }
  0x9e   : > { %8547 = vmatmul.mubr.f32.gmra.mxu0 %v338_v5  ;;  %8969 = vmatpush3.msra.mxu1 %v1345_v8  ;;  %v362_v5 = vld [vmem:[%s11105_s10 + $0x109] sm:$0xff] }
  0x9f   : > { %8702 = vmatmul.mubr.f32.gmra.mxu1 %v281_v6  ;;  %8549 = vmatprep.mubr.msk.f32.mxu0 %vm10931_vm0, %v10930_v0  ;;  %v305_v6 = vld [vmem:[%s11105_s10 + $0x108] sm:$0xff]  ;;  %v306_v8 = vld [vmem:[%s11105_s10 + $0x110] sm:$0xff] }
  0xa0   : > { %8704 = vmatprep.mubr.msk.f32.mxu1 %vm10931_vm0, %v10930_v0  ;;  %8816 = vmatpush3.msra.mxu0 %v975_v7  ;;  %v363_v7 = vld [vmem:[%s11105_s10 + $0x111] sm:$0xff] }
  0xa1   : > { %8817 = vmatprep.subr.mxu0 %v10930_v0  ;;  %8970 = vmatprep.subr.mxu1 %v10930_v0 }
  0xa2   : > { %8550 = vmatmul.mubr.f32.gmra.mxu0 %v339_v9  ;;  %8971 = vmatpush3.msra.mxu1 %v1344_v12  ;;  %v364_v9 = vld [vmem:[%s11105_s10 + $0x119] sm:$0xff] }
  0xa3   : > { %8705 = vmatmul.mubr.f32.gmra.mxu1 %v282_v10  ;;  %8552 = vmatprep.mubr.msk.f32.mxu0 %vm10931_vm0, %v10930_v0  ;;  %v307_v10 = vld [vmem:[%s11105_s10 + $0x118] sm:$0xff]  ;;  %v308_v12 = vld [vmem:[%s11105_s10 + $0x120] sm:$0xff] }
  0xa4   : > { %8707 = vmatprep.mubr.msk.f32.mxu1 %vm10931_vm0, %v10930_v0  ;;  %8818 = vmatpush3.msra.mxu0 %v974_v11  ;;  %v365_v11 = vld [vmem:[%s11105_s10 + $0x121] sm:$0xff] }
  0xa5   : > { %8819 = vmatprep.subr.mxu0 %v10930_v0  ;;  %8972 = vmatprep.subr.mxu1 %v10930_v0 }
  0xa6   : > { %8553 = vmatmul.mubr.f32.gmra.mxu0 %v340_v13  ;;  %8973 = vmatpush3.msra.mxu1 %v1343_v16  ;;  %v366_v13 = vld [vmem:[%s11105_s10 + $0x129] sm:$0xff] }
  0xa7   : > { %8708 = vmatmul.mubr.f32.gmra.mxu1 %v283_v14  ;;  %8555 = vmatprep.mubr.msk.f32.mxu0 %vm10931_vm0, %v10930_v0  ;;  %v309_v14 = vld [vmem:[%s11105_s10 + $0x128] sm:$0xff]  ;;  %v310_v16 = vld [vmem:[%s11105_s10 + $0x130] sm:$0xff] }
  0xa8   : > { %8710 = vmatprep.mubr.msk.f32.mxu1 %vm10931_vm0, %v10930_v0  ;;  %8820 = vmatpush3.msra.mxu0 %v973_v15  ;;  %v367_v15 = vld [vmem:[%s11105_s10 + $0x131] sm:$0xff] }
  0xa9   : > { %8821 = vmatprep.subr.mxu0 %v10930_v0  ;;  %8974 = vmatprep.subr.mxu1 %v10930_v0 }
  0xaa   : > { %8556 = vmatmul.mubr.f32.gmra.mxu0 %v341_v17  ;;  %8975 = vmatpush3.msra.mxu1 %v1342_v20  ;;  %v368_v17 = vld [vmem:[%s11105_s10 + $0x139] sm:$0xff] }
  0xab   : > { %8711 = vmatmul.mubr.f32.gmra.mxu1 %v284_v18  ;;  %8558 = vmatprep.mubr.msk.f32.mxu0 %vm10931_vm0, %v10930_v0  ;;  %v311_v18 = vld [vmem:[%s11105_s10 + $0x138] sm:$0xff]  ;;  %v312_v20 = vld [vmem:[%s11105_s10 + $0x140] sm:$0xff] }
  0xac   : > { %8713 = vmatprep.mubr.msk.f32.mxu1 %vm10931_vm0, %v10930_v0  ;;  %8822 = vmatpush3.msra.mxu0 %v972_v19  ;;  %v369_v19 = vld [vmem:[%s11105_s10 + $0x141] sm:$0xff] }
  0xad   : > { %8823 = vmatprep.subr.mxu0 %v10930_v0  ;;  %8976 = vmatprep.subr.mxu1 %v10930_v0 }
  0xae   : > { %8559 = vmatmul.mubr.f32.gmra.mxu0 %v342_v21  ;;  %8977 = vmatpush3.msra.mxu1 %v1341_v24  ;;  %v927_v21 = vld [vmem:[%s11105_s10 + $0x2] sm:$0xff]  ;;  %v928_v24 = vld [vmem:[%s11105_s10 + $0xa] sm:$0xff] }
  0xaf   : > { %8714 = vmatmul.mubr.f32.gmra.mxu1 %v285_v22  ;;  %8561 = vmatprep.mubr.msk.f32.mxu0 %vm10931_vm0, %v10930_v0  ;;  %v1722_v22 = vld [vmem:[#allocation6 + $0x278] sm:$0xff] }
  0xb0   : > { %8716 = vmatprep.mubr.msk.f32.mxu1 %vm10931_vm0, %v10930_v0  ;;  %8824 = vmatpush3.msra.mxu0 %v971_v23  ;;  %v1296_v23 = vld [vmem:[%s11105_s10 + $0x12] sm:$0xff] }
  0xb1   : > { %8825 = vmatprep.subr.mxu0 %v10930_v0  ;;  %8978 = vmatprep.subr.mxu1 %v10930_v0 }
  0xb2   : > { %8562 = vmatmul.mubr.f32.gmra.mxu0 %v343_v25  ;;  %8979 = vmatpush3.msra.mxu1 %v1340_v28  ;;  %v1297_v25 = vld [vmem:[%s11105_s10 + $0x1a] sm:$0xff] }
  0xb3   : > { %8717 = vmatmul.mubr.f32.gmra.mxu1 %v286_v26  ;;  %8564 = vmatprep.mubr.msk.f32.mxu0 %vm10931_vm0, %v10930_v0  ;;  %v1721_v26 = vld [vmem:[#allocation6 + $0x270] sm:$0xff]  ;;  %v1720_v28 = vld [vmem:[#allocation6 + $0x268] sm:$0xff] }
  0xb4   : > { %8719 = vmatprep.mubr.msk.f32.mxu1 %vm10931_vm0, %v10930_v0  ;;  %8826 = vmatpush3.msra.mxu0 %v970_v27  ;;  %v1298_v27 = vld [vmem:[%s11105_s10 + $0x22] sm:$0xff] }
  0xb5   : > { %8827 = vmatprep.subr.mxu0 %v10930_v0  ;;  %8980 = vmatprep.subr.mxu1 %v10930_v0 }
  0xb6   : > { %8565 = vmatmul.mubr.f32.gmra.mxu0 %v344_v29  ;;  %8981 = vmatpush3.msra.mxu1 %v1339_v32  ;;  %v2091_v29 = vld [vmem:[#allocation6 + $0x2f8] sm:$0xff]  ;;  %v1719_v32 = vld [vmem:[#allocation6 + $0x260] sm:$0xff] }
  0xb7   : > { %8720 = vmatmul.mubr.f32.gmra.mxu1 %v287_v30  ;;  %8567 = vmatprep.mubr.msk.f32.mxu0 %vm10931_vm0, %v10930_v0  ;;  %v2090_v30 = vld [vmem:[#allocation6 + $0x2f0] sm:$0xff] }
  0xb8   : > { %8722 = vmatprep.mubr.msk.f32.mxu1 %vm10931_vm0, %v10930_v0  ;;  %8828 = vmatpush3.msra.mxu0 %v969_v31  ;;  %v1299_v31 = vld [vmem:[%s11105_s10 + $0x2a] sm:$0xff] }
  0xb9   : > { %9107 = vmatprep.subr.mxu0 %v10930_v0  ;;  %8982 = vmatprep.subr.mxu1 %v10930_v0 }
  0xba   : > { %8568 = vmatmul.mubr.f32.gmra.mxu0 %v345_v33  ;;  %8983 = vmatpush3.msra.mxu1 %v1338_v35  ;;  %v2089_v33 = vld [vmem:[#allocation6 + $0x2e8] sm:$0xff]  ;;  %v1718_v35 = vld [vmem:[#allocation6 + $0x258] sm:$0xff] }
  0xbb   : > { %8723 = vmatmul.mubr.f32.gmra.mxu1 %v288_v34  ;;  %8570 = vmatprep.mubr.msk.f32.mxu0 %vm10931_vm0, %v10930_v0  ;;  %v1300_v34 = vld [vmem:[%s11105_s10 + $0x32] sm:$0xff] }
  0xbc   : > { %8725 = vmatprep.mubr.msk.f32.mxu1 %vm10931_vm0, %v10930_v0  ;;  %9262 = vmatprep.subr.mxu1 %v10930_v0 }
  0xbe   : > { %8571 = vmatmul.mubr.f32.gmra.mxu0 %v346_v36  ;;  %v2088_v36 = vld [vmem:[#allocation6 + $0x2e0] sm:$0xff] }
  0xbf   : > { %8726 = vmatmul.mubr.f32.gmra.mxu1 %v289_v37  ;;  %8573 = vmatprep.mubr.msk.f32.mxu0 %vm10931_vm0, %v10930_v0  ;;  %v1301_v37 = vld [vmem:[%s11105_s10 + $0x3a] sm:$0xff] }
  0xc0   : > { %8728 = vmatprep.mubr.msk.f32.mxu1 %vm10931_vm0, %v10930_v0 }
  0xc2   : > { %8574 = vmatmul.mubr.f32.gmra.mxu0 %v347_v38  ;;  %v1717_v38 = vld [vmem:[#allocation6 + $0x250] sm:$0xff] }
  0xc3   : > { %8729 = vmatmul.mubr.f32.gmra.mxu1 %v290_v39  ;;  %8576 = vmatprep.mubr.msk.f32.mxu0 %vm10931_vm0, %v10930_v0  ;;  %v2087_v39 = vld [vmem:[#allocation6 + $0x2d8] sm:$0xff] }
  0xc4   : > { %8731 = vmatprep.mubr.msk.f32.mxu1 %vm10931_vm0, %v10930_v0 }
  0xc6   : > { %8577 = vmatmul.mubr.f32.gmra.mxu0 %v348_v40  ;;  %v1302_v40 = vld [vmem:[%s11105_s10 + $0x42] sm:$0xff] }
  0xc7   : > { %8732 = vmatmul.mubr.f32.gmra.mxu1 %v291_v41  ;;  %8579 = vmatprep.mubr.msk.f32.mxu0 %vm10931_vm0, %v10930_v0  ;;  %v1716_v41 = vld [vmem:[#allocation6 + $0x248] sm:$0xff] }
  0xc8   : > { %8734 = vmatprep.mubr.msk.f32.mxu1 %vm10931_vm0, %v10930_v0 }
  0xca   : > { %8580 = vmatmul.mubr.f32.gmra.mxu0 %v349_v42  ;;  %v2086_v42 = vld [vmem:[#allocation6 + $0x2d0] sm:$0xff] }
  0xcb   : > { %8735 = vmatmul.mubr.f32.gmra.mxu1 %v292_v43  ;;  %8582 = vmatprep.mubr.msk.f32.mxu0 %vm10931_vm0, %v10930_v0  ;;  %v1303_v43 = vld [vmem:[%s11105_s10 + $0x4a] sm:$0xff] }
  0xcc   : > { %8737 = vmatprep.mubr.msk.f32.mxu1 %vm10931_vm0, %v10930_v0 }
  0xce   : > { %8583 = vmatmul.mubr.f32.gmra.mxu0 %v350_v44  ;;  %v1715_v44 = vld [vmem:[#allocation6 + $0x240] sm:$0xff] }
  0xcf   : > { %8738 = vmatmul.mubr.f32.gmra.mxu1 %v293_v45  ;;  %8585 = vmatprep.mubr.msk.f32.mxu0 %vm10931_vm0, %v10930_v0 }
  0xd0   : > { %8740 = vmatprep.mubr.msk.f32.mxu1 %vm10931_vm0, %v10930_v0 }
  0xd2   : > { %8586 = vmatmul.mubr.f32.gmra.mxu0 %v351_v46 }
  0xd3   : > { %8741 = vmatmul.mubr.f32.gmra.mxu1 %v294_v47  ;;  %8588 = vmatprep.mubr.msk.f32.mxu0 %vm10931_vm0, %v10930_v0  ;;  %v2085_v47 = vld [vmem:[#allocation6 + $0x2c8] sm:$0xff] }
  0xd4   : > { %8743 = vmatprep.mubr.msk.f32.mxu1 %vm10931_vm0, %v10930_v0 }
  0xd6   : > { %8589 = vmatmul.mubr.f32.gmra.mxu0 %v352_v48 }
  0xd7   : > { %8744 = vmatmul.mubr.f32.gmra.mxu1 %v295_v49  ;;  %8591 = vmatprep.mubr.msk.f32.mxu0 %vm10931_vm0, %v10930_v0 }
  0xd8   : > { %8746 = vmatprep.mubr.msk.f32.mxu1 %vm10931_vm0, %v10930_v0 }
  0xda   : > { %8592 = vmatmul.mubr.f32.gmra.mxu0 %v353_v50  ;;  %v1304_v50 = vld [vmem:[%s11105_s10 + $0x52] sm:$0xff] }
  0xdb   : > { %8747 = vmatmul.mubr.f32.gmra.mxu1 %v296_v51  ;;  %8594 = vmatprep.mubr.msk.f32.mxu0 %vm10931_vm0, %v10930_v0 }
  0xdc   : > { %8749 = vmatprep.mubr.msk.f32.mxu1 %vm10931_vm0, %v10930_v0 }
  0xde   : > { %8595 = vmatmul.mubr.f32.gmra.mxu0 %v354_v52  ;;  %v1714_v52 = vld [vmem:[#allocation6 + $0x238] sm:$0xff] }
  0xdf   : > { %8750 = vmatmul.mubr.f32.gmra.mxu1 %v297_v53  ;;  %8597 = vmatprep.mubr.msk.f32.mxu0 %vm10931_vm0, %v10930_v0 }
  0xe0   : > { %8752 = vmatprep.mubr.msk.f32.mxu1 %vm10931_vm0, %v10930_v0 }
  0xe2   : > { %8598 = vmatmul.mubr.f32.gmra.mxu0 %v355_v54 }
  0xe3   : > { %8753 = vmatmul.mubr.f32.gmra.mxu1 %v298_v55  ;;  %8600 = vmatprep.mubr.msk.f32.mxu0 %vm10931_vm0, %v10930_v0  ;;  %v2084_v55 = vld [vmem:[#allocation6 + $0x2c0] sm:$0xff] }
  0xe4   : > { %8755 = vmatprep.mubr.msk.f32.mxu1 %vm10931_vm0, %v10930_v0 }
  0xe6   : > { %8601 = vmatmul.mubr.f32.gmra.mxu0 %v356_v56 }
  0xe7   : > { %8756 = vmatmul.mubr.f32.gmra.mxu1 %v299_v57  ;;  %8603 = vmatprep.mubr.msk.f32.mxu0 %vm10931_vm0, %v10930_v0 }
  0xe8   : > { %8758 = vmatprep.mubr.msk.f32.mxu1 %vm10931_vm0, %v10930_v0 }
  0xea   : > { %8604 = vmatmul.mubr.f32.gmra.mxu0 %v357_v58  ;;  %v1305_v58 = vld [vmem:[%s11105_s10 + $0x5a] sm:$0xff] }
  0xeb   : > { %8759 = vmatmul.mubr.f32.gmra.mxu1 %v300_v59  ;;  %8606 = vmatprep.mubr.msk.f32.mxu0 %vm10931_vm0, %v10930_v0 }
  0xec   : > { %8761 = vmatprep.mubr.msk.f32.mxu1 %vm10931_vm0, %v10930_v0 }
  0xee   : > { %8607 = vmatmul.mubr.f32.gmra.mxu0 %v358_v60  ;;  %v1713_v60 = vld [vmem:[#allocation6 + $0x230] sm:$0xff] }
  0xef   : > { %8762 = vmatmul.mubr.f32.gmra.mxu1 %v301_v61  ;;  %8609 = vmatprep.mubr.msk.f32.mxu0 %vm10931_vm0, %v10930_v0 }
  0xf0   : > { %8764 = vmatprep.mubr.msk.f32.mxu1 %vm10931_vm0, %v10930_v0 }
  0xf2   : > { %8610 = vmatmul.mubr.f32.gmra.mxu0 %v359_v62 }
  0xf3   : > { %8765 = vmatmul.mubr.f32.gmra.mxu1 %v302_v63  ;;  %8612 = vmatprep.mubr.msk.f32.mxu0 %vm10931_vm0, %v10930_v0  ;;  %v2083_v63 = vld [vmem:[#allocation6 + $0x2b8] sm:$0xff] }
  0xf4   : > { %8767 = vmatprep.mubr.msk.f32.mxu1 %vm10931_vm0, %v10930_v0 }
  0xf6   : > { %8613 = vmatmul.mubr.f32.gmra.mxu0 %v360_v1 }
  0xf7   : > { %8768 = vmatmul.mubr.f32.gmra.mxu1 %v303_v2  ;;  %8615 = vmatprep.mubr.msk.f32.mxu0 %vm10931_vm0, %v10930_v0 }
  0xf8   : > { %8770 = vmatprep.mubr.msk.f32.mxu1 %vm10931_vm0, %v10930_v0 }
  0xfa   : > { %8616 = vmatmul.mubr.f32.gmra.mxu0 %v361_v3  ;;  %v1306_v3 = vld [vmem:[%s11105_s10 + $0x62] sm:$0xff] }
  0xfb   : > { %8771 = vmatmul.mubr.f32.gmra.mxu1 %v304_v4  ;;  %8618 = vmatprep.mubr.msk.f32.mxu0 %vm10931_vm0, %v10930_v0 }
  0xfc   : > { %8773 = vmatprep.mubr.msk.f32.mxu1 %vm10931_vm0, %v10930_v0 }
  0xfe   : > { %8619 = vmatmul.mubr.f32.gmra.mxu0 %v362_v5  ;;  %v1712_v5 = vld [vmem:[#allocation6 + $0x228] sm:$0xff] }
  0xff   : > { %8774 = vmatmul.mubr.f32.gmra.mxu1 %v305_v6  ;;  %8621 = vmatprep.mubr.msk.f32.mxu0 %vm10931_vm0, %v10930_v0 }
 0x100   : > { %8776 = vmatprep.mubr.msk.f32.mxu1 %vm10931_vm0, %v10930_v0 }
 0x102   : > { %8622 = vmatmul.mubr.f32.gmra.mxu0 %v363_v7 }
 0x103   : > { %8777 = vmatmul.mubr.f32.gmra.mxu1 %v306_v8  ;;  %8624 = vmatprep.mubr.msk.f32.mxu0 %vm10931_vm0, %v10930_v0  ;;  %v2082_v8 = vld [vmem:[#allocation6 + $0x2b0] sm:$0xff] }
 0x104   : > { %8779 = vmatprep.mubr.msk.f32.mxu1 %vm10931_vm0, %v10930_v0 }
 0x106   : > { %8625 = vmatmul.mubr.f32.gmra.mxu0 %v364_v9 }
 0x107   : > { %8780 = vmatmul.mubr.f32.gmra.mxu1 %v307_v10  ;;  %8627 = vmatprep.mubr.msk.f32.mxu0 %vm10931_vm0, %v10930_v0 }
 0x108   : > { %8782 = vmatprep.mubr.msk.f32.mxu1 %vm10931_vm0, %v10930_v0 }
 0x10a   : > { %8628 = vmatmul.mubr.f32.gmra.mxu0 %v365_v11  ;;  %v1307_v11 = vld [vmem:[%s11105_s10 + $0x6a] sm:$0xff] }
 0x10b   : > { %8783 = vmatmul.mubr.f32.gmra.mxu1 %v308_v12  ;;  %8630 = vmatprep.mubr.msk.f32.mxu0 %vm10931_vm0, %v10930_v0 }
 0x10c   : > { %8785 = vmatprep.mubr.msk.f32.mxu1 %vm10931_vm0, %v10930_v0 }
 0x10e   : > { %8631 = vmatmul.mubr.f32.gmra.mxu0 %v366_v13  ;;  %v1711_v13 = vld [vmem:[#allocation6 + $0x220] sm:$0xff] }
 0x10f   : > { %8786 = vmatmul.mubr.f32.gmra.mxu1 %v309_v14  ;;  %8633 = vmatprep.mubr.msk.f32.mxu0 %vm10931_vm0, %v10930_v0 }
 0x110   : > { %8788 = vmatprep.mubr.msk.f32.mxu1 %vm10931_vm0, %v10930_v0 }
 0x112   : > { %8634 = vmatmul.mubr.f32.gmra.mxu0 %v367_v15 }
 0x113   : > { %8789 = vmatmul.mubr.f32.gmra.mxu1 %v310_v16  ;;  %8636 = vmatprep.mubr.msk.f32.mxu0 %vm10931_vm0, %v10930_v0  ;;  %v2081_v16 = vld [vmem:[#allocation6 + $0x2a8] sm:$0xff] }
 0x114   : > { %8791 = vmatprep.mubr.msk.f32.mxu1 %vm10931_vm0, %v10930_v0 }
 0x116   : > { %8637 = vmatmul.mubr.f32.gmra.mxu0 %v368_v17 }
 0x117   : > { %8792 = vmatmul.mubr.f32.gmra.mxu1 %v311_v18  ;;  %8639 = vmatprep.mubr.msk.f32.mxu0 %vm10931_vm0, %v10930_v0 }
 0x118   : > { %8794 = vmatprep.mubr.msk.f32.mxu1 %vm10931_vm0, %v10930_v0 }
 0x11a   : > { %8640 = vmatmul.mubr.f32.gmra.mxu0 %v369_v19  ;;  %v1308_v19 = vld [vmem:[%s11105_s10 + $0x72] sm:$0xff] }
 0x11b   : > { %8795 = vmatmul.mubr.f32.gmra.mxu1 %v312_v20  ;;  %8829 = vmatprep.mubr.msk.f32.mxu0 %vm10931_vm0, %v10930_v0 }
 0x11c   : > { %8984 = vmatprep.mubr.msk.f32.mxu1 %vm10931_vm0, %v10930_v0 }
 0x11e   : > { %8830 = vmatmul.mubr.f32.vlgmr.msra.gmra.mxu0 %v927_v21  ;;  %v1710_v21 = vld [vmem:[#allocation6 + $0x218] sm:$0xff] }
 0x11f   : > { %9108 = vmatpush3.msra.mxu0 %v1722_v22  ;;  %8985 = vmatmul.mubr.f32.vlgmr.msra.gmra.mxu1 %v1296_v23 }
 0x120   : > { %8832 = vmatprep.mubr.msk.f32.mxu0 %vm10931_vm0, %v10930_v0  ;;  %8987 = vmatprep.mubr.msk.f32.mxu1 %vm10931_vm0, %v10930_v0 }
 0x121   : > { %9109 = vmatprep.subr.mxu0 %v10930_v0  ;;  %9263 = vmatpush3.msra.mxu1 %v2091_v29  ;;  %v1709_v29 = vld [vmem:[#allocation6 + $0x210] sm:$0xff] }
 0x122   : > { %8833 = vmatmul.mubr.f32.gmra.mxu0 %v928_v24  ;;  %9264 = vmatprep.subr.mxu1 %v10930_v0  ;;  %v2080_v24 = vld [vmem:[#allocation6 + $0x2a0] sm:$0xff] }
 0x123   : > { %8988 = vmatmul.mubr.f32.gmra.mxu1 %v1297_v25  ;;  %8835 = vmatprep.mubr.msk.f32.mxu0 %vm10931_vm0, %v10930_v0 }
 0x124   : > { %8990 = vmatprep.mubr.msk.f32.mxu1 %vm10931_vm0, %v10930_v0  ;;  %9110 = vmatpush3.msra.mxu0 %v1721_v26 }
 0x125   : > { %9111 = vmatprep.subr.mxu0 %v10930_v0  ;;  %9265 = vmatpush3.msra.mxu1 %v2090_v30 }
 0x126   : > { %8836 = vmatmul.mubr.f32.gmra.mxu0 %v1296_v23  ;;  %9266 = vmatprep.subr.mxu1 %v10930_v0 }
 0x127   : > { %8991 = vmatmul.mubr.f32.gmra.mxu1 %v1298_v27  ;;  %8838 = vmatprep.mubr.msk.f32.mxu0 %vm10931_vm0, %v10930_v0 }
 0x128   : > { %8993 = vmatprep.mubr.msk.f32.mxu1 %vm10931_vm0, %v10930_v0  ;;  %9112 = vmatpush3.msra.mxu0 %v1720_v28 }
 0x129   : > { %9113 = vmatprep.subr.mxu0 %v10930_v0  ;;  %9267 = vmatpush3.msra.mxu1 %v2089_v33 }
 0x12a   : > { %8839 = vmatmul.mubr.f32.gmra.mxu0 %v1297_v25  ;;  %9268 = vmatprep.subr.mxu1 %v10930_v0 }
 0x12b   : > { %8994 = vmatmul.mubr.f32.gmra.mxu1 %v1299_v31  ;;  %8841 = vmatprep.mubr.msk.f32.mxu0 %vm10931_vm0, %v10930_v0 }
 0x12c   : > { %8996 = vmatprep.mubr.msk.f32.mxu1 %vm10931_vm0, %v10930_v0  ;;  %9114 = vmatpush3.msra.mxu0 %v1719_v32  ;;  %v2079_v32 = vld [vmem:[#allocation6 + $0x298] sm:$0xff] }
 0x12d   : > { %9115 = vmatprep.subr.mxu0 %v10930_v0  ;;  %9269 = vmatpush3.msra.mxu1 %v2088_v36 }
 0x12e   : > { %8842 = vmatmul.mubr.f32.gmra.mxu0 %v1298_v27  ;;  %9270 = vmatprep.subr.mxu1 %v10930_v0  ;;  %v1309_v27 = vld [vmem:[%s11105_s10 + $0x7a] sm:$0xff] }
 0x12f   : > { %8997 = vmatmul.mubr.f32.gmra.mxu1 %v1300_v34  ;;  %8844 = vmatprep.mubr.msk.f32.mxu0 %vm10931_vm0, %v10930_v0 }
 0x130   : > { %8999 = vmatprep.mubr.msk.f32.mxu1 %vm10931_vm0, %v10930_v0  ;;  %9116 = vmatpush3.msra.mxu0 %v1718_v35  ;;  %v1310_v35 = vld [vmem:[%s11105_s10 + $0x82] sm:$0xff] }
 0x131   : > { %9117 = vmatprep.subr.mxu0 %v10930_v0  ;;  %9271 = vmatpush3.msra.mxu1 %v2087_v39 }
 0x132   : > { %8845 = vmatmul.mubr.f32.gmra.mxu0 %v1299_v31  ;;  %9272 = vmatprep.subr.mxu1 %v10930_v0 }
 0x133   : > { %9000 = vmatmul.mubr.f32.gmra.mxu1 %v1301_v37  ;;  %8847 = vmatprep.mubr.msk.f32.mxu0 %vm10931_vm0, %v10930_v0 }
 0x134   : > { %9002 = vmatprep.mubr.msk.f32.mxu1 %vm10931_vm0, %v10930_v0  ;;  %9118 = vmatpush3.msra.mxu0 %v1717_v38 }
 0x135   : > { %9119 = vmatprep.subr.mxu0 %v10930_v0  ;;  %9273 = vmatpush3.msra.mxu1 %v2086_v42 }
 0x136   : > { %8848 = vmatmul.mubr.f32.gmra.mxu0 %v1300_v34  ;;  %9274 = vmatprep.subr.mxu1 %v10930_v0 }
 0x137   : > { %9003 = vmatmul.mubr.f32.gmra.mxu1 %v1302_v40  ;;  %8850 = vmatprep.mubr.msk.f32.mxu0 %vm10931_vm0, %v10930_v0 }
 0x138   : > { %9005 = vmatprep.mubr.msk.f32.mxu1 %vm10931_vm0, %v10930_v0  ;;  %9120 = vmatpush3.msra.mxu0 %v1716_v41 }
 0x139   : > { %9121 = vmatprep.subr.mxu0 %v10930_v0  ;;  %9275 = vmatpush3.msra.mxu1 %v2085_v47 }
 0x13a   : > { %v453_v45 = vpop.f32.mrf.mxu0  ;;  %8851 = vmatmul.mubr.f32.gmra.mxu0 %v1301_v37  ;;  %9276 = vmatprep.subr.mxu1 %v10930_v0  ;;  %v1708_v37 = vld [vmem:[#allocation6 + $0x208] sm:$0xff] }
 0x13b   : > { %v723_v46 = vpop.f32.mrf.mxu1  ;;  %9006 = vmatmul.mubr.f32.gmra.mxu1 %v1303_v43  ;;  %8853 = vmatprep.mubr.msk.f32.mxu0 %vm10931_vm0, %v10930_v0 }
 0x13c   : > { %v11483_v48 = vadd.f32 %v723_v46, %v453_v45  ;;  %v8521_v49 = vpop.f32.mrf.mxu0  ;;  %9008 = vmatprep.mubr.msk.f32.mxu1 %vm10931_vm0, %v10930_v0  ;;  %9122 = vmatpush3.msra.mxu0 %v1715_v44  ;;  %v1707_v45 = vld [vmem:[#allocation6 + $0x200] sm:$0xff] }
 0x13d   : > { %v8676_v51 = vpop.f32.mrf.mxu1  ;;  %9123 = vmatprep.subr.mxu0 %v10930_v0  ;;  %9277 = vmatpush3.msra.mxu1 %v2084_v55  ;;  %v2077_v49 = vld [vmem:[#allocation6 + $0x288] sm:$0xff]  ;;  %v2076_v55 = vld [vmem:[#allocation6 + $0x280] sm:$0xff] }
 0x13e   : > { %v458_v53 = vpop.f32.mrf.mxu0  ;;  %8854 = vmatmul.mubr.f32.gmra.mxu0 %v1302_v40  ;;  %9278 = vmatprep.subr.mxu1 %v10930_v0  ;;  %v2078_v40 = vld [vmem:[#allocation6 + $0x290] sm:$0xff] }
 0x13f   : > { %v728_v54 = vpop.f32.mrf.mxu1  ;;  %9009 = vmatmul.mubr.f32.gmra.mxu1 %v1304_v50  ;;  %8856 = vmatprep.mubr.msk.f32.mxu0 %vm10931_vm0, %v10930_v0 }
 0x140   : > { %v11492_v56 = vadd.f32 %v728_v54, %v458_v53  ;;  %v8524_v57 = vpop.f32.mrf.mxu0  ;;  %9011 = vmatprep.mubr.msk.f32.mxu1 %vm10931_vm0, %v10930_v0  ;;  %9124 = vmatpush3.msra.mxu0 %v1714_v52  ;;  %v1312_v52 = vld [vmem:[%s11105_s10 + $0x92] sm:$0xff] }
 0x141   : > { %v8679_v59 = vpop.f32.mrf.mxu1  ;;  %9125 = vmatprep.subr.mxu0 %v10930_v0  ;;  %9279 = vmatpush3.msra.mxu1 %v2083_v63 }
 0x142   : > { %v463_v61 = vpop.f32.mrf.mxu0  ;;  %8857 = vmatmul.mubr.f32.gmra.mxu0 %v1303_v43  ;;  %9280 = vmatprep.subr.mxu1 %v10930_v0  ;;  %v1311_v43 = vld [vmem:[%s11105_s10 + $0x8a] sm:$0xff] }
 0x143   : > { %v733_v62 = vpop.f32.mrf.mxu1  ;;  %9012 = vmatmul.mubr.f32.gmra.mxu1 %v1305_v58  ;;  %8859 = vmatprep.mubr.msk.f32.mxu0 %vm10931_vm0, %v10930_v0 }
 0x144   : > { %v11501_v1 = vadd.f32 %v733_v62, %v463_v61  ;;  %v8527_v2 = vpop.f32.mrf.mxu0  ;;  %9014 = vmatprep.mubr.msk.f32.mxu1 %vm10931_vm0, %v10930_v0  ;;  %9126 = vmatpush3.msra.mxu0 %v1713_v60  ;;  %v1313_v60 = vld [vmem:[%s11105_s10 + $0x9a] sm:$0xff] }
 0x145   : > { %v8682_v4 = vpop.f32.mrf.mxu1  ;;  %9127 = vmatprep.subr.mxu0 %v10930_v0  ;;  %9281 = vmatpush3.msra.mxu1 %v2082_v8 }
 0x146   : > { %v468_v6 = vpop.f32.mrf.mxu0  ;;  %8860 = vmatmul.mubr.f32.gmra.mxu0 %v1304_v50  ;;  %9282 = vmatprep.subr.mxu1 %v10930_v0  ;;  %v1314_v4 = vld [vmem:[%s11105_s10 + $0xa2] sm:$0xff] }
 0x147   : > { %v738_v7 = vpop.f32.mrf.mxu1  ;;  %9015 = vmatmul.mubr.f32.gmra.mxu1 %v1306_v3  ;;  %8862 = vmatprep.mubr.msk.f32.mxu0 %vm10931_vm0, %v10930_v0 }
 0x148   : > { %v11510_v9 = vadd.f32 %v738_v7, %v468_v6  ;;  %v8530_v10 = vpop.f32.mrf.mxu0  ;;  %9017 = vmatprep.mubr.msk.f32.mxu1 %vm10931_vm0, %v10930_v0  ;;  %9128 = vmatpush3.msra.mxu0 %v1712_v5 }
 0x149   : > { %v8685_v12 = vpop.f32.mrf.mxu1  ;;  %9129 = vmatprep.subr.mxu0 %v10930_v0  ;;  %9283 = vmatpush3.msra.mxu1 %v2081_v16 }
 0x14a   : > { %v473_v14 = vpop.f32.mrf.mxu0  ;;  %8863 = vmatmul.mubr.f32.gmra.mxu0 %v1305_v58  ;;  %9284 = vmatprep.subr.mxu1 %v10930_v0 }
 0x14b   : > { %v743_v15 = vpop.f32.mrf.mxu1  ;;  %9018 = vmatmul.mubr.f32.gmra.mxu1 %v1307_v11  ;;  %8865 = vmatprep.mubr.msk.f32.mxu0 %vm10931_vm0, %v10930_v0 }
 0x14c   : > { %v11519_v17 = vadd.f32 %v743_v15, %v473_v14  ;;  %v8533_v18 = vpop.f32.mrf.mxu0  ;;  %9020 = vmatprep.mubr.msk.f32.mxu1 %vm10931_vm0, %v10930_v0  ;;  %9130 = vmatpush3.msra.mxu0 %v1711_v13 }
 0x14d   : > { %v8688_v20 = vpop.f32.mrf.mxu1  ;;  %9131 = vmatprep.subr.mxu0 %v10930_v0  ;;  %9285 = vmatpush3.msra.mxu1 %v2080_v24  ;;  %v1316_v18 = vld [vmem:[%s11105_s10 + $0xb2] sm:$0xff]  ;;  %v1317_v24 = vld [vmem:[%s11105_s10 + $0xba] sm:$0xff] }
 0x14e   : > { %v478_v22 = vpop.f32.mrf.mxu0  ;;  %8866 = vmatmul.mubr.f32.gmra.mxu0 %v1306_v3  ;;  %9286 = vmatprep.subr.mxu1 %v10930_v0 }
 0x14f   : > { %v748_v23 = vpop.f32.mrf.mxu1  ;;  %9021 = vmatmul.mubr.f32.gmra.mxu1 %v1308_v19  ;;  %8868 = vmatprep.mubr.msk.f32.mxu0 %vm10931_vm0, %v10930_v0 }
 0x150   : > { %v11528_v25 = vadd.f32 %v748_v23, %v478_v22  ;;  %v8536_v26 = vpop.f32.mrf.mxu0  ;;  %9023 = vmatprep.mubr.msk.f32.mxu1 %vm10931_vm0, %v10930_v0  ;;  %9132 = vmatpush3.msra.mxu0 %v1710_v21 }
 0x151   : > { %v8691_v28 = vpop.f32.mrf.mxu1  ;;  %9133 = vmatprep.subr.mxu0 %v10930_v0  ;;  %9287 = vmatpush3.msra.mxu1 %v2079_v32 }
 0x152   : > { %v483_v30 = vpop.f32.mrf.mxu0  ;;  %8869 = vmatmul.mubr.f32.gmra.mxu0 %v1307_v11  ;;  %9288 = vmatprep.subr.mxu1 %v10930_v0  ;;  %v1315_v11 = vld [vmem:[%s11105_s10 + $0xaa] sm:$0xff] }
 0x153   : > { %v753_v31 = vpop.f32.mrf.mxu1  ;;  %9024 = vmatmul.mubr.f32.gmra.mxu1 %v1309_v27  ;;  %8871 = vmatprep.mubr.msk.f32.mxu0 %vm10931_vm0, %v10930_v0 }
 0x154   : > { %v11537_v33 = vadd.f32 %v753_v31, %v483_v30  ;;  %v8539_v34 = vpop.f32.mrf.mxu0  ;;  %9026 = vmatprep.mubr.msk.f32.mxu1 %vm10931_vm0, %v10930_v0  ;;  %9134 = vmatpush3.msra.mxu0 %v1709_v29  ;;  %v1318_v31 = vld [vmem:[%s11105_s10 + $0xc2] sm:$0xff] }
 0x155   : > { %v8694_v36 = vpop.f32.mrf.mxu1  ;;  %9135 = vmatprep.subr.mxu0 %v10930_v0  ;;  %9289 = vmatpush3.msra.mxu1 %v2078_v40 }
 0x156   : > { %v488_v38 = vpop.f32.mrf.mxu0  ;;  %8872 = vmatmul.mubr.f32.gmra.mxu0 %v1308_v19  ;;  %9290 = vmatprep.subr.mxu1 %v10930_v0 }
 0x157   : > { %v758_v39 = vpop.f32.mrf.mxu1  ;;  %9027 = vmatmul.mubr.f32.gmra.mxu1 %v1310_v35  ;;  %8874 = vmatprep.mubr.msk.f32.mxu0 %vm10931_vm0, %v10930_v0 }
 0x158   : > { %v11546_v41 = vadd.f32 %v758_v39, %v488_v38  ;;  %v8542_v42 = vpop.f32.mrf.mxu0  ;;  %9029 = vmatprep.mubr.msk.f32.mxu1 %vm10931_vm0, %v10930_v0  ;;  %9136 = vmatpush3.msra.mxu0 %v1708_v37  ;;  %v1319_v38 = vld [vmem:[%s11105_s10 + $0xca] sm:$0xff] }
 0x159   : > { %v8697_v44 = vpop.f32.mrf.mxu1  ;;  %9137 = vmatprep.subr.mxu0 %v10930_v0  ;;  %9291 = vmatpush3.msra.mxu1 %v2077_v49 }
 0x15a   : > { %v493_v46 = vpop.f32.mrf.mxu0  ;;  %8875 = vmatmul.mubr.f32.gmra.mxu0 %v1309_v27  ;;  %9292 = vmatprep.subr.mxu1 %v10930_v0 }
 0x15b   : > { %v763_v47 = vpop.f32.mrf.mxu1  ;;  %9030 = vmatmul.mubr.f32.gmra.mxu1 %v1311_v43  ;;  %8877 = vmatprep.mubr.msk.f32.mxu0 %vm10931_vm0, %v10930_v0 }
 0x15c   : > { %v11555_v50 = vadd.f32 %v763_v47, %v493_v46  ;;  %v8545_v51 = vpop.f32.mrf.mxu0  ;;  %9032 = vmatprep.mubr.msk.f32.mxu1 %vm10931_vm0, %v10930_v0  ;;  %9138 = vmatpush3.msra.mxu0 %v1707_v45  ;;  %v1320_v45 = vld [vmem:[%s11105_s10 + $0xd2] sm:$0xff] }
 0x15d   : > { %v8700_v53 = vpop.f32.mrf.mxu1  ;;  %9417 = vmatprep.subr.mxu0 %v10930_v0  ;;  %9293 = vmatpush3.msra.mxu1 %v2076_v55 }
 0x15e   : > { %v498_v54 = vpop.f32.mrf.mxu0  ;;  %8878 = vmatmul.mubr.f32.gmra.mxu0 %v1310_v35  ;;  %9572 = vmatprep.subr.mxu1 %v10930_v0  ;;  %v1321_v53 = vld [vmem:[%s11105_s10 + $0xda] sm:$0xff] }
 0x15f   : > { %v768_v57 = vpop.f32.mrf.mxu1  ;;  %9033 = vmatmul.mubr.f32.gmra.mxu1 %v1312_v52  ;;  %8880 = vmatprep.mubr.msk.f32.mxu0 %vm10931_vm0, %v10930_v0 }
 0x160   : > { %v11564_v58 = vadd.f32 %v768_v57, %v498_v54  ;;  %v8548_v59 = vpop.f32.mrf.mxu0  ;;  %9035 = vmatprep.mubr.msk.f32.mxu1 %vm10931_vm0, %v10930_v0 }
 0x161   : > { %v8703_v61 = vpop.f32.mrf.mxu1 }
 0x162   : > { %v503_v62 = vpop.f32.mrf.mxu0  ;;  %8881 = vmatmul.mubr.f32.gmra.mxu0 %v1311_v43  ;;  %v1322_v61 = vld [vmem:[%s11105_s10 + $0xe2] sm:$0xff] }
 0x163   : > { %v773_v63 = vpop.f32.mrf.mxu1  ;;  %9036 = vmatmul.mubr.f32.gmra.mxu1 %v1313_v60  ;;  %8883 = vmatprep.mubr.msk.f32.mxu0 %vm10931_vm0, %v10930_v0 }
 0x164   : > { %v11573_v2 = vadd.f32 %v773_v63, %v503_v62  ;;  %v8551_v3 = vpop.f32.mrf.mxu0  ;;  %9038 = vmatprep.mubr.msk.f32.mxu1 %vm10931_vm0, %v10930_v0 }
 0x165   : > { %v8706_v5 = vpop.f32.mrf.mxu1 }
 0x166   : > { %v508_v6 = vpop.f32.mrf.mxu0  ;;  %8884 = vmatmul.mubr.f32.gmra.mxu0 %v1312_v52 }
 0x167   : > { %v778_v7 = vpop.f32.mrf.mxu1  ;;  %9039 = vmatmul.mubr.f32.gmra.mxu1 %v1314_v4  ;;  %8886 = vmatprep.mubr.msk.f32.mxu0 %vm10931_vm0, %v10930_v0 }
 0x168   : > { %v11580_v8 = vadd.f32 %v778_v7, %v508_v6  ;;  %v8554_v10 = vpop.f32.mrf.mxu0  ;;  %9041 = vmatprep.mubr.msk.f32.mxu1 %vm10931_vm0, %v10930_v0  ;;  %v1323_v6 = vld [vmem:[%s11105_s10 + $0xea] sm:$0xff] }
 0x169   : > { %v8709_v12 = vpop.f32.mrf.mxu1 }
 0x16a   : > { %v513_v13 = vpop.f32.mrf.mxu0  ;;  %8887 = vmatmul.mubr.f32.gmra.mxu0 %v1313_v60 }
 0x16b   : > { %v783_v14 = vpop.f32.mrf.mxu1  ;;  %9042 = vmatmul.mubr.f32.gmra.mxu1 %v1315_v11  ;;  %8889 = vmatprep.mubr.msk.f32.mxu0 %vm10931_vm0, %v10930_v0 }
 0x16c   : > { %v11587_v15 = vadd.f32 %v783_v14, %v513_v13  ;;  %v8557_v16 = vpop.f32.mrf.mxu0  ;;  %9044 = vmatprep.mubr.msk.f32.mxu1 %vm10931_vm0, %v10930_v0  ;;  %v1324_v14 = vld [vmem:[%s11105_s10 + $0xf2] sm:$0xff] }
 0x16d   : > { %v8712_v19 = vpop.f32.mrf.mxu1 }
 0x16e   : > { %v518_v20 = vpop.f32.mrf.mxu0  ;;  %8890 = vmatmul.mubr.f32.gmra.mxu0 %v1314_v4 }
 0x16f   : > { %v788_v21 = vpop.f32.mrf.mxu1  ;;  %9045 = vmatmul.mubr.f32.gmra.mxu1 %v1316_v18  ;;  %8892 = vmatprep.mubr.msk.f32.mxu0 %vm10931_vm0, %v10930_v0 }
 0x170   : > { %v11594_v22 = vadd.f32 %v788_v21, %v518_v20  ;;  %v8560_v23 = vpop.f32.mrf.mxu0  ;;  %9047 = vmatprep.mubr.msk.f32.mxu1 %vm10931_vm0, %v10930_v0 }
 0x171   : > { %v8715_v26 = vpop.f32.mrf.mxu1  ;;  %v1325_v23 = vld [vmem:[%s11105_s10 + $0xfa] sm:$0xff] }
 0x172   : > { %v523_v27 = vpop.f32.mrf.mxu0  ;;  %8893 = vmatmul.mubr.f32.gmra.mxu0 %v1315_v11 }
 0x173   : > { %v793_v28 = vpop.f32.mrf.mxu1  ;;  %9048 = vmatmul.mubr.f32.gmra.mxu1 %v1317_v24  ;;  %8895 = vmatprep.mubr.msk.f32.mxu0 %vm10931_vm0, %v10930_v0 }
 0x174   : > { %v11601_v29 = vadd.f32 %v793_v28, %v523_v27  ;;  %v8563_v30 = vpop.f32.mrf.mxu0  ;;  %9050 = vmatprep.mubr.msk.f32.mxu1 %vm10931_vm0, %v10930_v0 }
 0x175   : > { %v8718_v32 = vpop.f32.mrf.mxu1 }
 0x176   : > { %v528_v34 = vpop.f32.mrf.mxu0  ;;  %8896 = vmatmul.mubr.f32.gmra.mxu0 %v1316_v18 }
 0x177   : > { %v798_v35 = vpop.f32.mrf.mxu1  ;;  %9051 = vmatmul.mubr.f32.gmra.mxu1 %v1318_v31  ;;  %8898 = vmatprep.mubr.msk.f32.mxu0 %vm10931_vm0, %v10930_v0 }
 0x178   : > { %v11608_v36 = vadd.f32 %v798_v35, %v528_v34  ;;  %v8566_v37 = vpop.f32.mrf.mxu0  ;;  %9053 = vmatprep.mubr.msk.f32.mxu1 %vm10931_vm0, %v10930_v0 }
 0x179   : > { %v8721_v39 = vpop.f32.mrf.mxu1 }
 0x17a   : > { %v533_v40 = vpop.f32.mrf.mxu0  ;;  %8899 = vmatmul.mubr.f32.gmra.mxu0 %v1317_v24  ;;  %v1327_v39 = vld [vmem:[%s11105_s10 + $0x10a] sm:$0xff] }
 0x17b   : > { %v803_v42 = vpop.f32.mrf.mxu1  ;;  %9054 = vmatmul.mubr.f32.gmra.mxu1 %v1319_v38  ;;  %8901 = vmatprep.mubr.msk.f32.mxu0 %vm10931_vm0, %v10930_v0 }
 0x17c   : > { %v11615_v43 = vadd.f32 %v803_v42, %v533_v40  ;;  %v8569_v44 = vpop.f32.mrf.mxu0  ;;  %9056 = vmatprep.mubr.msk.f32.mxu1 %vm10931_vm0, %v10930_v0 }
 0x17d   : > { %v8724_v46 = vpop.f32.mrf.mxu1 }
 0x17e   : > { %v538_v47 = vpop.f32.mrf.mxu0  ;;  %8902 = vmatmul.mubr.f32.gmra.mxu0 %v1318_v31  ;;  %v1326_v31 = vld [vmem:[%s11105_s10 + $0x102] sm:$0xff] }
 0x17f   : > { %v808_v49 = vpop.f32.mrf.mxu1  ;;  %9057 = vmatmul.mubr.f32.gmra.mxu1 %v1320_v45  ;;  %8904 = vmatprep.mubr.msk.f32.mxu0 %vm10931_vm0, %v10930_v0 }
 0x180   : > { %v11622_v51 = vadd.f32 %v808_v49, %v538_v47  ;;  %v8572_v52 = vpop.f32.mrf.mxu0  ;;  %9059 = vmatprep.mubr.msk.f32.mxu1 %vm10931_vm0, %v10930_v0  ;;  %v1328_v47 = vld [vmem:[%s11105_s10 + $0x112] sm:$0xff] }
 0x181   : > { %v8727_v54 = vpop.f32.mrf.mxu1 }
 0x182   : > { %v543_v55 = vpop.f32.mrf.mxu0  ;;  %8905 = vmatmul.mubr.f32.gmra.mxu0 %v1319_v38 }
 0x183   : > { %v813_v57 = vpop.f32.mrf.mxu1  ;;  %9060 = vmatmul.mubr.f32.gmra.mxu1 %v1321_v53  ;;  %8907 = vmatprep.mubr.msk.f32.mxu0 %vm10931_vm0, %v10930_v0 }
 0x184   : > { %v11629_v59 = vadd.f32 %v813_v57, %v543_v55  ;;  %v8575_v60 = vpop.f32.mrf.mxu0  ;;  %9062 = vmatprep.mubr.msk.f32.mxu1 %vm10931_vm0, %v10930_v0  ;;  %v1329_v57 = vld [vmem:[%s11105_s10 + $0x11a] sm:$0xff] }
 0x185   : > { %v8730_v62 = vpop.f32.mrf.mxu1 }
 0x186   : > { %v548_v63 = vpop.f32.mrf.mxu0  ;;  %8908 = vmatmul.mubr.f32.gmra.mxu0 %v1320_v45 }
 0x187   : > { %v818_v3 = vpop.f32.mrf.mxu1  ;;  %9063 = vmatmul.mubr.f32.gmra.mxu1 %v1322_v61  ;;  %8910 = vmatprep.mubr.msk.f32.mxu0 %vm10931_vm0, %v10930_v0 }
 0x188   : > { %v11636_v4 = vadd.f32 %v818_v3, %v548_v63  ;;  %v8578_v5 = vpop.f32.mrf.mxu0  ;;  %9065 = vmatprep.mubr.msk.f32.mxu1 %vm10931_vm0, %v10930_v0 }
 0x189   : > { %v8733_v7 = vpop.f32.mrf.mxu1  ;;  %v1330_v5 = vld [vmem:[%s11105_s10 + $0x122] sm:$0xff] }
 0x18a   : > { %v553_v10 = vpop.f32.mrf.mxu0  ;;  %8911 = vmatmul.mubr.f32.gmra.mxu0 %v1321_v53 }
 0x18b   : > { %v823_v11 = vpop.f32.mrf.mxu1  ;;  %9066 = vmatmul.mubr.f32.gmra.mxu1 %v1323_v6  ;;  %8913 = vmatprep.mubr.msk.f32.mxu0 %vm10931_vm0, %v10930_v0 }
 0x18c   : > { %v11643_v12 = vadd.f32 %v823_v11, %v553_v10  ;;  %v8581_v13 = vpop.f32.mrf.mxu0  ;;  %9068 = vmatprep.mubr.msk.f32.mxu1 %vm10931_vm0, %v10930_v0 }
 0x18d   : > { %v8736_v16 = vpop.f32.mrf.mxu1 }
 0x18e   : > { %v558_v18 = vpop.f32.mrf.mxu0  ;;  %8914 = vmatmul.mubr.f32.gmra.mxu0 %v1322_v61 }
 0x18f   : > { %v828_v19 = vpop.f32.mrf.mxu1  ;;  %9069 = vmatmul.mubr.f32.gmra.mxu1 %v1324_v14  ;;  %8916 = vmatprep.mubr.msk.f32.mxu0 %vm10931_vm0, %v10930_v0 }
 0x190   : > { %v11650_v20 = vadd.f32 %v828_v19, %v558_v18  ;;  %v8584_v21 = vpop.f32.mrf.mxu0  ;;  %9071 = vmatprep.mubr.msk.f32.mxu1 %vm10931_vm0, %v10930_v0 }
 0x191   : > { %v8739_v24 = vpop.f32.mrf.mxu1 }
 0x192   : > { %v563_v26 = vpop.f32.mrf.mxu0  ;;  %8917 = vmatmul.mubr.f32.gmra.mxu0 %v1323_v6  ;;  %v1332_v24 = vld [vmem:[%s11105_s10 + $0x132] sm:$0xff] }
 0x193   : > { %v833_v27 = vpop.f32.mrf.mxu1  ;;  %9072 = vmatmul.mubr.f32.gmra.mxu1 %v1325_v23  ;;  %8919 = vmatprep.mubr.msk.f32.mxu0 %vm10931_vm0, %v10930_v0 }
 0x194   : > { %v11657_v28 = vadd.f32 %v833_v27, %v563_v26  ;;  %v8587_v30 = vpop.f32.mrf.mxu0  ;;  %9074 = vmatprep.mubr.msk.f32.mxu1 %vm10931_vm0, %v10930_v0 }
 0x195   : > { %v8742_v32 = vpop.f32.mrf.mxu1 }
 0x196   : > { %v568_v34 = vpop.f32.mrf.mxu0  ;;  %8920 = vmatmul.mubr.f32.gmra.mxu0 %v1324_v14  ;;  %v1331_v14 = vld [vmem:[%s11105_s10 + $0x12a] sm:$0xff] }
 0x197   : > { %v838_v35 = vpop.f32.mrf.mxu1  ;;  %9075 = vmatmul.mubr.f32.gmra.mxu1 %v1326_v31  ;;  %8922 = vmatprep.mubr.msk.f32.mxu0 %vm10931_vm0, %v10930_v0 }
 0x198   : > { %v11664_v37 = vadd.f32 %v838_v35, %v568_v34  ;;  %v8590_v38 = vpop.f32.mrf.mxu0  ;;  %9077 = vmatprep.mubr.msk.f32.mxu1 %vm10931_vm0, %v10930_v0  ;;  %v1333_v34 = vld [vmem:[%s11105_s10 + $0x13a] sm:$0xff] }
 0x199   : > { %v8745_v40 = vpop.f32.mrf.mxu1 }
 0x19a   : > { %v573_v42 = vpop.f32.mrf.mxu0  ;;  %8923 = vmatmul.mubr.f32.gmra.mxu0 %v1325_v23 }
 0x19b   : > { %v843_v44 = vpop.f32.mrf.mxu1  ;;  %9078 = vmatmul.mubr.f32.gmra.mxu1 %v1327_v39  ;;  %8925 = vmatprep.mubr.msk.f32.mxu0 %vm10931_vm0, %v10930_v0 }
 0x19c   : > { %v11671_v45 = vadd.f32 %v843_v44, %v573_v42  ;;  %v8593_v46 = vpop.f32.mrf.mxu0  ;;  %9080 = vmatprep.mubr.msk.f32.mxu1 %vm10931_vm0, %v10930_v0  ;;  %v1334_v44 = vld [vmem:[%s11105_s10 + $0x142] sm:$0xff] }
 0x19d   : > { %v8748_v49 = vpop.f32.mrf.mxu1 }
 0x19e   : > { %v578_v52 = vpop.f32.mrf.mxu0  ;;  %8926 = vmatmul.mubr.f32.gmra.mxu0 %v1326_v31 }
 0x19f   : > { %v848_v53 = vpop.f32.mrf.mxu1  ;;  %9081 = vmatmul.mubr.f32.gmra.mxu1 %v1328_v47  ;;  %8928 = vmatprep.mubr.msk.f32.mxu0 %vm10931_vm0, %v10930_v0 }
 0x1a0   : > { %v11678_v54 = vadd.f32 %v848_v53, %v578_v52  ;;  %v8596_v55 = vpop.f32.mrf.mxu0  ;;  %9083 = vmatprep.mubr.msk.f32.mxu1 %vm10931_vm0, %v10930_v0 }
 0x1a1   : > { %v8751_v60 = vpop.f32.mrf.mxu1  ;;  %v1335_v55 = vld [vmem:[%s11105_s10 + $0x14a] sm:$0xff] }
 0x1a2   : > { %v583_v61 = vpop.f32.mrf.mxu0  ;;  %8929 = vmatmul.mubr.f32.gmra.mxu0 %v1327_v39 }
 0x1a3   : > { %v853_v62 = vpop.f32.mrf.mxu1  ;;  %9084 = vmatmul.mubr.f32.gmra.mxu1 %v1329_v57  ;;  %8931 = vmatprep.mubr.msk.f32.mxu0 %vm10931_vm0, %v10930_v0 }
 0x1a4   : > { %v11685_v63 = vadd.f32 %v853_v62, %v583_v61  ;;  %v8599_v3 = vpop.f32.mrf.mxu0  ;;  %9086 = vmatprep.mubr.msk.f32.mxu1 %vm10931_vm0, %v10930_v0 }
 0x1a5   : > { %v8754_v6 = vpop.f32.mrf.mxu1 }
 0x1a6   : > { %v588_v7 = vpop.f32.mrf.mxu0  ;;  %8932 = vmatmul.mubr.f32.gmra.mxu0 %v1328_v47 }
 0x1a7   : > { %v858_v10 = vpop.f32.mrf.mxu1  ;;  %9087 = vmatmul.mubr.f32.gmra.mxu1 %v1330_v5  ;;  %8934 = vmatprep.mubr.msk.f32.mxu0 %vm10931_vm0, %v10930_v0 }
 0x1a8   : > { %v11692_v11 = vadd.f32 %v858_v10, %v588_v7  ;;  %v8602_v13 = vpop.f32.mrf.mxu0  ;;  %9089 = vmatprep.mubr.msk.f32.mxu1 %vm10931_vm0, %v10930_v0 }
 0x1a9   : > { %v8757_v16 = vpop.f32.mrf.mxu1  ;;  %v1665_v13 = vld [vmem:[%s11105_s10 + $0x13] sm:$0xff] }
 0x1aa   : > { %v593_v18 = vpop.f32.mrf.mxu0  ;;  %8935 = vmatmul.mubr.f32.gmra.mxu0 %v1329_v57 }
 0x1ab   : > { %v863_v19 = vpop.f32.mrf.mxu1  ;;  %9090 = vmatmul.mubr.f32.gmra.mxu1 %v1331_v14  ;;  %8937 = vmatprep.mubr.msk.f32.mxu0 %vm10931_vm0, %v10930_v0 }
 0x1ac   : > { %v11699_v21 = vadd.f32 %v863_v19, %v593_v18  ;;  %v8605_v23 = vpop.f32.mrf.mxu0  ;;  %9092 = vmatprep.mubr.msk.f32.mxu1 %vm10931_vm0, %v10930_v0  ;;  %v2460_v18 = vld [vmem:[#allocation6 + $0x378] sm:$0xff] }
 0x1ad   : > { %v8760_v26 = vpop.f32.mrf.mxu1  ;;  %v2034_v19 = vld [vmem:[%s11105_s10 + $0x14] sm:$0xff] }
 0x1ae   : > { %v598_v27 = vpop.f32.mrf.mxu0  ;;  %8938 = vmatmul.mubr.f32.gmra.mxu0 %v1330_v5  ;;  %v1336_v5 = vld [vmem:[%s11105_s10 + $0x152] sm:$0xff] }
 0x1af   : > { %v868_v30 = vpop.f32.mrf.mxu1  ;;  %9093 = vmatmul.mubr.f32.gmra.mxu1 %v1332_v24  ;;  %8940 = vmatprep.mubr.msk.f32.mxu0 %vm10931_vm0, %v10930_v0 }
 0x1b0   : > { %v11706_v31 = vadd.f32 %v868_v30, %v598_v27  ;;  %v8608_v32 = vpop.f32.mrf.mxu0  ;;  %9095 = vmatprep.mubr.msk.f32.mxu1 %vm10931_vm0, %v10930_v0  ;;  %v1666_v27 = vld [vmem:[%s11105_s10 + $0x1b] sm:$0xff] }
 0x1b1   : > { %v8763_v35 = vpop.f32.mrf.mxu1 }
 0x1b2   : > { %v603_v38 = vpop.f32.mrf.mxu0  ;;  %8941 = vmatmul.mubr.f32.gmra.mxu0 %v1331_v14 }
 0x1b3   : > { %v873_v39 = vpop.f32.mrf.mxu1  ;;  %9096 = vmatmul.mubr.f32.gmra.mxu1 %v1333_v34  ;;  %8943 = vmatprep.mubr.msk.f32.mxu0 %vm10931_vm0, %v10930_v0 }
 0x1b4   : > { %v11713_v40 = vadd.f32 %v873_v39, %v603_v38  ;;  %v8611_v42 = vpop.f32.mrf.mxu0  ;;  %9098 = vmatprep.mubr.msk.f32.mxu1 %vm10931_vm0, %v10930_v0  ;;  %v2459_v38 = vld [vmem:[#allocation6 + $0x370] sm:$0xff] }
 0x1b5   : > { %v8766_v46 = vpop.f32.mrf.mxu1 }
 0x1b6   : > { %v608_v47 = vpop.f32.mrf.mxu0  ;;  %8944 = vmatmul.mubr.f32.gmra.mxu0 %v1332_v24 }
 0x1b7   : > { %v878_v49 = vpop.f32.mrf.mxu1  ;;  %9099 = vmatmul.mubr.f32.gmra.mxu1 %v1334_v44  ;;  %8946 = vmatprep.mubr.msk.f32.mxu0 %vm10931_vm0, %v10930_v0 }
 0x1b8   : > { %v11720_v52 = vadd.f32 %v878_v49, %v608_v47  ;;  %v8614_v53 = vpop.f32.mrf.mxu0  ;;  %9101 = vmatprep.mubr.msk.f32.mxu1 %vm10931_vm0, %v10930_v0  ;;  %v2036_v49 = vld [vmem:[%s11105_s10 + $0x24] sm:$0xff] }
 0x1b9   : > { %v8769_v57 = vpop.f32.mrf.mxu1 }
 0x1ba   : > { %v613_v60 = vpop.f32.mrf.mxu0  ;;  %8947 = vmatmul.mubr.f32.gmra.mxu0 %v1333_v34  ;;  %v2035_v34 = vld [vmem:[%s11105_s10 + $0x1c] sm:$0xff] }
 0x1bb   : > { %v883_v61 = vpop.f32.mrf.mxu1  ;;  %9102 = vmatmul.mubr.f32.gmra.mxu1 %v1335_v55  ;;  %8949 = vmatprep.mubr.msk.f32.mxu0 %vm10931_vm0, %v10930_v0  ;;  %v2458_v55 = vld [vmem:[#allocation6 + $0x368] sm:$0xff]  ;;  %v2829_v57 = vld [vmem:[#allocation6 + $0x3f8] sm:$0xff] }
 0x1bc   : > { %v11727_v62 = vadd.f32 %v883_v61, %v613_v60  ;;  %v8617_v3 = vpop.f32.mrf.mxu0  ;;  %9104 = vmatprep.mubr.msk.f32.mxu1 %vm10931_vm0, %v10930_v0 }
 0x1bd   : > { %v8772_v6 = vpop.f32.mrf.mxu1  ;;  %v1668_v3 = vld [vmem:[%s11105_s10 + $0x2b] sm:$0xff] }
 0x1be   : > { %v618_v7 = vpop.f32.mrf.mxu0  ;;  %8950 = vmatmul.mubr.f32.gmra.mxu0 %v1334_v44  ;;  %v1667_v44 = vld [vmem:[%s11105_s10 + $0x23] sm:$0xff] }
 0x1bf   : > { %v888_v10 = vpop.f32.mrf.mxu1  ;;  %9105 = vmatmul.mubr.f32.gmra.mxu1 %v1336_v5  ;;  %9139 = vmatprep.mubr.msk.f32.mxu0 %vm10931_vm0, %v10930_v0  ;;  %v2828_v5 = vld [vmem:[#allocation6 + $0x3f0] sm:$0xff] }
 0x1c0   : > { %v11735_v14 = vadd.f32 %v888_v10, %v618_v7  ;;  %v8620_v16 = vpop.f32.mrf.mxu0  ;;  %9294 = vmatprep.mubr.msk.f32.mxu1 %vm10931_vm0, %v10930_v0  ;;  %v2037_v10 = vld [vmem:[%s11105_s10 + $0x2c] sm:$0xff] }
 0x1c1   : > { %v8775_v23 = vpop.f32.mrf.mxu1  ;;  %v2457_v16 = vld [vmem:[#allocation6 + $0x360] sm:$0xff] }
 0x1c2   : > { %v623_v24 = vpop.f32.mrf.mxu0  ;;  %9140 = vmatmul.mubr.f32.vlgmr.msra.gmra.mxu0 %v1665_v13  ;;  %v1669_v23 = vld [vmem:[%s11105_s10 + $0x33] sm:$0xff] }
 0x1c3   : > { %v893_v26 = vpop.f32.mrf.mxu1  ;;  %9418 = vmatpush3.msra.mxu0 %v2460_v18  ;;  %9295 = vmatmul.mubr.f32.vlgmr.msra.gmra.mxu1 %v2034_v19 }
 0x1c4   : > { %v11741_v30 = vadd.f32 %v893_v26, %v623_v24  ;;  %v8623_v32 = vpop.f32.mrf.mxu0  ;;  %9142 = vmatprep.mubr.msk.f32.mxu0 %vm10931_vm0, %v10930_v0  ;;  %9297 = vmatprep.mubr.msk.f32.mxu1 %vm10931_vm0, %v10930_v0  ;;  %v2827_v24 = vld [vmem:[#allocation6 + $0x3e8] sm:$0xff] }
 0x1c5   : > { %v8778_v35 = vpop.f32.mrf.mxu1  ;;  %9419 = vmatprep.subr.mxu0 %v10930_v0  ;;  %9573 = vmatpush3.msra.mxu1 %v2829_v57  ;;  %v2038_v32 = vld [vmem:[%s11105_s10 + $0x34] sm:$0xff] }
 0x1c6   : > { %v628_v39 = vpop.f32.mrf.mxu0  ;;  %9143 = vmatmul.mubr.f32.gmra.mxu0 %v1666_v27  ;;  %9574 = vmatprep.subr.mxu1 %v10930_v0  ;;  %v2456_v35 = vld [vmem:[#allocation6 + $0x358] sm:$0xff]  ;;  %v2455_v57 = vld [vmem:[#allocation6 + $0x350] sm:$0xff] }
 0x1c7   : > { %v898_v42 = vpop.f32.mrf.mxu1  ;;  %9298 = vmatmul.mubr.f32.gmra.mxu1 %v2035_v34  ;;  %9145 = vmatprep.mubr.msk.f32.mxu0 %vm10931_vm0, %v10930_v0 }
 0x1c8   : > { %v11752_v46 = vadd.f32 %v898_v42, %v628_v39  ;;  %v8626_v47 = vpop.f32.mrf.mxu0  ;;  %9300 = vmatprep.mubr.msk.f32.mxu1 %vm10931_vm0, %v10930_v0  ;;  %9420 = vmatpush3.msra.mxu0 %v2459_v38  ;;  %v1670_v42 = vld [vmem:[%s11105_s10 + $0x3b] sm:$0xff] }
 0x1c9   : > { %v8781_v53 = vpop.f32.mrf.mxu1  ;;  %9421 = vmatprep.subr.mxu0 %v10930_v0  ;;  %9575 = vmatpush3.msra.mxu1 %v2828_v5  ;;  %v2825_v5 = vld [vmem:[#allocation6 + $0x3d8] sm:$0xff] }
 0x1ca   : > { %v633_v60 = vpop.f32.mrf.mxu0  ;;  %9146 = vmatmul.mubr.f32.gmra.mxu0 %v1667_v44  ;;  %9576 = vmatprep.subr.mxu1 %v10930_v0  ;;  %v2826_v44 = vld [vmem:[#allocation6 + $0x3e0] sm:$0xff] }
 0x1cb   : > { %v903_v61 = vpop.f32.mrf.mxu1  ;;  %9301 = vmatmul.mubr.f32.gmra.mxu1 %v2036_v49  ;;  %9148 = vmatprep.mubr.msk.f32.mxu0 %vm10931_vm0, %v10930_v0  ;;  %v2039_v53 = vld [vmem:[%s11105_s10 + $0x3c] sm:$0xff] }
 0x1cc   : > { %v11761_v6 = vadd.f32 %v903_v61, %v633_v60  ;;  %v8629_v7 = vpop.f32.mrf.mxu0  ;;  %9303 = vmatprep.mubr.msk.f32.mxu1 %vm10931_vm0, %v10930_v0  ;;  %9422 = vmatpush3.msra.mxu0 %v2458_v55 }
 0x1cd   : > { %v8784_v13 = vpop.f32.mrf.mxu1  ;;  %9423 = vmatprep.subr.mxu0 %v10930_v0  ;;  %9577 = vmatpush3.msra.mxu1 %v2827_v24  ;;  %v1672_v24 = vld [vmem:[%s11105_s10 + $0x4b] sm:$0xff] }
 0x1ce   : > { %v638_v18 = vpop.f32.mrf.mxu0  ;;  %9149 = vmatmul.mubr.f32.gmra.mxu0 %v1668_v3  ;;  %9578 = vmatprep.subr.mxu1 %v10930_v0  ;;  %v1671_v3 = vld [vmem:[%s11105_s10 + $0x43] sm:$0xff] }
 0x1cf   : > { %v908_v19 = vpop.f32.mrf.mxu1  ;;  %9304 = vmatmul.mubr.f32.gmra.mxu1 %v2037_v10  ;;  %9151 = vmatprep.mubr.msk.f32.mxu0 %vm10931_vm0, %v10930_v0  ;;  %v2040_v13 = vld [vmem:[%s11105_s10 + $0x44] sm:$0xff] }
 0x1d0   : > { %v11771_v26 = vadd.f32 %v908_v19, %v638_v18  ;;  %v8632_v27 = vpop.f32.mrf.mxu0  ;;  %9306 = vmatprep.mubr.msk.f32.mxu1 %vm10931_vm0, %v10930_v0  ;;  %9424 = vmatpush3.msra.mxu0 %v2457_v16  ;;  %v2454_v18 = vld [vmem:[#allocation6 + $0x348] sm:$0xff] }
 0x1d1   : > { %v8787_v34 = vpop.f32.mrf.mxu1  ;;  %9425 = vmatprep.subr.mxu0 %v10930_v0  ;;  %9579 = vmatpush3.msra.mxu1 %v2826_v44  ;;  %v2824_v27 = vld [vmem:[#allocation6 + $0x3d0] sm:$0xff] }
 0x1d2   : > { %v643_v38 = vpop.f32.mrf.mxu0  ;;  %9152 = vmatmul.mubr.f32.gmra.mxu0 %v1669_v23  ;;  %9580 = vmatprep.subr.mxu1 %v10930_v0 }
 0x1d3   : > { %v913_v39 = vpop.f32.mrf.mxu1  ;;  %9307 = vmatmul.mubr.f32.gmra.mxu1 %v2038_v32  ;;  %9154 = vmatprep.mubr.msk.f32.mxu0 %vm10931_vm0, %v10930_v0 }
 0x1d4   : > { %v11781_v47 = vadd.f32 %v913_v39, %v643_v38  ;;  %v8635_v49 = vpop.f32.mrf.mxu0  ;;  %9309 = vmatprep.mubr.msk.f32.mxu1 %vm10931_vm0, %v10930_v0  ;;  %9426 = vmatpush3.msra.mxu0 %v2456_v35  ;;  %v2041_v35 = vld [vmem:[%s11105_s10 + $0x4c] sm:$0xff] }
 0x1d5   : > { %v8790_v55 = vpop.f32.mrf.mxu1  ;;  %9427 = vmatprep.subr.mxu0 %v10930_v0  ;;  %9581 = vmatpush3.msra.mxu1 %v2825_v5  ;;  %v2453_v39 = vld [vmem:[#allocation6 + $0x340] sm:$0xff] }
 0x1d6   : > { %v648_v60 = vpop.f32.mrf.mxu0  ;;  %9155 = vmatmul.mubr.f32.gmra.mxu0 %v1670_v42  ;;  %9582 = vmatprep.subr.mxu1 %v10930_v0  ;;  %v2823_v55 = vld [vmem:[#allocation6 + $0x3c8] sm:$0xff] }
 0x1d7   : > { %v918_v61 = vpop.f32.mrf.mxu1  ;;  %9310 = vmatmul.mubr.f32.gmra.mxu1 %v2039_v53  ;;  %9157 = vmatprep.mubr.msk.f32.mxu0 %vm10931_vm0, %v10930_v0  ;;  %v1673_v53 = vld [vmem:[%s11105_s10 + $0x53] sm:$0xff] }
 0x1d8   : > { %v11791_v7 = vadd.f32 %v918_v61, %v648_v60  ;;  %v8638_v10 = vpop.f32.mrf.mxu0  ;;  %9312 = vmatprep.mubr.msk.f32.mxu1 %vm10931_vm0, %v10930_v0  ;;  %9428 = vmatpush3.msra.mxu0 %v2455_v57  ;;  %v2042_v60 = vld [vmem:[%s11105_s10 + $0x54] sm:$0xff] }
 0x1d9   : > { %v8793_v16 = vpop.f32.mrf.mxu1  ;;  %9429 = vmatprep.subr.mxu0 %v10930_v0  ;;  %9583 = vmatpush3.msra.mxu1 %v2824_v27 }
 0x1da   : > { %v653_v19 = vpop.f32.mrf.mxu0  ;;  %9158 = vmatmul.mubr.f32.gmra.mxu0 %v1671_v3  ;;  %9584 = vmatprep.subr.mxu1 %v10930_v0  ;;  %v1674_v16 = vld [vmem:[%s11105_s10 + $0x5b] sm:$0xff] }
 0x1db   : > { %v923_v23 = vpop.f32.mrf.mxu1  ;;  %9313 = vmatmul.mubr.f32.gmra.mxu1 %v2040_v13  ;;  %9160 = vmatprep.mubr.msk.f32.mxu0 %vm10931_vm0, %v10930_v0 }
 0x1dc   : > { %v11801_v32 = vadd.f32 %v923_v23, %v653_v19  ;;  %v8641_v34 = vpop.f32.mrf.mxu0  ;;  %9315 = vmatprep.mubr.msk.f32.mxu1 %vm10931_vm0, %v10930_v0  ;;  %9430 = vmatpush3.msra.mxu0 %v2454_v18  ;;  %v2822_v18 = vld [vmem:[#allocation6 + $0x3c0] sm:$0xff] }
 0x1dd   : > { %v8796_v38 = vpop.f32.mrf.mxu1  ;;  %9431 = vmatprep.subr.mxu0 %v10930_v0  ;;  %9585 = vmatpush3.msra.mxu1 %v2823_v55  ;;  %v2043_v23 = vld [vmem:[%s11105_s10 + $0x5c] sm:$0xff] }
 0x1de   : > { %v1051_v42 = vpop.f32.mrf.mxu0  ;;  %9161 = vmatmul.mubr.f32.gmra.mxu0 %v1672_v24  ;;  %9586 = vmatprep.subr.mxu1 %v10930_v0 }
 0x1df   : > { %v1255_v44 = vadd.f32 %v1051_v42, %v11483_v48  ;;  %v1420_v49 = vpop.f32.mrf.mxu1  ;;  %9316 = vmatmul.mubr.f32.gmra.mxu1 %v2041_v35  ;;  %9163 = vmatprep.mubr.msk.f32.mxu0 %vm10931_vm0, %v10930_v0  ;;  %v2452_v48 = vld [vmem:[#allocation6 + $0x338] sm:$0xff] }
 0x1e0   : > { %v8831_v57 = vpop.f32.mrf.mxu0  ;;  %9318 = vmatprep.mubr.msk.f32.mxu1 %vm10931_vm0, %v10930_v0  ;;  %9432 = vmatpush3.msra.mxu0 %v2453_v39  ;;  %v1675_v39 = vld [vmem:[%s11105_s10 + $0x63] sm:$0xff] }
 0x1e1   : > { %v11815_v61 = vadd.f32 %v1420_v49, %v1255_v44  ;;  %v8986_v3 = vpop.f32.mrf.mxu1  ;;  %9433 = vmatprep.subr.mxu0 %v10930_v0  ;;  %9587 = vmatpush3.msra.mxu1 %v2822_v18  ;;  %v2821_v42 = vld [vmem:[#allocation6 + $0x3b8] sm:$0xff] }
 0x1e2   : > { %v1056_v5 = vpop.f32.mrf.mxu0  ;;  %9164 = vmatmul.mubr.f32.gmra.mxu0 %v1673_v53  ;;  %v2044_v49 = vld [vmem:[%s11105_s10 + $0x64] sm:$0xff]  ;;  %9588 = vmatprep.subr.mxu1 %v10930_v0 }
 0x1e3   : > { %v1256_v10 = vadd.f32 %v1056_v5, %v11492_v56  ;;  %v1425_v13 = vpop.f32.mrf.mxu1  ;;  %9319 = vmatmul.mubr.f32.gmra.mxu1 %v2042_v60  ;;  %9166 = vmatprep.mubr.msk.f32.mxu0 %vm10931_vm0, %v10930_v0  ;;  %v2451_v56 = vld [vmem:[#allocation6 + $0x330] sm:$0xff] }
 0x1e4   : > { %v8834_v19 = vpop.f32.mrf.mxu0  ;;  %9321 = vmatprep.mubr.msk.f32.mxu1 %vm10931_vm0, %v10930_v0  ;;  %9434 = vmatpush3.msra.mxu0 %v2452_v48  ;;  %v1676_v48 = vld [vmem:[%s11105_s10 + $0x6b] sm:$0xff] }
 0x1e5   : > { %v11826_v24 = vadd.f32 %v1425_v13, %v1256_v10  ;;  %v8989_v27 = vpop.f32.mrf.mxu1  ;;  %9435 = vmatprep.subr.mxu0 %v10930_v0  ;;  %9589 = vmatpush3.msra.mxu1 %v2821_v42  ;;  %v2820_v5 = vld [vmem:[#allocation6 + $0x3b0] sm:$0xff] }
 0x1e6   : > { %v1061_v34 = vpop.f32.mrf.mxu0  ;;  %9167 = vmatmul.mubr.f32.gmra.mxu0 %v1674_v16  ;;  %v2045_v13 = vld [vmem:[%s11105_s10 + $0x6c] sm:$0xff]  ;;  %9590 = vmatprep.subr.mxu1 %v10930_v0 }
 0x1e7   : > { %v1257_v35 = vadd.f32 %v1061_v34, %v11501_v1  ;;  %v1430_v38 = vpop.f32.mrf.mxu1  ;;  %9322 = vmatmul.mubr.f32.gmra.mxu1 %v2043_v23  ;;  %9169 = vmatprep.mubr.msk.f32.mxu0 %vm10931_vm0, %v10930_v0  ;;  %v2450_v1 = vld [vmem:[#allocation6 + $0x328] sm:$0xff] }
 0x1e8   : > { %v8837_v44 = vpop.f32.mrf.mxu0  ;;  %9324 = vmatprep.mubr.msk.f32.mxu1 %vm10931_vm0, %v10930_v0  ;;  %9436 = vmatpush3.msra.mxu0 %v2451_v56  ;;  %v1677_v56 = vld [vmem:[%s11105_s10 + $0x73] sm:$0xff] }
 0x1e9   : > { %v11837_v53 = vadd.f32 %v1430_v38, %v1257_v35  ;;  %v8992_v55 = vpop.f32.mrf.mxu1  ;;  %9437 = vmatprep.subr.mxu0 %v10930_v0  ;;  %9591 = vmatpush3.msra.mxu1 %v2820_v5  ;;  %v2819_v34 = vld [vmem:[#allocation6 + $0x3a8] sm:$0xff] }
 0x1ea   : > { %v1066_v57 = vpop.f32.mrf.mxu0  ;;  %9170 = vmatmul.mubr.f32.gmra.mxu0 %v1675_v39  ;;  %v2046_v38 = vld [vmem:[%s11105_s10 + $0x74] sm:$0xff]  ;;  %9592 = vmatprep.subr.mxu1 %v10930_v0 }
 0x1eb   : > { %v1258_v60 = vadd.f32 %v1066_v57, %v11510_v9  ;;  %v1435_v3 = vpop.f32.mrf.mxu1  ;;  %9325 = vmatmul.mubr.f32.gmra.mxu1 %v2044_v49  ;;  %9172 = vmatprep.mubr.msk.f32.mxu0 %vm10931_vm0, %v10930_v0  ;;  %v2449_v9 = vld [vmem:[#allocation6 + $0x320] sm:$0xff] }
 0x1ec   : > { %v8840_v10 = vpop.f32.mrf.mxu0  ;;  %9327 = vmatprep.mubr.msk.f32.mxu1 %vm10931_vm0, %v10930_v0  ;;  %9438 = vmatpush3.msra.mxu0 %v2450_v1  ;;  %v1678_v1 = vld [vmem:[%s11105_s10 + $0x7b] sm:$0xff] }
 0x1ed   : > { %v11848_v16 = vadd.f32 %v1435_v3, %v1258_v60  ;;  %v8995_v18 = vpop.f32.mrf.mxu1  ;;  %9439 = vmatprep.subr.mxu0 %v10930_v0  ;;  %9593 = vmatpush3.msra.mxu1 %v2819_v34  ;;  %v2818_v57 = vld [vmem:[#allocation6 + $0x3a0] sm:$0xff] }
 0x1ee   : > { %v1071_v19 = vpop.f32.mrf.mxu0  ;;  %9173 = vmatmul.mubr.f32.gmra.mxu0 %v1676_v48  ;;  %v2047_v3 = vld [vmem:[%s11105_s10 + $0x7c] sm:$0xff]  ;;  %9594 = vmatprep.subr.mxu1 %v10930_v0 }
 0x1ef   : > { %v1259_v23 = vadd.f32 %v1071_v19, %v11519_v17  ;;  %v1440_v27 = vpop.f32.mrf.mxu1  ;;  %9328 = vmatmul.mubr.f32.gmra.mxu1 %v2045_v13  ;;  %9175 = vmatprep.mubr.msk.f32.mxu0 %vm10931_vm0, %v10930_v0  ;;  %v2448_v17 = vld [vmem:[#allocation6 + $0x318] sm:$0xff] }
 0x1f0   : > { %v8843_v35 = vpop.f32.mrf.mxu0  ;;  %9330 = vmatprep.mubr.msk.f32.mxu1 %vm10931_vm0, %v10930_v0  ;;  %9440 = vmatpush3.msra.mxu0 %v2449_v9  ;;  %v1679_v9 = vld [vmem:[%s11105_s10 + $0x83] sm:$0xff] }
 0x1f1   : > { %v11859_v39 = vadd.f32 %v1440_v27, %v1259_v23  ;;  %v8998_v42 = vpop.f32.mrf.mxu1  ;;  %9441 = vmatprep.subr.mxu0 %v10930_v0  ;;  %9595 = vmatpush3.msra.mxu1 %v2818_v57  ;;  %v2817_v19 = vld [vmem:[#allocation6 + $0x398] sm:$0xff] }
 0x1f2   : > { %v1076_v44 = vpop.f32.mrf.mxu0  ;;  %9176 = vmatmul.mubr.f32.gmra.mxu0 %v1677_v56  ;;  %v2048_v27 = vld [vmem:[%s11105_s10 + $0x84] sm:$0xff]  ;;  %9596 = vmatprep.subr.mxu1 %v10930_v0 }
 0x1f3   : > { %v1260_v49 = vadd.f32 %v1076_v44, %v11528_v25  ;;  %v1445_v55 = vpop.f32.mrf.mxu1  ;;  %9331 = vmatmul.mubr.f32.gmra.mxu1 %v2046_v38  ;;  %9178 = vmatprep.mubr.msk.f32.mxu0 %vm10931_vm0, %v10930_v0  ;;  %v2447_v25 = vld [vmem:[#allocation6 + $0x310] sm:$0xff] }
 0x1f4   : > { %v8846_v60 = vpop.f32.mrf.mxu0  ;;  %9333 = vmatprep.mubr.msk.f32.mxu1 %vm10931_vm0, %v10930_v0  ;;  %9442 = vmatpush3.msra.mxu0 %v2448_v17  ;;  %v1680_v17 = vld [vmem:[%s11105_s10 + $0x8b] sm:$0xff] }
 0x1f5   : > { %v11870_v48 = vadd.f32 %v1445_v55, %v1260_v49  ;;  %v9001_v5 = vpop.f32.mrf.mxu1  ;;  %9443 = vmatprep.subr.mxu0 %v10930_v0  ;;  %9597 = vmatpush3.msra.mxu1 %v2817_v19  ;;  %v2816_v44 = vld [vmem:[#allocation6 + $0x390] sm:$0xff] }
 0x1f6   : > { %v1081_v10 = vpop.f32.mrf.mxu0  ;;  %9179 = vmatmul.mubr.f32.gmra.mxu0 %v1678_v1  ;;  %v2049_v55 = vld [vmem:[%s11105_s10 + $0x8c] sm:$0xff]  ;;  %9598 = vmatprep.subr.mxu1 %v10930_v0 }
 0x1f7   : > { %v1261_v13 = vadd.f32 %v1081_v10, %v11537_v33  ;;  %v1450_v18 = vpop.f32.mrf.mxu1  ;;  %9334 = vmatmul.mubr.f32.gmra.mxu1 %v2047_v3  ;;  %9181 = vmatprep.mubr.msk.f32.mxu0 %vm10931_vm0, %v10930_v0  ;;  %v2446_v33 = vld [vmem:[#allocation6 + $0x308] sm:$0xff] }
 0x1f8   : > { %v8849_v23 = vpop.f32.mrf.mxu0  ;;  %9336 = vmatprep.mubr.msk.f32.mxu1 %vm10931_vm0, %v10930_v0  ;;  %9444 = vmatpush3.msra.mxu0 %v2447_v25  ;;  %v1681_v25 = vld [vmem:[%s11105_s10 + $0x93] sm:$0xff] }
 0x1f9   : > { %v11881_v56 = vadd.f32 %v1450_v18, %v1261_v13  ;;  %v9004_v34 = vpop.f32.mrf.mxu1  ;;  %9445 = vmatprep.subr.mxu0 %v10930_v0  ;;  %9599 = vmatpush3.msra.mxu1 %v2816_v44  ;;  %v2815_v10 = vld [vmem:[#allocation6 + $0x388] sm:$0xff]  ;;  %v2814_v23 = vld [vmem:[#allocation6 + $0x380] sm:$0xff] }
 0x1fa   : > { %v1086_v35 = vpop.f32.mrf.mxu0  ;;  %9182 = vmatmul.mubr.f32.gmra.mxu0 %v1679_v9  ;;  %v2050_v18 = vld [vmem:[%s11105_s10 + $0x94] sm:$0xff]  ;;  %9600 = vmatprep.subr.mxu1 %v10930_v0 }
 0x1fb   : > { %v1262_v38 = vadd.f32 %v1086_v35, %v11546_v41  ;;  %v1455_v42 = vpop.f32.mrf.mxu1  ;;  %9337 = vmatmul.mubr.f32.gmra.mxu1 %v2048_v27  ;;  %9184 = vmatprep.mubr.msk.f32.mxu0 %vm10931_vm0, %v10930_v0  ;;  %v2445_v41 = vld [vmem:[#allocation6 + $0x300] sm:$0xff] }
 0x1fc   : > { %v8852_v49 = vpop.f32.mrf.mxu0  ;;  %9339 = vmatprep.mubr.msk.f32.mxu1 %vm10931_vm0, %v10930_v0  ;;  %9446 = vmatpush3.msra.mxu0 %v2446_v33  ;;  %v1682_v33 = vld [vmem:[%s11105_s10 + $0x9b] sm:$0xff] }
 0x1fd   : > { %v11892_v1 = vadd.f32 %v1455_v42, %v1262_v38  ;;  %v9007_v57 = vpop.f32.mrf.mxu1  ;;  %9447 = vmatprep.subr.mxu0 %v10930_v0  ;;  %9601 = vmatpush3.msra.mxu1 %v2815_v10  ;;  %v2051_v38 = vld [vmem:[%s11105_s10 + $0x9c] sm:$0xff]  ;;  %v1684_v10 = vld [vmem:[%s11105_s10 + $0xab] sm:$0xff] }
 0x1fe   : > { %v1091_v60 = vpop.f32.mrf.mxu0  ;;  %9185 = vmatmul.mubr.f32.gmra.mxu0 %v1680_v17  ;;  %9602 = vmatprep.subr.mxu1 %v10930_v0 }
 0x1ff   : > { %v1263_v3 = vadd.f32 %v1091_v60, %v11555_v50  ;;  %v1460_v5 = vpop.f32.mrf.mxu1  ;;  %9340 = vmatmul.mubr.f32.gmra.mxu1 %v2049_v55  ;;  %9187 = vmatprep.mubr.msk.f32.mxu0 %vm10931_vm0, %v10930_v0  ;;  %v1683_v55 = vld [vmem:[%s11105_s10 + $0xa3] sm:$0xff] }
 0x200   : > { %v8855_v13 = vpop.f32.mrf.mxu0  ;;  %9342 = vmatprep.mubr.msk.f32.mxu1 %vm10931_vm0, %v10930_v0  ;;  %9448 = vmatpush3.msra.mxu0 %v2445_v41  ;;  %v2052_v41 = vld [vmem:[%s11105_s10 + $0xa4] sm:$0xff] }
 0x201   : > { %v11903_v9 = vadd.f32 %v1460_v5, %v1263_v3  ;;  %v9010_v19 = vpop.f32.mrf.mxu1  ;;  %9727 = vmatprep.subr.mxu0 %v10930_v0  ;;  %9603 = vmatpush3.msra.mxu1 %v2814_v23 }
 0x202   : > { %v1096_v50 = vpop.f32.mrf.mxu0  ;;  %9188 = vmatmul.mubr.f32.gmra.mxu0 %v1681_v25 }
 0x203   : > { %v1264_v27 = vadd.f32 %v1096_v50, %v11564_v58  ;;  %v1465_v34 = vpop.f32.mrf.mxu1  ;;  %9343 = vmatmul.mubr.f32.gmra.mxu1 %v2050_v18  ;;  %9190 = vmatprep.mubr.msk.f32.mxu0 %vm10931_vm0, %v10930_v0  ;;  %v2053_v18 = vld [vmem:[%s11105_s10 + $0xac] sm:$0xff] }
 0x204   : > { %v8858_v35 = vpop.f32.mrf.mxu0  ;;  %9345 = vmatprep.mubr.msk.f32.mxu1 %vm10931_vm0, %v10930_v0 }
 0x205   : > { %v11915_v42 = vadd.f32 %v1465_v34, %v1264_v27  ;;  %v9013_v17 = vpop.f32.mrf.mxu1  ;;  %v1685_v34 = vld [vmem:[%s11105_s10 + $0xb3] sm:$0xff] }
 0x206   : > { %v1101_v58 = vpop.f32.mrf.mxu0  ;;  %9191 = vmatmul.mubr.f32.gmra.mxu0 %v1682_v33  ;;  %v2054_v35 = vld [vmem:[%s11105_s10 + $0xb4] sm:$0xff] }
 0x207   : > { %v1265_v44 = vadd.f32 %v1101_v58, %v11573_v2  ;;  %v1470_v49 = vpop.f32.mrf.mxu1  ;;  %9346 = vmatmul.mubr.f32.gmra.mxu1 %v2051_v38  ;;  %9193 = vmatprep.mubr.msk.f32.mxu0 %vm10931_vm0, %v10930_v0 }
 0x208   : > { %v8861_v57 = vpop.f32.mrf.mxu0  ;;  %9348 = vmatprep.mubr.msk.f32.mxu1 %vm10931_vm0, %v10930_v0 }
 0x209   : > { %v11924_v60 = vadd.f32 %v1470_v49, %v1265_v44  ;;  %v9016_v3 = vpop.f32.mrf.mxu1  ;;  %v1686_v49 = vld [vmem:[%s11105_s10 + $0xbb] sm:$0xff] }
 0x20a   : > { %v1106_v5 = vpop.f32.mrf.mxu0  ;;  %9194 = vmatmul.mubr.f32.gmra.mxu0 %v1683_v55  ;;  %v2055_v57 = vld [vmem:[%s11105_s10 + $0xbc] sm:$0xff] }
 0x20b   : > { %v1266_v2 = vadd.f32 %v1106_v5, %v11580_v8  ;;  %v1475_v25 = vpop.f32.mrf.mxu1  ;;  %9349 = vmatmul.mubr.f32.gmra.mxu1 %v2052_v41  ;;  %9196 = vmatprep.mubr.msk.f32.mxu0 %vm10931_vm0, %v10930_v0 }
 0x20c   : > { %v8864_v13 = vpop.f32.mrf.mxu0  ;;  %9351 = vmatprep.mubr.msk.f32.mxu1 %vm10931_vm0, %v10930_v0 }
 0x20d   : > { %v11933_v19 = vadd.f32 %v1475_v25, %v1266_v2  ;;  %v9019_v50 = vpop.f32.mrf.mxu1  ;;  %v1687_v25 = vld [vmem:[%s11105_s10 + $0xc3] sm:$0xff] }
 0x20e   : > { %v1111_v23 = vpop.f32.mrf.mxu0  ;;  %9197 = vmatmul.mubr.f32.gmra.mxu0 %v1684_v10  ;;  %v2056_v13 = vld [vmem:[%s11105_s10 + $0xc4] sm:$0xff] }
 0x20f   : > { %v1267_v8 = vadd.f32 %v1111_v23, %v11587_v15  ;;  %v1480_v27 = vpop.f32.mrf.mxu1  ;;  %9352 = vmatmul.mubr.f32.gmra.mxu1 %v2053_v18  ;;  %9199 = vmatprep.mubr.msk.f32.mxu0 %vm10931_vm0, %v10930_v0 }
 0x210   : > { %v8867_v33 = vpop.f32.mrf.mxu0  ;;  %9354 = vmatprep.mubr.msk.f32.mxu1 %vm10931_vm0, %v10930_v0 }
 0x211   : > { %v11942_v38 = vadd.f32 %v1480_v27, %v1267_v8  ;;  %v9022_v17 = vpop.f32.mrf.mxu1  ;;  %v1688_v27 = vld [vmem:[%s11105_s10 + $0xcb] sm:$0xff] }
 0x212   : > { %v1116_v58 = vpop.f32.mrf.mxu0  ;;  %9200 = vmatmul.mubr.f32.gmra.mxu0 %v1685_v34  ;;  %v2057_v33 = vld [vmem:[%s11105_s10 + $0xcc] sm:$0xff] }
 0x213   : > { %v1268_v15 = vadd.f32 %v1116_v58, %v11594_v22  ;;  %v1485_v44 = vpop.f32.mrf.mxu1  ;;  %9355 = vmatmul.mubr.f32.gmra.mxu1 %v2054_v35  ;;  %9202 = vmatprep.mubr.msk.f32.mxu0 %vm10931_vm0, %v10930_v0 }
 0x214   : > { %v8870_v55 = vpop.f32.mrf.mxu0  ;;  %9357 = vmatprep.mubr.msk.f32.mxu1 %vm10931_vm0, %v10930_v0 }
 0x215   : > { %v11951_v41 = vadd.f32 %v1485_v44, %v1268_v15  ;;  %v9025_v3 = vpop.f32.mrf.mxu1  ;;  %v1689_v44 = vld [vmem:[%s11105_s10 + $0xd3] sm:$0xff] }
 0x216   : > { %v1121_v5 = vpop.f32.mrf.mxu0  ;;  %9203 = vmatmul.mubr.f32.gmra.mxu0 %v1686_v49  ;;  %v2058_v55 = vld [vmem:[%s11105_s10 + $0xd4] sm:$0xff] }
 0x217   : > { %v1269_v22 = vadd.f32 %v1121_v5, %v11601_v29  ;;  %v1490_v2 = vpop.f32.mrf.mxu1  ;;  %9358 = vmatmul.mubr.f32.gmra.mxu1 %v2055_v57  ;;  %9205 = vmatprep.mubr.msk.f32.mxu0 %vm10931_vm0, %v10930_v0 }
 0x218   : > { %v8873_v10 = vpop.f32.mrf.mxu0  ;;  %9360 = vmatprep.mubr.msk.f32.mxu1 %vm10931_vm0, %v10930_v0 }
 0x219   : > { %v11960_v18 = vadd.f32 %v1490_v2, %v1269_v22  ;;  %v9028_v50 = vpop.f32.mrf.mxu1  ;;  %v1690_v2 = vld [vmem:[%s11105_s10 + $0xdb] sm:$0xff] }
 0x21a   : > { %v1126_v23 = vpop.f32.mrf.mxu0  ;;  %9206 = vmatmul.mubr.f32.gmra.mxu0 %v1687_v25  ;;  %v2059_v10 = vld [vmem:[%s11105_s10 + $0xdc] sm:$0xff] }
 0x21b   : > { %v1270_v29 = vadd.f32 %v1126_v23, %v11608_v36  ;;  %v1495_v8 = vpop.f32.mrf.mxu1  ;;  %9361 = vmatmul.mubr.f32.gmra.mxu1 %v2056_v13  ;;  %9208 = vmatprep.mubr.msk.f32.mxu0 %vm10931_vm0, %v10930_v0 }
 0x21c   : > { %v8876_v34 = vpop.f32.mrf.mxu0  ;;  %9363 = vmatprep.mubr.msk.f32.mxu1 %vm10931_vm0, %v10930_v0 }
 0x21d   : > { %v11969_v35 = vadd.f32 %v1495_v8, %v1270_v29  ;;  %v9031_v17 = vpop.f32.mrf.mxu1  ;;  %v1691_v8 = vld [vmem:[%s11105_s10 + $0xe3] sm:$0xff] }
 0x21e   : > { %v1131_v58 = vpop.f32.mrf.mxu0  ;;  %9209 = vmatmul.mubr.f32.gmra.mxu0 %v1688_v27  ;;  %v2060_v34 = vld [vmem:[%s11105_s10 + $0xe4] sm:$0xff] }
 0x21f   : > { %v1271_v36 = vadd.f32 %v1131_v58, %v11615_v43  ;;  %v1500_v15 = vpop.f32.mrf.mxu1  ;;  %9364 = vmatmul.mubr.f32.gmra.mxu1 %v2057_v33  ;;  %9211 = vmatprep.mubr.msk.f32.mxu0 %vm10931_vm0, %v10930_v0 }
 0x220   : > { %v8879_v49 = vpop.f32.mrf.mxu0  ;;  %9366 = vmatprep.mubr.msk.f32.mxu1 %vm10931_vm0, %v10930_v0 }
 0x221   : > { %v11978_v57 = vadd.f32 %v1500_v15, %v1271_v36  ;;  %v9034_v3 = vpop.f32.mrf.mxu1  ;;  %v1692_v15 = vld [vmem:[%s11105_s10 + $0xeb] sm:$0xff] }
 0x222   : > { %v1136_v5 = vpop.f32.mrf.mxu0  ;;  %9212 = vmatmul.mubr.f32.gmra.mxu0 %v1689_v44  ;;  %v2061_v49 = vld [vmem:[%s11105_s10 + $0xec] sm:$0xff] }
 0x223   : > { %v1272_v43 = vadd.f32 %v1136_v5, %v11622_v51  ;;  %v1505_v22 = vpop.f32.mrf.mxu1  ;;  %9367 = vmatmul.mubr.f32.gmra.mxu1 %v2058_v55  ;;  %9214 = vmatprep.mubr.msk.f32.mxu0 %vm10931_vm0, %v10930_v0 }
 0x224   : > { %v8882_v25 = vpop.f32.mrf.mxu0  ;;  %9369 = vmatprep.mubr.msk.f32.mxu1 %vm10931_vm0, %v10930_v0 }
 0x225   : > { %v11987_v13 = vadd.f32 %v1505_v22, %v1272_v43  ;;  %v9037_v50 = vpop.f32.mrf.mxu1  ;;  %v1693_v22 = vld [vmem:[%s11105_s10 + $0xf3] sm:$0xff] }
 0x226   : > { %v1141_v23 = vpop.f32.mrf.mxu0  ;;  %9215 = vmatmul.mubr.f32.gmra.mxu0 %v1690_v2  ;;  %v2062_v25 = vld [vmem:[%s11105_s10 + $0xf4] sm:$0xff] }
 0x227   : > { %v1273_v51 = vadd.f32 %v1141_v23, %v11629_v59  ;;  %v1510_v29 = vpop.f32.mrf.mxu1  ;;  %9370 = vmatmul.mubr.f32.gmra.mxu1 %v2059_v10  ;;  %9217 = vmatprep.mubr.msk.f32.mxu0 %vm10931_vm0, %v10930_v0 }
 0x228   : > { %v8885_v27 = vpop.f32.mrf.mxu0  ;;  %9372 = vmatprep.mubr.msk.f32.mxu1 %vm10931_vm0, %v10930_v0 }
 0x229   : > { %v11996_v33 = vadd.f32 %v1510_v29, %v1273_v51  ;;  %v9040_v17 = vpop.f32.mrf.mxu1  ;;  %v1694_v29 = vld [vmem:[%s11105_s10 + $0xfb] sm:$0xff] }
 0x22a   : > { %v1146_v58 = vpop.f32.mrf.mxu0  ;;  %9218 = vmatmul.mubr.f32.gmra.mxu0 %v1691_v8  ;;  %v2063_v27 = vld [vmem:[%s11105_s10 + $0xfc] sm:$0xff] }
 0x22b   : > { %v1274_v59 = vadd.f32 %v1146_v58, %v11636_v4  ;;  %v1515_v36 = vpop.f32.mrf.mxu1  ;;  %9373 = vmatmul.mubr.f32.gmra.mxu1 %v2060_v34  ;;  %9220 = vmatprep.mubr.msk.f32.mxu0 %vm10931_vm0, %v10930_v0 }
 0x22c   : > { %v8888_v44 = vpop.f32.mrf.mxu0  ;;  %9375 = vmatprep.mubr.msk.f32.mxu1 %vm10931_vm0, %v10930_v0 }
 0x22d   : > { %v12005_v55 = vadd.f32 %v1515_v36, %v1274_v59  ;;  %v9043_v3 = vpop.f32.mrf.mxu1  ;;  %v1695_v36 = vld [vmem:[%s11105_s10 + $0x103] sm:$0xff] }
 0x22e   : > { %v1151_v5 = vpop.f32.mrf.mxu0  ;;  %9221 = vmatmul.mubr.f32.gmra.mxu0 %v1692_v15  ;;  %v2064_v44 = vld [vmem:[%s11105_s10 + $0x104] sm:$0xff] }
 0x22f   : > { %v1275_v4 = vadd.f32 %v1151_v5, %v11643_v12  ;;  %v1520_v43 = vpop.f32.mrf.mxu1  ;;  %9376 = vmatmul.mubr.f32.gmra.mxu1 %v2061_v49  ;;  %9223 = vmatprep.mubr.msk.f32.mxu0 %vm10931_vm0, %v10930_v0 }
 0x230   : > { %v8891_v2 = vpop.f32.mrf.mxu0  ;;  %9378 = vmatprep.mubr.msk.f32.mxu1 %vm10931_vm0, %v10930_v0 }
 0x231   : > { %v12014_v10 = vadd.f32 %v1520_v43, %v1275_v4  ;;  %v9046_v50 = vpop.f32.mrf.mxu1  ;;  %v1696_v43 = vld [vmem:[%s11105_s10 + $0x10b] sm:$0xff] }
 0x232   : > { %v1156_v23 = vpop.f32.mrf.mxu0  ;;  %9224 = vmatmul.mubr.f32.gmra.mxu0 %v1693_v22  ;;  %v2065_v2 = vld [vmem:[%s11105_s10 + $0x10c] sm:$0xff] }
 0x233   : > { %v1276_v12 = vadd.f32 %v1156_v23, %v11650_v20  ;;  %v1525_v51 = vpop.f32.mrf.mxu1  ;;  %9379 = vmatmul.mubr.f32.gmra.mxu1 %v2062_v25  ;;  %9226 = vmatprep.mubr.msk.f32.mxu0 %vm10931_vm0, %v10930_v0 }
 0x234   : > { %v8894_v8 = vpop.f32.mrf.mxu0  ;;  %9381 = vmatprep.mubr.msk.f32.mxu1 %vm10931_vm0, %v10930_v0 }
 0x235   : > { %v12023_v34 = vadd.f32 %v1525_v51, %v1276_v12  ;;  %v9049_v17 = vpop.f32.mrf.mxu1  ;;  %v1697_v51 = vld [vmem:[%s11105_s10 + $0x113] sm:$0xff] }
 0x236   : > { %v1161_v58 = vpop.f32.mrf.mxu0  ;;  %9227 = vmatmul.mubr.f32.gmra.mxu0 %v1694_v29  ;;  %v2066_v8 = vld [vmem:[%s11105_s10 + $0x114] sm:$0xff] }
 0x237   : > { %v1277_v20 = vadd.f32 %v1161_v58, %v11657_v28  ;;  %v1530_v59 = vpop.f32.mrf.mxu1  ;;  %9382 = vmatmul.mubr.f32.gmra.mxu1 %v2063_v27  ;;  %9229 = vmatprep.mubr.msk.f32.mxu0 %vm10931_vm0, %v10930_v0 }
 0x238   : > { %v8897_v15 = vpop.f32.mrf.mxu0  ;;  %9384 = vmatprep.mubr.msk.f32.mxu1 %vm10931_vm0, %v10930_v0 }
 0x239   : > { %v12032_v49 = vadd.f32 %v1530_v59, %v1277_v20  ;;  %v9052_v3 = vpop.f32.mrf.mxu1  ;;  %v1698_v59 = vld [vmem:[%s11105_s10 + $0x11b] sm:$0xff] }
 0x23a   : > { %v1166_v5 = vpop.f32.mrf.mxu0  ;;  %9230 = vmatmul.mubr.f32.gmra.mxu0 %v1695_v36  ;;  %v2067_v15 = vld [vmem:[%s11105_s10 + $0x11c] sm:$0xff] }
 0x23b   : > { %v1278_v28 = vadd.f32 %v1166_v5, %v11664_v37  ;;  %v1535_v4 = vpop.f32.mrf.mxu1  ;;  %9385 = vmatmul.mubr.f32.gmra.mxu1 %v2064_v44  ;;  %9232 = vmatprep.mubr.msk.f32.mxu0 %vm10931_vm0, %v10930_v0 }
 0x23c   : > { %v8900_v22 = vpop.f32.mrf.mxu0  ;;  %9387 = vmatprep.mubr.msk.f32.mxu1 %vm10931_vm0, %v10930_v0 }
 0x23d   : > { %v12041_v25 = vadd.f32 %v1535_v4, %v1278_v28  ;;  %v9055_v50 = vpop.f32.mrf.mxu1  ;;  %v1699_v4 = vld [vmem:[%s11105_s10 + $0x123] sm:$0xff] }
 0x23e   : > { %v1171_v23 = vpop.f32.mrf.mxu0  ;;  %9233 = vmatmul.mubr.f32.gmra.mxu0 %v1696_v43  ;;  %v2068_v22 = vld [vmem:[%s11105_s10 + $0x124] sm:$0xff] }
 0x23f   : > { %v1279_v37 = vadd.f32 %v1171_v23, %v11671_v45  ;;  %v1540_v12 = vpop.f32.mrf.mxu1  ;;  %9388 = vmatmul.mubr.f32.gmra.mxu1 %v2065_v2  ;;  %9235 = vmatprep.mubr.msk.f32.mxu0 %vm10931_vm0, %v10930_v0 }
 0x240   : > { %v8903_v29 = vpop.f32.mrf.mxu0  ;;  %9390 = vmatprep.mubr.msk.f32.mxu1 %vm10931_vm0, %v10930_v0 }
 0x241   : > { %v12050_v27 = vadd.f32 %v1540_v12, %v1279_v37  ;;  %v9058_v17 = vpop.f32.mrf.mxu1  ;;  %v1700_v12 = vld [vmem:[%s11105_s10 + $0x12b] sm:$0xff] }
 0x242   : > { %v1176_v58 = vpop.f32.mrf.mxu0  ;;  %9236 = vmatmul.mubr.f32.gmra.mxu0 %v1697_v51  ;;  %v2069_v29 = vld [vmem:[%s11105_s10 + $0x12c] sm:$0xff] }
 0x243   : > { %v1280_v45 = vadd.f32 %v1176_v58, %v11678_v54  ;;  %v1545_v20 = vpop.f32.mrf.mxu1  ;;  %9391 = vmatmul.mubr.f32.gmra.mxu1 %v2066_v8  ;;  %9238 = vmatprep.mubr.msk.f32.mxu0 %vm10931_vm0, %v10930_v0 }
 0x244   : > { %v8906_v36 = vpop.f32.mrf.mxu0  ;;  %9393 = vmatprep.mubr.msk.f32.mxu1 %vm10931_vm0, %v10930_v0 }
 0x245   : > { %v12059_v44 = vadd.f32 %v1545_v20, %v1280_v45  ;;  %v9061_v3 = vpop.f32.mrf.mxu1  ;;  %v1701_v20 = vld [vmem:[%s11105_s10 + $0x133] sm:$0xff] }
 0x246   : > { %v1181_v5 = vpop.f32.mrf.mxu0  ;;  %9239 = vmatmul.mubr.f32.gmra.mxu0 %v1698_v59  ;;  %v2070_v36 = vld [vmem:[%s11105_s10 + $0x134] sm:$0xff] }
 0x247   : > { %v1281_v54 = vadd.f32 %v1181_v5, %v11685_v63  ;;  %v1550_v28 = vpop.f32.mrf.mxu1  ;;  %9394 = vmatmul.mubr.f32.gmra.mxu1 %v2067_v15  ;;  %9241 = vmatprep.mubr.msk.f32.mxu0 %vm10931_vm0, %v10930_v0 }
 0x248   : > { %v8909_v43 = vpop.f32.mrf.mxu0  ;;  %9396 = vmatprep.mubr.msk.f32.mxu1 %vm10931_vm0, %v10930_v0 }
 0x249   : > { %v12068_v2 = vadd.f32 %v1550_v28, %v1281_v54  ;;  %v9064_v50 = vpop.f32.mrf.mxu1  ;;  %v1702_v28 = vld [vmem:[%s11105_s10 + $0x13b] sm:$0xff] }
 0x24a   : > { %v1186_v23 = vpop.f32.mrf.mxu0  ;;  %9242 = vmatmul.mubr.f32.gmra.mxu0 %v1699_v4  ;;  %v2071_v43 = vld [vmem:[%s11105_s10 + $0x13c] sm:$0xff] }
 0x24b   : > { %v1282_v63 = vadd.f32 %v1186_v23, %v11692_v11  ;;  %v1555_v37 = vpop.f32.mrf.mxu1  ;;  %9397 = vmatmul.mubr.f32.gmra.mxu1 %v2068_v22  ;;  %9244 = vmatprep.mubr.msk.f32.mxu0 %vm10931_vm0, %v10930_v0 }
 0x24c   : > { %v8912_v51 = vpop.f32.mrf.mxu0  ;;  %9399 = vmatprep.mubr.msk.f32.mxu1 %vm10931_vm0, %v10930_v0 }
 0x24d   : > { %v12077_v8 = vadd.f32 %v1555_v37, %v1282_v63  ;;  %v9067_v17 = vpop.f32.mrf.mxu1  ;;  %v1703_v37 = vld [vmem:[%s11105_s10 + $0x143] sm:$0xff] }
 0x24e   : > { %v1191_v58 = vpop.f32.mrf.mxu0  ;;  %9245 = vmatmul.mubr.f32.gmra.mxu0 %v1700_v12  ;;  %v2072_v51 = vld [vmem:[%s11105_s10 + $0x144] sm:$0xff] }
 0x24f   : > { %v1283_v11 = vadd.f32 %v1191_v58, %v11699_v21  ;;  %v1560_v45 = vpop.f32.mrf.mxu1  ;;  %9400 = vmatmul.mubr.f32.gmra.mxu1 %v2069_v29  ;;  %9247 = vmatprep.mubr.msk.f32.mxu0 %vm10931_vm0, %v10930_v0 }
 0x250   : > { %v8915_v59 = vpop.f32.mrf.mxu0  ;;  %9402 = vmatprep.mubr.msk.f32.mxu1 %vm10931_vm0, %v10930_v0 }
 0x251   : > { %v12086_v15 = vadd.f32 %v1560_v45, %v1283_v11  ;;  %v9070_v3 = vpop.f32.mrf.mxu1  ;;  %v1704_v45 = vld [vmem:[%s11105_s10 + $0x14b] sm:$0xff] }
 0x252   : > { %v1196_v5 = vpop.f32.mrf.mxu0  ;;  %9248 = vmatmul.mubr.f32.gmra.mxu0 %v1701_v20  ;;  %v2073_v59 = vld [vmem:[%s11105_s10 + $0x14c] sm:$0xff] }
 0x253   : > { %v1284_v21 = vadd.f32 %v1196_v5, %v11706_v31  ;;  %v1565_v54 = vpop.f32.mrf.mxu1  ;;  %9403 = vmatmul.mubr.f32.gmra.mxu1 %v2070_v36  ;;  %9250 = vmatprep.mubr.msk.f32.mxu0 %vm10931_vm0, %v10930_v0 }
 0x254   : > { %v8918_v4 = vpop.f32.mrf.mxu0  ;;  %9405 = vmatprep.mubr.msk.f32.mxu1 %vm10931_vm0, %v10930_v0 }
 0x255   : > { %v12095_v22 = vadd.f32 %v1565_v54, %v1284_v21  ;;  %v9073_v50 = vpop.f32.mrf.mxu1  ;;  %v1705_v54 = vld [vmem:[%s11105_s10 + $0x153] sm:$0xff] }
 0x256   : > { %v1201_v23 = vpop.f32.mrf.mxu0  ;;  %9251 = vmatmul.mubr.f32.gmra.mxu0 %v1702_v28  ;;  %v2074_v4 = vld [vmem:[%s11105_s10 + $0x154] sm:$0xff] }
 0x257   : > { %v1285_v31 = vadd.f32 %v1201_v23, %v11713_v40  ;;  %v1570_v63 = vpop.f32.mrf.mxu1  ;;  %9406 = vmatmul.mubr.f32.gmra.mxu1 %v2071_v43  ;;  %9253 = vmatprep.mubr.msk.f32.mxu0 %vm10931_vm0, %v10930_v0 }
 0x258   : > { %v8921_v12 = vpop.f32.mrf.mxu0  ;;  %9408 = vmatprep.mubr.msk.f32.mxu1 %vm10931_vm0, %v10930_v0 }
 0x259   : > { %v12104_v29 = vadd.f32 %v1570_v63, %v1285_v31  ;;  %v9076_v17 = vpop.f32.mrf.mxu1  ;;  %v2403_v63 = vld [vmem:[%s11105_s10 + $0x24] sm:$0xff] }
 0x25a   : > { %v1206_v58 = vpop.f32.mrf.mxu0  ;;  %9254 = vmatmul.mubr.f32.gmra.mxu0 %v1703_v37  ;;  %v3198_v12 = vld [vmem:[#allocation6 + $0x478] sm:$0xff] }
 0x25b   : > { %v1286_v40 = vadd.f32 %v1206_v58, %v11720_v52  ;;  %v1575_v11 = vpop.f32.mrf.mxu1  ;;  %9409 = vmatmul.mubr.f32.gmra.mxu1 %v2072_v51  ;;  %9256 = vmatprep.mubr.msk.f32.mxu0 %vm10931_vm0, %v10930_v0  ;;  %v2772_v51 = vld [vmem:[%s11105_s10 + $0x25] sm:$0xff] }
 0x25c   : > { %v8924_v20 = vpop.f32.mrf.mxu0  ;;  %9411 = vmatprep.mubr.msk.f32.mxu1 %vm10931_vm0, %v10930_v0 }
 0x25d   : > { %v12113_v36 = vadd.f32 %v1575_v11, %v1286_v40  ;;  %v9079_v3 = vpop.f32.mrf.mxu1 }
 0x25e   : > { %v1211_v5 = vpop.f32.mrf.mxu0  ;;  %9257 = vmatmul.mubr.f32.gmra.mxu0 %v1704_v45  ;;  %v2404_v45 = vld [vmem:[%s11105_s10 + $0x2c] sm:$0xff] }
 0x25f   : > { %v1287_v52 = vadd.f32 %v1211_v5, %v11727_v62  ;;  %v1580_v21 = vpop.f32.mrf.mxu1  ;;  %9412 = vmatmul.mubr.f32.gmra.mxu1 %v2073_v59  ;;  %9259 = vmatprep.mubr.msk.f32.mxu0 %vm10931_vm0, %v10930_v0  ;;  %v2773_v59 = vld [vmem:[%s11105_s10 + $0x2d] sm:$0xff] }
 0x260   : > { %v8927_v28 = vpop.f32.mrf.mxu0  ;;  %9414 = vmatprep.mubr.msk.f32.mxu1 %vm10931_vm0, %v10930_v0 }
 0x261   : > { %v12122_v43 = vadd.f32 %v1580_v21, %v1287_v52  ;;  %v9082_v50 = vpop.f32.mrf.mxu1  ;;  %v2405_v28 = vld [vmem:[%s11105_s10 + $0x34] sm:$0xff] }
 0x262   : > { %v1216_v23 = vpop.f32.mrf.mxu0  ;;  %9260 = vmatmul.mubr.f32.gmra.mxu0 %v1705_v54  ;;  %v2774_v50 = vld [vmem:[%s11105_s10 + $0x35] sm:$0xff] }
 0x263   : > { %v1288_v62 = vadd.f32 %v1216_v23, %v11735_v14  ;;  %v1585_v31 = vpop.f32.mrf.mxu1  ;;  %9415 = vmatmul.mubr.f32.gmra.mxu1 %v2074_v4  ;;  %9449 = vmatprep.mubr.msk.f32.mxu0 %vm10931_vm0, %v10930_v0 }
 0x264   : > { %v8930_v37 = vpop.f32.mrf.mxu0  ;;  %9604 = vmatprep.mubr.msk.f32.mxu1 %vm10931_vm0, %v10930_v0 }
 0x265   : > { %v12131_v17 = vadd.f32 %v1585_v31, %v1288_v62  ;;  %v9085_v58 = vpop.f32.mrf.mxu1 }
 0x266   : > { %v1221_v40 = vpop.f32.mrf.mxu0  ;;  %9450 = vmatmul.mubr.f32.vlgmr.msra.gmra.mxu0 %v2403_v63  ;;  %v2775_v58 = vld [vmem:[%s11105_s10 + $0x3d] sm:$0xff] }
 0x267   : > { %v1289_v14 = vadd.f32 %v1221_v40, %v11741_v30  ;;  %9728 = vmatpush3.msra.mxu0 %v3198_v12  ;;  %v1590_v11 = vpop.f32.mrf.mxu1  ;;  %9605 = vmatmul.mubr.f32.vlgmr.msra.gmra.mxu1 %v2772_v51  ;;  %v3197_v30 = vld [vmem:[#allocation6 + $0x470] sm:$0xff] }
 0x268   : > { %v8933_v20 = vpop.f32.mrf.mxu0  ;;  %9452 = vmatprep.mubr.msk.f32.mxu0 %vm10931_vm0, %v10930_v0  ;;  %9607 = vmatprep.mubr.msk.f32.mxu1 %vm10931_vm0, %v10930_v0  ;;  %v2406_v12 = vld [vmem:[%s11105_s10 + $0x3c] sm:$0xff] }
 0x269   : > { %v12140_v3 = vadd.f32 %v1590_v11, %v1289_v14  ;;  %v9088_v5 = vpop.f32.mrf.mxu1  ;;  %9729 = vmatprep.subr.mxu0 %v10930_v0 }
 0x26a   : > { %v1226_v52 = vpop.f32.mrf.mxu0  ;;  %9453 = vmatmul.mubr.f32.gmra.mxu0 %v2404_v45 }
 0x26b   : > { %v1290_v21 = vadd.f32 %v1226_v52, %v11752_v46  ;;  %v1595_v54 = vpop.f32.mrf.mxu1  ;;  %9608 = vmatmul.mubr.f32.gmra.mxu1 %v2773_v59  ;;  %9455 = vmatprep.mubr.msk.f32.mxu0 %vm10931_vm0, %v10930_v0  ;;  %v3196_v46 = vld [vmem:[#allocation6 + $0x468] sm:$0xff] }
 0x26c   : > { %v8936_v4 = vpop.f32.mrf.mxu0  ;;  %9610 = vmatprep.mubr.msk.f32.mxu1 %vm10931_vm0, %v10930_v0  ;;  %9730 = vmatpush3.msra.mxu0 %v3197_v30  ;;  %v2407_v59 = vld [vmem:[%s11105_s10 + $0x44] sm:$0xff] }
 0x26d   : > { %v12150_v23 = vadd.f32 %v1595_v54, %v1290_v21  ;;  %v9091_v62 = vpop.f32.mrf.mxu1  ;;  %9731 = vmatprep.subr.mxu0 %v10930_v0  ;;  %v2776_v30 = vld [vmem:[%s11105_s10 + $0x45] sm:$0xff] }
 0x26e   : > { %v1231_v31 = vpop.f32.mrf.mxu0  ;;  %9456 = vmatmul.mubr.f32.gmra.mxu0 %v2405_v28 }
 0x26f   : > { %v1291_v63 = vadd.f32 %v1231_v31, %v11761_v6  ;;  %v1600_v37 = vpop.f32.mrf.mxu1  ;;  %9611 = vmatmul.mubr.f32.gmra.mxu1 %v2774_v50  ;;  %9458 = vmatprep.mubr.msk.f32.mxu0 %vm10931_vm0, %v10930_v0  ;;  %v3195_v6 = vld [vmem:[#allocation6 + $0x460] sm:$0xff] }
 0x270   : > { %v8939_v51 = vpop.f32.mrf.mxu0  ;;  %9613 = vmatprep.mubr.msk.f32.mxu1 %vm10931_vm0, %v10930_v0  ;;  %9732 = vmatpush3.msra.mxu0 %v3196_v46  ;;  %v2408_v50 = vld [vmem:[%s11105_s10 + $0x4c] sm:$0xff] }
 0x271   : > { %v12160_v40 = vadd.f32 %v1600_v37, %v1291_v63  ;;  %v9094_v14 = vpop.f32.mrf.mxu1  ;;  %9733 = vmatprep.subr.mxu0 %v10930_v0  ;;  %v2777_v46 = vld [vmem:[%s11105_s10 + $0x4d] sm:$0xff] }
 0x272   : > { %v1236_v11 = vpop.f32.mrf.mxu0  ;;  %9459 = vmatmul.mubr.f32.gmra.mxu0 %v2406_v12 }
 0x273   : > { %v1292_v45 = vadd.f32 %v1236_v11, %v11771_v26  ;;  %v1605_v20 = vpop.f32.mrf.mxu1  ;;  %9614 = vmatmul.mubr.f32.gmra.mxu1 %v2775_v58  ;;  %9461 = vmatprep.mubr.msk.f32.mxu0 %vm10931_vm0, %v10930_v0  ;;  %v3194_v26 = vld [vmem:[#allocation6 + $0x458] sm:$0xff] }
 0x274   : > { %v8942_v5 = vpop.f32.mrf.mxu0  ;;  %9616 = vmatprep.mubr.msk.f32.mxu1 %vm10931_vm0, %v10930_v0  ;;  %9734 = vmatpush3.msra.mxu0 %v3195_v6  ;;  %v2409_v58 = vld [vmem:[%s11105_s10 + $0x54] sm:$0xff] }
 0x275   : > { %v12170_v52 = vadd.f32 %v1605_v20, %v1292_v45  ;;  %v9097_v21 = vpop.f32.mrf.mxu1  ;;  %9735 = vmatprep.subr.mxu0 %v10930_v0  ;;  %v2778_v6 = vld [vmem:[%s11105_s10 + $0x55] sm:$0xff] }
 0x276   : > { %v1241_v54 = vpop.f32.mrf.mxu0  ;;  %9462 = vmatmul.mubr.f32.gmra.mxu0 %v2407_v59 }
 0x277   : > { %v1293_v28 = vadd.f32 %v1241_v54, %v11781_v47  ;;  %v1610_v4 = vpop.f32.mrf.mxu1  ;;  %9617 = vmatmul.mubr.f32.gmra.mxu1 %v2776_v30  ;;  %9464 = vmatprep.mubr.msk.f32.mxu0 %vm10931_vm0, %v10930_v0  ;;  %v3193_v47 = vld [vmem:[#allocation6 + $0x450] sm:$0xff] }
 0x278   : > { %v8945_v62 = vpop.f32.mrf.mxu0  ;;  %9619 = vmatprep.mubr.msk.f32.mxu1 %vm10931_vm0, %v10930_v0  ;;  %9736 = vmatpush3.msra.mxu0 %v3194_v26  ;;  %v2410_v30 = vld [vmem:[%s11105_s10 + $0x5c] sm:$0xff] }
 0x279   : > { %v12180_v31 = vadd.f32 %v1610_v4, %v1293_v28  ;;  %v9100_v63 = vpop.f32.mrf.mxu1  ;;  %9737 = vmatprep.subr.mxu0 %v10930_v0  ;;  %v2779_v26 = vld [vmem:[%s11105_s10 + $0x5d] sm:$0xff] }
 0x27a   : > { %v1246_v37 = vpop.f32.mrf.mxu0  ;;  %9465 = vmatmul.mubr.f32.gmra.mxu0 %v2408_v50 }
 0x27b   : > { %v1294_v12 = vadd.f32 %v1246_v37, %v11791_v7  ;;  %v1615_v51 = vpop.f32.mrf.mxu1  ;;  %9620 = vmatmul.mubr.f32.gmra.mxu1 %v2777_v46  ;;  %9467 = vmatprep.mubr.msk.f32.mxu0 %vm10931_vm0, %v10930_v0  ;;  %v3192_v7 = vld [vmem:[#allocation6 + $0x448] sm:$0xff] }
 0x27c   : > { %v8948_v14 = vpop.f32.mrf.mxu0  ;;  %9622 = vmatprep.mubr.msk.f32.mxu1 %vm10931_vm0, %v10930_v0  ;;  %9738 = vmatpush3.msra.mxu0 %v3193_v47  ;;  %v2411_v46 = vld [vmem:[%s11105_s10 + $0x64] sm:$0xff] }
 0x27d   : > { %v12190_v11 = vadd.f32 %v1615_v51, %v1294_v12  ;;  %v9103_v45 = vpop.f32.mrf.mxu1  ;;  %9739 = vmatprep.subr.mxu0 %v10930_v0  ;;  %v2780_v47 = vld [vmem:[%s11105_s10 + $0x65] sm:$0xff] }
 0x27e   : > { %v1251_v20 = vpop.f32.mrf.mxu0  ;;  %9468 = vmatmul.mubr.f32.gmra.mxu0 %v2409_v58 }
 0x27f   : > { %v1295_v59 = vadd.f32 %v1251_v20, %v11801_v32  ;;  %v1620_v5 = vpop.f32.mrf.mxu1  ;;  %9623 = vmatmul.mubr.f32.gmra.mxu1 %v2778_v6  ;;  %9470 = vmatprep.mubr.msk.f32.mxu0 %vm10931_vm0, %v10930_v0  ;;  %v3191_v32 = vld [vmem:[#allocation6 + $0x440] sm:$0xff] }
 0x280   : > { %v8951_v21 = vpop.f32.mrf.mxu0  ;;  %9625 = vmatprep.mubr.msk.f32.mxu1 %vm10931_vm0, %v10930_v0  ;;  %9740 = vmatpush3.msra.mxu0 %v3192_v7  ;;  %v2412_v6 = vld [vmem:[%s11105_s10 + $0x6c] sm:$0xff] }
 0x281   : > { %v12200_v54 = vadd.f32 %v1620_v5, %v1295_v59  ;;  %v9106_v28 = vpop.f32.mrf.mxu1  ;;  %9741 = vmatprep.subr.mxu0 %v10930_v0  ;;  %v2781_v7 = vld [vmem:[%s11105_s10 + $0x6d] sm:$0xff] }
 0x282   : > { %v1789_v4 = vpop.f32.mrf.mxu0  ;;  %9471 = vmatmul.mubr.f32.gmra.mxu0 %v2410_v30 }
 0x283   : > { %v1993_v50 = vadd.f32 %v1789_v4, %v11815_v61  ;;  %v2158_v62 = vpop.f32.mrf.mxu1  ;;  %9626 = vmatmul.mubr.f32.gmra.mxu1 %v2779_v26  ;;  %9473 = vmatprep.mubr.msk.f32.mxu0 %vm10931_vm0, %v10930_v0  ;;  %v3190_v61 = vld [vmem:[#allocation6 + $0x438] sm:$0xff] }
 0x284   : > { %v9141_v63 = vpop.f32.mrf.mxu0  ;;  %9628 = vmatprep.mubr.msk.f32.mxu1 %vm10931_vm0, %v10930_v0  ;;  %9742 = vmatpush3.msra.mxu0 %v3191_v32  ;;  %v2413_v26 = vld [vmem:[%s11105_s10 + $0x74] sm:$0xff] }
 0x285   : > { %v12210_v37 = vadd.f32 %v2158_v62, %v1993_v50  ;;  %v9296_v12 = vpop.f32.mrf.mxu1  ;;  %9743 = vmatprep.subr.mxu0 %v10930_v0  ;;  %v2782_v32 = vld [vmem:[%s11105_s10 + $0x75] sm:$0xff] }
 0x286   : > { %v1794_v51 = vpop.f32.mrf.mxu0  ;;  %9474 = vmatmul.mubr.f32.gmra.mxu0 %v2411_v46 }
 0x287   : > { %v1994_v58 = vadd.f32 %v1794_v51, %v11826_v24  ;;  %v2163_v14 = vpop.f32.mrf.mxu1  ;;  %9629 = vmatmul.mubr.f32.gmra.mxu1 %v2780_v47  ;;  %9476 = vmatprep.mubr.msk.f32.mxu0 %vm10931_vm0, %v10930_v0  ;;  %v3189_v24 = vld [vmem:[#allocation6 + $0x430] sm:$0xff] }
 0x288   : > { %v9144_v45 = vpop.f32.mrf.mxu0  ;;  %9631 = vmatprep.mubr.msk.f32.mxu1 %vm10931_vm0, %v10930_v0  ;;  %9744 = vmatpush3.msra.mxu0 %v3190_v61  ;;  %v2414_v47 = vld [vmem:[%s11105_s10 + $0x7c] sm:$0xff] }
 0x289   : > { %v12220_v20 = vadd.f32 %v2163_v14, %v1994_v58  ;;  %v9299_v59 = vpop.f32.mrf.mxu1  ;;  %9745 = vmatprep.subr.mxu0 %v10930_v0  ;;  %v2783_v61 = vld [vmem:[%s11105_s10 + $0x7d] sm:$0xff] }
 0x28a   : > { %v1799_v5 = vpop.f32.mrf.mxu0  ;;  %9477 = vmatmul.mubr.f32.gmra.mxu0 %v2412_v6 }
 0x28b   : > { %v1995_v30 = vadd.f32 %v1799_v5, %v11837_v53  ;;  %v2168_v21 = vpop.f32.mrf.mxu1  ;;  %9632 = vmatmul.mubr.f32.gmra.mxu1 %v2781_v7  ;;  %9479 = vmatprep.mubr.msk.f32.mxu0 %vm10931_vm0, %v10930_v0  ;;  %v3188_v53 = vld [vmem:[#allocation6 + $0x428] sm:$0xff] }
 0x28c   : > { %v9147_v28 = vpop.f32.mrf.mxu0  ;;  %9634 = vmatprep.mubr.msk.f32.mxu1 %vm10931_vm0, %v10930_v0  ;;  %9746 = vmatpush3.msra.mxu0 %v3189_v24  ;;  %v2415_v7 = vld [vmem:[%s11105_s10 + $0x84] sm:$0xff] }
 0x28d   : > { %v12230_v4 = vadd.f32 %v2168_v21, %v1995_v30  ;;  %v9302_v50 = vpop.f32.mrf.mxu1  ;;  %9747 = vmatprep.subr.mxu0 %v10930_v0  ;;  %v2784_v24 = vld [vmem:[%s11105_s10 + $0x85] sm:$0xff] }
 0x28e   : > { %v1804_v62 = vpop.f32.mrf.mxu0  ;;  %9480 = vmatmul.mubr.f32.gmra.mxu0 %v2413_v26 }
 0x28f   : > { %v1996_v46 = vadd.f32 %v1804_v62, %v11848_v16  ;;  %v2173_v63 = vpop.f32.mrf.mxu1  ;;  %9635 = vmatmul.mubr.f32.gmra.mxu1 %v2782_v32  ;;  %9482 = vmatprep.mubr.msk.f32.mxu0 %vm10931_vm0, %v10930_v0  ;;  %v3187_v16 = vld [vmem:[#allocation6 + $0x420] sm:$0xff] }
 0x290   : > { %v9150_v12 = vpop.f32.mrf.mxu0  ;;  %9637 = vmatprep.mubr.msk.f32.mxu1 %vm10931_vm0, %v10930_v0  ;;  %9748 = vmatpush3.msra.mxu0 %v3188_v53  ;;  %v2416_v32 = vld [vmem:[%s11105_s10 + $0x8c] sm:$0xff] }
 0x291   : > { %v12240_v51 = vadd.f32 %v2173_v63, %v1996_v46  ;;  %v9305_v58 = vpop.f32.mrf.mxu1  ;;  %9749 = vmatprep.subr.mxu0 %v10930_v0  ;;  %v2785_v53 = vld [vmem:[%s11105_s10 + $0x8d] sm:$0xff] }
 0x292   : > { %v1809_v14 = vpop.f32.mrf.mxu0  ;;  %9483 = vmatmul.mubr.f32.gmra.mxu0 %v2414_v47 }
 0x293   : > { %v1997_v6 = vadd.f32 %v1809_v14, %v11859_v39  ;;  %v2178_v45 = vpop.f32.mrf.mxu1  ;;  %9638 = vmatmul.mubr.f32.gmra.mxu1 %v2783_v61  ;;  %9485 = vmatprep.mubr.msk.f32.mxu0 %vm10931_vm0, %v10930_v0  ;;  %v3186_v39 = vld [vmem:[#allocation6 + $0x418] sm:$0xff] }
 0x294   : > { %v9153_v59 = vpop.f32.mrf.mxu0  ;;  %9640 = vmatprep.mubr.msk.f32.mxu1 %vm10931_vm0, %v10930_v0  ;;  %9750 = vmatpush3.msra.mxu0 %v3187_v16  ;;  %v2417_v61 = vld [vmem:[%s11105_s10 + $0x94] sm:$0xff] }
 0x295   : > { %v12250_v5 = vadd.f32 %v2178_v45, %v1997_v6  ;;  %v9308_v30 = vpop.f32.mrf.mxu1  ;;  %9751 = vmatprep.subr.mxu0 %v10930_v0  ;;  %v2786_v16 = vld [vmem:[%s11105_s10 + $0x95] sm:$0xff] }
 0x296   : > { %v1814_v21 = vpop.f32.mrf.mxu0  ;;  %9486 = vmatmul.mubr.f32.gmra.mxu0 %v2415_v7 }
 0x297   : > { %v1998_v26 = vadd.f32 %v1814_v21, %v11870_v48  ;;  %v2183_v28 = vpop.f32.mrf.mxu1  ;;  %9641 = vmatmul.mubr.f32.gmra.mxu1 %v2784_v24  ;;  %9488 = vmatprep.mubr.msk.f32.mxu0 %vm10931_vm0, %v10930_v0  ;;  %v3185_v48 = vld [vmem:[#allocation6 + $0x410] sm:$0xff] }
 0x298   : > { %v9156_v50 = vpop.f32.mrf.mxu0  ;;  %9643 = vmatprep.mubr.msk.f32.mxu1 %vm10931_vm0, %v10930_v0  ;;  %9752 = vmatpush3.msra.mxu0 %v3186_v39  ;;  %v2418_v24 = vld [vmem:[%s11105_s10 + $0x9c] sm:$0xff] }
 0x299   : > { %v12260_v62 = vadd.f32 %v2183_v28, %v1998_v26  ;;  %v9311_v46 = vpop.f32.mrf.mxu1  ;;  %9753 = vmatprep.subr.mxu0 %v10930_v0  ;;  %v2787_v39 = vld [vmem:[%s11105_s10 + $0x9d] sm:$0xff] }
 0x29a   : > { %v1819_v63 = vpop.f32.mrf.mxu0  ;;  %9489 = vmatmul.mubr.f32.gmra.mxu0 %v2416_v32 }
 0x29b   : > { %v1999_v47 = vadd.f32 %v1819_v63, %v11881_v56  ;;  %v2188_v12 = vpop.f32.mrf.mxu1  ;;  %9644 = vmatmul.mubr.f32.gmra.mxu1 %v2785_v53  ;;  %9491 = vmatprep.mubr.msk.f32.mxu0 %vm10931_vm0, %v10930_v0  ;;  %v3184_v56 = vld [vmem:[#allocation6 + $0x408] sm:$0xff] }
 0x29c   : > { %v9159_v58 = vpop.f32.mrf.mxu0  ;;  %9646 = vmatprep.mubr.msk.f32.mxu1 %vm10931_vm0, %v10930_v0  ;;  %9754 = vmatpush3.msra.mxu0 %v3185_v48  ;;  %v2419_v53 = vld [vmem:[%s11105_s10 + $0xa4] sm:$0xff] }
 0x29d   : > { %v12270_v14 = vadd.f32 %v2188_v12, %v1999_v47  ;;  %v9314_v6 = vpop.f32.mrf.mxu1  ;;  %9755 = vmatprep.subr.mxu0 %v10930_v0  ;;  %v2788_v48 = vld [vmem:[%s11105_s10 + $0xa5] sm:$0xff] }
 0x29e   : > { %v1824_v45 = vpop.f32.mrf.mxu0  ;;  %9492 = vmatmul.mubr.f32.gmra.mxu0 %v2417_v61  ;;  %v2420_v58 = vld [vmem:[%s11105_s10 + $0xac] sm:$0xff] }
 0x29f   : > { %v2000_v7 = vadd.f32 %v1824_v45, %v11892_v1  ;;  %v2193_v59 = vpop.f32.mrf.mxu1  ;;  %9647 = vmatmul.mubr.f32.gmra.mxu1 %v2786_v16  ;;  %9494 = vmatprep.mubr.msk.f32.mxu0 %vm10931_vm0, %v10930_v0  ;;  %v3183_v1 = vld [vmem:[#allocation6 + $0x400] sm:$0xff] }
 0x2a0   : > { %v9162_v30 = vpop.f32.mrf.mxu0  ;;  %9649 = vmatprep.mubr.msk.f32.mxu1 %vm10931_vm0, %v10930_v0  ;;  %9756 = vmatpush3.msra.mxu0 %v3184_v56  ;;  %v2789_v6 = vld [vmem:[%s11105_s10 + $0xad] sm:$0xff] }
 0x2a1   : > { %v12280_v21 = vadd.f32 %v2193_v59, %v2000_v7  ;;  %v9317_v26 = vpop.f32.mrf.mxu1  ;;  %9757 = vmatprep.subr.mxu0 %v10930_v0 }
 0x2a2   : > { %v1829_v28 = vpop.f32.mrf.mxu0  ;;  %9495 = vmatmul.mubr.f32.gmra.mxu0 %v2418_v24  ;;  %v2421_v24 = vld [vmem:[%s11105_s10 + $0xb4] sm:$0xff] }
 0x2a3   : > { %v2001_v32 = vadd.f32 %v1829_v28, %v11903_v9  ;;  %v2198_v50 = vpop.f32.mrf.mxu1  ;;  %9650 = vmatmul.mubr.f32.gmra.mxu1 %v2787_v39  ;;  %9497 = vmatprep.mubr.msk.f32.mxu0 %vm10931_vm0, %v10930_v0  ;;  %v2790_v39 = vld [vmem:[%s11105_s10 + $0xb5] sm:$0xff] }
 0x2a4   : > { %v9165_v46 = vpop.f32.mrf.mxu0  ;;  %9652 = vmatprep.mubr.msk.f32.mxu1 %vm10931_vm0, %v10930_v0  ;;  %9758 = vmatpush3.msra.mxu0 %v3183_v1 }
 0x2a5   : > { %v12290_v63 = vadd.f32 %v2198_v50, %v2001_v32  ;;  %v9320_v47 = vpop.f32.mrf.mxu1  ;;  %v2422_v50 = vld [vmem:[%s11105_s10 + $0xbc] sm:$0xff] }
 0x2a6   : > { %v1834_v12 = vpop.f32.mrf.mxu0  ;;  %9498 = vmatmul.mubr.f32.gmra.mxu0 %v2419_v53  ;;  %v2791_v46 = vld [vmem:[%s11105_s10 + $0xbd] sm:$0xff] }
 0x2a7   : > { %v2002_v9 = vadd.f32 %v1834_v12, %v11915_v42  ;;  %v2203_v61 = vpop.f32.mrf.mxu1  ;;  %9653 = vmatmul.mubr.f32.gmra.mxu1 %v2788_v48  ;;  %9500 = vmatprep.mubr.msk.f32.mxu0 %vm10931_vm0, %v10930_v0 }
 0x2a8   : > { %v9168_v16 = vpop.f32.mrf.mxu0  ;;  %9655 = vmatprep.mubr.msk.f32.mxu1 %vm10931_vm0, %v10930_v0 }
 0x2a9   : > { %v12299_v56 = vadd.f32 %v2203_v61, %v2002_v9  ;;  %v9323_v45 = vpop.f32.mrf.mxu1  ;;  %v2423_v61 = vld [vmem:[%s11105_s10 + $0xc4] sm:$0xff] }
 0x2aa   : > { %v1839_v7 = vpop.f32.mrf.mxu0  ;;  %9501 = vmatmul.mubr.f32.gmra.mxu0 %v2420_v58  ;;  %v2792_v16 = vld [vmem:[%s11105_s10 + $0xc5] sm:$0xff] }
 0x2ab   : > { %v2003_v42 = vadd.f32 %v1839_v7, %v11924_v60  ;;  %v2208_v59 = vpop.f32.mrf.mxu1  ;;  %9656 = vmatmul.mubr.f32.gmra.mxu1 %v2789_v6  ;;  %9503 = vmatprep.mubr.msk.f32.mxu0 %vm10931_vm0, %v10930_v0 }
 0x2ac   : > { %v9171_v30 = vpop.f32.mrf.mxu0  ;;  %9658 = vmatprep.mubr.msk.f32.mxu1 %vm10931_vm0, %v10930_v0 }
 0x2ad   : > { %v12308_v26 = vadd.f32 %v2208_v59, %v2003_v42  ;;  %v9326_v1 = vpop.f32.mrf.mxu1  ;;  %v2424_v59 = vld [vmem:[%s11105_s10 + $0xcc] sm:$0xff] }
 0x2ae   : > { %v1844_v28 = vpop.f32.mrf.mxu0  ;;  %9504 = vmatmul.mubr.f32.gmra.mxu0 %v2421_v24  ;;  %v2793_v30 = vld [vmem:[%s11105_s10 + $0xcd] sm:$0xff] }
 0x2af   : > { %v2004_v60 = vadd.f32 %v1844_v28, %v11933_v19  ;;  %v2213_v32 = vpop.f32.mrf.mxu1  ;;  %9659 = vmatmul.mubr.f32.gmra.mxu1 %v2790_v39  ;;  %9506 = vmatprep.mubr.msk.f32.mxu0 %vm10931_vm0, %v10930_v0 }
 0x2b0   : > { %v9174_v53 = vpop.f32.mrf.mxu0  ;;  %9661 = vmatprep.mubr.msk.f32.mxu1 %vm10931_vm0, %v10930_v0 }
 0x2b1   : > { %v12317_v48 = vadd.f32 %v2213_v32, %v2004_v60  ;;  %v9329_v47 = vpop.f32.mrf.mxu1  ;;  %v2425_v32 = vld [vmem:[%s11105_s10 + $0xd4] sm:$0xff] }
 0x2b2   : > { %v1849_v12 = vpop.f32.mrf.mxu0  ;;  %9507 = vmatmul.mubr.f32.gmra.mxu0 %v2422_v50  ;;  %v2794_v53 = vld [vmem:[%s11105_s10 + $0xd5] sm:$0xff] }
 0x2b3   : > { %v2005_v19 = vadd.f32 %v1849_v12, %v11942_v38  ;;  %v2218_v9 = vpop.f32.mrf.mxu1  ;;  %9662 = vmatmul.mubr.f32.gmra.mxu1 %v2791_v46  ;;  %9509 = vmatprep.mubr.msk.f32.mxu0 %vm10931_vm0, %v10930_v0 }
 0x2b4   : > { %v9177_v58 = vpop.f32.mrf.mxu0  ;;  %9664 = vmatprep.mubr.msk.f32.mxu1 %vm10931_vm0, %v10930_v0 }
 0x2b5   : > { %v12326_v6 = vadd.f32 %v2218_v9, %v2005_v19  ;;  %v9332_v45 = vpop.f32.mrf.mxu1  ;;  %v2426_v9 = vld [vmem:[%s11105_s10 + $0xdc] sm:$0xff] }
 0x2b6   : > { %v1854_v7 = vpop.f32.mrf.mxu0  ;;  %9510 = vmatmul.mubr.f32.gmra.mxu0 %v2423_v61  ;;  %v2795_v58 = vld [vmem:[%s11105_s10 + $0xdd] sm:$0xff] }
 0x2b7   : > { %v2006_v38 = vadd.f32 %v1854_v7, %v11951_v41  ;;  %v2223_v42 = vpop.f32.mrf.mxu1  ;;  %9665 = vmatmul.mubr.f32.gmra.mxu1 %v2792_v16  ;;  %9512 = vmatprep.mubr.msk.f32.mxu0 %vm10931_vm0, %v10930_v0 }
 0x2b8   : > { %v9180_v24 = vpop.f32.mrf.mxu0  ;;  %9667 = vmatprep.mubr.msk.f32.mxu1 %vm10931_vm0, %v10930_v0 }
 0x2b9   : > { %v12335_v39 = vadd.f32 %v2223_v42, %v2006_v38  ;;  %v9335_v1 = vpop.f32.mrf.mxu1  ;;  %v2427_v42 = vld [vmem:[%s11105_s10 + $0xe4] sm:$0xff] }
 0x2ba   : > { %v1859_v28 = vpop.f32.mrf.mxu0  ;;  %9513 = vmatmul.mubr.f32.gmra.mxu0 %v2424_v59  ;;  %v2796_v24 = vld [vmem:[%s11105_s10 + $0xe5] sm:$0xff] }
 0x2bb   : > { %v2007_v41 = vadd.f32 %v1859_v28, %v11960_v18  ;;  %v2228_v60 = vpop.f32.mrf.mxu1  ;;  %9668 = vmatmul.mubr.f32.gmra.mxu1 %v2793_v30  ;;  %9515 = vmatprep.mubr.msk.f32.mxu0 %vm10931_vm0, %v10930_v0 }
 0x2bc   : > { %v9183_v50 = vpop.f32.mrf.mxu0  ;;  %9670 = vmatprep.mubr.msk.f32.mxu1 %vm10931_vm0, %v10930_v0 }
 0x2bd   : > { %v12344_v46 = vadd.f32 %v2228_v60, %v2007_v41  ;;  %v9338_v47 = vpop.f32.mrf.mxu1  ;;  %v2428_v60 = vld [vmem:[%s11105_s10 + $0xec] sm:$0xff] }
 0x2be   : > { %v1864_v12 = vpop.f32.mrf.mxu0  ;;  %9516 = vmatmul.mubr.f32.gmra.mxu0 %v2425_v32  ;;  %v2797_v50 = vld [vmem:[%s11105_s10 + $0xed] sm:$0xff] }
 0x2bf   : > { %v2008_v18 = vadd.f32 %v1864_v12, %v11969_v35  ;;  %v2233_v19 = vpop.f32.mrf.mxu1  ;;  %9671 = vmatmul.mubr.f32.gmra.mxu1 %v2794_v53  ;;  %9518 = vmatprep.mubr.msk.f32.mxu0 %vm10931_vm0, %v10930_v0 }
 0x2c0   : > { %v9186_v61 = vpop.f32.mrf.mxu0  ;;  %9673 = vmatprep.mubr.msk.f32.mxu1 %vm10931_vm0, %v10930_v0 }
 0x2c1   : > { %v12353_v16 = vadd.f32 %v2233_v19, %v2008_v18  ;;  %v9341_v45 = vpop.f32.mrf.mxu1  ;;  %v2429_v19 = vld [vmem:[%s11105_s10 + $0xf4] sm:$0xff] }
 0x2c2   : > { %v1869_v7 = vpop.f32.mrf.mxu0  ;;  %9519 = vmatmul.mubr.f32.gmra.mxu0 %v2426_v9  ;;  %v2798_v61 = vld [vmem:[%s11105_s10 + $0xf5] sm:$0xff] }
 0x2c3   : > { %v2009_v35 = vadd.f32 %v1869_v7, %v11978_v57  ;;  %v2238_v38 = vpop.f32.mrf.mxu1  ;;  %9674 = vmatmul.mubr.f32.gmra.mxu1 %v2795_v58  ;;  %9521 = vmatprep.mubr.msk.f32.mxu0 %vm10931_vm0, %v10930_v0 }
 0x2c4   : > { %v9189_v59 = vpop.f32.mrf.mxu0  ;;  %9676 = vmatprep.mubr.msk.f32.mxu1 %vm10931_vm0, %v10930_v0 }
 0x2c5   : > { %v12362_v30 = vadd.f32 %v2238_v38, %v2009_v35  ;;  %v9344_v1 = vpop.f32.mrf.mxu1  ;;  %v2430_v38 = vld [vmem:[%s11105_s10 + $0xfc] sm:$0xff] }
 0x2c6   : > { %v1874_v28 = vpop.f32.mrf.mxu0  ;;  %9522 = vmatmul.mubr.f32.gmra.mxu0 %v2427_v42  ;;  %v2799_v59 = vld [vmem:[%s11105_s10 + $0xfd] sm:$0xff] }
 0x2c7   : > { %v2010_v57 = vadd.f32 %v1874_v28, %v11987_v13  ;;  %v2243_v41 = vpop.f32.mrf.mxu1  ;;  %9677 = vmatmul.mubr.f32.gmra.mxu1 %v2796_v24  ;;  %9524 = vmatprep.mubr.msk.f32.mxu0 %vm10931_vm0, %v10930_v0 }
 0x2c8   : > { %v9192_v32 = vpop.f32.mrf.mxu0  ;;  %9679 = vmatprep.mubr.msk.f32.mxu1 %vm10931_vm0, %v10930_v0 }
 0x2c9   : > { %v12371_v53 = vadd.f32 %v2243_v41, %v2010_v57  ;;  %v9347_v47 = vpop.f32.mrf.mxu1  ;;  %v2431_v41 = vld [vmem:[%s11105_s10 + $0x104] sm:$0xff] }
 0x2ca   : > { %v1879_v12 = vpop.f32.mrf.mxu0  ;;  %9525 = vmatmul.mubr.f32.gmra.mxu0 %v2428_v60  ;;  %v2800_v32 = vld [vmem:[%s11105_s10 + $0x105] sm:$0xff] }
 0x2cb   : > { %v2011_v13 = vadd.f32 %v1879_v12, %v11996_v33  ;;  %v2248_v18 = vpop.f32.mrf.mxu1  ;;  %9680 = vmatmul.mubr.f32.gmra.mxu1 %v2797_v50  ;;  %9527 = vmatprep.mubr.msk.f32.mxu0 %vm10931_vm0, %v10930_v0 }
 0x2cc   : > { %v9195_v9 = vpop.f32.mrf.mxu0  ;;  %9682 = vmatprep.mubr.msk.f32.mxu1 %vm10931_vm0, %v10930_v0 }
 0x2cd   : > { %v12380_v58 = vadd.f32 %v2248_v18, %v2011_v13  ;;  %v9350_v45 = vpop.f32.mrf.mxu1  ;;  %v2432_v18 = vld [vmem:[%s11105_s10 + $0x10c] sm:$0xff] }
 0x2ce   : > { %v1884_v7 = vpop.f32.mrf.mxu0  ;;  %9528 = vmatmul.mubr.f32.gmra.mxu0 %v2429_v19  ;;  %v2801_v9 = vld [vmem:[%s11105_s10 + $0x10d] sm:$0xff] }
 0x2cf   : > { %v2012_v33 = vadd.f32 %v1884_v7, %v12005_v55  ;;  %v2253_v35 = vpop.f32.mrf.mxu1  ;;  %9683 = vmatmul.mubr.f32.gmra.mxu1 %v2798_v61  ;;  %9530 = vmatprep.mubr.msk.f32.mxu0 %vm10931_vm0, %v10930_v0 }
 0x2d0   : > { %v9198_v42 = vpop.f32.mrf.mxu0  ;;  %9685 = vmatprep.mubr.msk.f32.mxu1 %vm10931_vm0, %v10930_v0 }
 0x2d1   : > { %v12389_v24 = vadd.f32 %v2253_v35, %v2012_v33  ;;  %v9353_v1 = vpop.f32.mrf.mxu1  ;;  %v2433_v35 = vld [vmem:[%s11105_s10 + $0x114] sm:$0xff] }
 0x2d2   : > { %v1889_v28 = vpop.f32.mrf.mxu0  ;;  %9531 = vmatmul.mubr.f32.gmra.mxu0 %v2430_v38  ;;  %v2802_v42 = vld [vmem:[%s11105_s10 + $0x115] sm:$0xff] }
 0x2d3   : > { %v2013_v55 = vadd.f32 %v1889_v28, %v12014_v10  ;;  %v2258_v57 = vpop.f32.mrf.mxu1  ;;  %9686 = vmatmul.mubr.f32.gmra.mxu1 %v2799_v59  ;;  %9533 = vmatprep.mubr.msk.f32.mxu0 %vm10931_vm0, %v10930_v0 }
 0x2d4   : > { %v9201_v60 = vpop.f32.mrf.mxu0  ;;  %9688 = vmatprep.mubr.msk.f32.mxu1 %vm10931_vm0, %v10930_v0 }
 0x2d5   : > { %v12398_v50 = vadd.f32 %v2258_v57, %v2013_v55  ;;  %v9356_v47 = vpop.f32.mrf.mxu1  ;;  %v2434_v57 = vld [vmem:[%s11105_s10 + $0x11c] sm:$0xff] }
 0x2d6   : > { %v1894_v12 = vpop.f32.mrf.mxu0  ;;  %9534 = vmatmul.mubr.f32.gmra.mxu0 %v2431_v41  ;;  %v2803_v60 = vld [vmem:[%s11105_s10 + $0x11d] sm:$0xff] }
 0x2d7   : > { %v2014_v10 = vadd.f32 %v1894_v12, %v12023_v34  ;;  %v2263_v13 = vpop.f32.mrf.mxu1  ;;  %9689 = vmatmul.mubr.f32.gmra.mxu1 %v2800_v32  ;;  %9536 = vmatprep.mubr.msk.f32.mxu0 %vm10931_vm0, %v10930_v0 }
 0x2d8   : > { %v9204_v19 = vpop.f32.mrf.mxu0  ;;  %9691 = vmatprep.mubr.msk.f32.mxu1 %vm10931_vm0, %v10930_v0 }
 0x2d9   : > { %v12407_v61 = vadd.f32 %v2263_v13, %v2014_v10  ;;  %v9359_v45 = vpop.f32.mrf.mxu1  ;;  %v2435_v13 = vld [vmem:[%s11105_s10 + $0x124] sm:$0xff] }
 0x2da   : > { %v1899_v7 = vpop.f32.mrf.mxu0  ;;  %9537 = vmatmul.mubr.f32.gmra.mxu0 %v2432_v18  ;;  %v2804_v19 = vld [vmem:[%s11105_s10 + $0x125] sm:$0xff] }
 0x2db   : > { %v2015_v34 = vadd.f32 %v1899_v7, %v12032_v49  ;;  %v2268_v33 = vpop.f32.mrf.mxu1  ;;  %9692 = vmatmul.mubr.f32.gmra.mxu1 %v2801_v9  ;;  %9539 = vmatprep.mubr.msk.f32.mxu0 %vm10931_vm0, %v10930_v0 }
 0x2dc   : > { %v9207_v38 = vpop.f32.mrf.mxu0  ;;  %9694 = vmatprep.mubr.msk.f32.mxu1 %vm10931_vm0, %v10930_v0 }
 0x2dd   : > { %v12416_v59 = vadd.f32 %v2268_v33, %v2015_v34  ;;  %v9362_v1 = vpop.f32.mrf.mxu1  ;;  %v2436_v33 = vld [vmem:[%s11105_s10 + $0x12c] sm:$0xff] }
 0x2de   : > { %v1904_v28 = vpop.f32.mrf.mxu0  ;;  %9540 = vmatmul.mubr.f32.gmra.mxu0 %v2433_v35  ;;  %v2805_v38 = vld [vmem:[%s11105_s10 + $0x12d] sm:$0xff] }
 0x2df   : > { %v2016_v49 = vadd.f32 %v1904_v28, %v12041_v25  ;;  %v2273_v55 = vpop.f32.mrf.mxu1  ;;  %9695 = vmatmul.mubr.f32.gmra.mxu1 %v2802_v42  ;;  %9542 = vmatprep.mubr.msk.f32.mxu0 %vm10931_vm0, %v10930_v0 }
 0x2e0   : > { %v9210_v41 = vpop.f32.mrf.mxu0  ;;  %9697 = vmatprep.mubr.msk.f32.mxu1 %vm10931_vm0, %v10930_v0 }
 0x2e1   : > { %v12425_v32 = vadd.f32 %v2273_v55, %v2016_v49  ;;  %v9365_v47 = vpop.f32.mrf.mxu1  ;;  %v2437_v55 = vld [vmem:[%s11105_s10 + $0x134] sm:$0xff] }
 0x2e2   : > { %v1909_v12 = vpop.f32.mrf.mxu0  ;;  %9543 = vmatmul.mubr.f32.gmra.mxu0 %v2434_v57  ;;  %v2806_v41 = vld [vmem:[%s11105_s10 + $0x135] sm:$0xff] }
 0x2e3   : > { %v2017_v25 = vadd.f32 %v1909_v12, %v12050_v27  ;;  %v2278_v10 = vpop.f32.mrf.mxu1  ;;  %9698 = vmatmul.mubr.f32.gmra.mxu1 %v2803_v60  ;;  %9545 = vmatprep.mubr.msk.f32.mxu0 %vm10931_vm0, %v10930_v0 }
 0x2e4   : > { %v9213_v18 = vpop.f32.mrf.mxu0  ;;  %9700 = vmatprep.mubr.msk.f32.mxu1 %vm10931_vm0, %v10930_v0 }
 0x2e5   : > { %v12434_v9 = vadd.f32 %v2278_v10, %v2017_v25  ;;  %v9368_v45 = vpop.f32.mrf.mxu1  ;;  %v2438_v10 = vld [vmem:[%s11105_s10 + $0x13c] sm:$0xff] }
 0x2e6   : > { %v1914_v7 = vpop.f32.mrf.mxu0  ;;  %9546 = vmatmul.mubr.f32.gmra.mxu0 %v2435_v13  ;;  %v2807_v18 = vld [vmem:[%s11105_s10 + $0x13d] sm:$0xff] }
 0x2e7   : > { %v2018_v27 = vadd.f32 %v1914_v7, %v12059_v44  ;;  %v2283_v34 = vpop.f32.mrf.mxu1  ;;  %9701 = vmatmul.mubr.f32.gmra.mxu1 %v2804_v19  ;;  %9548 = vmatprep.mubr.msk.f32.mxu0 %vm10931_vm0, %v10930_v0 }
 0x2e8   : > { %v9216_v35 = vpop.f32.mrf.mxu0  ;;  %9703 = vmatprep.mubr.msk.f32.mxu1 %vm10931_vm0, %v10930_v0 }
 0x2e9   : > { %v12443_v42 = vadd.f32 %v2283_v34, %v2018_v27  ;;  %v9371_v1 = vpop.f32.mrf.mxu1  ;;  %v2439_v34 = vld [vmem:[%s11105_s10 + $0x144] sm:$0xff] }
 0x2ea   : > { %v1919_v28 = vpop.f32.mrf.mxu0  ;;  %9549 = vmatmul.mubr.f32.gmra.mxu0 %v2436_v33  ;;  %v2808_v35 = vld [vmem:[%s11105_s10 + $0x145] sm:$0xff] }
 0x2eb   : > { %v2019_v44 = vadd.f32 %v1919_v28, %v12068_v2  ;;  %v2288_v49 = vpop.f32.mrf.mxu1  ;;  %9704 = vmatmul.mubr.f32.gmra.mxu1 %v2805_v38  ;;  %9551 = vmatprep.mubr.msk.f32.mxu0 %vm10931_vm0, %v10930_v0 }
 0x2ec   : > { %v9219_v57 = vpop.f32.mrf.mxu0  ;;  %9706 = vmatprep.mubr.msk.f32.mxu1 %vm10931_vm0, %v10930_v0 }
 0x2ed   : > { %v12452_v60 = vadd.f32 %v2288_v49, %v2019_v44  ;;  %v9374_v47 = vpop.f32.mrf.mxu1  ;;  %v2440_v49 = vld [vmem:[%s11105_s10 + $0x14c] sm:$0xff] }
 0x2ee   : > { %v1924_v12 = vpop.f32.mrf.mxu0  ;;  %9552 = vmatmul.mubr.f32.gmra.mxu0 %v2437_v55  ;;  %v2809_v57 = vld [vmem:[%s11105_s10 + $0x14d] sm:$0xff] }
 0x2ef   : > { %v2020_v2 = vadd.f32 %v1924_v12, %v12077_v8  ;;  %v2293_v25 = vpop.f32.mrf.mxu1  ;;  %9707 = vmatmul.mubr.f32.gmra.mxu1 %v2806_v41  ;;  %9554 = vmatprep.mubr.msk.f32.mxu0 %vm10931_vm0, %v10930_v0 }
 0x2f0   : > { %v9222_v13 = vpop.f32.mrf.mxu0  ;;  %9709 = vmatprep.mubr.msk.f32.mxu1 %vm10931_vm0, %v10930_v0 }
 0x2f1   : > { %v12461_v19 = vadd.f32 %v2293_v25, %v2020_v2  ;;  %v9377_v45 = vpop.f32.mrf.mxu1  ;;  %v2441_v25 = vld [vmem:[%s11105_s10 + $0x154] sm:$0xff] }
 0x2f2   : > { %v1929_v7 = vpop.f32.mrf.mxu0  ;;  %9555 = vmatmul.mubr.f32.gmra.mxu0 %v2438_v10  ;;  %v2810_v13 = vld [vmem:[%s11105_s10 + $0x155] sm:$0xff] }
 0x2f3   : > { %v2021_v8 = vadd.f32 %v1929_v7, %v12086_v15  ;;  %v2298_v27 = vpop.f32.mrf.mxu1  ;;  %9710 = vmatmul.mubr.f32.gmra.mxu1 %v2807_v18  ;;  %9557 = vmatprep.mubr.msk.f32.mxu0 %vm10931_vm0, %v10930_v0 }
 0x2f4   : > { %v9225_v33 = vpop.f32.mrf.mxu0  ;;  %9712 = vmatprep.mubr.msk.f32.mxu1 %vm10931_vm0, %v10930_v0 }
 0x2f5   : > { %v12470_v38 = vadd.f32 %v2298_v27, %v2021_v8  ;;  %v9380_v1 = vpop.f32.mrf.mxu1  ;;  %v2442_v27 = vld [vmem:[%s11105_s10 + $0x15c] sm:$0xff] }
 0x2f6   : > { %v1934_v28 = vpop.f32.mrf.mxu0  ;;  %9558 = vmatmul.mubr.f32.gmra.mxu0 %v2439_v34  ;;  %v2811_v33 = vld [vmem:[%s11105_s10 + $0x15d] sm:$0xff] }
 0x2f7   : > { %v2022_v15 = vadd.f32 %v1934_v28, %v12095_v22  ;;  %v2303_v44 = vpop.f32.mrf.mxu1  ;;  %9713 = vmatmul.mubr.f32.gmra.mxu1 %v2808_v35  ;;  %9560 = vmatprep.mubr.msk.f32.mxu0 %vm10931_vm0, %v10930_v0 }
 0x2f8   : > { %v9228_v55 = vpop.f32.mrf.mxu0  ;;  %9715 = vmatprep.mubr.msk.f32.mxu1 %vm10931_vm0, %v10930_v0 }
 0x2f9   : > { %v12479_v41 = vadd.f32 %v2303_v44, %v2022_v15  ;;  %v9383_v47 = vpop.f32.mrf.mxu1  ;;  %v2443_v44 = vld [vmem:[%s11105_s10 + $0x164] sm:$0xff] }
 0x2fa   : > { %v1939_v12 = vpop.f32.mrf.mxu0  ;;  %9561 = vmatmul.mubr.f32.gmra.mxu0 %v2440_v49  ;;  %v4442_v49 = vld [vmem:[#allocation8 + $0xf8] sm:$0xff] }
 0x2fb   : > { %v2023_v22 = vadd.f32 %v1939_v12, %v12104_v29  ;;  %v2308_v2 = vpop.f32.mrf.mxu1  ;;  %9716 = vmatmul.mubr.f32.gmra.mxu1 %v2809_v57  ;;  %9563 = vmatprep.mubr.msk.f32.mxu0 %vm10931_vm0, %v10930_v0  ;;  %v2812_v57 = vld [vmem:[%s11105_s10 + $0x165] sm:$0xff] }
 0x2fc   : > { %v9231_v10 = vpop.f32.mrf.mxu0  ;;  %9718 = vmatprep.mubr.msk.f32.mxu1 %vm10931_vm0, %v10930_v0  ;;  %9882 = vmatprep.subr.mxu1 %v4442_v49 }
 0x2fd   : > { %v12488_v18 = vadd.f32 %v2308_v2, %v2023_v22  ;;  %v9386_v45 = vpop.f32.mrf.mxu1  ;;  %9883 = vmatpush3.msra.mxu1 %v4442_v49 }
 0x2fe   : > { %v1944_v7 = vpop.f32.mrf.mxu0  ;;  %9564 = vmatmul.mubr.f32.gmra.mxu0 %v2441_v25  ;;  %v3141_v25 = vld [vmem:[%s11105_s10 + $0x26] sm:$0xff] }
 0x2ff   : > { %v2024_v29 = vadd.f32 %v1944_v7, %v12113_v36  ;;  %v2313_v8 = vpop.f32.mrf.mxu1  ;;  %9719 = vmatmul.mubr.f32.gmra.mxu1 %v2810_v13  ;;  %9566 = vmatprep.mubr.msk.f32.mxu0 %vm10931_vm0, %v10930_v0 }
 0x300   : > { %v9234_v34 = vpop.f32.mrf.mxu0  ;;  %9721 = vmatprep.mubr.msk.f32.mxu1 %vm10931_vm0, %v10930_v0 }
 0x301   : > { %v12497_v35 = vadd.f32 %v2313_v8, %v2024_v29  ;;  %v9389_v1 = vpop.f32.mrf.mxu1 }
 0x302   : > { %v1949_v28 = vpop.f32.mrf.mxu0  ;;  %9567 = vmatmul.mubr.f32.gmra.mxu0 %v2442_v27  ;;  %v4441_v1 = vld [vmem:[#allocation8 + $0xf0] sm:$0xff] }
 0x303   : > { %v2025_v36 = vadd.f32 %v1949_v28, %v12122_v43  ;;  %v2318_v15 = vpop.f32.mrf.mxu1  ;;  %9722 = vmatmul.mubr.f32.gmra.mxu1 %v2811_v33  ;;  %9569 = vmatprep.mubr.msk.f32.mxu0 %vm10931_vm0, %v10930_v0 }
 0x304   : > { %v9237_v55 = vpop.f32.mrf.mxu0  ;;  %9724 = vmatprep.mubr.msk.f32.mxu1 %vm10931_vm0, %v10930_v0  ;;  %9884 = vmatprep.subr.mxu1 %v4441_v1 }
 0x305   : > { %v12506_v47 = vadd.f32 %v2318_v15, %v2025_v36  ;;  %v9392_v12 = vpop.f32.mrf.mxu1  ;;  %9885 = vmatpush3.msra.mxu1 %v4441_v1 }
 0x306   : > { %v1954_v43 = vpop.f32.mrf.mxu0  ;;  %9570 = vmatmul.mubr.f32.gmra.mxu0 %v2443_v44 }
 0x307   : > { %v2026_v22 = vadd.f32 %v1954_v43, %v12131_v17  ;;  %v2323_v2 = vpop.f32.mrf.mxu1  ;;  %9725 = vmatmul.mubr.f32.gmra.mxu1 %v2812_v57  ;;  %9759 = vmatprep.mubr.msk.f32.mxu0 %vm10931_vm0, %v10930_v0  ;;  %v3142_v17 = vld [vmem:[%s11105_s10 + $0x2e] sm:$0xff] }
 0x308   : > { %v9240_v10 = vpop.f32.mrf.mxu0 }
 0x309   : > { %v12512_v13 = vadd.f32 %v2323_v2, %v2026_v22  ;;  %v9395_v45 = vpop.f32.mrf.mxu1 }
 0x30a   : > { %v1959_v7 = vpop.f32.mrf.mxu0  ;;  %9760 = vmatmul.mubr.f32.vlgmr.msra.gmra.mxu0 %v3141_v25 }
 0x30b   : > { %v2027_v29 = vadd.f32 %v1959_v7, %v12140_v3  ;;  %v2328_v8 = vpop.f32.mrf.mxu1  ;;  %9762 = vmatprep.mubr.msk.f32.mxu0 %vm10931_vm0, %v10930_v0  ;;  %v3143_v3 = vld [vmem:[%s11105_s10 + $0x36] sm:$0xff] }
 0x30c   : > { %v9243_v27 = vpop.f32.mrf.mxu0 }
 0x30d   : > { %v12518_v34 = vadd.f32 %v2328_v8, %v2027_v29  ;;  %v9398_v33 = vpop.f32.mrf.mxu1  ;;  %v3145_v29 = vld [vmem:[%s11105_s10 + $0x46] sm:$0xff] }
 0x30e   : > { %v1964_v28 = vpop.f32.mrf.mxu0  ;;  %9763 = vmatmul.mubr.f32.gmra.mxu0 %v3142_v17 }
 0x30f   : > { %v2028_v36 = vadd.f32 %v1964_v28, %v12150_v23  ;;  %v2333_v15 = vpop.f32.mrf.mxu1  ;;  %9765 = vmatprep.mubr.msk.f32.mxu0 %vm10931_vm0, %v10930_v0  ;;  %v3144_v23 = vld [vmem:[%s11105_s10 + $0x3e] sm:$0xff] }
 0x310   : > { %v9246_v44 = vpop.f32.mrf.mxu0 }
 0x311   : > { %v12524_v49 = vadd.f32 %v2333_v15, %v2028_v36  ;;  %v9401_v55 = vpop.f32.mrf.mxu1 }
 0x312   : > { %v1969_v57 = vpop.f32.mrf.mxu0  ;;  %9766 = vmatmul.mubr.f32.gmra.mxu0 %v3143_v3 }
 0x313   : > { %v2029_v12 = vadd.f32 %v1969_v57, %v12160_v40  ;;  %v2338_v43 = vpop.f32.mrf.mxu1  ;;  %9768 = vmatprep.mubr.msk.f32.mxu0 %vm10931_vm0, %v10930_v0  ;;  %v4440_v40 = vld [vmem:[#allocation8 + $0xe8] sm:$0xff] }
 0x314   : > { %v9249_v22 = vpop.f32.mrf.mxu0  ;;  %9886 = vmatprep.subr.mxu1 %v4440_v40 }
 0x315   : > { %v12530_v2 = vadd.f32 %v2338_v43, %v2029_v12  ;;  %v9404_v25 = vpop.f32.mrf.mxu1  ;;  %9887 = vmatpush3.msra.mxu1 %v4440_v40  ;;  %v3147_v12 = vld [vmem:[%s11105_s10 + $0x56] sm:$0xff] }
 0x316   : > { %v1974_v10 = vpop.f32.mrf.mxu0  ;;  %9769 = vmatmul.mubr.f32.gmra.mxu0 %v3144_v23  ;;  %v4439_v22 = vld [vmem:[#allocation8 + $0xe0] sm:$0xff] }
 0x317   : > { %v2030_v45 = vadd.f32 %v1974_v10, %v12170_v52  ;;  %v2343_v7 = vpop.f32.mrf.mxu1  ;;  %9771 = vmatprep.mubr.msk.f32.mxu0 %vm10931_vm0, %v10930_v0  ;;  %v3146_v52 = vld [vmem:[%s11105_s10 + $0x4e] sm:$0xff]  ;;  %9888 = vmatprep.subr.mxu1 %v4439_v22 }
 0x318   : > { %v9252_v8 = vpop.f32.mrf.mxu0  ;;  %9889 = vmatpush3.msra.mxu1 %v4439_v22 }
 0x319   : > { %v12536_v17 = vadd.f32 %v2343_v7, %v2030_v45  ;;  %v9407_v27 = vpop.f32.mrf.mxu1 }
 0x31a   : > { %v1979_v33 = vpop.f32.mrf.mxu0  ;;  %9772 = vmatmul.mubr.f32.gmra.mxu0 %v3145_v29 }
 0x31b   : > { %v2031_v1 = vadd.f32 %v1979_v33, %v12180_v31  ;;  %v2348_v28 = vpop.f32.mrf.mxu1  ;;  %9774 = vmatprep.mubr.msk.f32.mxu0 %vm10931_vm0, %v10930_v0 }
 0x31c   : > { %v9255_v36 = vpop.f32.mrf.mxu0 }
 0x31d   : > { %v12542_v15 = vadd.f32 %v2348_v28, %v2031_v1  ;;  %v9410_v3 = vpop.f32.mrf.mxu1 }
 0x31e   : > { %v1984_v44 = vpop.f32.mrf.mxu0  ;;  %9775 = vmatmul.mubr.f32.gmra.mxu0 %v3146_v52 }
 0x31f   : > { %v2032_v55 = vadd.f32 %v1984_v44, %v12190_v11  ;;  %v2353_v57 = vpop.f32.mrf.mxu1  ;;  %9777 = vmatprep.mubr.msk.f32.mxu0 %vm10931_vm0, %v10930_v0  ;;  %v3148_v11 = vld [vmem:[%s11105_s10 + $0x5e] sm:$0xff] }
 0x320   : > { %v9258_v31 = vpop.f32.mrf.mxu0 }
 0x321   : > { %v12548_v43 = vadd.f32 %v2353_v57, %v2032_v55  ;;  %v9413_v23 = vpop.f32.mrf.mxu1  ;;  %v3150_v55 = vld [vmem:[%s11105_s10 + $0x6e] sm:$0xff] }
 0x322   : > { %v1989_v25 = vpop.f32.mrf.mxu0  ;;  %9778 = vmatmul.mubr.f32.gmra.mxu0 %v3147_v12 }
 0x323   : > { %v2033_v10 = vadd.f32 %v1989_v25, %v12200_v54  ;;  %v2358_v45 = vpop.f32.mrf.mxu1  ;;  %9780 = vmatprep.mubr.msk.f32.mxu0 %vm10931_vm0, %v10930_v0  ;;  %v3149_v54 = vld [vmem:[%s11105_s10 + $0x66] sm:$0xff] }
 0x324   : > { %v9261_v7 = vpop.f32.mrf.mxu0 }
 0x325   : > { %v12554_v29 = vadd.f32 %v2358_v45, %v2033_v10  ;;  %v9416_v40 = vpop.f32.mrf.mxu1 }
 0x326   : > { %v2527_v8 = vpop.f32.mrf.mxu0  ;;  %9781 = vmatmul.mubr.f32.gmra.mxu0 %v3148_v11 }
 0x327   : > { %v2731_v27 = vadd.f32 %v2527_v8, %v12210_v37  ;;  %v2896_v33 = vpop.f32.mrf.mxu1  ;;  %9783 = vmatprep.mubr.msk.f32.mxu0 %vm10931_vm0, %v10930_v0  ;;  %v4438_v37 = vld [vmem:[#allocation8 + $0xd8] sm:$0xff] }
 0x328   : > { %v9451_v1 = vpop.f32.mrf.mxu0  ;;  %9890 = vmatprep.subr.mxu1 %v4438_v37 }
 0x329   : > { %v12560_v28 = vadd.f32 %v2896_v33, %v2731_v27  ;;  %v9606_v52 = vpop.f32.mrf.mxu1  ;;  %9891 = vmatpush3.msra.mxu1 %v4438_v37  ;;  %v3152_v27 = vld [vmem:[%s11105_s10 + $0x7e] sm:$0xff] }
 0x32a   : > { %v2532_v36 = vpop.f32.mrf.mxu0  ;;  %9784 = vmatmul.mubr.f32.gmra.mxu0 %v3149_v54 }
 0x32b   : > { %v2732_v3 = vadd.f32 %v2532_v36, %v12220_v20  ;;  %v2901_v44 = vpop.f32.mrf.mxu1  ;;  %9786 = vmatprep.mubr.msk.f32.mxu0 %vm10931_vm0, %v10930_v0  ;;  %v3151_v20 = vld [vmem:[%s11105_s10 + $0x76] sm:$0xff] }
 0x32c   : > { %v9454_v57 = vpop.f32.mrf.mxu0 }
 0x32d   : > { %v12566_v12 = vadd.f32 %v2901_v44, %v2732_v3  ;;  %v9609_v31 = vpop.f32.mrf.mxu1  ;;  %v3153_v3 = vld [vmem:[%s11105_s10 + $0x86] sm:$0xff] }
 0x32e   : > { %v2537_v23 = vpop.f32.mrf.mxu0  ;;  %9787 = vmatmul.mubr.f32.gmra.mxu0 %v3150_v55 }
 0x32f   : > { %v2733_v22 = vadd.f32 %v2537_v23, %v12230_v4  ;;  %v2906_v25 = vpop.f32.mrf.mxu1  ;;  %9789 = vmatprep.mubr.msk.f32.mxu0 %vm10931_vm0, %v10930_v0 }
 0x330   : > { %v9457_v10 = vpop.f32.mrf.mxu0 }
 0x331   : > { %v12572_v45 = vadd.f32 %v2906_v25, %v2733_v22  ;;  %v9612_v11 = vpop.f32.mrf.mxu1 }
 0x332   : > { %v2542_v7 = vpop.f32.mrf.mxu0  ;;  %9790 = vmatmul.mubr.f32.gmra.mxu0 %v3151_v20 }
 0x333   : > { %v2734_v40 = vadd.f32 %v2542_v7, %v12240_v51  ;;  %v2911_v8 = vpop.f32.mrf.mxu1  ;;  %9792 = vmatprep.mubr.msk.f32.mxu0 %vm10931_vm0, %v10930_v0  ;;  %v4437_v51 = vld [vmem:[#allocation8 + $0xd0] sm:$0xff] }
 0x334   : > { %v9460_v4 = vpop.f32.mrf.mxu0  ;;  %9892 = vmatprep.subr.mxu1 %v4437_v51 }
 0x335   : > { %v12578_v33 = vadd.f32 %v2911_v8, %v2734_v40  ;;  %v9615_v54 = vpop.f32.mrf.mxu1  ;;  %9893 = vmatpush3.msra.mxu1 %v4437_v51  ;;  %v3155_v40 = vld [vmem:[%s11105_s10 + $0x96] sm:$0xff] }
 0x336   : > { %v2547_v1 = vpop.f32.mrf.mxu0  ;;  %9793 = vmatmul.mubr.f32.gmra.mxu0 %v3152_v27  ;;  %v4436_v4 = vld [vmem:[#allocation8 + $0xc8] sm:$0xff] }
 0x337   : > { %v2735_v52 = vadd.f32 %v2547_v1, %v12250_v5  ;;  %v2916_v36 = vpop.f32.mrf.mxu1  ;;  %9795 = vmatprep.mubr.msk.f32.mxu0 %vm10931_vm0, %v10930_v0  ;;  %v3154_v5 = vld [vmem:[%s11105_s10 + $0x8e] sm:$0xff]  ;;  %9894 = vmatprep.subr.mxu1 %v4436_v4 }
 0x338   : > { %v9463_v44 = vpop.f32.mrf.mxu0  ;;  %9895 = vmatpush3.msra.mxu1 %v4436_v4 }
 0x339   : > { %v12584_v55 = vadd.f32 %v2916_v36, %v2735_v52  ;;  %v9618_v37 = vpop.f32.mrf.mxu1 }
 0x33a   : > { %v2552_v57 = vpop.f32.mrf.mxu0  ;;  %9796 = vmatmul.mubr.f32.gmra.mxu0 %v3153_v3 }
 0x33b   : > { %v2736_v31 = vadd.f32 %v2552_v57, %v12260_v62  ;;  %v2921_v23 = vpop.f32.mrf.mxu1  ;;  %9798 = vmatprep.mubr.msk.f32.mxu0 %vm10931_vm0, %v10930_v0 }
 0x33c   : > { %v9466_v22 = vpop.f32.mrf.mxu0 }
 0x33d   : > { %v12590_v25 = vadd.f32 %v2921_v23, %v2736_v31  ;;  %v9621_v20 = vpop.f32.mrf.mxu1 }
 0x33e   : > { %v2557_v10 = vpop.f32.mrf.mxu0  ;;  %9799 = vmatmul.mubr.f32.gmra.mxu0 %v3154_v5  ;;  %v5319_v20 = vld [vmem:[#allocation8 + $0x1f8] sm:$0xff] }
 0x33f   : > { %v2737_v11 = vadd.f32 %v2557_v10, %v12270_v14  ;;  %v2926_v7 = vpop.f32.mrf.mxu1  ;;  %9801 = vmatprep.mubr.msk.f32.mxu0 %vm10931_vm0, %v10930_v0  ;;  %v3156_v14 = vld [vmem:[%s11105_s10 + $0x9e] sm:$0xff]  ;;  %10140 = vmatprep.subr.mxu0 %v5319_v20 }
 0x340   : > { %v9469_v62 = vpop.f32.mrf.mxu0  ;;  %10141 = vmatpush3.msra.mxu0 %v5319_v20 }
 0x341   : > { %v12596_v8 = vadd.f32 %v2926_v7, %v2737_v11  ;;  %v9624_v27 = vpop.f32.mrf.mxu1 }
 0x342   : > { %v2562_v54 = vpop.f32.mrf.mxu0  ;;  %9802 = vmatmul.mubr.f32.gmra.mxu0 %v3155_v40  ;;  %v5318_v40 = vld [vmem:[#allocation8 + $0x1f0] sm:$0xff] }
 0x343   : > { %v2738_v1 = vadd.f32 %v2562_v54, %v12280_v21  ;;  %v2931_v52 = vpop.f32.mrf.mxu1  ;;  %9804 = vmatprep.mubr.msk.f32.mxu0 %vm10931_vm0, %v10930_v0  ;;  %v3157_v21 = vld [vmem:[%s11105_s10 + $0xa6] sm:$0xff]  ;;  %10142 = vmatprep.subr.mxu0 %v5318_v40 }
 0x344   : > { %v9472_v36 = vpop.f32.mrf.mxu0  ;;  %v5317_v54 = vld [vmem:[#allocation8 + $0x1e8] sm:$0xff]  ;;  %10143 = vmatpush3.msra.mxu0 %v5318_v40 }
 0x345   : > { %v12602_v3 = vadd.f32 %v2931_v52, %v2738_v1  ;;  %v9627_v51 = vpop.f32.mrf.mxu1  ;;  %v3159_v52 = vld [vmem:[%s11105_s10 + $0xb6] sm:$0xff]  ;;  %10144 = vmatprep.subr.mxu0 %v5317_v54 }
 0x346   : > { %v2567_v44 = vpop.f32.mrf.mxu0  ;;  %9805 = vmatmul.mubr.f32.gmra.mxu0 %v3156_v14  ;;  %v4435_v36 = vld [vmem:[#allocation8 + $0xc0] sm:$0xff] }
 0x347   : > { %v2739_v37 = vadd.f32 %v2567_v44, %v12290_v63  ;;  %v2936_v57 = vpop.f32.mrf.mxu1  ;;  %9807 = vmatprep.mubr.msk.f32.mxu0 %vm10931_vm0, %v10930_v0  ;;  %v3158_v63 = vld [vmem:[%s11105_s10 + $0xae] sm:$0xff]  ;;  %9896 = vmatprep.subr.mxu1 %v4435_v36 }
 0x348   : > { %v9475_v31 = vpop.f32.mrf.mxu0  ;;  %v5316_v51 = vld [vmem:[#allocation8 + $0x1e0] sm:$0xff]  ;;  %10145 = vmatpush3.msra.mxu0 %v5317_v54  ;;  %9897 = vmatpush3.msra.mxu1 %v4435_v36 }
 0x349   : > { %v12608_v23 = vadd.f32 %v2936_v57, %v2739_v37  ;;  %v9630_v5 = vpop.f32.mrf.mxu1  ;;  %10146 = vmatprep.subr.mxu0 %v5316_v51  ;;  %v3161_v54 = vld [vmem:[%s11105_s10 + $0xc6] sm:$0xff] }
 0x34a   : > { %v2572_v22 = vpop.f32.mrf.mxu0  ;;  %9808 = vmatmul.mubr.f32.gmra.mxu0 %v3157_v21  ;;  %v5315_v21 = vld [vmem:[#allocation8 + $0x1d8] sm:$0xff]  ;;  %v4431_v36 = vld [vmem:[#allocation8 + $0xa0] sm:$0xff] }
 0x34b   : > { %v2740_v10 = vadd.f32 %v2572_v22, %v12299_v56  ;;  %v2941_v11 = vpop.f32.mrf.mxu1  ;;  %9810 = vmatprep.mubr.msk.f32.mxu0 %vm10931_vm0, %v10930_v0  ;;  %v3160_v22 = vld [vmem:[%s11105_s10 + $0xbe] sm:$0xff]  ;;  %10147 = vmatpush3.msra.mxu0 %v5316_v51 }
 0x34c   : > { %v9478_v7 = vpop.f32.mrf.mxu0  ;;  %10148 = vmatprep.subr.mxu0 %v5315_v21 }
 0x34d   : > { %v12614_v62 = vadd.f32 %v2941_v11, %v2740_v10  ;;  %v9633_v27 = vpop.f32.mrf.mxu1  ;;  %v4433_v10 = vld [vmem:[#allocation8 + $0xb0] sm:$0xff]  ;;  %10149 = vmatpush3.msra.mxu0 %v5315_v21  ;;  %v4430_v21 = vld [vmem:[#allocation8 + $0x98] sm:$0xff] }
 0x34e   : > { %v2577_v4 = vpop.f32.mrf.mxu0  ;;  %9811 = vmatmul.mubr.f32.gmra.mxu0 %v3158_v63  ;;  %v5314_v7 = vld [vmem:[#allocation8 + $0x1d0] sm:$0xff] }
 0x34f   : > { %v2741_v1 = vadd.f32 %v2577_v4, %v12308_v26  ;;  %v2946_v56 = vpop.f32.mrf.mxu1  ;;  %9813 = vmatprep.mubr.msk.f32.mxu0 %vm10931_vm0, %v10930_v0  ;;  %v4434_v26 = vld [vmem:[#allocation8 + $0xb8] sm:$0xff]  ;;  %10150 = vmatprep.subr.mxu0 %v5314_v7 }
 0x350   : > { %v9481_v14 = vpop.f32.mrf.mxu0  ;;  %9898 = vmatprep.subr.mxu1 %v4434_v26  ;;  %10151 = vmatpush3.msra.mxu0 %v5314_v7 }
 0x351   : > { %v12620_v44 = vadd.f32 %v2946_v56, %v2741_v1  ;;  %v9636_v37 = vpop.f32.mrf.mxu1  ;;  %9899 = vmatpush3.msra.mxu1 %v4434_v26  ;;  %v5313_v1 = vld [vmem:[#allocation8 + $0x1c8] sm:$0xff] }
 0x352   : > { %v2582_v57 = vpop.f32.mrf.mxu0  ;;  %9814 = vmatmul.mubr.f32.gmra.mxu0 %v3159_v52  ;;  %9900 = vmatprep.subr.mxu1 %v4433_v10  ;;  %v3162_v26 = vld [vmem:[%s11105_s10 + $0xce] sm:$0xff] }
 0x353   : > { %v2742_v31 = vadd.f32 %v2582_v57, %v12317_v48  ;;  %v2951_v5 = vpop.f32.mrf.mxu1  ;;  %9816 = vmatprep.mubr.msk.f32.mxu0 %vm10931_vm0, %v10930_v0  ;;  %v4432_v48 = vld [vmem:[#allocation8 + $0xa8] sm:$0xff]  ;;  %9901 = vmatpush3.msra.mxu1 %v4433_v10 }
 0x354   : > { %v9484_v20 = vpop.f32.mrf.mxu0  ;;  %9902 = vmatprep.subr.mxu1 %v4432_v48  ;;  %10152 = vmatprep.subr.mxu0 %v5313_v1 }
 0x355   : > { %v12626_v11 = vadd.f32 %v2951_v5, %v2742_v31  ;;  %v9639_v63 = vpop.f32.mrf.mxu1  ;;  %9903 = vmatpush3.msra.mxu1 %v4432_v48  ;;  %10153 = vmatpush3.msra.mxu0 %v5313_v1  ;;  %v5311_v20 = vld [vmem:[#allocation8 + $0x1b8] sm:$0xff]  ;;  %v5310_v48 = vld [vmem:[#allocation8 + $0x1b0] sm:$0xff]  ;;  %v4428_v1 = vld [vmem:[#allocation8 + $0x88] sm:$0xff] }
 0x356   : > { %v2587_v40 = vpop.f32.mrf.mxu0  ;;  %9817 = vmatmul.mubr.f32.gmra.mxu0 %v3160_v22  ;;  %9904 = vmatprep.subr.mxu1 %v4431_v36 }
 0x357   : > { %v2743_v27 = vadd.f32 %v2587_v40, %v12326_v6  ;;  %v2956_v4 = vpop.f32.mrf.mxu1  ;;  %9819 = vmatprep.mubr.msk.f32.mxu0 %vm10931_vm0, %v10930_v0  ;;  %v5312_v6 = vld [vmem:[#allocation8 + $0x1c0] sm:$0xff]  ;;  %9905 = vmatpush3.msra.mxu1 %v4431_v36 }
 0x358   : > { %v9487_v56 = vpop.f32.mrf.mxu0  ;;  %10154 = vmatprep.subr.mxu0 %v5312_v6  ;;  %9906 = vmatprep.subr.mxu1 %v4430_v21  ;;  %v3163_v40 = vld [vmem:[%s11105_s10 + $0xd6] sm:$0xff] }
 0x359   : > { %v12632_v52 = vadd.f32 %v2956_v4, %v2743_v27  ;;  %v9642_v14 = vpop.f32.mrf.mxu1  ;;  %10155 = vmatpush3.msra.mxu0 %v5312_v6  ;;  %9907 = vmatpush3.msra.mxu1 %v4430_v21  ;;  %v4427_v6 = vld [vmem:[#allocation8 + $0x80] sm:$0xff] }
 0x35a   : > { %v2592_v51 = vpop.f32.mrf.mxu0  ;;  %9820 = vmatmul.mubr.f32.gmra.mxu0 %v3161_v54  ;;  %10156 = vmatprep.subr.mxu0 %v5311_v20  ;;  %v5308_v21 = vld [vmem:[#allocation8 + $0x1a0] sm:$0xff] }
 0x35b   : > { %v2744_v37 = vadd.f32 %v2592_v51, %v12335_v39  ;;  %v2961_v57 = vpop.f32.mrf.mxu1  ;;  %9822 = vmatprep.mubr.msk.f32.mxu0 %vm10931_vm0, %v10930_v0  ;;  %v4429_v39 = vld [vmem:[#allocation8 + $0x90] sm:$0xff]  ;;  %10157 = vmatpush3.msra.mxu0 %v5311_v20 }
 0x35c   : > { %v9490_v31 = vpop.f32.mrf.mxu0  ;;  %9908 = vmatprep.subr.mxu1 %v4429_v39  ;;  %10158 = vmatprep.subr.mxu0 %v5310_v48  ;;  %v3164_v51 = vld [vmem:[%s11105_s10 + $0xde] sm:$0xff]  ;;  %v3165_v20 = vld [vmem:[%s11105_s10 + $0xe6] sm:$0xff] }
 0x35d   : > { %v12638_v5 = vadd.f32 %v2961_v57, %v2744_v37  ;;  %v9645_v22 = vpop.f32.mrf.mxu1  ;;  %9909 = vmatpush3.msra.mxu1 %v4429_v39  ;;  %10159 = vmatpush3.msra.mxu0 %v5310_v48 }
 0x35e   : > { %v2597_v10 = vpop.f32.mrf.mxu0  ;;  %9823 = vmatmul.mubr.f32.gmra.mxu0 %v3162_v26  ;;  %9910 = vmatprep.subr.mxu1 %v4428_v1 }
 0x35f   : > { %v2745_v63 = vadd.f32 %v2597_v10, %v12344_v46  ;;  %v2966_v7 = vpop.f32.mrf.mxu1  ;;  %9825 = vmatprep.mubr.msk.f32.mxu0 %vm10931_vm0, %v10930_v0  ;;  %v5309_v46 = vld [vmem:[#allocation8 + $0x1a8] sm:$0xff]  ;;  %9911 = vmatpush3.msra.mxu1 %v4428_v1  ;;  %v5307_v10 = vld [vmem:[#allocation8 + $0x198] sm:$0xff] }
 0x360   : > { %v9493_v27 = vpop.f32.mrf.mxu0  ;;  %10160 = vmatprep.subr.mxu0 %v5309_v46  ;;  %9912 = vmatprep.subr.mxu1 %v4427_v6  ;;  %v5305_v1 = vld [vmem:[#allocation8 + $0x188] sm:$0xff] }
 0x361   : > { %v12644_v4 = vadd.f32 %v2966_v7, %v2745_v63  ;;  %v9648_v54 = vpop.f32.mrf.mxu1  ;;  %10161 = vmatpush3.msra.mxu0 %v5309_v46  ;;  %9913 = vmatpush3.msra.mxu1 %v4427_v6 }
 0x362   : > { %v2602_v56 = vpop.f32.mrf.mxu0  ;;  %9826 = vmatmul.mubr.f32.gmra.mxu0 %v3163_v40  ;;  %10162 = vmatprep.subr.mxu0 %v5308_v21  ;;  %v5306_v40 = vld [vmem:[#allocation8 + $0x190] sm:$0xff] }
 0x363   : > { %v2746_v14 = vadd.f32 %v2602_v56, %v12353_v16  ;;  %v2971_v36 = vpop.f32.mrf.mxu1  ;;  %9828 = vmatprep.mubr.msk.f32.mxu0 %vm10931_vm0, %v10930_v0  ;;  %10163 = vmatpush3.msra.mxu0 %v5308_v21  ;;  %v3166_v54 = vld [vmem:[%s11105_s10 + $0xee] sm:$0xff] }
 0x364   : > { %v9496_v37 = vpop.f32.mrf.mxu0  ;;  %10164 = vmatprep.subr.mxu0 %v5307_v10 }
 0x365   : > { %v12650_v57 = vadd.f32 %v2971_v36, %v2746_v14  ;;  %v9651_v26 = vpop.f32.mrf.mxu1  ;;  %10165 = vmatpush3.msra.mxu0 %v5307_v10  ;;  %v5304_v36 = vld [vmem:[#allocation8 + $0x180] sm:$0xff] }
 0x366   : > { %v2607_v31 = vpop.f32.mrf.mxu0  ;;  %9829 = vmatmul.mubr.f32.gmra.mxu0 %v3164_v51  ;;  %10166 = vmatprep.subr.mxu0 %v5306_v40  ;;  %v3167_v37 = vld [vmem:[%s11105_s10 + $0xf6] sm:$0xff] }
 0x367   : > { %v2747_v16 = vadd.f32 %v2607_v31, %v12362_v30  ;;  %v2976_v22 = vpop.f32.mrf.mxu1  ;;  %9831 = vmatprep.mubr.msk.f32.mxu0 %vm10931_vm0, %v10930_v0  ;;  %10167 = vmatpush3.msra.mxu0 %v5306_v40 }
 0x368   : > { %v9499_v39 = vpop.f32.mrf.mxu0  ;;  %10168 = vmatprep.subr.mxu0 %v5305_v1 }
 0x369   : > { %v12656_v63 = vadd.f32 %v2976_v22, %v2747_v16  ;;  %v9654_v7 = vpop.f32.mrf.mxu1  ;;  %10169 = vmatpush3.msra.mxu0 %v5305_v1 }
 0x36a   : > { %v2612_v48 = vpop.f32.mrf.mxu0  ;;  %9832 = vmatmul.mubr.f32.gmra.mxu0 %v3165_v20  ;;  %10170 = vmatprep.subr.mxu0 %v5304_v36 }
 0x36b   : > { %v2748_v30 = vadd.f32 %v2612_v48, %v12371_v53  ;;  %v2981_v27 = vpop.f32.mrf.mxu1  ;;  %9834 = vmatprep.mubr.msk.f32.mxu0 %vm10931_vm0, %v10930_v0  ;;  %10171 = vmatpush3.msra.mxu0 %v5304_v36 }
 0x36c   : > { %v9502_v56 = vpop.f32.mrf.mxu0 }
 0x36d   : > { %v12662_v46 = vadd.f32 %v2981_v27, %v2748_v30  ;;  %v9657_v14 = vpop.f32.mrf.mxu1  ;;  %v3169_v27 = vld [vmem:[%s11105_s10 + $0x106] sm:$0xff] }
 0x36e   : > { %v2617_v51 = vpop.f32.mrf.mxu0  ;;  %9835 = vmatmul.mubr.f32.gmra.mxu0 %v3166_v54 }
 0x36f   : > { %v2749_v53 = vadd.f32 %v2617_v51, %v12380_v58  ;;  %v2986_v6 = vpop.f32.mrf.mxu1  ;;  %9837 = vmatprep.mubr.msk.f32.mxu0 %vm10931_vm0, %v10930_v0  ;;  %v3168_v58 = vld [vmem:[%s11105_s10 + $0xfe] sm:$0xff]  ;;  %v3170_v51 = vld [vmem:[%s11105_s10 + $0x10e] sm:$0xff] }
 0x370   : > { %v9505_v26 = vpop.f32.mrf.mxu0 }
 0x371   : > { %v12668_v21 = vadd.f32 %v2986_v6, %v2749_v53  ;;  %v9660_v31 = vpop.f32.mrf.mxu1 }
 0x372   : > { %v2622_v16 = vpop.f32.mrf.mxu0  ;;  %9838 = vmatmul.mubr.f32.gmra.mxu0 %v3167_v37 }
 0x373   : > { %v2750_v22 = vadd.f32 %v2622_v16, %v12389_v24  ;;  %v2991_v20 = vpop.f32.mrf.mxu1  ;;  %9840 = vmatprep.mubr.msk.f32.mxu0 %vm10931_vm0, %v10930_v0  ;;  %v3171_v16 = vld [vmem:[%s11105_s10 + $0x116] sm:$0xff] }
 0x374   : > { %v9508_v10 = vpop.f32.mrf.mxu0 }
 0x375   : > { %v12674_v39 = vadd.f32 %v2991_v20, %v2750_v22  ;;  %v9663_v7 = vpop.f32.mrf.mxu1 }
 0x376   : > { %v2627_v40 = vpop.f32.mrf.mxu0  ;;  %9841 = vmatmul.mubr.f32.gmra.mxu0 %v3168_v58 }
 0x377   : > { %v2751_v48 = vadd.f32 %v2627_v40, %v12398_v50  ;;  %v2996_v30 = vpop.f32.mrf.mxu1  ;;  %9843 = vmatprep.mubr.msk.f32.mxu0 %vm10931_vm0, %v10930_v0  ;;  %v3172_v40 = vld [vmem:[%s11105_s10 + $0x11e] sm:$0xff] }
 0x378   : > { %v9511_v24 = vpop.f32.mrf.mxu0 }
 0x379   : > { %v12680_v54 = vadd.f32 %v2996_v30, %v2751_v48  ;;  %v9666_v1 = vpop.f32.mrf.mxu1 }
 0x37a   : > { %v2632_v56 = vpop.f32.mrf.mxu0  ;;  %9844 = vmatmul.mubr.f32.gmra.mxu0 %v3169_v27 }
 0x37b   : > { %v2752_v14 = vadd.f32 %v2632_v56, %v12407_v61  ;;  %v3001_v36 = vpop.f32.mrf.mxu1  ;;  %9846 = vmatprep.mubr.msk.f32.mxu0 %vm10931_vm0, %v10930_v0  ;;  %v3173_v56 = vld [vmem:[%s11105_s10 + $0x126] sm:$0xff] }
 0x37c   : > { %v9514_v50 = vpop.f32.mrf.mxu0 }
 0x37d   : > { %v12686_v53 = vadd.f32 %v3001_v36, %v2752_v14  ;;  %v9669_v6 = vpop.f32.mrf.mxu1 }
 0x37e   : > { %v2637_v37 = vpop.f32.mrf.mxu0  ;;  %9847 = vmatmul.mubr.f32.gmra.mxu0 %v3170_v51 }
 0x37f   : > { %v2753_v26 = vadd.f32 %v2637_v37, %v12416_v59  ;;  %v3006_v31 = vpop.f32.mrf.mxu1  ;;  %9849 = vmatprep.mubr.msk.f32.mxu0 %vm10931_vm0, %v10930_v0  ;;  %v3174_v37 = vld [vmem:[%s11105_s10 + $0x12e] sm:$0xff] }
 0x380   : > { %v9517_v61 = vpop.f32.mrf.mxu0 }
 0x381   : > { %v12692_v22 = vadd.f32 %v3006_v31, %v2753_v26  ;;  %v9672_v20 = vpop.f32.mrf.mxu1 }
 0x382   : > { %v2642_v58 = vpop.f32.mrf.mxu0  ;;  %9850 = vmatmul.mubr.f32.gmra.mxu0 %v3171_v16 }
 0x383   : > { %v2754_v10 = vadd.f32 %v2642_v58, %v12425_v32  ;;  %v3011_v7 = vpop.f32.mrf.mxu1  ;;  %9852 = vmatprep.mubr.msk.f32.mxu0 %vm10931_vm0, %v10930_v0  ;;  %v3175_v58 = vld [vmem:[%s11105_s10 + $0x136] sm:$0xff] }
 0x384   : > { %v9520_v59 = vpop.f32.mrf.mxu0 }
 0x385   : > { %v12698_v48 = vadd.f32 %v3011_v7, %v2754_v10  ;;  %v9675_v30 = vpop.f32.mrf.mxu1 }
 0x386   : > { %v2647_v27 = vpop.f32.mrf.mxu0  ;;  %9853 = vmatmul.mubr.f32.gmra.mxu0 %v3172_v40 }
 0x387   : > { %v2755_v24 = vadd.f32 %v2647_v27, %v12434_v9  ;;  %v3016_v1 = vpop.f32.mrf.mxu1  ;;  %9855 = vmatprep.mubr.msk.f32.mxu0 %vm10931_vm0, %v10930_v0  ;;  %v3176_v27 = vld [vmem:[%s11105_s10 + $0x13e] sm:$0xff] }
 0x388   : > { %v9523_v32 = vpop.f32.mrf.mxu0 }
 0x389   : > { %v12704_v14 = vadd.f32 %v3016_v1, %v2755_v24  ;;  %v9678_v36 = vpop.f32.mrf.mxu1 }
 0x38a   : > { %v2652_v51 = vpop.f32.mrf.mxu0  ;;  %9856 = vmatmul.mubr.f32.gmra.mxu0 %v3173_v56 }
 0x38b   : > { %v2756_v50 = vadd.f32 %v2652_v51, %v12443_v42  ;;  %v3021_v6 = vpop.f32.mrf.mxu1  ;;  %9858 = vmatprep.mubr.msk.f32.mxu0 %vm10931_vm0, %v10930_v0  ;;  %v3177_v51 = vld [vmem:[%s11105_s10 + $0x146] sm:$0xff] }
 0x38c   : > { %v9526_v9 = vpop.f32.mrf.mxu0 }
 0x38d   : > { %v12710_v26 = vadd.f32 %v3021_v6, %v2756_v50  ;;  %v9681_v31 = vpop.f32.mrf.mxu1 }
 0x38e   : > { %v2657_v16 = vpop.f32.mrf.mxu0  ;;  %9859 = vmatmul.mubr.f32.gmra.mxu0 %v3174_v37 }
 0x38f   : > { %v2757_v61 = vadd.f32 %v2657_v16, %v12452_v60  ;;  %v3026_v20 = vpop.f32.mrf.mxu1  ;;  %9861 = vmatprep.mubr.msk.f32.mxu0 %vm10931_vm0, %v10930_v0  ;;  %v3178_v16 = vld [vmem:[%s11105_s10 + $0x14e] sm:$0xff] }
 0x390   : > { %v9529_v42 = vpop.f32.mrf.mxu0 }
 0x391   : > { %v12716_v10 = vadd.f32 %v3026_v20, %v2757_v61  ;;  %v9684_v7 = vpop.f32.mrf.mxu1 }
 0x392   : > { %v2662_v40 = vpop.f32.mrf.mxu0  ;;  %9862 = vmatmul.mubr.f32.gmra.mxu0 %v3175_v58 }
 0x393   : > { %v2758_v59 = vadd.f32 %v2662_v40, %v12461_v19  ;;  %v3031_v30 = vpop.f32.mrf.mxu1  ;;  %9864 = vmatprep.mubr.msk.f32.mxu0 %vm10931_vm0, %v10930_v0  ;;  %v3179_v40 = vld [vmem:[%s11105_s10 + $0x156] sm:$0xff] }
 0x394   : > { %v9532_v60 = vpop.f32.mrf.mxu0 }
 0x395   : > { %v12722_v24 = vadd.f32 %v3031_v30, %v2758_v59  ;;  %v9687_v1 = vpop.f32.mrf.mxu1 }
 0x396   : > { %v2667_v56 = vpop.f32.mrf.mxu0  ;;  %9865 = vmatmul.mubr.f32.gmra.mxu0 %v3176_v27 }
 0x397   : > { %v2759_v32 = vadd.f32 %v2667_v56, %v12470_v38  ;;  %v3036_v36 = vpop.f32.mrf.mxu1  ;;  %9867 = vmatprep.mubr.msk.f32.mxu0 %vm10931_vm0, %v10930_v0  ;;  %v3180_v56 = vld [vmem:[%s11105_s10 + $0x15e] sm:$0xff] }
 0x398   : > { %v9535_v19 = vpop.f32.mrf.mxu0 }
 0x399   : > { %v12728_v50 = vadd.f32 %v3036_v36, %v2759_v32  ;;  %v9690_v6 = vpop.f32.mrf.mxu1 }
 0x39a   : > { %v2672_v37 = vpop.f32.mrf.mxu0  ;;  %9868 = vmatmul.mubr.f32.gmra.mxu0 %v3177_v51 }
 0x39b   : > { %v2760_v9 = vadd.f32 %v2672_v37, %v12479_v41  ;;  %v3041_v31 = vpop.f32.mrf.mxu1  ;;  %9870 = vmatprep.mubr.msk.f32.mxu0 %vm10931_vm0, %v10930_v0  ;;  %v3181_v37 = vld [vmem:[%s11105_s10 + $0x166] sm:$0xff]  ;;  %s15383_s10 = scalar_lea.hbm %s15435_s5, %s10692_s17 }
 0x39c   : > { %v9538_v38 = vpop.f32.mrf.mxu0 }
 0x39d   : > { %v12734_v61 = vadd.f32 %v3041_v31, %v2760_v9  ;;  %v9693_v20 = vpop.f32.mrf.mxu1 }
 0x39e   : > { %v2677_v58 = vpop.f32.mrf.mxu0  ;;  %9871 = vmatmul.mubr.f32.gmra.mxu0 %v3178_v16 }
 0x39f   : > { %v2761_v42 = vadd.f32 %v2677_v58, %v12488_v18  ;;  %v3046_v7 = vpop.f32.mrf.mxu1  ;;  %9873 = vmatprep.mubr.msk.f32.mxu0 %vm10931_vm0, %v10930_v0 }
 0x3a0   : > { %v9541_v41 = vpop.f32.mrf.mxu0 }
 0x3a1   : > { %v12740_v59 = vadd.f32 %v3046_v7, %v2761_v42  ;;  %v9696_v30 = vpop.f32.mrf.mxu1 }
 0x3a2   : > { %v2682_v27 = vpop.f32.mrf.mxu0  ;;  %9874 = vmatmul.mubr.f32.gmra.mxu0 %v3179_v40  ;;  %v12759_v30 = vld [vmem:[#allocation8 + $0x78] sm:$0xff] }
 0x3a3   : > { %v2762_v60 = vadd.f32 %v2682_v27, %v12497_v35  ;;  %v3051_v1 = vpop.f32.mrf.mxu1  ;;  %9876 = vmatprep.mubr.msk.f32.mxu0 %vm10931_vm0, %v10930_v0  ;;  %v3599_v35 = vlaneseq  ;;  %9968 = vmatprep.subr.mxu1 %v12759_v30 }
 0x3a4   : > { %v9544_v18 = vpop.f32.mrf.mxu0 }
 0x3a5   : > { %v12746_v32 = vadd.f32 %v3051_v1, %v2762_v60  ;;  %v9699_v36 = vpop.f32.mrf.mxu1  ;;  %v12755_v7 = vshrl.u32 %v3599_v35, 7 }
 0x3a6   : > { %v2687_v51 = vpop.f32.mrf.mxu0  ;;  %9877 = vmatmul.mubr.f32.gmra.mxu0 %v3180_v56 }
 0x3a7   : > { %v2763_v19 = vadd.f32 %v2687_v51, %v12506_v47  ;;  %v3056_v6 = vpop.f32.mrf.mxu1  ;;  %9879 = vmatprep.mubr.msk.f32.mxu0 %vm10931_vm0, %v10930_v0  ;;  %v12763_v60 = vadd.s32 8, %v12755_v7  ;;  %v12770_v51 = vadd.s32 16, %v12755_v7 }
 0x3a8   : > { %v9547_v9 = vpop.f32.mrf.mxu0 }
 0x3a9   : > { %v12752_v31 = vadd.f32 %v3056_v6, %v2763_v19  ;;  %v9702_v16 = vpop.f32.mrf.mxu1 }
 0x3aa   : > { %v2692_v38 = vpop.f32.mrf.mxu0  ;;  %9880 = vmatmul.mubr.f32.gmra.mxu0 %v3181_v37 }
 0x3ab   : > { %v2764_v20 = vadd.f32 %v2692_v38, %v12512_v13  ;;  %v3061_v58 = vpop.f32.mrf.mxu1  ;;  %v3641_v13 = vcvt.s32.f32 %v12755_v7 }
 0x3ac   : > { %v9550_v42 = vpop.f32.mrf.mxu0 }
 0x3ad   : > { %v12757_v40 = vadd.f32 %v3061_v58, %v2764_v20  ;;  %v9705_v47 = vpop.f32.mrf.mxu1  ;;  %v3682_v9 = vadd.f32 0.5, %v3641_v13  ;;  %v15441_v20 = vcvt.s32.f32 %v12770_v51 }
 0x3ae   : > { %v2697_v41 = vpop.f32.mrf.mxu0 }
 0x3af   : > { %15461 = vst [vmem:[#allocation13_spill] sm:$0xff] %v12757_v40  ;;  %v2765_v0 = vadd.f32 %v2697_v41, %v12518_v34  ;;  %v3066_v27 = vpop.f32.mrf.mxu1  ;;  %v3642_v34 = vcvt.s32.f32 %v12763_v60  ;;  %v12779_v41 = vadd.s32 24, %v12755_v7  ;;  %v12806_v40 = vadd.s32 48, %v12755_v7 }
 0x3b0   : > { %v9553_v1 = vpop.f32.mrf.mxu0 }
 0x3b1   : > { %v12767_v56 = vadd.f32 %v3066_v27, %v2765_v0  ;;  %v9708_v18 = vpop.f32.mrf.mxu1  ;;  %v3683_v47 = vadd.f32 0.5, %v3642_v34 }
 0x3b2   : > { %v2702_v36 = vpop.f32.mrf.mxu0  ;;  %v3684_v18 = vadd.f32 0.5, %v15441_v20 }
 0x3b3   : > { %15462 = vst [vmem:[#allocation14_spill] sm:$0xff] %v12767_v56  ;;  %v2766_v19 = vadd.f32 %v2702_v36, %v12524_v49  ;;  %v3071_v6 = vpop.f32.mrf.mxu1  ;;  %v3723_v49 = vmul.f32 0.055555556, %v3682_v9  ;;  %v12797_v56 = vadd.s32 40, %v12755_v7 }
 0x3b4   : > { %v9556_v37 = vpop.f32.mrf.mxu0 }
 0x3b5   : > { %v12774_v35 = vadd.f32 %v3071_v6, %v2766_v19  ;;  %v9711_v16 = vpop.f32.mrf.mxu1  ;;  %v3724_v6 = vmul.f32 0.055555556, %v3683_v47  ;;  %v12788_v37 = vadd.s32 32, %v12755_v7 }
 0x3b6   : > { %v2707_v38 = vpop.f32.mrf.mxu0 }
 0x3b7   : > { %15463 = vst [vmem:[#allocation15_spill] sm:$0xff] %v12774_v35  ;;  %v2767_v58 = vadd.f32 %v2707_v38, %v12530_v2  ;;  %v3076_v42 = vpop.f32.mrf.mxu1  ;;  %v15442_v2 = vcvt.s32.f32 %v12779_v41  ;;  %v3764_v38 = vfloor.f32 %v3723_v49  ;;  %v3765_v20 = vfloor.f32 %v3724_v6 }
 0x3b8   : > { %v9559_v0 = vpop.f32.mrf.mxu0  ;;  %v15443_v47 = vcvt.s32.f32 %v12788_v37 }
 0x3b9   : > { %v12781_v27 = vadd.f32 %v3076_v42, %v2767_v58  ;;  %v9714_v60 = vpop.f32.mrf.mxu1  ;;  %v3725_v42 = vmul.f32 0.055555556, %v3684_v18  ;;  %v3805_v35 = vmul.f32 18.0, %v3764_v38  ;;  %vm3887_vm1 = vcmp.ge.f32.partialorder %v3764_v38, 1.0 }
 0x3ba   : > { %v2712_v1 = vpop.f32.mrf.mxu0  ;;  %vm3928_vm2 = vcmp.le.f32.partialorder %v3764_v38, 16.0  ;;  %vm3888_vm5 = vcmp.ge.f32.partialorder %v3765_v20, 1.0  ;;  %vm3929_vm6 = vcmp.le.f32.partialorder %v3765_v20, 16.0 }
 0x3bb   : > { %15464 = vst [vmem:[#allocation16_spill] sm:$0xff] %v12781_v27  ;;  %v2768_v36 = vadd.f32 %v2712_v1, %v12536_v17  ;;  %v3081_v19 = vpop.f32.mrf.mxu1  ;;  %v3685_v17 = vadd.f32 0.5, %v15442_v2  ;;  %vm3969_vm3 = vmand %vm3887_vm1, %vm3928_vm2 }
 0x3bc   : > { %v9562_v16 = vpop.f32.mrf.mxu0  ;;  %vm12829_vm10 = vmand %vm3888_vm5, %vm3929_vm6 }
 0x3bd   : > { %v12790_v0 = vadd.f32 %v3081_v19, %v2768_v36  ;;  %v9717_v9 = vpop.f32.mrf.mxu1  ;;  %v3766_v16 = vfloor.f32 %v3725_v42  ;;  %v3726_v6 = vmul.f32 0.055555556, %v3685_v17 }
 0x3be   : > { %v2717_v58 = vpop.f32.mrf.mxu0  ;;  %v3806_v9 = vmul.f32 18.0, %v3765_v20 }
 0x3bf   : > { %15465 = vst [vmem:[#allocation17_spill] sm:$0xff] %v12790_v0  ;;  %v2769_v60 = vadd.f32 %v2717_v58, %v12542_v15  ;;  %v3086_v27 = vpop.f32.mrf.mxu1  ;;  %v3686_v58 = vadd.f32 0.5, %v15443_v47  ;;  %v3846_v0 = vsub.f32 %v3641_v13, %v3805_v35  ;;  %v15444_v35 = vcvt.s32.f32 %v12806_v40 }
 0x3c0   : > { %v9565_v1 = vpop.f32.mrf.mxu0  ;;  %vm3889_vm11 = vcmp.ge.f32.partialorder %v3766_v16, 1.0  ;;  %vm3930_vm12 = vcmp.le.f32.partialorder %v3766_v16, 16.0 }
 0x3c1   : > { %v12799_v49 = vadd.f32 %v3086_v27, %v2769_v60  ;;  %v9720_v36 = vpop.f32.mrf.mxu1  ;;  %v15445_v1 = vcvt.s32.f32 %v12797_v56  ;;  %v3727_v47 = vmul.f32 0.055555556, %v3686_v58  ;;  %vm4010_vm4 = vcmp.ge.f32.partialorder %v3846_v0, 1.0  ;;  %vm12855_vm1 = vmand %vm3889_vm11, %vm3930_vm12 }
 0x3c2   : > { %v2722_v19 = vpop.f32.mrf.mxu0  ;;  %vm4092_vm7 = vcmp.le.f32.partialorder %v3846_v0, 16.0  ;;  %vm4051_vm8 = vmand %vm3969_vm3, %vm4010_vm4 }
 0x3c3   : > { %15466 = vst [vmem:[#allocation18_spill] sm:$0xff] %v12799_v49  ;;  %v2770_v18 = vadd.f32 %v2722_v19, %v12548_v43  ;;  %v3091_v15 = vpop.f32.mrf.mxu1  ;;  %v3807_v43 = vmul.f32 18.0, %v3766_v16  ;;  %v3847_v19 = vsub.f32 %v3642_v34, %v3806_v9  ;;  %v3767_v49 = vfloor.f32 %v3726_v6  ;;  %v12822_v34 = vld [vmem:[%s15432_s2] ss:$0 sm:$0xff]  ;;  %vm12841_vm13 = vmand %vm4051_vm8, %vm4092_vm7 }
 0x3c4   : > { %v9568_v2 = vpop.f32.mrf.mxu0  ;;  %v3687_v13 = vadd.f32 0.5, %v15445_v1  ;;  %v15467_v9 = vcvt.s32.f32 %v12770_v51  ;;  %v12837_v51 = vadd.s32 64, %v12755_v7  ;;  %v15472_v16 = vcvt.s32.f32 %v12779_v41 }
 0x3c5   : > { %v12808_v27 = vadd.f32 %v3091_v15, %v2770_v18  ;;  %v9723_v60 = vpop.f32.mrf.mxu1  ;;  %v12815_v18 = vadd.s32 56, %v12755_v7  ;;  %vm4011_vm9 = vcmp.ge.f32.partialorder %v3847_v19, 1.0  ;;  %vm4093_vm14 = vcmp.le.f32.partialorder %v3847_v19, 16.0 }
 0x3c6   : > { %v2727_v42 = vpop.f32.mrf.mxu0  ;;  %v3848_v6 = vsub.f32 %v15467_v9, %v3807_v43  ;;  %v3808_v60 = vmul.f32 18.0, %v3767_v49  ;;  %vm4052_vm0 = vmand %vm12829_vm10, %vm4011_vm9  ;;  %vm3890_vm2 = vcmp.ge.f32.partialorder %v3767_v49, 1.0  ;;  %vm3931_vm3 = vcmp.le.f32.partialorder %v3767_v49, 16.0 }
 0x3c7   : > { %v2771_v36 = vadd.f32 %v2727_v42, %v12554_v29  ;;  %v3096_v17 = vpop.f32.mrf.mxu1  ;;  %v12827_v42 = vfloor.f32 %v3727_v47  ;;  %vm12868_vm4 = vmand %vm4052_vm0, %vm4093_vm14  ;;  %v15478_v49 = vcvt.s32.f32 %v12788_v37 }
 0x3c8   : > { %v9571_v2 = vpop.f32.mrf.mxu0  ;;  %vm4012_vm15 = vcmp.ge.f32.partialorder %v3848_v6, 1.0  ;;  %v3849_v0 = vsub.f32 %v15472_v16, %v3808_v60  ;;  %vm4094_vm5 = vcmp.le.f32.partialorder %v3848_v6, 16.0  ;;  %v12874_v16 = vadd.s32 80, %v12755_v7  ;;  %vm12882_vm8 = vmand %vm3890_vm2, %vm3931_vm3  ;;  %v12904_v60 = vld [vmem:[#allocation8 + $0x2f8] sm:$0xff] }
 0x3c9   : > { %v12817_v38 = vadd.f32 %v3096_v17, %v2771_v36  ;;  %v9726_v29 = vpop.f32.mrf.mxu1  ;;  %v3728_v17 = vmul.f32 0.055555556, %v3687_v13  ;;  %v3688_v2 = vadd.f32 0.5, %v15444_v35  ;;  %v12846_v13 = vadd.s32 72, %v12755_v7  ;;  %vm4053_vm6 = vmand %vm12855_vm1, %vm4012_vm15  ;;  %10312 = vmatprep.subr.mxu0 %v12904_v60 }
 0x3ca   : > { %v3265_v15 = vpop.f32.mrf.mxu0  ;;  %vm4013_vm7 = vcmp.ge.f32.partialorder %v3849_v0, 1.0  ;;  %vm3891_vm9 = vcmp.ge.f32.partialorder %v12827_v42, 1.0  ;;  %vm3932_vm10 = vcmp.le.f32.partialorder %v12827_v42, 16.0  ;;  %vm12897_vm11 = vmand %vm4053_vm6, %vm4094_vm5  ;;  %vm4095_vm12 = vcmp.le.f32.partialorder %v3849_v0, 16.0 }
 0x3cb   : > { %v3469_v58 = vadd.f32 %v3265_v15, %v12560_v28  ;;  %v12859_v1 = vfloor.f32 %v3728_v17  ;;  %v3729_v29 = vmul.f32 0.055555556, %v3688_v2  ;;  %v15446_v2 = vcvt.s32.f32 %v12846_v13  ;;  %vm12922_vm15 = vmand %vm3891_vm9, %vm3932_vm10 }
 0x3cc   : > { %v9761_v36 = vpop.f32.mrf.mxu0 }
 0x3cd   : > { %v3517_v28 = vadd.f32 %v12822_v34, %v3469_v58  ;;  %v3809_v58 = vmul.f32 18.0, %v12827_v42  ;;  %vm3892_vm0 = vcmp.ge.f32.partialorder %v12859_v1, 1.0  ;;  %vm3933_vm1 = vcmp.le.f32.partialorder %v12859_v1, 16.0 }
 0x3ce   : > { %v3270_v43 = vpop.f32.mrf.mxu0  ;;  %vm12957_vm5 = vmand %vm3892_vm0, %vm3933_vm1 }
 0x3cf   : > { %v3558_v15 = vmax.f32 %v3517_v28, 0.0  ;;  %v3470_v9 = vadd.f32 %v3270_v43, %v12566_v12  ;;  %v15475_v28 = vcvt.s32.f32 %v12815_v18  ;;  %v15447_v43 = vcvt.s32.f32 %v12837_v51 }
 0x3d0   : > { %v9764_v36 = vpop.f32.mrf.mxu0  ;;  %v3850_v19 = vsub.f32 %v15478_v49, %v3809_v58  ;;  %v3691_v58 = vadd.f32 0.5, %v15446_v2  ;;  %v12915_v49 = vadd.s32 88, %v12755_v7 }
 0x3d1   : > { %v3689_v12 = vadd.f32 0.5, %v15475_v28  ;;  %v4256_v20 = vsel %vm12841_vm13, %v3558_v15, 0.0  ;;  %v3518_v41 = vadd.f32 %v12822_v34, %v3470_v9  ;;  %v3810_v28 = vmul.f32 18.0, %v12859_v1  ;;  %vm12910_vm13 = vmand %vm12882_vm8, %vm4013_vm7 }
 0x3d2   : > { %4297 = vst [vmem:[#allocation2] sm:$0xff] %v4256_v20  ;;  %v3275_v17 = vpop.f32.mrf.mxu0  ;;  %v12887_v20 = vfloor.f32 %v3729_v29  ;;  %vm4014_vm14 = vcmp.ge.f32.partialorder %v3850_v19, 1.0  ;;  %v15487_v9 = vcvt.s32.f32 %v12797_v56  ;;  %vm12939_vm2 = vmand %vm12910_vm13, %vm4095_vm12  ;;  %vm4096_vm3 = vcmp.le.f32.partialorder %v3850_v19, 16.0 }
 0x3d3   : > { %v3559_v36 = vmax.f32 %v3518_v41, 0.0  ;;  %v3471_v47 = vadd.f32 %v3275_v17, %v12572_v45  ;;  %v3730_v41 = vmul.f32 0.055555556, %v3689_v12  ;;  %v3690_v45 = vadd.f32 0.5, %v15447_v43 }
 0x3d4   : > { %v9767_v15 = vpop.f32.mrf.mxu0  ;;  %v3651_v12 = vcvt.s32.f32 %v12874_v16  ;;  %v3652_v0 = vcvt.s32.f32 %v12915_v49  ;;  %vm3893_vm7 = vcmp.ge.f32.partialorder %v12887_v20, 1.0  ;;  %vm3934_vm8 = vcmp.le.f32.partialorder %v12887_v20, 16.0 }
 0x3d5   : > { %v4257_v35 = vsel %vm12868_vm4, %v3559_v36, 0.0  ;;  %v3519_v17 = vadd.f32 %v12822_v34, %v3471_v47  ;;  %v3731_v2 = vmul.f32 0.055555556, %v3690_v45  ;;  %vm12949_vm4 = vmand %vm12922_vm15, %vm4014_vm14 }
 0x3d6   : > { %4298 = vst [vmem:[#allocation2 + $0x8] sm:$0xff] %v4257_v35  ;;  %v3280_v29 = vpop.f32.mrf.mxu0  ;;  %v3851_v35 = vsub.f32 %v15487_v9, %v3810_v28  ;;  %v3732_v28 = vmul.f32 0.055555556, %v3691_v58  ;;  %vm12974_vm9 = vmand %vm12949_vm4, %vm4096_vm3  ;;  %v3693_v1 = vadd.f32 0.5, %v3652_v0 }
 0x3d7   : > { %v3560_v36 = vmax.f32 %v3519_v17, 0.0  ;;  %v3472_v47 = vadd.f32 %v3280_v29, %v12578_v33  ;;  %v3811_v17 = vmul.f32 18.0, %v12887_v20  ;;  %v12929_v29 = vfloor.f32 %v3730_v41  ;;  %vm12993_vm12 = vmand %vm3893_vm7, %vm3934_vm8 }
 0x3d8   : > { %v9770_v15 = vpop.f32.mrf.mxu0  ;;  %v3692_v41 = vadd.f32 0.5, %v3651_v12  ;;  %vm4015_vm6 = vcmp.ge.f32.partialorder %v3851_v35, 1.0  ;;  %v12964_v33 = vfloor.f32 %v3731_v2  ;;  %vm4097_vm10 = vcmp.le.f32.partialorder %v3851_v35, 16.0 }
 0x3d9   : > { %v4258_v43 = vsel %vm12897_vm11, %v3560_v36, 0.0  ;;  %v3520_v15 = vadd.f32 %v12822_v34, %v3472_v47  ;;  %v3812_v6 = vmul.f32 18.0, %v12929_v29  ;;  %vm12984_vm11 = vmand %vm12957_vm5, %vm4015_vm6  ;;  %vm3894_vm14 = vcmp.ge.f32.partialorder %v12929_v29, 1.0 }
 0x3da   : > { %4299 = vst [vmem:[#allocation2 + $0x10] sm:$0xff] %v4258_v43  ;;  %v3285_v42 = vpop.f32.mrf.mxu0  ;;  %v12955_v43 = vadd.s32 96, %v12755_v7  ;;  %v3733_v56 = vmul.f32 0.055555556, %v3692_v41  ;;  %v3813_v58 = vmul.f32 18.0, %v12964_v33  ;;  %vm3935_vm15 = vcmp.le.f32.partialorder %v12929_v29, 16.0  ;;  %vm13013_vm0 = vmand %vm12984_vm11, %vm4097_vm10 }
 0x3db   : > { %v3561_v45 = vmax.f32 %v3520_v15, 0.0  ;;  %v3473_v37 = vadd.f32 %v3285_v42, %v12584_v55  ;;  %v15494_v55 = vcvt.s32.f32 %v12806_v40  ;;  %v3734_v19 = vmul.f32 0.055555556, %v3693_v1  ;;  %vm13035_vm3 = vmand %vm3894_vm14, %vm3935_vm15 }
 0x3dc   : > { %v9773_v36 = vpop.f32.mrf.mxu0  ;;  %vm3895_vm5 = vcmp.ge.f32.partialorder %v12964_v33, 1.0  ;;  %vm3936_vm6 = vcmp.le.f32.partialorder %v12964_v33, 16.0 }
 0x3dd   : > { %v3852_v47 = vsub.f32 %v15494_v55, %v3811_v17  ;;  %v4259_v9 = vsel %vm12939_vm2, %v3561_v45, 0.0  ;;  %v3521_v15 = vadd.f32 %v12822_v34, %v3473_v37  ;;  %v4390_v42 = vld [vmem:[#allocation2 + $0x1] sm:$0xff]  ;;  %v12978_v17 = vfloor.f32 %v3732_v28  ;;  %vm13081_vm10 = vmand %vm3895_vm5, %vm3936_vm6 }
 0x3de   : > { %4300 = vst [vmem:[#allocation2 + $0x18] sm:$0xff] %v4259_v9  ;;  %v3290_v2 = vpop.f32.mrf.mxu0  ;;  %9914 = vmatprep.mubr.f32.mxu1 %v4390_v42  ;;  %v3653_v36 = vcvt.s32.f32 %v12955_v43  ;;  %v13003_v9 = vadd.s32 104, %v12755_v7 }
 0x3df   : > { %v3562_v45 = vmax.f32 %v3521_v15, 0.0  ;;  %v3474_v37 = vadd.f32 %v3290_v2, %v12590_v25  ;;  %vm4016_vm13 = vcmp.ge.f32.partialorder %v3852_v47, 1.0  ;;  %v15501_v25 = vcvt.s32.f32 %v12815_v18  ;;  %v4388_v2 = vld [vmem:[#allocation8 + $0x70] sm:$0xff] }
 0x3e0   : > { %v9776_v55 = vpop.f32.mrf.mxu0  ;;  %vm4098_vm1 = vcmp.le.f32.partialorder %v3852_v47, 16.0  ;;  %v3814_v40 = vmul.f32 18.0, %v12978_v17  ;;  %vm13024_vm2 = vmand %vm12993_vm12, %vm4016_vm13  ;;  %v3654_v1 = vcvt.s32.f32 %v13003_v9  ;;  %v15511_v18 = vcvt.s32.f32 %v12846_v13  ;;  %v5980_v9 = vld [vmem:[#allocation8 + $0x2c0] sm:$0xff] }
 0x3e1   : > { %v12999_v41 = vsub.f32 %v15501_v25, %v3812_v6  ;;  %v4260_v15 = vsel %vm12974_vm9, %v3562_v45, 0.0  ;;  %v3522_v42 = vadd.f32 %v12822_v34, %v3474_v37  ;;  %v4391_v20 = vld [vmem:[#allocation2 + $0x9] sm:$0xff]  ;;  %v13018_v45 = vfloor.f32 %v3733_v56  ;;  %vm13056_vm7 = vmand %vm13024_vm2, %vm4098_vm1 }
 0x3e2   : > { %4301 = vst [vmem:[#allocation2 + $0x20] sm:$0xff] %v4260_v15  ;;  %v3295_v6 = vpop.f32.mrf.mxu0  ;;  %9915 = vmatmul.mubr.f32.vlgmr.msra.gmra.mxu1 %v4391_v20  ;;  %v3694_v25 = vadd.f32 0.5, %v3653_v36  ;;  %v15508_v56 = vcvt.s32.f32 %v12837_v51  ;;  %vm3896_vm12 = vcmp.ge.f32.partialorder %v12978_v17, 1.0  ;;  %vm3937_vm13 = vcmp.le.f32.partialorder %v12978_v17, 16.0 }
 0x3e3   : > { %v3563_v37 = vmax.f32 %v3522_v42, 0.0  ;;  %v3475_v55 = vadd.f32 %v3295_v6, %v12596_v8  ;;  %9969 = vmatpush3.msra.mxu1 %v12759_v30  ;;  %vm4017_vm4 = vcmp.ge.f32.partialorder %v12999_v41, 1.0  ;;  %v13046_v42 = vadd.s32 112, %v12755_v7  ;;  %v4387_v30 = vld [vmem:[#allocation8 + $0x68] sm:$0xff]  ;;  %vm13128_vm2 = vmand %vm3896_vm12, %vm3937_vm13 }
 0x3e4   : > { %v9779_v15 = vpop.f32.mrf.mxu0  ;;  %v13042_v28 = vsub.f32 %v15508_v56, %v3813_v58  ;;  %9970 = vmatprep.subr.mxu1 %v4388_v2  ;;  %vm4099_vm8 = vcmp.le.f32.partialorder %v12999_v41, 16.0  ;;  %vm13071_vm9 = vmand %vm13035_vm3, %vm4017_vm4  ;;  %vm3897_vm3 = vcmp.ge.f32.partialorder %v13018_v45, 1.0  ;;  %vm3938_vm4 = vcmp.le.f32.partialorder %v13018_v45, 16.0 }
 0x3e5   : > { %v4261_v29 = vsel %vm13013_vm0, %v3563_v37, 0.0  ;;  %v3523_v20 = vadd.f32 %v12822_v34, %v3475_v55  ;;  %v4392_v6 = vld [vmem:[#allocation2 + $0x11] sm:$0xff]  ;;  %9971 = vmatpush3.msra.mxu1 %v4388_v2  ;;  %v13063_v37 = vsub.f32 %v15511_v18, %v3814_v40  ;;  %v3815_v55 = vmul.f32 18.0, %v13018_v45  ;;  %v4386_v2 = vld [vmem:[#allocation8 + $0x60] sm:$0xff]  ;;  %vm13101_vm14 = vmand %vm13071_vm9, %vm4099_vm8 }
 0x3e6   : > { %v5267_v15 = vld [vmem:[#allocation2 + $0x12] sm:$0xff]  ;;  %4302 = vst [vmem:[#allocation2 + $0x28] sm:$0xff] %v4261_v29  ;;  %v3300_v58 = vpop.f32.mrf.mxu0  ;;  %9917 = vmatprep.mubr.f32.mxu1 %v4392_v6  ;;  %v13075_v29 = vfloor.f32 %v3734_v19  ;;  %v3735_v6 = vmul.f32 0.055555556, %v3694_v25  ;;  %9972 = vmatprep.subr.mxu1 %v4387_v30  ;;  %vm4018_vm11 = vcmp.ge.f32.partialorder %v13042_v28, 1.0  ;;  %v3655_v8 = vcvt.s32.f32 %v13046_v42  ;;  %v4385_v25 = vld [vmem:[#allocation8 + $0x58] sm:$0xff]  ;;  %vm13174_vm9 = vmand %vm3897_vm3, %vm3938_vm4 }
 0x3e7   : > { %10172 = vmatprep.mubr.f32.mxu0 %v5267_v15  ;;  %v3564_v56 = vmax.f32 %v3523_v20, 0.0  ;;  %v3476_v47 = vadd.f32 %v3300_v58, %v12602_v3  ;;  %v3695_v3 = vadd.f32 0.5, %v3654_v1  ;;  %v13090_v19 = vadd.s32 120, %v12755_v7  ;;  %9973 = vmatpush3.msra.mxu1 %v4387_v30  ;;  %v5986_v18 = vld [vmem:[#allocation8 + $0x2f0] sm:$0xff]  ;;  %vm13116_vm1 = vmand %vm13081_vm10, %vm4018_vm11 }
 0x3e8   : > { %v9782_v13 = vpop.f32.mrf.mxu0  ;;  %9974 = vmatprep.subr.mxu1 %v4386_v2  ;;  %vm4100_vm15 = vcmp.le.f32.partialorder %v13042_v28, 16.0  ;;  %vm4019_vm0 = vcmp.ge.f32.partialorder %v13063_v37, 1.0  ;;  %vm4101_vm6 = vcmp.le.f32.partialorder %v13063_v37, 16.0  ;;  %vm3898_vm10 = vcmp.ge.f32.partialorder %v13075_v29, 1.0 }
 0x3e9   : > { %v4262_v20 = vsel %vm13056_vm7, %v3564_v56, 0.0  ;;  %v3524_v33 = vadd.f32 %v12822_v34, %v3476_v47  ;;  %v4393_v15 = vld [vmem:[#allocation2 + $0x19] sm:$0xff]  ;;  %v13109_v56 = vsub.f32 %v3651_v12, %v3815_v55  ;;  %v3816_v13 = vmul.f32 18.0, %v13075_v29  ;;  %9975 = vmatpush3.msra.mxu1 %v4386_v2  ;;  %v5985_v2 = vld [vmem:[#allocation8 + $0x2e8] sm:$0xff]  ;;  %vm13147_vm5 = vmand %vm13116_vm1, %vm4100_vm15 }
 0x3ea   : > { %v5268_v58 = vld [vmem:[#allocation2 + $0x1a] sm:$0xff]  ;;  %4303 = vst [vmem:[#allocation2 + $0x30] sm:$0xff] %v4262_v20  ;;  %v3305_v51 = vpop.f32.mrf.mxu0  ;;  %9918 = vmatmul.mubr.f32.gmra.mxu1 %v4393_v15  ;;  %v13121_v20 = vfloor.f32 %v3735_v6  ;;  %v3736_v12 = vmul.f32 0.055555556, %v3695_v3  ;;  %v3696_v55 = vadd.f32 0.5, %v3655_v8  ;;  %v3656_v40 = vcvt.s32.f32 %v13090_v19  ;;  %9976 = vmatprep.subr.mxu1 %v4385_v25  ;;  %vm13161_vm8 = vmand %vm13128_vm2, %vm4019_vm0  ;;  %v5977_v19 = vld [vmem:[#allocation8 + $0x2a8] sm:$0xff] }
 0x3eb   : > { %10173 = vmatmul.mubr.f32.vlgmr.msra.gmra.mxu0 %v5268_v58  ;;  %v3565_v47 = vmax.f32 %v3524_v33, 0.0  ;;  %v3477_v41 = vadd.f32 %v3305_v51, %v12608_v23  ;;  %v13136_v6 = vadd.s32 128, %v12755_v7  ;;  %9977 = vmatpush3.msra.mxu1 %v4385_v25  ;;  %vm4020_vm7 = vcmp.ge.f32.partialorder %v13109_v56, 1.0  ;;  %v4383_v25 = vld [vmem:[#allocation8 + $0x48] sm:$0xff]  ;;  %vm13192_vm12 = vmand %vm13161_vm8, %vm4101_vm6 }
 0x3ec   : > { %10313 = vmatpush3.msra.mxu0 %v12904_v60  ;;  %v9785_v16 = vpop.f32.mrf.mxu0  ;;  %v4384_v60 = vld [vmem:[#allocation8 + $0x50] sm:$0xff]  ;;  %v13154_v51 = vadd.s32 136, %v12755_v7  ;;  %v13167_v35 = vsub.f32 %v3652_v0, %v3816_v13  ;;  %v13178_v23 = vfloor.f32 %v3736_v12  ;;  %v3697_v49 = vadd.f32 0.5, %v3656_v40  ;;  %v4382_v13 = vld [vmem:[#allocation8 + $0x40] sm:$0xff]  ;;  %v5983_v12 = vld [vmem:[#allocation8 + $0x2d8] sm:$0xff] }
 0x3ed   : > { %10314 = vmatprep.subr.mxu0 %v5986_v18  ;;  %v4263_v17 = vsel %vm13101_vm14, %v3565_v47, 0.0  ;;  %v3525_v33 = vadd.f32 %v12822_v34, %v3477_v41  ;;  %v4394_v15 = vld [vmem:[#allocation2 + $0x21] sm:$0xff]  ;;  %v3817_v16 = vmul.f32 18.0, %v13121_v20  ;;  %9978 = vmatprep.subr.mxu1 %v4384_v60  ;;  %v3657_v0 = vcvt.s32.f32 %v13136_v6  ;;  %vm13206_vm14 = vmand %vm13174_vm9, %vm4020_vm7 }
 0x3ee   : > { %v5269_v58 = vld [vmem:[#allocation2 + $0x22] sm:$0xff]  ;;  %10315 = vmatpush3.msra.mxu0 %v5986_v18  ;;  %4304 = vst [vmem:[#allocation2 + $0x38] sm:$0xff] %v4263_v17  ;;  %v3310_v30 = vpop.f32.mrf.mxu0  ;;  %9920 = vmatprep.mubr.f32.mxu1 %v4394_v15  ;;  %vm3939_vm11 = vcmp.le.f32.partialorder %v13075_v29, 16.0  ;;  %vm4102_vm13 = vcmp.le.f32.partialorder %v13109_v56, 16.0  ;;  %v13199_v3 = vadd.s32 144, %v12755_v7  ;;  %vm4021_vm15 = vcmp.ge.f32.partialorder %v13167_v35, 1.0 }
 0x3ef   : > { %10175 = vmatprep.mubr.f32.mxu0 %v5269_v58  ;;  %v5984_v18 = vld [vmem:[#allocation8 + $0x2e0] sm:$0xff]  ;;  %v3566_v47 = vmax.f32 %v3525_v33, 0.0  ;;  %v3478_v28 = vadd.f32 %v3310_v30, %v12614_v62  ;;  %10316 = vmatprep.subr.mxu0 %v5985_v2  ;;  %v3737_v33 = vmul.f32 0.055555556, %v3696_v55  ;;  %v13213_v41 = vsub.f32 %v3653_v36, %v3817_v16  ;;  %vm13219_vm0 = vmand %vm3898_vm10, %vm3939_vm11  ;;  %v4381_v36 = vld [vmem:[#allocation8 + $0x38] sm:$0xff] }
 0x3f0   : > { %v9788_v17 = vpop.f32.mrf.mxu0  ;;  %9979 = vmatpush3.msra.mxu1 %v4384_v60  ;;  %10317 = vmatpush3.msra.mxu0 %v5985_v2  ;;  %v3658_v2 = vcvt.s32.f32 %v13154_v51  ;;  %v3818_v62 = vmul.f32 18.0, %v13178_v23  ;;  %v3698_v43 = vadd.f32 0.5, %v3657_v0  ;;  %vm3899_vm1 = vcmp.ge.f32.partialorder %v13121_v20, 1.0  ;;  %vm13237_vm3 = vmand %vm13206_vm14, %vm4102_vm13  ;;  %v5981_v55 = vld [vmem:[#allocation8 + $0x2c8] sm:$0xff] }
 0x3f1   : > { %v4264_v15 = vsel %vm13147_vm5, %v3566_v47, 0.0  ;;  %v3526_v45 = vadd.f32 %v12822_v34, %v3478_v28  ;;  %v4395_v58 = vld [vmem:[#allocation2 + $0x29] sm:$0xff]  ;;  %9980 = vmatprep.subr.mxu1 %v4383_v25  ;;  %10318 = vmatprep.subr.mxu0 %v5984_v18  ;;  %vm3940_vm2 = vcmp.le.f32.partialorder %v13121_v20, 16.0  ;;  %vm4103_vm4 = vcmp.le.f32.partialorder %v13167_v35, 16.0  ;;  %vm13250_vm5 = vmand %vm13219_vm0, %vm4021_vm15 }
 0x3f2   : > { %v5270_v30 = vld [vmem:[#allocation2 + $0x2a] sm:$0xff]  ;;  %4305 = vst [vmem:[#allocation2 + $0x40] sm:$0xff] %v4264_v15  ;;  %v3315_v60 = vpop.f32.mrf.mxu0  ;;  %9921 = vmatmul.mubr.f32.gmra.mxu1 %v4395_v58  ;;  %10319 = vmatpush3.msra.mxu0 %v5984_v18  ;;  %v13224_v15 = vfloor.f32 %v3737_v33  ;;  %vm4022_vm6 = vcmp.ge.f32.partialorder %v13213_v41, 1.0  ;;  %vm13262_vm7 = vmand %vm3899_vm1, %vm3940_vm2  ;;  %vm3900_vm8 = vcmp.ge.f32.partialorder %v13178_v23, 1.0  ;;  %vm3941_vm9 = vcmp.le.f32.partialorder %v13178_v23, 16.0 }
 0x3f3   : > { %10176 = vmatmul.mubr.f32.gmra.mxu0 %v5270_v30  ;;  %v3567_v47 = vmax.f32 %v3526_v45, 0.0  ;;  %v3479_v28 = vadd.f32 %v3315_v60, %v12620_v44  ;;  %9981 = vmatpush3.msra.mxu1 %v4383_v25  ;;  %v3738_v45 = vmul.f32 0.055555556, %v3697_v49  ;;  %v5982_v25 = vld [vmem:[#allocation8 + $0x2d0] sm:$0xff]  ;;  %v3699_v30 = vadd.f32 0.5, %v3658_v2  ;;  %vm13282_vm10 = vmand %vm13250_vm5, %vm4103_vm4 }
 0x3f4   : > { %v9791_v17 = vpop.f32.mrf.mxu0  ;;  %9982 = vmatprep.subr.mxu1 %v4382_v13  ;;  %10320 = vmatprep.subr.mxu0 %v5983_v12  ;;  %v3819_v44 = vmul.f32 18.0, %v13224_v15  ;;  %vm4104_vm11 = vcmp.le.f32.partialorder %v13213_v41, 16.0  ;;  %vm13306_vm13 = vmand %vm3900_vm8, %vm3941_vm9  ;;  %vm3901_vm15 = vcmp.ge.f32.partialorder %v13224_v15, 1.0  ;;  %vm3942_vm0 = vcmp.le.f32.partialorder %v13224_v15, 16.0  ;;  %v5976_v41 = vld [vmem:[#allocation8 + $0x2a0] sm:$0xff] }
 0x3f5   : > { %v4265_v18 = vsel %vm13192_vm12, %v3567_v47, 0.0  ;;  %v3527_v29 = vadd.f32 %v12822_v34, %v3479_v28  ;;  %v4396_v16 = vld [vmem:[#allocation2 + $0x31] sm:$0xff]  ;;  %9983 = vmatpush3.msra.mxu1 %v4382_v13  ;;  %10321 = vmatpush3.msra.mxu0 %v5983_v12  ;;  %v3659_v13 = vcvt.s32.f32 %v13199_v3  ;;  %v13256_v28 = vadd.s32 152, %v12755_v7  ;;  %vm13294_vm12 = vmand %vm13262_vm7, %vm4022_vm6 }
 0x3f6   : > { %v5271_v58 = vld [vmem:[#allocation2 + $0x32] sm:$0xff]  ;;  %4306 = vst [vmem:[#allocation2 + $0x48] sm:$0xff] %v4265_v18  ;;  %v3320_v49 = vpop.f32.mrf.mxu0  ;;  %9923 = vmatprep.mubr.f32.mxu1 %v4396_v16  ;;  %9984 = vmatprep.subr.mxu1 %v4381_v36  ;;  %v13268_v17 = vsub.f32 %v3654_v1, %v3818_v62  ;;  %v13271_v18 = vfloor.f32 %v3738_v45  ;;  %v3740_v45 = vmul.f32 0.055555556, %v3699_v30  ;;  %vm13327_vm1 = vmand %vm13294_vm12, %vm4104_vm11  ;;  %v13361_v35 = vadd.s32 168, %v12755_v7 }
 0x3f7   : > { %10178 = vmatprep.mubr.f32.mxu0 %v5271_v58  ;;  %v4380_v12 = vld [vmem:[#allocation8 + $0x30] sm:$0xff]  ;;  %v3568_v60 = vmax.f32 %v3527_v29, 0.0  ;;  %v3480_v56 = vadd.f32 %v3320_v49, %v12626_v11  ;;  %10322 = vmatprep.subr.mxu0 %v5982_v25  ;;  %v3739_v29 = vmul.f32 0.055555556, %v3698_v43  ;;  %v4379_v16 = vld [vmem:[#allocation8 + $0x28] sm:$0xff]  ;;  %v3700_v43 = vadd.f32 0.5, %v3659_v13  ;;  %vm13350_vm4 = vmand %vm3901_vm15, %vm3942_vm0 }
 0x3f8   : > { %v9794_v37 = vpop.f32.mrf.mxu0  ;;  %9985 = vmatpush3.msra.mxu1 %v4381_v36  ;;  %10323 = vmatpush3.msra.mxu0 %v5982_v25  ;;  %v3660_v33 = vcvt.s32.f32 %v13256_v28  ;;  %vm4023_vm14 = vcmp.ge.f32.partialorder %v13268_v17, 1.0  ;;  %v3820_v47 = vmul.f32 18.0, %v13271_v18  ;;  %vm4105_vm2 = vcmp.le.f32.partialorder %v13268_v17, 16.0 }
 0x3f9   : > { %v4266_v58 = vsel %vm13237_vm3, %v3568_v60, 0.0  ;;  %v3528_v20 = vadd.f32 %v12822_v34, %v3480_v56  ;;  %v4397_v49 = vld [vmem:[#allocation2 + $0x39] sm:$0xff]  ;;  %9986 = vmatprep.subr.mxu1 %v4380_v12  ;;  %10324 = vmatprep.subr.mxu0 %v5981_v55  ;;  %v13300_v60 = vadd.s32 160, %v12755_v7  ;;  %v13313_v56 = vsub.f32 %v3655_v8, %v3819_v44  ;;  %vm13339_vm3 = vmand %vm13306_vm13, %vm4023_vm14 }
 0x3fa   : > { %v5272_v37 = vld [vmem:[#allocation2 + $0x3a] sm:$0xff]  ;;  %4307 = vst [vmem:[#allocation2 + $0x50] sm:$0xff] %v4266_v58  ;;  %v3325_v62 = vpop.f32.mrf.mxu0  ;;  %9924 = vmatmul.mubr.f32.gmra.mxu1 %v4397_v49  ;;  %10325 = vmatpush3.msra.mxu0 %v5981_v55  ;;  %v13316_v11 = vfloor.f32 %v3739_v29  ;;  %v13332_v44 = vfloor.f32 %v3740_v45  ;;  %v3741_v29 = vmul.f32 0.055555556, %v3700_v43  ;;  %vm3902_vm6 = vcmp.ge.f32.partialorder %v13271_v18, 1.0  ;;  %vm13372_vm8 = vmand %vm13339_vm3, %vm4105_vm2 }
 0x3fb   : > { %10179 = vmatmul.mubr.f32.gmra.mxu0 %v5272_v37  ;;  %v3569_v36 = vmax.f32 %v3528_v20, 0.0  ;;  %v3481_v25 = vadd.f32 %v3325_v62, %v12632_v52  ;;  %9987 = vmatpush3.msra.mxu1 %v4380_v12  ;;  %v4378_v12 = vld [vmem:[#allocation8 + $0x20] sm:$0xff]  ;;  %v5979_v55 = vld [vmem:[#allocation8 + $0x2b8] sm:$0xff]  ;;  %v3701_v62 = vadd.f32 0.5, %v3660_v33  ;;  %v3661_v45 = vcvt.s32.f32 %v13300_v60 }
 0x3fc   : > { %v9797_v30 = vpop.f32.mrf.mxu0  ;;  %9988 = vmatprep.subr.mxu1 %v4379_v16  ;;  %10326 = vmatprep.subr.mxu0 %v5980_v9  ;;  %v4377_v37 = vld [vmem:[#allocation8 + $0x18] sm:$0xff]  ;;  %vm4024_vm5 = vcmp.ge.f32.partialorder %v13313_v56, 1.0  ;;  %vm3943_vm7 = vcmp.le.f32.partialorder %v13271_v18, 16.0  ;;  %vm4106_vm9 = vcmp.le.f32.partialorder %v13313_v56, 16.0  ;;  %vm3903_vm13 = vcmp.ge.f32.partialorder %v13316_v11, 1.0 }
 0x3fd   : > { %v4267_v23 = vsel %vm13282_vm10, %v3569_v36, 0.0  ;;  %v3529_v58 = vadd.f32 %v12822_v34, %v3481_v25  ;;  %v4398_v20 = vld [vmem:[#allocation2 + $0x41] sm:$0xff]  ;;  %9989 = vmatpush3.msra.mxu1 %v4379_v16  ;;  %10327 = vmatpush3.msra.mxu0 %v5980_v9  ;;  %v5978_v16 = vld [vmem:[#allocation8 + $0x2b0] sm:$0xff]  ;;  %v13357_v36 = vsub.f32 %v3656_v40, %v3820_v47  ;;  %v3821_v25 = vmul.f32 18.0, %v13316_v11  ;;  %vm13385_vm10 = vmand %vm13350_vm4, %vm4024_vm5 }
 0x3fe   : > { %v5273_v49 = vld [vmem:[#allocation2 + $0x42] sm:$0xff]  ;;  %4308 = vst [vmem:[#allocation2 + $0x58] sm:$0xff] %v4267_v23  ;;  %v3330_v8 = vpop.f32.mrf.mxu0  ;;  %9926 = vmatprep.mubr.f32.mxu1 %v4398_v20  ;;  %9990 = vmatprep.subr.mxu1 %v4378_v12  ;;  %v4376_v30 = vld [vmem:[#allocation8 + $0x10] sm:$0xff]  ;;  %v3742_v42 = vmul.f32 0.055555556, %v3701_v62  ;;  %vm13395_vm11 = vmand %vm3902_vm6, %vm3943_vm7  ;;  %vm3944_vm14 = vcmp.le.f32.partialorder %v13316_v11, 16.0 }
 0x3ff   : > { %10181 = vmatprep.mubr.f32.mxu0 %v5273_v49  ;;  %v3570_v9 = vmax.f32 %v3529_v58, 0.0  ;;  %v3482_v1 = vadd.f32 %v3330_v8, %v12638_v5  ;;  %10328 = vmatprep.subr.mxu0 %v5979_v55  ;;  %v3702_v8 = vadd.f32 0.5, %v3661_v45  ;;  %vm4025_vm12 = vcmp.ge.f32.partialorder %v13357_v36, 1.0  ;;  %vm13417_vm15 = vmand %vm13385_vm10, %vm4106_vm9 }
 0x400   : > { %v9800_v43 = vpop.f32.mrf.mxu0  ;;  %9991 = vmatpush3.msra.mxu1 %v4378_v12  ;;  %10329 = vmatpush3.msra.mxu0 %v5979_v55  ;;  %v3822_v12 = vmul.f32 18.0, %v13332_v44  ;;  %v13378_v55 = vfloor.f32 %v3741_v29  ;;  %v13402_v29 = vsub.f32 %v3657_v0, %v3821_v25  ;;  %vm4107_vm0 = vcmp.le.f32.partialorder %v13357_v36, 16.0  ;;  %vm13442_vm2 = vmand %vm3903_vm13, %vm3944_vm14 }
 0x401   : > { %v4268_v15 = vsel %vm13327_vm1, %v3570_v9, 0.0  ;;  %v3530_v52 = vadd.f32 %v12822_v34, %v3482_v1  ;;  %v4399_v23 = vld [vmem:[#allocation2 + $0x49] sm:$0xff]  ;;  %9992 = vmatprep.subr.mxu1 %v4377_v37  ;;  %10330 = vmatprep.subr.mxu0 %v5978_v16  ;;  %v3662_v1 = vcvt.s32.f32 %v13361_v35  ;;  %vm13432_vm1 = vmand %vm13395_vm11, %vm4025_vm12  ;;  %v3743_v51 = vmul.f32 0.055555556, %v3702_v8  ;;  %v4985_v8 = vld [vmem:[#allocation8 + $0x178] sm:$0xff] }
 0x402   : > { %v5274_v58 = vld [vmem:[#allocation2 + $0x4a] sm:$0xff]  ;;  %4309 = vst [vmem:[#allocation2 + $0x60] sm:$0xff] %v4268_v15  ;;  %v3335_v47 = vpop.f32.mrf.mxu0  ;;  %9927 = vmatmul.mubr.f32.gmra.mxu1 %v4399_v23  ;;  %10331 = vmatpush3.msra.mxu0 %v5978_v16  ;;  %v13424_v25 = vsub.f32 %v3658_v2, %v3822_v12  ;;  %vm4026_vm3 = vcmp.ge.f32.partialorder %v13402_v29, 1.0  ;;  %v13451_v12 = vadd.s32 184, %v12755_v7  ;;  %vm3904_vm4 = vcmp.ge.f32.partialorder %v13332_v44, 1.0  ;;  %vm13462_vm6 = vmand %vm13432_vm1, %vm4107_vm0 }
 0x403   : > { %10182 = vmatmul.mubr.f32.gmra.mxu0 %v5274_v58  ;;  %v3571_v20 = vmax.f32 %v3530_v52, 0.0  ;;  %v3483_v49 = vadd.f32 %v3335_v47, %v12644_v4  ;;  %9993 = vmatpush3.msra.mxu1 %v4377_v37  ;;  %v13406_v37 = vadd.s32 176, %v12755_v7  ;;  %v4375_v16 = vld [vmem:[#allocation8 + $0x8] sm:$0xff]  ;;  %v4374_v15 = vld [vmem:[#allocation8] sm:$0xff]  ;;  %v5975_v52 = vld [vmem:[#allocation8 + $0x298] sm:$0xff]  ;;  %v3703_v40 = vadd.f32 0.5, %v3662_v1 }
 0x404   : > { %v9803_v9 = vpop.f32.mrf.mxu0  ;;  %9994 = vmatprep.subr.mxu1 %v4376_v30  ;;  %10332 = vmatprep.subr.mxu0 %v5977_v19  ;;  %vm3945_vm5 = vcmp.le.f32.partialorder %v13332_v44, 16.0  ;;  %vm4108_vm7 = vcmp.le.f32.partialorder %v13402_v29, 16.0  ;;  %vm13477_vm9 = vmand %vm13442_vm2, %vm4026_vm3  ;;  %v3664_v6 = vcvt.s32.f32 %v13451_v12  ;;  %vm3905_vm11 = vcmp.ge.f32.partialorder %v13378_v55, 1.0 }
 0x405   : > { %v4269_v18 = vsel %vm13372_vm8, %v3571_v20, 0.0  ;;  %v3531_v62 = vadd.f32 %v12822_v34, %v3483_v49  ;;  %v4400_v43 = vld [vmem:[#allocation2 + $0x51] sm:$0xff]  ;;  %9995 = vmatpush3.msra.mxu1 %v4376_v30  ;;  %10333 = vmatpush3.msra.mxu0 %v5977_v19  ;;  %v3823_v30 = vmul.f32 18.0, %v13378_v55  ;;  %v13436_v19 = vfloor.f32 %v3742_v42  ;;  %vm13488_vm10 = vmand %vm3904_vm4, %vm3945_vm5 }
 0x406   : > { %v5275_v5 = vld [vmem:[#allocation2 + $0x52] sm:$0xff]  ;;  %4310 = vst [vmem:[#allocation2 + $0x68] sm:$0xff] %v4269_v18  ;;  %v3340_v0 = vpop.f32.mrf.mxu0  ;;  %9929 = vmatprep.mubr.f32.mxu1 %v4400_v43  ;;  %9996 = vmatprep.subr.mxu1 %v4375_v16  ;;  %v3663_v47 = vcvt.s32.f32 %v13406_v37  ;;  %vm4027_vm8 = vcmp.ge.f32.partialorder %v13424_v25, 1.0  ;;  %v13482_v43 = vfloor.f32 %v3743_v51  ;;  %vm3946_vm12 = vcmp.le.f32.partialorder %v13378_v55, 16.0  ;;  %vm13507_vm13 = vmand %vm13477_vm9, %vm4108_vm7  ;;  %v5972_v51 = vld [vmem:[#allocation8 + $0x280] sm:$0xff] }
 0x407   : > { %10184 = vmatprep.mubr.f32.mxu0 %v5275_v5  ;;  %v3572_v56 = vmax.f32 %v3531_v62, 0.0  ;;  %v3484_v23 = vadd.f32 %v3340_v0, %v12650_v57  ;;  %10334 = vmatprep.subr.mxu0 %v5976_v41  ;;  %v5974_v20 = vld [vmem:[#allocation8 + $0x290] sm:$0xff]  ;;  %v3824_v62 = vmul.f32 18.0, %v13436_v19  ;;  %v13496_v0 = vadd.s32 192, %v12755_v7  ;;  %vm13521_vm0 = vmand %vm13488_vm10, %vm4027_vm8  ;;  %v13548_v55 = vld [vmem:[%s15432_s2] ss:$0 sm:$0xff] }
 0x408   : > { %v9806_v2 = vpop.f32.mrf.mxu0  ;;  %9997 = vmatpush3.msra.mxu1 %v4375_v16  ;;  %10335 = vmatpush3.msra.mxu0 %v5976_v41  ;;  %v13470_v16 = vsub.f32 %v3659_v13, %v3823_v30  ;;  %v3744_v13 = vmul.f32 0.055555556, %v3703_v40  ;;  %v3704_v5 = vadd.f32 0.5, %v3663_v47  ;;  %v5973_v30 = vld [vmem:[#allocation8 + $0x288] sm:$0xff]  ;;  %vm4109_vm14 = vcmp.le.f32.partialorder %v13424_v25, 16.0  ;;  %vm13534_vm1 = vmand %vm3905_vm11, %vm3946_vm12 }
 0x409   : > { %v4270_v11 = vsel %vm13417_vm15, %v3572_v56, 0.0  ;;  %v3532_v49 = vadd.f32 %v12822_v34, %v3484_v23  ;;  %v4401_v17 = vld [vmem:[#allocation2 + $0x59] sm:$0xff]  ;;  %9998 = vmatprep.subr.mxu1 %v4374_v15  ;;  %10336 = vmatprep.subr.mxu0 %v5975_v52  ;;  %v13527_v40 = vsub.f32 %v3660_v33, %v3824_v62  ;;  %v3705_v28 = vadd.f32 0.5, %v3664_v6  ;;  %vm13557_vm4 = vmand %vm13521_vm0, %vm4109_vm14 }
 0x40a   : > { %v5276_v42 = vld [vmem:[#allocation2 + $0x5a] sm:$0xff]  ;;  %4311 = vst [vmem:[#allocation2 + $0x70] sm:$0xff] %v4270_v11  ;;  %v3345_v4 = vpop.f32.mrf.mxu0  ;;  %9930 = vmatmul.mubr.f32.gmra.mxu1 %v4401_v17  ;;  %10337 = vmatpush3.msra.mxu0 %v5975_v52  ;;  %vm4028_vm15 = vcmp.ge.f32.partialorder %v13470_v16, 1.0  ;;  %v3745_v17 = vmul.f32 0.055555556, %v3704_v5  ;;  %v3665_v33 = vcvt.s32.f32 %v13496_v0  ;;  %vm3906_vm2 = vcmp.ge.f32.partialorder %v13436_v19, 1.0 }
 0x40b   : > { %10185 = vmatmul.mubr.f32.gmra.mxu0 %v5276_v42  ;;  %v3573_v41 = vmax.f32 %v3532_v49, 0.0  ;;  %v3485_v36 = vadd.f32 %v3345_v4, %v12656_v63  ;;  %9999 = vmatpush3.msra.mxu1 %v4374_v15  ;;  %v13538_v49 = vfloor.f32 %v3744_v13  ;;  %vm3947_vm3 = vcmp.le.f32.partialorder %v13436_v19, 16.0 }
 0x40c   : > { %v9809_v3 = vpop.f32.mrf.mxu0  ;;  %10054 = vmatprep.subr.mxu1 %v4985_v8  ;;  %10338 = vmatprep.subr.mxu0 %v5974_v20  ;;  %vm4110_vm5 = vcmp.le.f32.partialorder %v13470_v16, 16.0  ;;  %v13564_v62 = vadd.s32 208, %v12755_v7  ;;  %vm4029_vm7 = vcmp.ge.f32.partialorder %v13527_v40, 1.0  ;;  %vm13584_vm8 = vmand %vm3906_vm2, %vm3947_vm3  ;;  %v3706_v60 = vadd.f32 0.5, %v3665_v33 }
 0x40d   : > { %v4271_v15 = vsel %vm13462_vm6, %v3573_v41, 0.0  ;;  %v3533_v44 = vadd.f32 %v12822_v34, %v3485_v36  ;;  %v4402_v52 = vld [vmem:[#allocation2 + $0x61] sm:$0xff]  ;;  %10339 = vmatpush3.msra.mxu0 %v5974_v20  ;;  %v13514_v34 = vadd.s32 200, %v12755_v7  ;;  %v3825_v20 = vmul.f32 18.0, %v13482_v43  ;;  %vm13571_vm6 = vmand %vm13534_vm1, %vm4028_vm15 }
 0x40e   : > { %v5277_v56 = vld [vmem:[#allocation2 + $0x62] sm:$0xff]  ;;  %4312 = vst [vmem:[#allocation2 + $0x78] sm:$0xff] %v4271_v15  ;;  %v3350_v58 = vpop.f32.mrf.mxu0  ;;  %9932 = vmatprep.mubr.f32.mxu1 %v4402_v52  ;;  %10340 = vmatprep.subr.mxu0 %v5973_v30  ;;  %v13589_v15 = vfloor.f32 %v3745_v17  ;;  %vm3907_vm9 = vcmp.ge.f32.partialorder %v13482_v43, 1.0  ;;  %vm3948_vm10 = vcmp.le.f32.partialorder %v13482_v43, 16.0  ;;  %vm13602_vm11 = vmand %vm13571_vm6, %vm4110_vm5  ;;  %vm4111_vm12 = vcmp.le.f32.partialorder %v13527_v40, 16.0 }
 0x40f   : > { %10187 = vmatprep.mubr.f32.mxu0 %v5277_v56  ;;  %v3574_v2 = vmax.f32 %v3533_v44, 0.0  ;;  %v3486_v29 = vadd.f32 %v3350_v58, %v12662_v46  ;;  %10341 = vmatpush3.msra.mxu0 %v5973_v30  ;;  %v3666_v18 = vcvt.s32.f32 %v13514_v34  ;;  %v13578_v13 = vsub.f32 %v3661_v45, %v3825_v20  ;;  %vm13627_vm15 = vmand %vm3907_vm9, %vm3948_vm10 }
 0x410   : > { %v9812_v11 = vpop.f32.mrf.mxu0  ;;  %10342 = vmatprep.subr.mxu0 %v5972_v51  ;;  %v3826_v30 = vmul.f32 18.0, %v13538_v49  ;;  %v3746_v44 = vmul.f32 0.055555556, %v3705_v28  ;;  %v13621_v20 = vadd.s32 216, %v12755_v7  ;;  %v3827_v17 = vmul.f32 18.0, %v13589_v15 }
 0x411   : > { %v4272_v42 = vsel %vm13507_vm13, %v3574_v2, 0.0  ;;  %v3534_v8 = vadd.f32 %v13548_v55, %v3486_v29  ;;  %v4403_v9 = vld [vmem:[#allocation2 + $0x69] sm:$0xff]  ;;  %10343 = vmatpush3.msra.mxu0 %v5972_v51  ;;  %v3707_v51 = vadd.f32 0.5, %v3666_v18  ;;  %v3667_v2 = vcvt.s32.f32 %v13564_v62  ;;  %vm13615_vm13 = vmand %vm13584_vm8, %vm4029_vm7 }
 0x412   : > { %v5278_v4 = vld [vmem:[#allocation2 + $0x6a] sm:$0xff]  ;;  %4313 = vst [vmem:[#allocation2 + $0x80] sm:$0xff] %v4272_v42  ;;  %v3355_v36 = vpop.f32.mrf.mxu0  ;;  %9933 = vmatmul.mubr.f32.gmra.mxu1 %v4403_v9  ;;  %vm4030_vm14 = vcmp.ge.f32.partialorder %v13578_v13, 1.0  ;;  %v13633_v46 = vsub.f32 %v3662_v1, %v3826_v30  ;;  %v13636_v28 = vfloor.f32 %v3746_v44  ;;  %v3747_v42 = vmul.f32 0.055555556, %v3706_v60  ;;  %vm13647_vm2 = vmand %vm13615_vm13, %vm4111_vm12 }
 0x413   : > { %10188 = vmatmul.mubr.f32.gmra.mxu0 %v5278_v4  ;;  %v3575_v3 = vmax.f32 %v3534_v8, 0.0  ;;  %v3487_v63 = vadd.f32 %v3355_v36, %v12668_v21  ;;  %vm3908_vm0 = vcmp.ge.f32.partialorder %v13538_v49, 1.0  ;;  %vm3949_vm1 = vcmp.le.f32.partialorder %v13538_v49, 16.0 }
 0x414   : > { %v9815_v5 = vpop.f32.mrf.mxu0  ;;  %vm4112_vm3 = vcmp.le.f32.partialorder %v13578_v13, 16.0  ;;  %v3748_v41 = vmul.f32 0.055555556, %v3707_v51  ;;  %v3708_v36 = vadd.f32 0.5, %v3667_v2  ;;  %v3668_v25 = vcvt.s32.f32 %v13621_v20  ;;  %vm13671_vm5 = vmand %vm3908_vm0, %vm3949_vm1 }
 0x415   : > { %v4273_v45 = vsel %vm13557_vm4, %v3575_v3, 0.0  ;;  %v3535_v52 = vadd.f32 %v13548_v55, %v3487_v63  ;;  %v4404_v56 = vld [vmem:[#allocation2 + $0x71] sm:$0xff]  ;;  %vm13659_vm4 = vmand %vm13627_vm15, %vm4030_vm14  ;;  %v13665_v5 = vadd.s32 224, %v12755_v7  ;;  %vm4031_vm6 = vcmp.ge.f32.partialorder %v13633_v46, 1.0 }
 0x416   : > { %v5279_v23 = vld [vmem:[#allocation2 + $0x72] sm:$0xff]  ;;  %4314 = vst [vmem:[#allocation2 + $0x88] sm:$0xff] %v4273_v45  ;;  %v3360_v58 = vpop.f32.mrf.mxu0  ;;  %9935 = vmatprep.mubr.f32.mxu1 %v4404_v56  ;;  %v3868_v30 = vsub.f32 %v3663_v47, %v3827_v17  ;;  %v3828_v44 = vmul.f32 18.0, %v13636_v28  ;;  %v13679_v60 = vfloor.f32 %v3747_v42  ;;  %vm3909_vm7 = vcmp.ge.f32.partialorder %v13589_v15, 1.0  ;;  %vm13690_vm9 = vmand %vm13659_vm4, %vm4112_vm3 }
 0x417   : > { %10190 = vmatprep.mubr.f32.mxu0 %v5279_v23  ;;  %v3576_v29 = vmax.f32 %v3535_v52, 0.0  ;;  %v3488_v57 = vadd.f32 %v3360_v58, %v12674_v39  ;;  %vm3950_vm8 = vcmp.le.f32.partialorder %v13589_v15, 16.0  ;;  %vm4113_vm10 = vcmp.le.f32.partialorder %v13633_v46, 16.0  ;;  %v13697_v58 = vld [vmem:[#allocation8 + $0x3f8] sm:$0xff] }
 0x418   : > { %v9818_v11 = vpop.f32.mrf.mxu0  ;;  %v13695_v23 = vfloor.f32 %v3748_v41  ;;  %v3749_v19 = vmul.f32 0.055555556, %v3708_v36  ;;  %v3669_v16 = vcvt.s32.f32 %v13665_v5  ;;  %10484 = vmatprep.subr.mxu0 %v13697_v58  ;;  %vm13716_vm12 = vmand %vm3909_vm7, %vm3950_vm8  ;;  %vm4032_vm13 = vcmp.ge.f32.partialorder %v3868_v30, 1.0 }
 0x419   : > { %v4274_v8 = vsel %vm13602_vm11, %v3576_v29, 0.0  ;;  %v3536_v9 = vadd.f32 %v13548_v55, %v3488_v57  ;;  %v4405_v4 = vld [vmem:[#allocation2 + $0x79] sm:$0xff]  ;;  %vm13704_vm11 = vmand %vm13671_vm5, %vm4031_vm6  ;;  %v3709_v57 = vadd.f32 0.5, %v3668_v25  ;;  %v3869_v39 = vsub.f32 %v3664_v6, %v3828_v44 }
 0x41a   : > { %v5280_v43 = vld [vmem:[#allocation2 + $0x7a] sm:$0xff]  ;;  %4315 = vst [vmem:[#allocation2 + $0x90] sm:$0xff] %v4274_v8  ;;  %v3365_v1 = vpop.f32.mrf.mxu0  ;;  %9936 = vmatmul.mubr.f32.gmra.mxu1 %v4405_v4  ;;  %v3829_v17 = vmul.f32 18.0, %v13679_v60  ;;  %v13724_v42 = vadd.s32 232, %v12755_v7  ;;  %vm3910_vm14 = vcmp.ge.f32.partialorder %v13636_v28, 1.0  ;;  %vm3951_vm15 = vcmp.le.f32.partialorder %v13636_v28, 16.0  ;;  %vm13735_vm0 = vmand %vm13704_vm11, %vm4113_vm10 }
 0x41b   : > { %10191 = vmatmul.mubr.f32.gmra.mxu0 %v5280_v43  ;;  %v3577_v3 = vmax.f32 %v3536_v9, 0.0  ;;  %v3489_v63 = vadd.f32 %v3365_v1, %v12680_v54  ;;  %vm4114_vm1 = vcmp.le.f32.partialorder %v3868_v30, 16.0  ;;  %v3830_v43 = vmul.f32 18.0, %v13695_v23  ;;  %vm13756_vm3 = vmand %vm3910_vm14, %vm3951_vm15 }
 0x41c   : > { %v9821_v21 = vpop.f32.mrf.mxu0  ;;  %v13740_v35 = vfloor.f32 %v3749_v19  ;;  %v3750_v36 = vmul.f32 0.055555556, %v3709_v57  ;;  %vm4033_vm4 = vcmp.ge.f32.partialorder %v3869_v39, 1.0  ;;  %v13764_v54 = vadd.s32 240, %v12755_v7 }
 0x41d   : > { %v4275_v45 = vsel %vm13647_vm2, %v3577_v3, 0.0  ;;  %v3537_v52 = vadd.f32 %v13548_v55, %v3489_v63  ;;  %v4406_v56 = vld [vmem:[#allocation2 + $0x81] sm:$0xff]  ;;  %vm13746_vm2 = vmand %vm13716_vm12, %vm4032_vm13  ;;  %v3710_v3 = vadd.f32 0.5, %v3669_v16  ;;  %v3670_v21 = vcvt.s32.f32 %v13724_v42 }
 0x41e   : > { %v5281_v49 = vld [vmem:[#allocation2 + $0x82] sm:$0xff]  ;;  %4316 = vst [vmem:[#allocation2 + $0x98] sm:$0xff] %v4275_v45  ;;  %v3370_v47 = vpop.f32.mrf.mxu0  ;;  %9938 = vmatprep.mubr.f32.mxu1 %v4406_v56  ;;  %vm3911_vm5 = vcmp.ge.f32.partialorder %v13679_v60, 1.0  ;;  %vm3952_vm6 = vcmp.le.f32.partialorder %v13679_v60, 16.0  ;;  %vm13774_vm7 = vmand %vm13746_vm2, %vm4114_vm1  ;;  %vm4115_vm8 = vcmp.le.f32.partialorder %v3869_v39, 16.0  ;;  %v13780_v56 = vsub.f32 %v3666_v18, %v3830_v43 }
 0x41f   : > { %10193 = vmatprep.mubr.f32.mxu0 %v5281_v49  ;;  %v3578_v51 = vmax.f32 %v3537_v52, 0.0  ;;  %v3490_v29 = vadd.f32 %v3370_v47, %v12686_v53  ;;  %v3831_v49 = vmul.f32 18.0, %v13740_v35  ;;  %v13791_v19 = vfloor.f32 %v3750_v36  ;;  %vm13797_vm10 = vmand %vm3911_vm5, %vm3952_vm6 }
 0x420   : > { %v9824_v11 = vpop.f32.mrf.mxu0  ;;  %v3671_v18 = vcvt.s32.f32 %v13764_v54  ;;  %v13805_v13 = vadd.s32 248, %v12755_v7  ;;  %vm3912_vm12 = vcmp.ge.f32.partialorder %v13695_v23, 1.0  ;;  %vm3953_vm13 = vcmp.le.f32.partialorder %v13695_v23, 16.0 }
 0x421   : > { %v4276_v8 = vsel %vm13690_vm9, %v3578_v51, 0.0  ;;  %v3538_v9 = vadd.f32 %v13548_v55, %v3490_v29  ;;  %v4407_v4 = vld [vmem:[#allocation2 + $0x89] sm:$0xff]  ;;  %vm13787_vm9 = vmand %vm13756_vm3, %vm4033_vm4  ;;  %v3751_v51 = vmul.f32 0.055555556, %v3710_v3  ;;  %v3832_v12 = vmul.f32 18.0, %v13791_v19 }
 0x422   : > { %v5282_v15 = vld [vmem:[#allocation2 + $0x8a] sm:$0xff]  ;;  %4317 = vst [vmem:[#allocation2 + $0xa0] sm:$0xff] %v4276_v8  ;;  %v3375_v6 = vpop.f32.mrf.mxu0  ;;  %9939 = vmatmul.mubr.f32.gmra.mxu1 %v4407_v4  ;;  %vm13815_vm14 = vmand %vm13787_vm9, %vm4115_vm8  ;;  %vm3913_vm3 = vcmp.ge.f32.partialorder %v13740_v35, 1.0  ;;  %vm3954_vm4 = vcmp.le.f32.partialorder %v13740_v35, 16.0  ;;  %vm4117_vm6 = vcmp.le.f32.partialorder %v13780_v56, 16.0  ;;  %v14100_v42 = vadd.s32 304, %v12755_v7 }
 0x423   : > { %10194 = vmatmul.mubr.f32.gmra.mxu0 %v5282_v15  ;;  %v3579_v1 = vmax.f32 %v3538_v9, 0.0  ;;  %v3491_v41 = vadd.f32 %v3375_v6, %v12692_v22  ;;  %v3870_v22 = vsub.f32 %v3665_v33, %v3829_v17  ;;  %v13822_v9 = vsub.f32 %v3667_v2, %v3831_v49  ;;  %vm13839_vm2 = vmand %vm3912_vm12, %vm3953_vm13 }
 0x424   : > { %v9827_v63 = vpop.f32.mrf.mxu0  ;;  %v13833_v6 = vfloor.f32 %v3751_v51  ;;  %v3712_v2 = vadd.f32 0.5, %v3671_v18  ;;  %vm13884_vm9 = vmand %vm3913_vm3, %vm3954_vm4 }
 0x425   : > { %v4277_v44 = vsel %vm13735_vm0, %v3579_v1, 0.0  ;;  %v3539_v45 = vadd.f32 %v13548_v55, %v3491_v41  ;;  %v4408_v52 = vld [vmem:[#allocation2 + $0x91] sm:$0xff]  ;;  %vm4034_vm11 = vcmp.ge.f32.partialorder %v3870_v22, 1.0  ;;  %vm4116_vm15 = vcmp.le.f32.partialorder %v3870_v22, 16.0 }
 0x426   : > { %v5283_v28 = vld [vmem:[#allocation2 + $0x92] sm:$0xff]  ;;  %4318 = vst [vmem:[#allocation2 + $0xa8] sm:$0xff] %v4277_v44  ;;  %v3380_v33 = vpop.f32.mrf.mxu0  ;;  %9941 = vmatprep.mubr.f32.mxu1 %v4408_v52  ;;  %vm4035_vm0 = vcmp.ge.f32.partialorder %v13780_v56, 1.0  ;;  %vm13828_vm1 = vmand %vm13797_vm10, %vm4034_vm11  ;;  %v3672_v1 = vcvt.s32.f32 %v13805_v13  ;;  %v13847_v41 = vadd.s32 256, %v12755_v7  ;;  %v13864_v44 = vadd.s32 264, %v12755_v7 }
 0x427   : > { %10196 = vmatprep.mubr.f32.mxu0 %v5283_v28  ;;  %v3580_v37 = vmax.f32 %v3539_v45, 0.0  ;;  %v3492_v47 = vadd.f32 %v3380_v33, %v12698_v48  ;;  %v3711_v48 = vadd.f32 0.5, %v3670_v21  ;;  %vm13857_vm5 = vmand %vm13828_vm1, %vm4116_vm15  ;;  %v13877_v28 = vsub.f32 %v3668_v25, %v3832_v12 }
 0x428   : > { %v9830_v29 = vpop.f32.mrf.mxu0  ;;  %vm13871_vm8 = vmand %vm13839_vm2, %vm4035_vm0  ;;  %v3833_v0 = vmul.f32 18.0, %v13833_v6  ;;  %v3673_v20 = vcvt.s32.f32 %v13847_v41  ;;  %vm3914_vm10 = vcmp.ge.f32.partialorder %v13791_v19, 1.0  ;;  %vm3955_vm11 = vcmp.le.f32.partialorder %v13791_v19, 16.0 }
 0x429   : > { %v4278_v57 = vsel %vm13774_vm7, %v3580_v37, 0.0  ;;  %v3540_v11 = vadd.f32 %v13548_v55, %v3492_v47  ;;  %v4409_v53 = vld [vmem:[#allocation2 + $0x99] sm:$0xff]  ;;  %vm4036_vm7 = vcmp.ge.f32.partialorder %v13822_v9, 1.0  ;;  %v3753_v37 = vmul.f32 0.055555556, %v3712_v2  ;;  %vm13902_vm12 = vmand %vm13871_vm8, %vm4117_vm6 }
 0x42a   : > { %v5284_v60 = vld [vmem:[#allocation2 + $0x9a] sm:$0xff]  ;;  %4319 = vst [vmem:[#allocation2 + $0xb0] sm:$0xff] %v4278_v57  ;;  %v3385_v8 = vpop.f32.mrf.mxu0  ;;  %9942 = vmatmul.mubr.f32.gmra.mxu1 %v4409_v53  ;;  %v3713_v47 = vadd.f32 0.5, %v3672_v1  ;;  %vm4118_vm13 = vcmp.le.f32.partialorder %v13822_v9, 16.0  ;;  %v13909_v57 = vadd.s32 272, %v12755_v7  ;;  %vm4037_vm15 = vcmp.ge.f32.partialorder %v13877_v28, 1.0  ;;  %vm13929_vm0 = vmand %vm3914_vm10, %vm3955_vm11 }
 0x42b   : > { %10197 = vmatmul.mubr.f32.gmra.mxu0 %v5284_v60  ;;  %v3581_v4 = vmax.f32 %v3540_v11, 0.0  ;;  %v3493_v15 = vadd.f32 %v3385_v8, %v12704_v14  ;;  %v3752_v14 = vmul.f32 0.055555556, %v3711_v48  ;;  %v3674_v48 = vcvt.s32.f32 %v13864_v44 }
 0x42c   : > { %v9833_v43 = vpop.f32.mrf.mxu0  ;;  %v13923_v60 = vsub.f32 %v3669_v16, %v3833_v0  ;;  %v3714_v39 = vadd.f32 0.5, %v3673_v20  ;;  %vm3915_vm1 = vcmp.ge.f32.partialorder %v13833_v6, 1.0  ;;  %vm3956_vm2 = vcmp.le.f32.partialorder %v13833_v6, 16.0 }
 0x42d   : > { %v4279_v46 = vsel %vm13815_vm14, %v3581_v4, 0.0  ;;  %v3541_v36 = vadd.f32 %v13548_v55, %v3493_v15  ;;  %v4410_v3 = vld [vmem:[#allocation2 + $0xa1] sm:$0xff]  ;;  %v13888_v49 = vfloor.f32 %v3752_v14  ;;  %vm13916_vm14 = vmand %vm13884_vm9, %vm4036_vm7  ;;  %v13934_v4 = vfloor.f32 %v3753_v37 }
 0x42e   : > { %v5285_v23 = vld [vmem:[#allocation2 + $0xa2] sm:$0xff]  ;;  %4320 = vst [vmem:[#allocation2 + $0xb8] sm:$0xff] %v4279_v46  ;;  %v3390_v40 = vpop.f32.mrf.mxu0  ;;  %9944 = vmatprep.mubr.f32.mxu1 %v4410_v3  ;;  %v3754_v15 = vmul.f32 0.055555556, %v3713_v47  ;;  %vm13947_vm3 = vmand %vm13916_vm14, %vm4118_vm13  ;;  %vm4119_vm4 = vcmp.le.f32.partialorder %v13877_v28, 16.0  ;;  %v3715_v14 = vadd.f32 0.5, %v3674_v48  ;;  %v3675_v2 = vcvt.s32.f32 %v13909_v57 }
 0x42f   : > { %10199 = vmatprep.mubr.f32.mxu0 %v5285_v23  ;;  %v3582_v45 = vmax.f32 %v3541_v36, 0.0  ;;  %v3494_v52 = vadd.f32 %v3390_v40, %v12710_v26  ;;  %v3834_v8 = vmul.f32 18.0, %v13888_v49  ;;  %vm4038_vm6 = vcmp.ge.f32.partialorder %v13923_v60, 1.0  ;;  %vm13972_vm7 = vmand %vm3915_vm1, %vm3956_vm2  ;;  %v15682_v57 = vld [vmem:[#allocation15_spill] sm:$0xff] }
 0x430   : > { %v9836_v33 = vpop.f32.mrf.mxu0  ;;  %v13966_v3 = vadd.s32 280, %v12755_v7  ;;  %v3835_v40 = vmul.f32 18.0, %v13934_v4  ;;  %vm3916_vm8 = vcmp.ge.f32.partialorder %v13888_v49, 1.0  ;;  %vm3957_vm9 = vcmp.le.f32.partialorder %v13888_v49, 16.0 }
 0x431   : > { %v4280_v25 = vsel %vm13857_vm5, %v3582_v45, 0.0  ;;  %v3542_v30 = vadd.f32 %v13548_v55, %v3494_v52  ;;  %v4411_v51 = vld [vmem:[#allocation2 + $0xa9] sm:$0xff]  ;;  %vm13960_vm5 = vmand %vm13929_vm0, %vm4037_vm15  ;;  %v3875_v63 = vsub.f32 %v3670_v21, %v3834_v8  ;;  %v13979_v45 = vfloor.f32 %v3754_v15 }
 0x432   : > { %v5286_v29 = vld [vmem:[#allocation2 + $0xaa] sm:$0xff]  ;;  %4321 = vst [vmem:[#allocation2 + $0xc0] sm:$0xff] %v4280_v25  ;;  %v3395_v34 = vpop.f32.mrf.mxu0  ;;  %9945 = vmatmul.mubr.f32.gmra.mxu1 %v4411_v51  ;;  %v3755_v52 = vmul.f32 0.055555556, %v3714_v39  ;;  %vm13990_vm10 = vmand %vm13960_vm5, %vm4119_vm4  ;;  %vm4120_vm11 = vcmp.le.f32.partialorder %v13923_v60, 16.0  ;;  %v3716_v37 = vadd.f32 0.5, %v3675_v2  ;;  %v3876_v35 = vsub.f32 %v3671_v18, %v3835_v40 }
 0x433   : > { %10200 = vmatmul.mubr.f32.gmra.mxu0 %v5286_v29  ;;  %v3583_v11 = vmax.f32 %v3542_v30, 0.0  ;;  %v3495_v53 = vadd.f32 %v3395_v34, %v12716_v10  ;;  %v3756_v6 = vmul.f32 0.055555556, %v3715_v14  ;;  %v3676_v30 = vcvt.s32.f32 %v13966_v3  ;;  %vm14014_vm13 = vmand %vm3916_vm8, %vm3957_vm9 }
 0x434   : > { %v9839_v17 = vpop.f32.mrf.mxu0  ;;  %v14008_v51 = vadd.s32 288, %v12755_v7  ;;  %vm4039_vm14 = vcmp.ge.f32.partialorder %v3875_v63, 1.0  ;;  %v3836_v34 = vmul.f32 18.0, %v13979_v45  ;;  %vm3917_vm15 = vcmp.ge.f32.partialorder %v13934_v4, 1.0 }
 0x435   : > { %v4281_v5 = vsel %vm13902_vm12, %v3583_v11, 0.0  ;;  %v3543_v16 = vadd.f32 %v13548_v55, %v3495_v53  ;;  %v4412_v12 = vld [vmem:[#allocation2 + $0xb1] sm:$0xff]  ;;  %vm14002_vm12 = vmand %vm13972_vm7, %vm4038_vm6  ;;  %v14021_v11 = vfloor.f32 %v3755_v52  ;;  %vm3958_vm0 = vcmp.le.f32.partialorder %v13934_v4, 16.0 }
 0x436   : > { %v5287_v43 = vld [vmem:[#allocation2 + $0xb2] sm:$0xff]  ;;  %4322 = vst [vmem:[#allocation2 + $0xc8] sm:$0xff] %v4281_v5  ;;  %v3400_v62 = vpop.f32.mrf.mxu0  ;;  %9947 = vmatprep.mubr.f32.mxu1 %v4412_v12  ;;  %vm14032_vm1 = vmand %vm14002_vm12, %vm4120_vm11  ;;  %vm4121_vm2 = vcmp.le.f32.partialorder %v3875_v63, 16.0  ;;  %v14036_v49 = vfloor.f32 %v3756_v6  ;;  %v3757_v8 = vmul.f32 0.055555556, %v3716_v37  ;;  %v3717_v5 = vadd.f32 0.5, %v3676_v30 }
 0x437   : > { %10202 = vmatprep.mubr.f32.mxu0 %v5287_v43  ;;  %v3584_v46 = vmax.f32 %v3543_v16, 0.0  ;;  %v3496_v36 = vadd.f32 %v3400_v62, %v12722_v24  ;;  %v3677_v16 = vcvt.s32.f32 %v14008_v51  ;;  %vm14053_vm4 = vmand %vm3917_vm15, %vm3958_vm0  ;;  %vm4040_vm5 = vcmp.ge.f32.partialorder %v3876_v35, 1.0 }
 0x438   : > { %v9842_v23 = vpop.f32.mrf.mxu0  ;;  %v3837_v19 = vmul.f32 18.0, %v14021_v11  ;;  %v14061_v62 = vadd.s32 296, %v12755_v7  ;;  %vm3918_vm6 = vcmp.ge.f32.partialorder %v13979_v45, 1.0  ;;  %vm3959_vm7 = vcmp.le.f32.partialorder %v13979_v45, 16.0 }
 0x439   : > { %v4282_v22 = vsel %vm13947_vm3, %v3584_v46, 0.0  ;;  %v3544_v0 = vadd.f32 %v13548_v55, %v3496_v36  ;;  %v4413_v33 = vld [vmem:[#allocation2 + $0xb9] sm:$0xff]  ;;  %vm14042_vm3 = vmand %vm14014_vm13, %vm4039_vm14  ;;  %vm4122_vm9 = vcmp.le.f32.partialorder %v3876_v35, 16.0  ;;  %v3838_v9 = vmul.f32 18.0, %v14036_v49 }
 0x43a   : > { %v5288_v26 = vld [vmem:[#allocation2 + $0xba] sm:$0xff]  ;;  %4323 = vst [vmem:[#allocation2 + $0xd0] sm:$0xff] %v4282_v22  ;;  %v3405_v21 = vpop.f32.mrf.mxu0  ;;  %9948 = vmatmul.mubr.f32.gmra.mxu1 %v4413_v33  ;;  %vm14071_vm8 = vmand %vm14042_vm3, %vm4121_vm2  ;;  %v14076_v23 = vfloor.f32 %v3757_v8  ;;  %v3758_v52 = vmul.f32 0.055555556, %v3717_v5  ;;  %v3718_v22 = vadd.f32 0.5, %v3677_v16  ;;  %vm3919_vm13 = vcmp.ge.f32.partialorder %v14021_v11, 1.0 }
 0x43b   : > { %10203 = vmatmul.mubr.f32.gmra.mxu0 %v5288_v26  ;;  %v3585_v47 = vmax.f32 %v3544_v0, 0.0  ;;  %v3497_v25 = vadd.f32 %v3405_v21, %v12728_v50  ;;  %vm14092_vm11 = vmand %vm3918_vm6, %vm3959_vm7  ;;  %v3678_v26 = vcvt.s32.f32 %v14061_v62  ;;  %vm3960_vm14 = vcmp.le.f32.partialorder %v14021_v11, 16.0  ;;  %v15675_v50 = vld [vmem:[#allocation14_spill] sm:$0xff] }
 0x43c   : > { %v9845_v29 = vpop.f32.mrf.mxu0  ;;  %v14130_v35 = vfloor.f32 %v3758_v52  ;;  %vm14136_vm2 = vmand %vm3919_vm13, %vm3960_vm14  ;;  %v15680_v5 = vmov 0  ;;  %v15687_v62 = vmov 0 }
 0x43d   : > { %v4283_v53 = vsel %vm13990_vm10, %v3585_v47, 0.0  ;;  %v3545_v56 = vadd.f32 %v13548_v55, %v3497_v25  ;;  %v4414_v17 = vld [vmem:[#allocation2 + $0xc1] sm:$0xff]  ;;  %vm14082_vm10 = vmand %vm14053_vm4, %vm4040_vm5  ;;  %v14118_v47 = vsub.f32 %v3674_v48, %v3838_v9  ;;  %v3839_v25 = vmul.f32 18.0, %v14076_v23 }
 0x43e   : > { %v5289_v10 = vld [vmem:[#allocation2 + $0xc2] sm:$0xff]  ;;  %4324 = vst [vmem:[#allocation2 + $0xd8] sm:$0xff] %v4283_v53  ;;  %v3410_v18 = vpop.f32.mrf.mxu0  ;;  %9950 = vmatprep.mubr.f32.mxu1 %v4414_v17  ;;  %vm14112_vm15 = vmand %vm14082_vm10, %vm4122_vm9  ;;  %v3679_v48 = vcvt.s32.f32 %v14100_v42  ;;  %vm3920_vm4 = vcmp.ge.f32.partialorder %v14036_v49, 1.0  ;;  %vm3961_vm5 = vcmp.le.f32.partialorder %v14036_v49, 16.0 }
 0x43f   : > { %10205 = vmatprep.mubr.f32.mxu0 %v5289_v10  ;;  %v3586_v15 = vmax.f32 %v3545_v56, 0.0  ;;  %v3498_v39 = vadd.f32 %v3410_v18, %v12734_v61  ;;  %v3877_v61 = vsub.f32 %v3672_v1, %v3836_v34  ;;  %v3759_v34 = vmul.f32 0.055555556, %v3718_v22  ;;  %vm14183_vm10 = vmand %vm3920_vm4, %vm3961_vm5  ;;  %v15668_v9 = vld [vmem:[#allocation13_spill] sm:$0xff] }
 0x440   : > { %v9848_v12 = vpop.f32.mrf.mxu0  ;;  %v14144_v56 = vadd.s32 312, %v12755_v7  ;;  %vm4125_vm14 = vcmp.le.f32.partialorder %v14118_v47, 16.0  ;;  %vm3963_vm4 = vcmp.le.f32.partialorder %v14130_v35, 16.0  ;;  %v4933_v18 = vld [vmem:[#allocation2 + $0x2] sm:$0xff] }
 0x441   : > { %v4284_v14 = vsel %vm14032_vm1, %v3586_v15, 0.0  ;;  %v3546_v46 = vadd.f32 %v13548_v55, %v3498_v39  ;;  %v4415_v36 = vld [vmem:[#allocation2 + $0xc9] sm:$0xff]  ;;  %vm4041_vm12 = vcmp.ge.f32.partialorder %v3877_v61, 1.0  ;;  %vm4123_vm0 = vcmp.le.f32.partialorder %v3877_v61, 16.0 }
 0x442   : > { %v5290_v4 = vld [vmem:[#allocation2 + $0xca] sm:$0xff]  ;;  %4325 = vst [vmem:[#allocation2 + $0xe0] sm:$0xff] %v4284_v14  ;;  %v3415_v1 = vpop.f32.mrf.mxu0  ;;  %9951 = vmatmul.mubr.f32.gmra.mxu1 %v4415_v36  ;;  %vm14126_vm1 = vmand %vm14092_vm11, %vm4041_vm12  ;;  %v14165_v15 = vsub.f32 %v3675_v2, %v3839_v25  ;;  %v3840_v12 = vmul.f32 18.0, %v14130_v35  ;;  %v14177_v43 = vfloor.f32 %v3759_v34  ;;  %v3720_v2 = vadd.f32 0.5, %v3679_v48 }
 0x443   : > { %10206 = vmatmul.mubr.f32.gmra.mxu0 %v5290_v4  ;;  %v3587_v24 = vmax.f32 %v3546_v46, 0.0  ;;  %v3499_v40 = vadd.f32 %v3415_v1, %v12740_v59  ;;  %v3878_v59 = vsub.f32 %v3673_v20, %v3837_v19  ;;  %vm14158_vm6 = vmand %vm14126_vm1, %vm4123_vm0  ;;  %v3680_v19 = vcvt.s32.f32 %v14144_v56 }
 0x444   : > { %v9851_v0 = vpop.f32.mrf.mxu0  ;;  %v14191_v14 = vadd.s32 320, %v12755_v7  ;;  %vm3921_vm11 = vcmp.ge.f32.partialorder %v14076_v23, 1.0  ;;  %vm3962_vm12 = vcmp.le.f32.partialorder %v14076_v23, 16.0  ;;  %vm4044_vm0 = vcmp.ge.f32.partialorder %v14165_v15, 1.0  ;;  %v4934_v7 = vld [vmem:[#allocation2 + $0xa] sm:$0xff] }
 0x445   : > { %v4285_v21 = vsel %vm14071_vm8, %v3587_v24, 0.0  ;;  %v14105_v6 = vadd.f32 %v13548_v55, %v3499_v40  ;;  %v4416_v45 = vld [vmem:[#allocation2 + $0xd1] sm:$0xff]  ;;  %vm4042_vm3 = vcmp.ge.f32.partialorder %v3878_v59, 1.0  ;;  %vm4124_vm7 = vcmp.le.f32.partialorder %v3878_v59, 16.0  ;;  %v15689_v0 = vld [vmem:[#allocation16_spill] sm:$0xff] }
 0x446   : > { %v5291_v37 = vld [vmem:[#allocation2 + $0xd2] sm:$0xff]  ;;  %4326 = vst [vmem:[#allocation2 + $0xe8] sm:$0xff] %v4285_v21  ;;  %v3420_v20 = vpop.f32.mrf.mxu0  ;;  %9953 = vmatprep.mubr.f32.mxu1 %v4416_v45  ;;  %vm4043_vm8 = vcmp.ge.f32.partialorder %v14118_v47, 1.0  ;;  %vm14172_vm9 = vmand %vm14136_vm2, %vm4042_vm3  ;;  %v3881_v63 = vsub.f32 %v3676_v30, %v3840_v12  ;;  %v3841_v52 = vmul.f32 18.0, %v14177_v43  ;;  %v3761_v59 = vmul.f32 0.055555556, %v3720_v2 }
 0x447   : > { %10208 = vmatprep.mubr.f32.mxu0 %v5291_v37  ;;  %v3588_v28 = vmax.f32 %v14105_v6, 0.0  ;;  %v3500_v29 = vadd.f32 %v3420_v20, %v12746_v32  ;;  %v3719_v32 = vadd.f32 0.5, %v3678_v26  ;;  %vm14205_vm13 = vmand %vm14172_vm9, %vm4124_vm7  ;;  %v3721_v21 = vadd.f32 0.5, %v3680_v19  ;;  %v4935_v20 = vld [vmem:[#allocation2 + $0x12] sm:$0xff] }
 0x448   : > { %v9854_v53 = vpop.f32.mrf.mxu0  ;;  %vm14217_vm1 = vmand %vm14183_vm10, %vm4043_vm8  ;;  %v3681_v45 = vcvt.s32.f32 %v14191_v14  ;;  %vm3922_vm3 = vcmp.ge.f32.partialorder %v14130_v35, 1.0  ;;  %vm4126_vm7 = vcmp.le.f32.partialorder %v14165_v15, 16.0  ;;  %vm4045_vm9 = vcmp.ge.f32.partialorder %v3881_v63, 1.0 }
 0x449   : > { %v4286_v17 = vsel %vm14112_vm15, %v3588_v28, 0.0  ;;  %v14151_v11 = vadd.f32 %v13548_v55, %v3500_v29  ;;  %v4417_v10 = vld [vmem:[#allocation2 + $0xd9] sm:$0xff]  ;;  %vm14226_vm2 = vmand %vm3921_vm11, %vm3962_vm12  ;;  %v3882_v35 = vsub.f32 %v3677_v16, %v3841_v52  ;;  %vm3923_vm11 = vcmp.ge.f32.partialorder %v14177_v43, 1.0 }
 0x44a   : > { %v5292_v54 = vld [vmem:[#allocation2 + $0xda] sm:$0xff]  ;;  %4327 = vst [vmem:[#allocation2 + $0xf0] sm:$0xff] %v4286_v17  ;;  %v3425_v8 = vpop.f32.mrf.mxu0  ;;  %9954 = vmatmul.mubr.f32.gmra.mxu1 %v4417_v10  ;;  %vm14248_vm5 = vmand %vm14217_vm1, %vm4125_vm14  ;;  %v3802_v17 = vfloor.f32 %v3761_v59  ;;  %v3762_v10 = vmul.f32 0.055555556, %v3721_v21  ;;  %vm3964_vm12 = vcmp.le.f32.partialorder %v14177_v43, 16.0  ;;  %vm4127_vm1 = vcmp.le.f32.partialorder %v3881_v63, 16.0 }
 0x44b   : > { %10209 = vmatmul.mubr.f32.gmra.mxu0 %v5292_v54  ;;  %v3589_v39 = vmax.f32 %v14151_v11, 0.0  ;;  %v3501_v60 = vadd.f32 %v3425_v8, %v12752_v31  ;;  %v3760_v31 = vmul.f32 0.055555556, %v3719_v32  ;;  %vm14259_vm8 = vmand %vm14226_vm2, %vm4044_vm0  ;;  %v3722_v54 = vadd.f32 0.5, %v3681_v45 }
 0x44c   : > { %v9857_v61 = vpop.f32.mrf.mxu0  ;;  %vm14265_vm10 = vmand %vm3922_vm3, %vm3963_vm4  ;;  %vm4046_vm2 = vcmp.ge.f32.partialorder %v3882_v35, 1.0 }
 0x44d   : > { %v4287_v46 = vsel %vm14158_vm6, %v3589_v39, 0.0  ;;  %v14198_v49 = vadd.f32 %v13548_v55, %v3501_v60  ;;  %v4418_v36 = vld [vmem:[#allocation2 + $0xe1] sm:$0xff]  ;;  %v14230_v33 = vfloor.f32 %v3760_v31  ;;  %vm14285_vm14 = vmand %vm14259_vm8, %vm4126_vm7 }
 0x44e   : > { %v5293_v4 = vld [vmem:[#allocation2 + $0xe2] sm:$0xff]  ;;  %4328 = vst [vmem:[#allocation2 + $0xf8] sm:$0xff] %v4287_v46  ;;  %v3430_v13 = vpop.f32.mrf.mxu0  ;;  %9956 = vmatprep.mubr.f32.mxu1 %v4418_v36  ;;  %v15681_v5 = vsel %vm14285_vm14, 4294967295, %v15680_v5  ;;  %vm14294_vm0 = vmand %vm14265_vm10, %vm4045_vm9  ;;  %v3843_v36 = vmul.f32 18.0, %v3802_v17  ;;  %vm4128_vm10 = vcmp.le.f32.partialorder %v3882_v35, 16.0 }
 0x44f   : > { %10211 = vmatprep.mubr.f32.mxu0 %v5293_v4  ;;  %v3590_v1 = vmax.f32 %v14198_v49, 0.0  ;;  %v3502_v24 = vadd.f32 %v3430_v13, %v15668_v9  ;;  %v3842_v32 = vmul.f32 18.0, %v14230_v33  ;;  %vm14298_vm3 = vmand %vm3923_vm11, %vm3964_vm12  ;;  %v3803_v4 = vfloor.f32 %v3762_v10  ;;  %v14403_v49 = vld [vmem:[#allocation8 + $0x478] sm:$0xff] }
 0x450   : > { %v9860_v22 = vpop.f32.mrf.mxu0  ;;  %v3763_v13 = vmul.f32 0.055555556, %v3722_v54  ;;  %vm3924_vm4 = vcmp.ge.f32.partialorder %v14230_v33, 1.0  ;;  %vm3965_vm7 = vcmp.le.f32.partialorder %v14230_v33, 16.0  ;;  %vm14316_vm8 = vmand %vm14294_vm0, %vm4127_vm1  ;;  %vm3925_vm0 = vcmp.ge.f32.partialorder %v3802_v17, 1.0  ;;  %v4338_v33 = vld [vmem:[#allocation2] sm:$0xff] }
 0x451   : > { %v4288_v3 = vsel %vm14205_vm13, %v3590_v1, 0.0  ;;  %v14240_v30 = vadd.f32 %v13548_v55, %v3502_v24  ;;  %v4419_v23 = vld [vmem:[#allocation2 + $0xe9] sm:$0xff]  ;;  %v3883_v46 = vsub.f32 %v3678_v26, %v3842_v32  ;;  %v15688_v62 = vsel %vm14316_vm8, 4294967295, %v15687_v62  ;;  %vm14325_vm9 = vmand %vm14298_vm3, %vm4046_vm2  ;;  %v4342_v32 = vld [vmem:[#allocation2 + $0x20] sm:$0xff] }
 0x452   : > { %v5294_v37 = vld [vmem:[#allocation2 + $0xea] sm:$0xff]  ;;  %4329 = vst [vmem:[#allocation2 + $0x100] sm:$0xff] %v4288_v3  ;;  %v3435_v25 = vpop.f32.mrf.mxu0  ;;  %9957 = vmatmul.mubr.f32.gmra.mxu1 %v4419_v23  ;;  %vm14329_vm11 = vmand %vm3924_vm4, %vm3965_vm7  ;;  %v3884_v3 = vsub.f32 %v3679_v48, %v3843_v36  ;;  %v3844_v23 = vmul.f32 18.0, %v3803_v4  ;;  %vm3966_vm1 = vcmp.le.f32.partialorder %v3802_v17, 16.0 }
 0x453   : > { %10212 = vmatmul.mubr.f32.gmra.mxu0 %v5294_v37  ;;  %v3591_v29 = vmax.f32 %v14240_v30, 0.0  ;;  %v3503_v34 = vadd.f32 %v3435_v25, %v15675_v50  ;;  %vm4047_vm12 = vcmp.ge.f32.partialorder %v3883_v46, 1.0  ;;  %v3804_v37 = vfloor.f32 %v3763_v13  ;;  %vm4169_vm2 = vmand %vm14325_vm9, %vm4128_vm10  ;;  %v15694_v48 = vld [vmem:[#allocation17_spill] sm:$0xff]  ;;  %v5652_v30 = vld [vmem:[#allocation8 + $0x270] sm:$0xff] }
 0x454   : > { %v9863_v53 = vpop.f32.mrf.mxu0  ;;  %vm4088_vm3 = vmand %vm14329_vm11, %vm4047_vm12  ;;  %vm4129_vm4 = vcmp.le.f32.partialorder %v3883_v46, 16.0  ;;  %v3885_v17 = vsub.f32 %v3680_v19, %v3844_v23  ;;  %vm3926_vm9 = vcmp.ge.f32.partialorder %v3803_v4, 1.0  ;;  %vm3967_vm10 = vcmp.le.f32.partialorder %v3803_v4, 16.0  ;;  %v5939_v19 = vld [vmem:[#allocation2 + $0x34] sm:$0xff] }
 0x455   : > { %v4289_v8 = vsel %vm14248_vm5, %v3591_v29, 0.0  ;;  %v14277_v51 = vadd.f32 %v13548_v55, %v3503_v34  ;;  %v4420_v16 = vld [vmem:[#allocation2 + $0xf1] sm:$0xff]  ;;  %vm14346_vm7 = vmand %vm3925_vm0, %vm3966_vm1  ;;  %v3845_v10 = vmul.f32 18.0, %v3804_v37  ;;  %vm4130_vm0 = vcmp.le.f32.partialorder %v3884_v3, 16.0 }
 0x456   : > { %v5295_v60 = vld [vmem:[#allocation2 + $0xf2] sm:$0xff]  ;;  %4330 = vst [vmem:[#allocation2 + $0x108] sm:$0xff] %v4289_v8  ;;  %v3440_v12 = vpop.f32.mrf.mxu0  ;;  %9959 = vmatprep.mubr.f32.mxu1 %v4420_v16  ;;  %vm4170_vm11 = vmand %vm4088_vm3, %vm4129_vm4  ;;  %vm3927_vm3 = vcmp.ge.f32.partialorder %v3804_v37, 1.0  ;;  %vm3968_vm4 = vcmp.le.f32.partialorder %v3804_v37, 16.0 }
 0x457   : > { %10214 = vmatprep.mubr.f32.mxu0 %v5295_v60  ;;  %v3592_v61 = vmax.f32 %v14277_v51, 0.0  ;;  %v3504_v31 = vadd.f32 %v3440_v12, %v15682_v57  ;;  %vm14357_vm1 = vmand %vm3926_vm9, %vm3967_vm10  ;;  %v4936_v51 = vld [vmem:[#allocation2 + $0x1a] sm:$0xff] }
 0x458   : > { %v9866_v15 = vpop.f32.mrf.mxu0  ;;  %vm14368_vm9 = vmand %vm3927_vm3, %vm3968_vm4 }
 0x459   : > { %v4290_v9 = vsel %vm14285_vm14, %v3592_v61, 0.0  ;;  %v14309_v24 = vadd.f32 %v13548_v55, %v3504_v31  ;;  %v4421_v40 = vld [vmem:[#allocation2 + $0xf9] sm:$0xff]  ;;  %v15697_v31 = vld [vmem:[#allocation18_spill] sm:$0xff]  ;;  %v3886_v15 = vsub.f32 %v3681_v45, %v3845_v10  ;;  %v4343_v10 = vld [vmem:[#allocation2 + $0x28] sm:$0xff] }
 0x45a   : > { %v5296_v52 = vld [vmem:[#allocation2 + $0xfa] sm:$0xff]  ;;  %4331 = vst [vmem:[#allocation2 + $0x110] sm:$0xff] %v4290_v9  ;;  %v3445_v26 = vpop.f32.mrf.mxu0  ;;  %9960 = vmatmul.mubr.f32.gmra.mxu1 %v4421_v40 }
 0x45b   : > { %10215 = vmatmul.mubr.f32.gmra.mxu0 %v5296_v52  ;;  %v3593_v22 = vmax.f32 %v14309_v24, 0.0  ;;  %v3505_v59 = vadd.f32 %v3445_v26, %v15689_v0  ;;  %vm4050_vm10 = vcmp.ge.f32.partialorder %v3886_v15, 1.0  ;;  %v10767_v52 = vld [vmem:[%s15432_s2] ss:$0 sm:$0xff]  ;;  %v4937_v24 = vld [vmem:[#allocation2 + $0x22] sm:$0xff] }
 0x45c   : > { %v9869_v63 = vpop.f32.mrf.mxu0  ;;  %v5964_v6 = vld [vmem:[#allocation2 + $0xfc] sm:$0xff] }
 0x45d   : > { %v4291_v25 = vsel %vm14316_vm8, %v3593_v22, 0.0  ;;  %v3553_v50 = vadd.f32 %v13548_v55, %v3505_v59  ;;  %v4422_v34 = vld [vmem:[#allocation2 + $0x101] sm:$0xff]  ;;  %vm4048_vm8 = vcmp.ge.f32.partialorder %v3884_v3, 1.0 }
 0x45e   : > { %v5297_v47 = vld [vmem:[#allocation2 + $0x102] sm:$0xff]  ;;  %4332 = vst [vmem:[#allocation2 + $0x118] sm:$0xff] %v4291_v25  ;;  %v3450_v35 = vpop.f32.mrf.mxu0  ;;  %9962 = vmatprep.mubr.f32.mxu1 %v4422_v34  ;;  %vm4089_vm12 = vmand %vm14346_vm7, %vm4048_vm8  ;;  %vm4131_vm7 = vcmp.le.f32.partialorder %v3885_v17, 16.0  ;;  %v4984_v34 = vld [vmem:[#allocation8 + $0x170] sm:$0xff] }
 0x45f   : > { %10217 = vmatprep.mubr.f32.mxu0 %v5297_v47  ;;  %v3594_v42 = vmax.f32 %v3553_v50, 0.0  ;;  %v3506_v53 = vadd.f32 %v3450_v35, %v15694_v48  ;;  %vm4171_vm14 = vmand %vm4089_vm12, %vm4130_vm0  ;;  %v4339_v25 = vld [vmem:[#allocation2 + $0x8] sm:$0xff]  ;;  %v4340_v47 = vld [vmem:[#allocation2 + $0x10] sm:$0xff] }
 0x460   : > { %v9872_v44 = vpop.f32.mrf.mxu0  ;;  %vm4091_vm12 = vmand %vm14368_vm9, %vm4050_vm10  ;;  %v4341_v48 = vld [vmem:[#allocation2 + $0x18] sm:$0xff]  ;;  %v5965_v41 = vld [vmem:[#allocation2 + $0x104] sm:$0xff] }
 0x461   : > { %v4292_v54 = vsel %vm4169_vm2, %v3594_v42, 0.0  ;;  %v3554_v8 = vadd.f32 %v13548_v55, %v3506_v53  ;;  %v4423_v16 = vld [vmem:[#allocation2 + $0x109] sm:$0xff]  ;;  %vm4049_vm2 = vcmp.ge.f32.partialorder %v3885_v17, 1.0  ;;  %v10768_v42 = vld [vmem:[#allocation8 + $0x178] sm:$0xff]  ;;  %v5935_v17 = vld [vmem:[#allocation2 + $0x14] sm:$0xff] }
 0x462   : > { %v5298_v60 = vld [vmem:[#allocation2 + $0x10a] sm:$0xff]  ;;  %4333 = vst [vmem:[#allocation2 + $0x120] sm:$0xff] %v4292_v54  ;;  %v3455_v12 = vpop.f32.mrf.mxu0  ;;  %9963 = vmatmul.mubr.f32.gmra.mxu1 %v4423_v16  ;;  %vm4090_vm8 = vmand %vm14357_vm1, %vm4049_vm2  ;;  %v5936_v54 = vld [vmem:[#allocation2 + $0x1c] sm:$0xff] }
 0x463   : > { %10218 = vmatmul.mubr.f32.gmra.mxu0 %v5298_v60  ;;  %v3595_v57 = vmax.f32 %v3554_v8, 0.0  ;;  %v3507_v43 = vadd.f32 %v3455_v12, %v15697_v31  ;;  %v4983_v44 = vld [vmem:[#allocation8 + $0x168] sm:$0xff]  ;;  %v4982_v8 = vld [vmem:[#allocation8 + $0x160] sm:$0xff]  ;;  %v6654_v12 = vld [vmem:[#allocation8 + $0x3f0] sm:$0xff] }
 0x464   : > { %v9875_v56 = vpop.f32.mrf.mxu0  ;;  %v4344_v16 = vld [vmem:[#allocation2 + $0x30] sm:$0xff]  ;;  %v5937_v60 = vld [vmem:[#allocation2 + $0x24] sm:$0xff] }
 0x465   : > { %v4293_v2 = vsel %vm4170_vm11, %v3595_v57, 0.0  ;;  %v3555_v46 = vadd.f32 %v13548_v55, %v3507_v43  ;;  %v4424_v36 = vld [vmem:[#allocation2 + $0x111] sm:$0xff]  ;;  %vm4172_vm11 = vmand %vm4090_vm8, %vm4131_vm7  ;;  %v4981_v43 = vld [vmem:[#allocation8 + $0x158] sm:$0xff] }
 0x466   : > { %v5299_v4 = vld [vmem:[#allocation2 + $0x112] sm:$0xff]  ;;  %4334 = vst [vmem:[#allocation2 + $0x128] sm:$0xff] %v4293_v2  ;;  %v3460_v13 = vpop.f32.mrf.mxu0  ;;  %9965 = vmatprep.mubr.f32.mxu1 %v4424_v36  ;;  %v4346_v56 = vld [vmem:[#allocation2 + $0x40] sm:$0xff]  ;;  %v4347_v2 = vld [vmem:[#allocation2 + $0x48] sm:$0xff] }
 0x467   : > { %10220 = vmatprep.mubr.f32.mxu0 %v5299_v4  ;;  %v3596_v9 = vmax.f32 %v3555_v46, 0.0  ;;  %v3508_v40 = vadd.f32 %v3460_v13, %v12808_v27  ;;  %v4345_v57 = vld [vmem:[#allocation2 + $0x38] sm:$0xff]  ;;  %v5938_v31 = vld [vmem:[#allocation2 + $0x2c] sm:$0xff]  ;;  %v5941_v4 = vld [vmem:[#allocation2 + $0x44] sm:$0xff] }
 0x468   : > { %v9878_v14 = vpop.f32.mrf.mxu0  ;;  %v5940_v46 = vld [vmem:[#allocation2 + $0x3c] sm:$0xff]  ;;  %v6652_v13 = vld [vmem:[#allocation8 + $0x3e0] sm:$0xff] }
 0x469   : > { %v4294_v45 = vsel %vm4171_vm14, %v3596_v9, 0.0  ;;  %v3556_v26 = vadd.f32 %v10767_v52, %v3508_v40  ;;  %v4425_v0 = vld [vmem:[#allocation2 + $0x119] sm:$0xff]  ;;  %vm4132_vm14 = vcmp.le.f32.partialorder %v3886_v15, 16.0  ;;  %v6653_v15 = vld [vmem:[#allocation8 + $0x3e8] sm:$0xff] }
 0x46a   : > { %v5300_v59 = vld [vmem:[#allocation2 + $0x11a] sm:$0xff]  ;;  %4335 = vst [vmem:[#allocation2 + $0x130] sm:$0xff] %v4294_v45  ;;  %v3465_v27 = vpop.f32.mrf.mxu0  ;;  %9966 = vmatmul.mubr.f32.gmra.mxu1 %v4425_v0  ;;  %vm4173_vm0 = vmand %vm4091_vm12, %vm4132_vm14  ;;  %v5942_v40 = vld [vmem:[#allocation2 + $0x4c] sm:$0xff] }
 0x46b   : > { %10221 = vmatmul.mubr.f32.gmra.mxu0 %v5300_v59  ;;  %v3597_v63 = vmax.f32 %v3556_v26, 0.0  ;;  %v3509_v21 = vadd.f32 %v3465_v27, %v12817_v38  ;;  %10000 = vmatprep.mubr.f32.mxu1 %v4338_v33  ;;  %v4980_v36 = vld [vmem:[#allocation8 + $0x150] sm:$0xff]  ;;  %v4979_v14 = vld [vmem:[#allocation8 + $0x148] sm:$0xff]  ;;  %v4350_v55 = vld [vmem:[#allocation2 + $0x60] sm:$0xff] }
 0x46c   : > { %v9881_v3 = vpop.f32.mrf.mxu0  ;;  %v4349_v9 = vld [vmem:[#allocation2 + $0x58] sm:$0xff]  ;;  %v4351_v26 = vld [vmem:[#allocation2 + $0x68] sm:$0xff]  ;;  %v4352_v27 = vld [vmem:[#allocation2 + $0x70] sm:$0xff] }
 0x46d   : > { %v4295_v23 = vsel %vm4172_vm11, %v3597_v63, 0.0  ;;  %v3557_v37 = vadd.f32 %v10767_v52, %v3509_v21  ;;  %v5301_v50 = vld [vmem:[#allocation2 + $0x122] sm:$0xff]  ;;  %v5943_v45 = vld [vmem:[#allocation2 + $0x54] sm:$0xff]  ;;  %v5946_v3 = vld [vmem:[#allocation2 + $0x6c] sm:$0xff] }
 0x46e   : > { %4336 = vst [vmem:[#allocation2 + $0x138] sm:$0xff] %v4295_v23  ;;  %10001 = vmatmul.mubr.f32.vlgmr.msra.gmra.mxu1 %v4339_v25  ;;  %10223 = vmatprep.mubr.f32.mxu0 %v5301_v50  ;;  %v6651_v52 = vld [vmem:[#allocation8 + $0x3d8] sm:$0xff]  ;;  %v4978_v59 = vld [vmem:[#allocation8 + $0x140] sm:$0xff]  ;;  %v6650_v63 = vld [vmem:[#allocation8 + $0x3d0] sm:$0xff] }
 0x46f   : > { %v3598_v35 = vmax.f32 %v3557_v37, 0.0  ;;  %10003 = vmatprep.mubr.f32.mxu1 %v4340_v47  ;;  %10055 = vmatpush3.msra.mxu1 %v10768_v42  ;;  %v5944_v0 = vld [vmem:[#allocation2 + $0x5c] sm:$0xff]  ;;  %v5945_v33 = vld [vmem:[#allocation2 + $0x64] sm:$0xff]  ;;  %v5947_v25 = vld [vmem:[#allocation2 + $0x74] sm:$0xff] }
 0x470   : > { %10056 = vmatprep.subr.mxu1 %v4984_v34  ;;  %v4353_v21 = vld [vmem:[#allocation2 + $0x78] sm:$0xff]  ;;  %v4977_v23 = vld [vmem:[#allocation8 + $0x138] sm:$0xff]  ;;  %v6649_v50 = vld [vmem:[#allocation8 + $0x3c8] sm:$0xff] }
 0x471   : > { %v4296_v38 = vsel %vm4173_vm0, %v3598_v35, 0.0  ;;  %v5302_v53 = vld [vmem:[#allocation2 + $0x12a] sm:$0xff]  ;;  %10057 = vmatpush3.msra.mxu1 %v4984_v34  ;;  %v4354_v37 = vld [vmem:[#allocation2 + $0x80] sm:$0xff]  ;;  %v4976_v35 = vld [vmem:[#allocation8 + $0x130] sm:$0xff] }
 0x472   : > { %4337 = vst [vmem:[#allocation2 + $0x140] sm:$0xff] %v4296_v38  ;;  %10004 = vmatmul.mubr.f32.gmra.mxu1 %v4341_v48  ;;  %10224 = vmatmul.mubr.f32.gmra.mxu0 %v5302_v53  ;;  %v4355_v34 = vld [vmem:[#allocation2 + $0x88] sm:$0xff]  ;;  %v5948_v47 = vld [vmem:[#allocation2 + $0x7c] sm:$0xff]  ;;  %v4356_v42 = vld [vmem:[#allocation2 + $0x90] sm:$0xff] }
 0x473   : > { %10006 = vmatprep.mubr.f32.mxu1 %v4342_v32  ;;  %10344 = vmatprep.mubr.f32.mxu0 %v5935_v17  ;;  %v5949_v38 = vld [vmem:[#allocation2 + $0x84] sm:$0xff]  ;;  %v4357_v53 = vld [vmem:[#allocation2 + $0x98] sm:$0xff]  ;;  %v4975_v32 = vld [vmem:[#allocation8 + $0x128] sm:$0xff] }
 0x474   : > { %10058 = vmatprep.subr.mxu1 %v4983_v44  ;;  %v6648_v48 = vld [vmem:[#allocation8 + $0x3c0] sm:$0xff]  ;;  %v4358_v17 = vld [vmem:[#allocation2 + $0xa0] sm:$0xff] }
 0x475   : > { %10059 = vmatpush3.msra.mxu1 %v4983_v44  ;;  %v5950_v44 = vld [vmem:[#allocation2 + $0x8c] sm:$0xff] }
 0x476   : > { %10007 = vmatmul.mubr.f32.gmra.mxu1 %v4343_v10  ;;  %10345 = vmatmul.mubr.f32.vlgmr.msra.gmra.mxu0 %v5936_v54  ;;  %v5951_v10 = vld [vmem:[#allocation2 + $0x94] sm:$0xff]  ;;  %v6647_v54 = vld [vmem:[#allocation8 + $0x3b8] sm:$0xff]  ;;  %v5966_v11 = vld [vmem:[#allocation2 + $0x10c] sm:$0xff] }
 0x477   : > { %10009 = vmatprep.mubr.f32.mxu1 %v4344_v16  ;;  %10347 = vmatprep.mubr.f32.mxu0 %v5937_v60  ;;  %v5952_v16 = vld [vmem:[#allocation2 + $0x9c] sm:$0xff]  ;;  %v4974_v60 = vld [vmem:[#allocation8 + $0x120] sm:$0xff] }
 0x478   : > { %10060 = vmatprep.subr.mxu1 %v4982_v8  ;;  %10485 = vmatpush3.msra.mxu0 %v13697_v58  ;;  %v4348_v58 = vld [vmem:[#allocation2 + $0x50] sm:$0xff] }
 0x479   : > { %10061 = vmatpush3.msra.mxu1 %v4982_v8  ;;  %10486 = vmatprep.subr.mxu0 %v6654_v12  ;;  %v4359_v8 = vld [vmem:[#allocation2 + $0xa8] sm:$0xff] }
 0x47a   : > { %10010 = vmatmul.mubr.f32.gmra.mxu1 %v4345_v57  ;;  %10348 = vmatmul.mubr.f32.gmra.mxu0 %v5938_v31  ;;  %v5953_v57 = vld [vmem:[#allocation2 + $0xa4] sm:$0xff]  ;;  %v6646_v31 = vld [vmem:[#allocation8 + $0x3b0] sm:$0xff] }
 0x47b   : > { %10012 = vmatprep.mubr.f32.mxu1 %v4346_v56  ;;  %10350 = vmatprep.mubr.f32.mxu0 %v5939_v19  ;;  %v5954_v56 = vld [vmem:[#allocation2 + $0xac] sm:$0xff]  ;;  %v4973_v19 = vld [vmem:[#allocation8 + $0x118] sm:$0xff] }
 0x47c   : > { %10062 = vmatprep.subr.mxu1 %v4981_v43  ;;  %10487 = vmatpush3.msra.mxu0 %v6654_v12  ;;  %v4360_v12 = vld [vmem:[#allocation2 + $0xb0] sm:$0xff] }
 0x47d   : > { %10063 = vmatpush3.msra.mxu1 %v4981_v43  ;;  %10488 = vmatprep.subr.mxu0 %v6653_v15  ;;  %v4361_v43 = vld [vmem:[#allocation2 + $0xb8] sm:$0xff] }
 0x47e   : > { %10013 = vmatmul.mubr.f32.gmra.mxu1 %v4347_v2  ;;  %10351 = vmatmul.mubr.f32.gmra.mxu0 %v5940_v46  ;;  %v5955_v2 = vld [vmem:[#allocation2 + $0xb4] sm:$0xff] }
 0x47f   : > { %10015 = vmatprep.mubr.f32.mxu1 %v4348_v58  ;;  %10353 = vmatprep.mubr.f32.mxu0 %v5941_v4  ;;  %v6645_v46 = vld [vmem:[#allocation8 + $0x3a8] sm:$0xff]  ;;  %v5956_v58 = vld [vmem:[#allocation2 + $0xbc] sm:$0xff] }
 0x480   : > { %10064 = vmatprep.subr.mxu1 %v4980_v36  ;;  %10489 = vmatpush3.msra.mxu0 %v6653_v15  ;;  %v4362_v15 = vld [vmem:[#allocation2 + $0xc0] sm:$0xff]  ;;  %v4972_v4 = vld [vmem:[#allocation8 + $0x110] sm:$0xff] }
 0x481   : > { %10065 = vmatpush3.msra.mxu1 %v4980_v36  ;;  %10490 = vmatprep.subr.mxu0 %v6652_v13  ;;  %v4363_v36 = vld [vmem:[#allocation2 + $0xc8] sm:$0xff] }
 0x482   : > { %10016 = vmatmul.mubr.f32.gmra.mxu1 %v4349_v9  ;;  %10354 = vmatmul.mubr.f32.gmra.mxu0 %v5942_v40  ;;  %v5957_v9 = vld [vmem:[#allocation2 + $0xc4] sm:$0xff] }
 0x483   : > { %10018 = vmatprep.mubr.f32.mxu1 %v4350_v55  ;;  %10356 = vmatprep.mubr.f32.mxu0 %v5943_v45  ;;  %v6644_v40 = vld [vmem:[#allocation8 + $0x3a0] sm:$0xff]  ;;  %v4971_v45 = vld [vmem:[#allocation8 + $0x108] sm:$0xff] }
 0x484   : > { %10066 = vmatprep.subr.mxu1 %v4979_v14  ;;  %10491 = vmatpush3.msra.mxu0 %v6652_v13  ;;  %v4364_v13 = vld [vmem:[#allocation2 + $0xd0] sm:$0xff] }
 0x485   : > { %10067 = vmatpush3.msra.mxu1 %v4979_v14  ;;  %10492 = vmatprep.subr.mxu0 %v6651_v52  ;;  %v4365_v14 = vld [vmem:[#allocation2 + $0xd8] sm:$0xff]  ;;  %v5958_v55 = vld [vmem:[#allocation2 + $0xcc] sm:$0xff] }
 0x486   : > { %10019 = vmatmul.mubr.f32.gmra.mxu1 %v4351_v26  ;;  %10357 = vmatmul.mubr.f32.gmra.mxu0 %v5944_v0  ;;  %v5959_v26 = vld [vmem:[#allocation2 + $0xd4] sm:$0xff]  ;;  %v6643_v0 = vld [vmem:[#allocation8 + $0x398] sm:$0xff] }
 0x487   : > { %10021 = vmatprep.mubr.f32.mxu1 %v4352_v27  ;;  %10359 = vmatprep.mubr.f32.mxu0 %v5945_v33  ;;  %v5960_v27 = vld [vmem:[#allocation2 + $0xdc] sm:$0xff]  ;;  %v4970_v33 = vld [vmem:[#allocation8 + $0x100] sm:$0xff] }
 0x488   : > { %10068 = vmatprep.subr.mxu1 %v4978_v59  ;;  %10493 = vmatpush3.msra.mxu0 %v6651_v52  ;;  %v4366_v52 = vld [vmem:[#allocation2 + $0xe0] sm:$0xff] }
 0x489   : > { %10069 = vmatpush3.msra.mxu1 %v4978_v59  ;;  %10494 = vmatprep.subr.mxu0 %v6650_v63  ;;  %v4367_v59 = vld [vmem:[#allocation2 + $0xe8] sm:$0xff] }
 0x48a   : > { %10022 = vmatmul.mubr.f32.gmra.mxu1 %v4353_v21  ;;  %10360 = vmatmul.mubr.f32.gmra.mxu0 %v5946_v3  ;;  %v6642_v21 = vld [vmem:[#allocation8 + $0x390] sm:$0xff]  ;;  %v5962_v3 = vld [vmem:[#allocation2 + $0xec] sm:$0xff] }
 0x48b   : > { %10024 = vmatprep.mubr.f32.mxu1 %v4354_v37  ;;  %10362 = vmatprep.mubr.f32.mxu0 %v5947_v25  ;;  %v5963_v37 = vld [vmem:[#allocation2 + $0xf4] sm:$0xff] }
 0x48c   : > { %10070 = vmatprep.subr.mxu1 %v4977_v23  ;;  %10495 = vmatpush3.msra.mxu0 %v6650_v63  ;;  %v5961_v63 = vld [vmem:[#allocation2 + $0xe4] sm:$0xff]  ;;  %v6641_v25 = vld [vmem:[#allocation8 + $0x388] sm:$0xff] }
 0x48d   : > { %10071 = vmatpush3.msra.mxu1 %v4977_v23  ;;  %10496 = vmatprep.subr.mxu0 %v6649_v50  ;;  %v5653_v23 = vld [vmem:[#allocation8 + $0x278] sm:$0xff] }
 0x48e   : > { %10025 = vmatmul.mubr.f32.gmra.mxu1 %v4355_v34  ;;  %10363 = vmatmul.mubr.f32.gmra.mxu0 %v5948_v47  ;;  %v5650_v34 = vld [vmem:[#allocation8 + $0x260] sm:$0xff]  ;;  %v4939_v47 = vld [vmem:[#allocation2 + $0x32] sm:$0xff] }
 0x48f   : > { %10027 = vmatprep.mubr.f32.mxu1 %v4356_v42  ;;  %10365 = vmatprep.mubr.f32.mxu0 %v5949_v38  ;;  %v14406_v42 = vld [vmem:[#allocation8 + $0x470] sm:$0xff] }
 0x490   : > { %10072 = vmatprep.subr.mxu1 %v4976_v35  ;;  %10497 = vmatpush3.msra.mxu0 %v6649_v50  ;;  %v6604_v50 = vld [vmem:[#allocation2 + $0x2d] sm:$0xff]  ;;  %v4940_v38 = vld [vmem:[#allocation2 + $0x3a] sm:$0xff] }
 0x491   : > { %10073 = vmatpush3.msra.mxu1 %v4976_v35  ;;  %10498 = vmatprep.subr.mxu0 %v6648_v48  ;;  %v6605_v35 = vld [vmem:[#allocation2 + $0x35] sm:$0xff] }
 0x492   : > { %10028 = vmatmul.mubr.f32.gmra.mxu1 %v4357_v53  ;;  %10366 = vmatmul.mubr.f32.gmra.mxu0 %v5950_v44  ;;  %v5649_v53 = vld [vmem:[#allocation8 + $0x258] sm:$0xff] }
 0x493   : > { %10030 = vmatprep.mubr.f32.mxu1 %v4358_v17  ;;  %10368 = vmatprep.mubr.f32.mxu0 %v5951_v10  ;;  %v4941_v44 = vld [vmem:[#allocation2 + $0x42] sm:$0xff]  ;;  %v14410_v17 = vld [vmem:[#allocation8 + $0x468] sm:$0xff] }
 0x494   : > { %10074 = vmatprep.subr.mxu1 %v4975_v32  ;;  %10499 = vmatpush3.msra.mxu0 %v6648_v48  ;;  %v6606_v48 = vld [vmem:[#allocation2 + $0x3d] sm:$0xff] }
 0x495   : > { %10075 = vmatpush3.msra.mxu1 %v4975_v32  ;;  %10500 = vmatprep.subr.mxu0 %v6647_v54  ;;  %v6607_v32 = vld [vmem:[#allocation2 + $0x45] sm:$0xff] }
 0x496   : > { %10031 = vmatmul.mubr.f32.gmra.mxu1 %v4359_v8  ;;  %10369 = vmatmul.mubr.f32.gmra.mxu0 %v5952_v16  ;;  %v6608_v8 = vld [vmem:[#allocation2 + $0x4d] sm:$0xff]  ;;  %v5648_v16 = vld [vmem:[#allocation8 + $0x250] sm:$0xff] }
 0x497   : > { %10033 = vmatprep.mubr.f32.mxu1 %v4360_v12  ;;  %10371 = vmatprep.mubr.f32.mxu0 %v5953_v57  ;;  %v6609_v12 = vld [vmem:[#allocation2 + $0x55] sm:$0xff]  ;;  %v14416_v57 = vld [vmem:[#allocation8 + $0x460] sm:$0xff] }
 0x498   : > { %10076 = vmatprep.subr.mxu1 %v4974_v60  ;;  %10501 = vmatpush3.msra.mxu0 %v6647_v54  ;;  %v4942_v54 = vld [vmem:[#allocation2 + $0x4a] sm:$0xff] }
 0x499   : > { %10077 = vmatpush3.msra.mxu1 %v4974_v60  ;;  %10502 = vmatprep.subr.mxu0 %v6646_v31  ;;  %v4943_v60 = vld [vmem:[#allocation2 + $0x52] sm:$0xff] }
 0x49a   : > { %10034 = vmatmul.mubr.f32.gmra.mxu1 %v4361_v43  ;;  %10372 = vmatmul.mubr.f32.gmra.mxu0 %v5954_v56  ;;  %v4944_v43 = vld [vmem:[#allocation2 + $0x5a] sm:$0xff] }
 0x49b   : > { %10036 = vmatprep.mubr.f32.mxu1 %v4362_v15  ;;  %10374 = vmatprep.mubr.f32.mxu0 %v5955_v2  ;;  %v6610_v56 = vld [vmem:[#allocation2 + $0x5d] sm:$0xff] }
 0x49c   : > { %10078 = vmatprep.subr.mxu1 %v4973_v19  ;;  %10503 = vmatpush3.msra.mxu0 %v6646_v31  ;;  %v4945_v2 = vld [vmem:[#allocation2 + $0x62] sm:$0xff] }
 0x49d   : > { %10079 = vmatpush3.msra.mxu1 %v4973_v19  ;;  %10504 = vmatprep.subr.mxu0 %v6645_v46  ;;  %v5647_v19 = vld [vmem:[#allocation8 + $0x248] sm:$0xff] }
 0x49e   : > { %10037 = vmatmul.mubr.f32.gmra.mxu1 %v4363_v36  ;;  %10375 = vmatmul.mubr.f32.gmra.mxu0 %v5956_v58  ;;  %v14424_v36 = vld [vmem:[#allocation8 + $0x458] sm:$0xff] }
 0x49f   : > { %10039 = vmatprep.mubr.f32.mxu1 %v4364_v13  ;;  %10377 = vmatprep.mubr.f32.mxu0 %v5957_v9  ;;  %v6612_v13 = vld [vmem:[#allocation2 + $0x6d] sm:$0xff] }
 0x4a0   : > { %10080 = vmatprep.subr.mxu1 %v4972_v4  ;;  %10505 = vmatpush3.msra.mxu0 %v6645_v46  ;;  %v6611_v46 = vld [vmem:[#allocation2 + $0x65] sm:$0xff] }
 0x4a1   : > { %10081 = vmatpush3.msra.mxu1 %v4972_v4  ;;  %10506 = vmatprep.subr.mxu0 %v6644_v40  ;;  %v4946_v4 = vld [vmem:[#allocation2 + $0x6a] sm:$0xff] }
 0x4a2   : > { %10040 = vmatmul.mubr.f32.gmra.mxu1 %v4365_v14  ;;  %10378 = vmatmul.mubr.f32.gmra.mxu0 %v5958_v55  ;;  %v14412_v10 = vpop.f32.mrf.mxu1  ;;  %v5646_v9 = vld [vmem:[#allocation8 + $0x240] sm:$0xff]  ;;  %v4947_v14 = vld [vmem:[#allocation2 + $0x72] sm:$0xff] }
 0x4a3   : > { %10042 = vmatprep.mubr.f32.mxu1 %v4366_v52  ;;  %10380 = vmatprep.mubr.f32.mxu0 %v5959_v26  ;;  %v6613_v55 = vld [vmem:[#allocation2 + $0x75] sm:$0xff] }
 0x4a4   : > { %10082 = vmatprep.subr.mxu1 %v4971_v45  ;;  %10507 = vmatpush3.msra.mxu0 %v6644_v40  ;;  %v14418_v31 = vpop.f32.mrf.mxu1 }
 0x4a5   : > { %10083 = vmatpush3.msra.mxu1 %v4971_v45  ;;  %10508 = vmatprep.subr.mxu0 %v6643_v0  ;;  %v14432_v45 = vld [vmem:[#allocation8 + $0x450] sm:$0xff] }
 0x4a6   : > { %10043 = vmatmul.mubr.f32.gmra.mxu1 %v4367_v59  ;;  %10381 = vmatmul.mubr.f32.gmra.mxu0 %v5960_v27  ;;  %v6614_v59 = vld [vmem:[#allocation2 + $0x7d] sm:$0xff] }
 0x4a7   : > { %10769 = vmatprep.mubr.msk.f32.mxu1 %vm14112_vm15, %v3588_v28  ;;  %10383 = vmatprep.mubr.f32.mxu0 %v5961_v63  ;;  %v6640_v28 = vld [vmem:[#allocation8 + $0x380] sm:$0xff]  ;;  %vm15702_vm15 = vnez %v15681_v5  ;;  %v5645_v27 = vld [vmem:[#allocation8 + $0x238] sm:$0xff] }
 0x4a8   : > { %10084 = vmatprep.subr.mxu1 %v4970_v33  ;;  %10509 = vmatpush3.msra.mxu0 %v6643_v0  ;;  %v5970_v5 = vld [vmem:[#allocation2 + $0x12c] sm:$0xff]  ;;  %v4948_v0 = vld [vmem:[#allocation2 + $0x7a] sm:$0xff]  ;;  %v4949_v63 = vld [vmem:[#allocation2 + $0x82] sm:$0xff] }
 0x4a9   : > { %10085 = vmatpush3.msra.mxu1 %v4970_v33  ;;  %10510 = vmatprep.subr.mxu0 %v6642_v21 }
 0x4aa   : > { %10770 = vmatmul.mubr.msk.f32.gmra.mxu1 %vm14158_vm6, %v3589_v39  ;;  %10384 = vmatmul.mubr.f32.gmra.mxu0 %v5962_v3  ;;  %vm15703_vm6 = vnez %v15688_v62  ;;  %v5967_v39 = vld [vmem:[#allocation2 + $0x114] sm:$0xff]  ;;  %v6603_v62 = vld [vmem:[#allocation2 + $0x25] sm:$0xff]  ;;  %v14422_v15 = vpop.f32.mrf.mxu1 }
 0x4ab   : > { %10771 = vmatprep.mubr.msk.f32.mxu1 %vm14205_vm13, %v3590_v1  ;;  %10386 = vmatprep.mubr.f32.mxu0 %v5963_v37  ;;  %v5968_v1 = vld [vmem:[#allocation2 + $0x11c] sm:$0xff]  ;;  %v14426_v58 = vpop.f32.mrf.mxu0  ;;  %v14442_v3 = vld [vmem:[#allocation8 + $0x448] sm:$0xff] }
 0x4ac   : > { %10226 = vmatprep.subr.mxu1 %v5653_v23  ;;  %10511 = vmatpush3.msra.mxu0 %v6642_v21  ;;  %15704 = vst [vmem:[#allocation13_spill] sm:$0xff] %v14426_v58  ;;  %v14430_v40 = vpop.f32.mrf.mxu1  ;;  %v6615_v21 = vld [vmem:[#allocation2 + $0x85] sm:$0xff]  ;;  %v5630_v58 = vld [vmem:[#allocation2 + $0xfb] sm:$0xff] }
 0x4ad   : > { %10512 = vmatprep.subr.mxu0 %v6641_v25  ;;  %v14434_v52 = vpop.f32.mrf.mxu0  ;;  %v4950_v37 = vld [vmem:[#allocation2 + $0x8a] sm:$0xff] }
 0x4ae   : > { %10772 = vmatmul.mubr.msk.f32.gmra.mxu1 %vm14248_vm5, %v3591_v29  ;;  %10387 = vmatmul.mubr.f32.gmra.mxu0 %v5964_v6  ;;  %v5969_v29 = vld [vmem:[#allocation2 + $0x124] sm:$0xff]  ;;  %15705 = vst [vmem:[#allocation14_spill] sm:$0xff] %v14434_v52  ;;  %v5644_v6 = vld [vmem:[#allocation8 + $0x230] sm:$0xff] }
 0x4af   : > { %10773 = vmatprep.mubr.msk.f32.mxu1 %vm15702_vm15, %v3592_v61  ;;  %10389 = vmatprep.mubr.f32.mxu0 %v5965_v41  ;;  %v5651_v61 = vld [vmem:[#allocation8 + $0x268] sm:$0xff] }
 0x4b0   : > { %10513 = vmatpush3.msra.mxu0 %v6641_v25  ;;  %v6616_v25 = vld [vmem:[#allocation2 + $0x8d] sm:$0xff] }
 0x4b1   : > { %10514 = vmatprep.subr.mxu0 %v6640_v28 }
 0x4b2   : > { %10774 = vmatmul.mubr.msk.f32.gmra.mxu1 %vm15703_vm6, %v3593_v22  ;;  %10390 = vmatmul.mubr.f32.gmra.mxu0 %v5966_v11  ;;  %v4938_v22 = vld [vmem:[#allocation2 + $0x2a] sm:$0xff]  ;;  %v14436_v26 = vpop.f32.mrf.mxu1  ;;  %v4951_v11 = vld [vmem:[#allocation2 + $0x92] sm:$0xff] }
 0x4b3   : > { %10086 = vmatprep.mubr.f32.mxu1 %v4933_v18  ;;  %10392 = vmatprep.mubr.f32.mxu0 %v5967_v39  ;;  %v14440_v33 = vpop.f32.mrf.mxu0  ;;  %v6617_v18 = vld [vmem:[#allocation2 + $0x95] sm:$0xff]  ;;  %v14452_v39 = vld [vmem:[#allocation8 + $0x440] sm:$0xff] }
 0x4b4   : > { %10515 = vmatpush3.msra.mxu0 %v6640_v28  ;;  %15706 = vst [vmem:[#allocation15_spill] sm:$0xff] %v14440_v33 }
 0x4b5   : > { %10570 = vmatprep.subr.mxu0 %v14403_v49  ;;  %v14448_v41 = vpop.f32.mrf.mxu0 }
 0x4b6   : > { %10087 = vmatmul.mubr.f32.vlgmr.msra.gmra.mxu1 %v4934_v7  ;;  %10393 = vmatmul.mubr.f32.gmra.mxu0 %v5968_v1  ;;  %15707 = vst [vmem:[#allocation16_spill] sm:$0xff] %v14448_v41  ;;  %v4952_v1 = vld [vmem:[#allocation2 + $0x9a] sm:$0xff] }
 0x4b7   : > { %10089 = vmatprep.mubr.f32.mxu1 %v4935_v20  ;;  %10227 = vmatpush3.msra.mxu1 %v5653_v23  ;;  %v14444_v23 = vpop.f32.mrf.mxu1  ;;  %v5643_v20 = vld [vmem:[#allocation8 + $0x228] sm:$0xff] }
 0x4b8   : > { %10395 = vmatprep.mubr.f32.mxu0 %v5969_v29  ;;  %10228 = vmatprep.subr.mxu1 %v5652_v30 }
 0x4b9   : > { %10229 = vmatpush3.msra.mxu1 %v5652_v30  ;;  %v6618_v30 = vld [vmem:[#allocation2 + $0x9d] sm:$0xff] }
 0x4ba   : > { %10090 = vmatmul.mubr.f32.gmra.mxu1 %v4936_v51  ;;  %10396 = vmatmul.mubr.f32.gmra.mxu0 %v5970_v5  ;;  %v14450_v28 = vpop.f32.mrf.mxu1  ;;  %v4953_v51 = vld [vmem:[#allocation2 + $0xa2] sm:$0xff] }
 0x4bb   : > { %10092 = vmatprep.mubr.f32.mxu1 %v4937_v24  ;;  %10516 = vmatprep.mubr.f32.mxu0 %v6603_v62  ;;  %v14454_v7 = vpop.f32.mrf.mxu0  ;;  %v6619_v5 = vld [vmem:[#allocation2 + $0xa5] sm:$0xff] }
 0x4bc   : > { %10230 = vmatprep.subr.mxu1 %v5651_v61  ;;  %15708 = vst [vmem:[#allocation17_spill] sm:$0xff] %v14454_v7  ;;  %v14458_v29 = vpop.f32.mrf.mxu1 }
 0x4bd   : > { %10231 = vmatpush3.msra.mxu1 %v5651_v61  ;;  %v14460_v61 = vld [vmem:[#allocation8 + $0x438] sm:$0xff]  ;;  %v14462_v24 = vpop.f32.mrf.mxu0 }
 0x4be   : > { %10093 = vmatmul.mubr.f32.gmra.mxu1 %v4938_v22  ;;  %10517 = vmatmul.mubr.f32.vlgmr.msra.gmra.mxu0 %v6604_v50  ;;  %15709 = vst [vmem:[#allocation18_spill] sm:$0xff] %v14462_v24  ;;  %v4954_v22 = vld [vmem:[#allocation2 + $0xaa] sm:$0xff] }
 0x4bf   : > { %10095 = vmatprep.mubr.f32.mxu1 %v4939_v47  ;;  %10519 = vmatprep.mubr.f32.mxu0 %v6605_v35  ;;  %v6620_v50 = vld [vmem:[#allocation2 + $0xad] sm:$0xff] }
 0x4c0   : > { %10232 = vmatprep.subr.mxu1 %v5650_v34  ;;  %10571 = vmatpush3.msra.mxu0 %v14403_v49  ;;  %v4955_v35 = vld [vmem:[#allocation2 + $0xb2] sm:$0xff] }
 0x4c1   : > { %10233 = vmatpush3.msra.mxu1 %v5650_v34  ;;  %10572 = vmatprep.subr.mxu0 %v14406_v42  ;;  %v5642_v34 = vld [vmem:[#allocation8 + $0x220] sm:$0xff] }
 0x4c2   : > { %10096 = vmatmul.mubr.f32.gmra.mxu1 %v4940_v38  ;;  %10520 = vmatmul.mubr.f32.gmra.mxu0 %v6606_v48  ;;  %v14464_v62 = vpop.f32.mrf.mxu1  ;;  %v6621_v38 = vld [vmem:[#allocation2 + $0xb5] sm:$0xff] }
 0x4c3   : > { %10098 = vmatprep.mubr.f32.mxu1 %v4941_v44  ;;  %10522 = vmatprep.mubr.f32.mxu0 %v6607_v32  ;;  %v14468_v47 = vpop.f32.mrf.mxu0  ;;  %v14470_v48 = vld [vmem:[#allocation8 + $0x430] sm:$0xff] }
 0x4c4   : > { %10234 = vmatprep.subr.mxu1 %v5649_v53  ;;  %10573 = vmatpush3.msra.mxu0 %v14406_v42  ;;  %15710 = vst [vmem:[#allocation19_spill] sm:$0xff] %v14468_v47  ;;  %v4956_v44 = vld [vmem:[#allocation2 + $0xba] sm:$0xff] }
 0x4c5   : > { %10235 = vmatpush3.msra.mxu1 %v5649_v53  ;;  %10574 = vmatprep.subr.mxu0 %v14410_v17  ;;  %v14472_v53 = vpop.f32.mrf.mxu1  ;;  %v6622_v32 = vld [vmem:[#allocation2 + $0xbd] sm:$0xff] }
 0x4c6   : > { %10099 = vmatmul.mubr.f32.gmra.mxu1 %v4942_v54  ;;  %10523 = vmatmul.mubr.f32.gmra.mxu0 %v6608_v8  ;;  %v5641_v54 = vld [vmem:[#allocation8 + $0x218] sm:$0xff]  ;;  %v14476_v8 = vpop.f32.mrf.mxu0 }
 0x4c7   : > { %10101 = vmatprep.mubr.f32.mxu1 %v4943_v60  ;;  %10525 = vmatprep.mubr.f32.mxu0 %v6609_v12  ;;  %15711 = vst [vmem:[#allocation20_spill] sm:$0xff] %v14476_v8  ;;  %v4957_v60 = vld [vmem:[#allocation2 + $0xc2] sm:$0xff] }
 0x4c8   : > { %10236 = vmatprep.subr.mxu1 %v5648_v16  ;;  %10575 = vmatpush3.msra.mxu0 %v14410_v17  ;;  %v6623_v12 = vld [vmem:[#allocation2 + $0xc5] sm:$0xff] }
 0x4c9   : > { %10237 = vmatpush3.msra.mxu1 %v5648_v16  ;;  %10576 = vmatprep.subr.mxu0 %v14416_v57 }
 0x4ca   : > { %10102 = vmatmul.mubr.f32.gmra.mxu1 %v4944_v43  ;;  %10526 = vmatmul.mubr.f32.gmra.mxu0 %v6610_v56  ;;  %v14478_v16 = vpop.f32.mrf.mxu1  ;;  %v14480_v43 = vld [vmem:[#allocation8 + $0x428] sm:$0xff] }
 0x4cb   : > { %10104 = vmatprep.mubr.f32.mxu1 %v4945_v2  ;;  %10528 = vmatprep.mubr.f32.mxu0 %v6611_v46  ;;  %v14482_v56 = vpop.f32.mrf.mxu0  ;;  %v6624_v2 = vld [vmem:[#allocation2 + $0xcd] sm:$0xff]  ;;  %v5640_v46 = vld [vmem:[#allocation8 + $0x210] sm:$0xff] }
 0x4cc   : > { %10238 = vmatprep.subr.mxu1 %v5647_v19  ;;  %10577 = vmatpush3.msra.mxu0 %v14416_v57  ;;  %15712 = vst [vmem:[#allocation21_spill] sm:$0xff] %v14482_v56 }
 0x4cd   : > { %10239 = vmatpush3.msra.mxu1 %v5647_v19  ;;  %10578 = vmatprep.subr.mxu0 %v14424_v36  ;;  %v4958_v19 = vld [vmem:[#allocation2 + $0xca] sm:$0xff] }
 0x4ce   : > { %10105 = vmatmul.mubr.f32.gmra.mxu1 %v4946_v4  ;;  %10529 = vmatmul.mubr.f32.gmra.mxu0 %v6612_v13  ;;  %v14486_v4 = vpop.f32.mrf.mxu1  ;;  %v4959_v13 = vld [vmem:[#allocation2 + $0xd2] sm:$0xff] }
 0x4cf   : > { %10107 = vmatprep.mubr.f32.mxu1 %v4947_v14  ;;  %10531 = vmatprep.mubr.f32.mxu0 %v6613_v55  ;;  %v14488_v14 = vld [vmem:[#allocation8 + $0x420] sm:$0xff]  ;;  %v14490_v55 = vpop.f32.mrf.mxu0 }
 0x4d0   : > { %10240 = vmatprep.subr.mxu1 %v5646_v9  ;;  %10579 = vmatpush3.msra.mxu0 %v14424_v36  ;;  %15713 = vst [vmem:[#allocation22_spill] sm:$0xff] %v14490_v55 }
 0x4d1   : > { %10241 = vmatpush3.msra.mxu1 %v5646_v9  ;;  %10580 = vmatprep.subr.mxu0 %v14432_v45  ;;  %v6625_v9 = vld [vmem:[#allocation2 + $0xd5] sm:$0xff] }
 0x4d2   : > { %10108 = vmatmul.mubr.f32.gmra.mxu1 %v4948_v0  ;;  %10532 = vmatmul.mubr.f32.gmra.mxu0 %v6614_v59  ;;  %v14492_v0 = vpop.f32.mrf.mxu1  ;;  %v4960_v59 = vld [vmem:[#allocation2 + $0xda] sm:$0xff] }
 0x4d3   : > { %10110 = vmatprep.mubr.f32.mxu1 %v4949_v63  ;;  %10534 = vmatprep.mubr.f32.mxu0 %v6615_v21  ;;  %v5639_v63 = vld [vmem:[#allocation8 + $0x208] sm:$0xff]  ;;  %v14496_v21 = vpop.f32.mrf.mxu0 }
 0x4d4   : > { %10242 = vmatprep.subr.mxu1 %v5645_v27  ;;  %10581 = vmatpush3.msra.mxu0 %v14432_v45  ;;  %15714 = vst [vmem:[#allocation23_spill] sm:$0xff] %v14496_v21 }
 0x4d5   : > { %10243 = vmatpush3.msra.mxu1 %v5645_v27  ;;  %10582 = vmatprep.subr.mxu0 %v14442_v3  ;;  %v6626_v27 = vld [vmem:[#allocation2 + $0xdd] sm:$0xff] }
 0x4d6   : > { %10111 = vmatmul.mubr.f32.gmra.mxu1 %v4950_v37  ;;  %10535 = vmatmul.mubr.f32.gmra.mxu0 %v6616_v25  ;;  %v4961_v37 = vld [vmem:[#allocation2 + $0xe2] sm:$0xff] }
 0x4d7   : > { %10113 = vmatprep.mubr.f32.mxu1 %v4951_v11  ;;  %10537 = vmatprep.mubr.f32.mxu0 %v6617_v18  ;;  %v6627_v25 = vld [vmem:[#allocation2 + $0xe5] sm:$0xff]  ;;  %v14500_v11 = vpop.f32.mrf.mxu1 }
 0x4d8   : > { %10244 = vmatprep.subr.mxu1 %v5644_v6  ;;  %10583 = vmatpush3.msra.mxu0 %v14442_v3  ;;  %v4962_v18 = vld [vmem:[#allocation2 + $0xea] sm:$0xff] }
 0x4d9   : > { %10245 = vmatpush3.msra.mxu1 %v5644_v6  ;;  %10584 = vmatprep.subr.mxu0 %v14452_v39  ;;  %v14498_v6 = vld [vmem:[#allocation8 + $0x418] sm:$0xff] }
 0x4da   : > { %10114 = vmatmul.mubr.f32.gmra.mxu1 %v4952_v1  ;;  %10538 = vmatmul.mubr.f32.gmra.mxu0 %v6618_v30  ;;  %v6628_v1 = vld [vmem:[#allocation2 + $0xed] sm:$0xff] }
 0x4db   : > { %10116 = vmatprep.mubr.f32.mxu1 %v4953_v51  ;;  %10540 = vmatprep.mubr.f32.mxu0 %v6619_v5  ;;  %v5638_v30 = vld [vmem:[#allocation8 + $0x200] sm:$0xff]  ;;  %v14506_v51 = vpop.f32.mrf.mxu1  ;;  %v4963_v5 = vld [vmem:[#allocation2 + $0xf2] sm:$0xff] }
 0x4dc   : > { %10246 = vmatprep.subr.mxu1 %v5643_v20  ;;  %10585 = vmatpush3.msra.mxu0 %v14452_v39 }
 0x4dd   : > { %10247 = vmatpush3.msra.mxu1 %v5643_v20  ;;  %10586 = vmatprep.subr.mxu0 %v14460_v61  ;;  %v14504_v20 = vpop.f32.mrf.mxu0 }
 0x4de   : > { %10117 = vmatmul.mubr.f32.gmra.mxu1 %v4954_v22  ;;  %10541 = vmatmul.mubr.f32.gmra.mxu0 %v6620_v50  ;;  %15715 = vst [vmem:[#allocation24_spill] sm:$0xff] %v14504_v20  ;;  %v6629_v22 = vld [vmem:[#allocation2 + $0xf5] sm:$0xff] }
 0x4df   : > { %10119 = vmatprep.mubr.f32.mxu1 %v4955_v35  ;;  %10543 = vmatprep.mubr.f32.mxu0 %v6621_v38  ;;  %v14508_v50 = vld [vmem:[#allocation8 + $0x410] sm:$0xff] }
 0x4e0   : > { %10248 = vmatprep.subr.mxu1 %v5642_v34  ;;  %10587 = vmatpush3.msra.mxu0 %v14460_v61  ;;  %v4964_v35 = vld [vmem:[#allocation2 + $0xfa] sm:$0xff] }
 0x4e1   : > { %10249 = vmatpush3.msra.mxu1 %v5642_v34  ;;  %10588 = vmatprep.subr.mxu0 %v14470_v48  ;;  %v14510_v34 = vpop.f32.mrf.mxu0  ;;  %v6630_v38 = vld [vmem:[#allocation2 + $0xfd] sm:$0xff] }
 0x4e2   : > { %10120 = vmatmul.mubr.f32.gmra.mxu1 %v4956_v44  ;;  %10544 = vmatmul.mubr.f32.gmra.mxu0 %v6622_v32  ;;  %15716 = vst [vmem:[#allocation25_spill] sm:$0xff] %v14510_v34  ;;  %v6321_v44 = vld [vmem:[#allocation8 + $0x378] sm:$0xff]  ;;  %v14514_v32 = vpop.f32.mrf.mxu1 }
 0x4e3   : > { %10122 = vmatprep.mubr.f32.mxu1 %v4957_v60  ;;  %10546 = vmatprep.mubr.f32.mxu0 %v6623_v12  ;;  %v6631_v60 = vld [vmem:[#allocation2 + $0x105] sm:$0xff]  ;;  %v14516_v12 = vld [vmem:[#allocation8 + $0x408] sm:$0xff] }
 0x4e4   : > { %10250 = vmatprep.subr.mxu1 %v5641_v54  ;;  %10589 = vmatpush3.msra.mxu0 %v14470_v48 }
 0x4e5   : > { %10251 = vmatpush3.msra.mxu1 %v5641_v54  ;;  %10590 = vmatprep.subr.mxu0 %v14480_v43  ;;  %v4965_v54 = vld [vmem:[#allocation2 + $0x102] sm:$0xff] }
 0x4e6   : > { %10123 = vmatmul.mubr.f32.gmra.mxu1 %v4958_v19  ;;  %10547 = vmatmul.mubr.f32.gmra.mxu0 %v6624_v2  ;;  %v14518_v19 = vpop.f32.mrf.mxu0  ;;  %v14520_v2 = vpop.f32.mrf.mxu1 }
 0x4e7   : > { %10125 = vmatprep.mubr.f32.mxu1 %v4959_v13  ;;  %10549 = vmatprep.mubr.f32.mxu0 %v6625_v9  ;;  %15717 = vst [vmem:[#allocation26_spill] sm:$0xff] %v14518_v19  ;;  %v6632_v13 = vld [vmem:[#allocation2 + $0x10d] sm:$0xff] }
 0x4e8   : > { %10252 = vmatprep.subr.mxu1 %v5640_v46  ;;  %10591 = vmatpush3.msra.mxu0 %v14480_v43  ;;  %v14524_v9 = vpop.f32.mrf.mxu0 }
 0x4e9   : > { %10253 = vmatpush3.msra.mxu1 %v5640_v46  ;;  %10592 = vmatprep.subr.mxu0 %v14488_v14  ;;  %v4966_v46 = vld [vmem:[#allocation2 + $0x10a] sm:$0xff]  ;;  %15718 = vst [vmem:[#allocation27_spill] sm:$0xff] %v14524_v9 }
 0x4ea   : > { %10126 = vmatmul.mubr.f32.gmra.mxu1 %v4960_v59  ;;  %10550 = vmatmul.mubr.f32.gmra.mxu0 %v6626_v27  ;;  %v4967_v59 = vld [vmem:[#allocation2 + $0x112] sm:$0xff] }
 0x4eb   : > { %10128 = vmatprep.mubr.f32.mxu1 %v4961_v37  ;;  %10552 = vmatprep.mubr.f32.mxu0 %v6627_v25  ;;  %v6633_v27 = vld [vmem:[#allocation2 + $0x115] sm:$0xff]  ;;  %v14528_v37 = vpop.f32.mrf.mxu1 }
 0x4ec   : > { %10254 = vmatprep.subr.mxu1 %v5639_v63  ;;  %10593 = vmatpush3.msra.mxu0 %v14488_v14  ;;  %v4968_v25 = vld [vmem:[#allocation2 + $0x11a] sm:$0xff] }
 0x4ed   : > { %10255 = vmatpush3.msra.mxu1 %v5639_v63  ;;  %10594 = vmatprep.subr.mxu0 %v14498_v6  ;;  %v14526_v63 = vld [vmem:[#allocation8 + $0x400] sm:$0xff] }
 0x4ee   : > { %10129 = vmatmul.mubr.f32.gmra.mxu1 %v4962_v18  ;;  %10553 = vmatmul.mubr.f32.gmra.mxu0 %v6628_v1  ;;  %v6634_v18 = vld [vmem:[#allocation2 + $0x11d] sm:$0xff]  ;;  %v14532_v1 = vpop.f32.mrf.mxu0 }
 0x4ef   : > { %10131 = vmatprep.mubr.f32.mxu1 %v4963_v5  ;;  %10555 = vmatprep.mubr.f32.mxu0 %v6629_v22  ;;  %15719 = vst [vmem:[#allocation28_spill] sm:$0xff] %v14532_v1  ;;  %v5601_v5 = vld [vmem:[#allocation2 + $0x13] sm:$0xff]  ;;  %v6635_v22 = vld [vmem:[#allocation2 + $0x125] sm:$0xff] }
 0x4f0   : > { %10256 = vmatprep.subr.mxu1 %v5638_v30  ;;  %10595 = vmatpush3.msra.mxu0 %v14498_v6 }
 0x4f1   : > { %10257 = vmatpush3.msra.mxu1 %v5638_v30  ;;  %10596 = vmatprep.subr.mxu0 %v14508_v50  ;;  %v14534_v30 = vpop.f32.mrf.mxu1 }
 0x4f2   : > { %10132 = vmatmul.mubr.f32.gmra.mxu1 %v4964_v35  ;;  %10556 = vmatmul.mubr.f32.gmra.mxu0 %v6630_v38  ;;  %v14536_v35 = vpop.f32.mrf.mxu0  ;;  %v5602_v38 = vld [vmem:[#allocation2 + $0x1b] sm:$0xff] }
 0x4f3   : > { %10134 = vmatprep.mubr.f32.mxu1 %v4965_v54  ;;  %10558 = vmatprep.mubr.f32.mxu0 %v6631_v60  ;;  %15720 = vst [vmem:[#allocation29_spill] sm:$0xff] %v14536_v35  ;;  %v6636_v54 = vld [vmem:[#allocation2 + $0x12d] sm:$0xff]  ;;  %v6320_v60 = vld [vmem:[#allocation8 + $0x370] sm:$0xff] }
 0x4f4   : > { %10398 = vmatprep.subr.mxu1 %v6321_v44  ;;  %10597 = vmatpush3.msra.mxu0 %v14508_v50 }
 0x4f5   : > { %10598 = vmatprep.subr.mxu0 %v14516_v12 }
 0x4f6   : > { %10135 = vmatmul.mubr.f32.gmra.mxu1 %v4966_v46  ;;  %10559 = vmatmul.mubr.f32.gmra.mxu0 %v6632_v13  ;;  %v14539_v46 = vpop.f32.mrf.mxu1  ;;  %v5603_v13 = vld [vmem:[#allocation2 + $0x23] sm:$0xff] }
 0x4f7   : > { %10137 = vmatprep.mubr.f32.mxu1 %v4967_v59  ;;  %10561 = vmatprep.mubr.f32.mxu0 %v6633_v27  ;;  %v6637_v59 = vld [vmem:[#allocation2 + $0x135] sm:$0xff]  ;;  %v14541_v27 = vpop.f32.mrf.mxu0 }
 0x4f8   : > { %10599 = vmatpush3.msra.mxu0 %v14516_v12  ;;  %15721 = vst [vmem:[#allocation30_spill] sm:$0xff] %v14541_v27  ;;  %v6938_v27 = vld [vmem:[#allocation2 + $0x2e] sm:$0xff] }
 0x4f9   : > { %10600 = vmatprep.subr.mxu0 %v14526_v63  ;;  %v14545_v35 = vpop.f32.mrf.mxu0 }
 0x4fa   : > { %10138 = vmatmul.mubr.f32.gmra.mxu1 %v4968_v25  ;;  %10562 = vmatmul.mubr.f32.gmra.mxu0 %v6634_v18  ;;  %v14543_v25 = vpop.f32.mrf.mxu1  ;;  %v5604_v18 = vld [vmem:[#allocation2 + $0x2b] sm:$0xff]  ;;  %15722 = vst [vmem:[#allocation31_spill] sm:$0xff] %v14545_v35  ;;  %v6317_v35 = vld [vmem:[#allocation8 + $0x358] sm:$0xff] }
 0x4fb   : > { %10258 = vmatprep.mubr.f32.mxu1 %v5601_v5  ;;  %10564 = vmatprep.mubr.f32.mxu0 %v6635_v22  ;;  %v6638_v5 = vld [vmem:[#allocation2 + $0x13d] sm:$0xff]  ;;  %v6319_v22 = vld [vmem:[#allocation8 + $0x368] sm:$0xff]  ;;  %v14549_v1 = vpop.f32.mrf.mxu0 }
 0x4fc   : > { %10601 = vmatpush3.msra.mxu0 %v14526_v63  ;;  %15723 = vst [vmem:[#allocation32_spill] sm:$0xff] %v14549_v1  ;;  %v6941_v1 = vld [vmem:[#allocation2 + $0x46] sm:$0xff] }
 0x4fe   : > { %10259 = vmatmul.mubr.f32.vlgmr.msra.gmra.mxu1 %v5602_v38  ;;  %10565 = vmatmul.mubr.f32.gmra.mxu0 %v6636_v54  ;;  %v5605_v38 = vld [vmem:[#allocation2 + $0x33] sm:$0xff]  ;;  %v6937_v54 = vld [vmem:[#allocation2 + $0x26] sm:$0xff] }
 0x4ff   : > { %10261 = vmatprep.mubr.f32.mxu1 %v5603_v13  ;;  %10399 = vmatpush3.msra.mxu1 %v6321_v44  ;;  %v14547_v44 = vpop.f32.mrf.mxu1  ;;  %v5606_v13 = vld [vmem:[#allocation2 + $0x3b] sm:$0xff] }
 0x500   : > { %10567 = vmatprep.mubr.f32.mxu0 %v6637_v59  ;;  %10400 = vmatprep.subr.mxu1 %v6320_v60  ;;  %v6318_v59 = vld [vmem:[#allocation8 + $0x360] sm:$0xff] }
 0x501   : > { %10401 = vmatpush3.msra.mxu1 %v6320_v60  ;;  %v14551_v9 = vpop.f32.mrf.mxu1  ;;  %v5607_v60 = vld [vmem:[#allocation2 + $0x43] sm:$0xff] }
 0x502   : > { %10262 = vmatmul.mubr.f32.gmra.mxu1 %v5604_v18  ;;  %10568 = vmatmul.mubr.f32.gmra.mxu0 %v6638_v5  ;;  %v6939_v18 = vld [vmem:[#allocation2 + $0x36] sm:$0xff]  ;;  %v14553_v5 = vpop.f32.mrf.mxu0 }
 0x503   : > { %10264 = vmatprep.mubr.f32.mxu1 %v5605_v38  ;;  %10602 = vmatprep.mubr.f32.mxu0 %v6937_v54  ;;  %15724 = vst [vmem:[#allocation33_spill] sm:$0xff] %v14553_v5  ;;  %v5608_v38 = vld [vmem:[#allocation2 + $0x4b] sm:$0xff]  ;;  %v6940_v54 = vld [vmem:[#allocation2 + $0x3e] sm:$0xff]  ;;  %v14555_v19 = vpop.f32.mrf.mxu1 }
 0x504   : > { %10402 = vmatprep.subr.mxu1 %v6319_v22  ;;  %v6316_v5 = vld [vmem:[#allocation8 + $0x350] sm:$0xff] }
 0x505   : > { %10403 = vmatpush3.msra.mxu1 %v6319_v22  ;;  %v5609_v22 = vld [vmem:[#allocation2 + $0x53] sm:$0xff] }
 0x506   : > { %10265 = vmatmul.mubr.f32.gmra.mxu1 %v5606_v13  ;;  %10603 = vmatmul.mubr.f32.vlgmr.msra.gmra.mxu0 %v6938_v27  ;;  %v14557_v27 = vpop.f32.mrf.mxu0  ;;  %v14559_v13 = vpop.f32.mrf.mxu1 }
 0x507   : > { %10267 = vmatprep.mubr.f32.mxu1 %v5607_v60  ;;  %10605 = vmatprep.mubr.f32.mxu0 %v6939_v18  ;;  %15725 = vst [vmem:[#allocation34_spill] sm:$0xff] %v14557_v27  ;;  %v5610_v60 = vld [vmem:[#allocation2 + $0x5b] sm:$0xff]  ;;  %v6942_v18 = vld [vmem:[#allocation2 + $0x4e] sm:$0xff] }
 0x508   : > { %10404 = vmatprep.subr.mxu1 %v6318_v59  ;;  %v14561_v34 = vpop.f32.mrf.mxu0  ;;  %v6315_v27 = vld [vmem:[#allocation8 + $0x348] sm:$0xff] }
 0x509   : > { %10405 = vmatpush3.msra.mxu1 %v6318_v59  ;;  %15726 = vst [vmem:[#allocation35_spill] sm:$0xff] %v14561_v34  ;;  %v5611_v59 = vld [vmem:[#allocation2 + $0x63] sm:$0xff] }
 0x50a   : > { %10268 = vmatmul.mubr.f32.gmra.mxu1 %v5608_v38  ;;  %10606 = vmatmul.mubr.f32.gmra.mxu0 %v6940_v54  ;;  %v6943_v38 = vld [vmem:[#allocation2 + $0x56] sm:$0xff]  ;;  %v14563_v54 = vpop.f32.mrf.mxu1  ;;  %v14565_v20 = vpop.f32.mrf.mxu0  ;;  %v6314_v34 = vld [vmem:[#allocation8 + $0x340] sm:$0xff] }
 0x50b   : > { %10270 = vmatprep.mubr.f32.mxu1 %v5609_v22  ;;  %10608 = vmatprep.mubr.f32.mxu0 %v6941_v1  ;;  %v5612_v1 = vld [vmem:[#allocation2 + $0x6b] sm:$0xff]  ;;  %v6944_v22 = vld [vmem:[#allocation2 + $0x5e] sm:$0xff]  ;;  %15727 = vst [vmem:[#allocation36_spill] sm:$0xff] %v14565_v20  ;;  %v6947_v20 = vld [vmem:[#allocation2 + $0x76] sm:$0xff] }
 0x50c   : > { %10406 = vmatprep.subr.mxu1 %v6317_v35  ;;  %v14567_v21 = vpop.f32.mrf.mxu1 }
 0x50d   : > { %10407 = vmatpush3.msra.mxu1 %v6317_v35  ;;  %15728 = vst [vmem:[#allocation37_spill] sm:$0xff] %v14567_v21  ;;  %v5613_v35 = vld [vmem:[#allocation2 + $0x73] sm:$0xff] }
 0x50e   : > { %10271 = vmatmul.mubr.f32.gmra.mxu1 %v5610_v60  ;;  %10609 = vmatmul.mubr.f32.gmra.mxu0 %v6942_v18  ;;  %v6945_v60 = vld [vmem:[#allocation2 + $0x66] sm:$0xff]  ;;  %v14569_v18 = vpop.f32.mrf.mxu0  ;;  %v14571_v55 = vpop.f32.mrf.mxu1 }
 0x50f   : > { %10273 = vmatprep.mubr.f32.mxu1 %v5611_v59  ;;  %10611 = vmatprep.mubr.f32.mxu0 %v6943_v38  ;;  %15729 = vst [vmem:[#allocation38_spill] sm:$0xff] %v14569_v18  ;;  %v5614_v59 = vld [vmem:[#allocation2 + $0x7b] sm:$0xff]  ;;  %v6946_v38 = vld [vmem:[#allocation2 + $0x6e] sm:$0xff]  ;;  %15730 = vst [vmem:[#allocation39_spill] sm:$0xff] %v14571_v55 }
 0x510   : > { %10408 = vmatprep.subr.mxu1 %v6316_v5  ;;  %v6948_v18 = vld [vmem:[#allocation2 + $0x7e] sm:$0xff]  ;;  %v6271_v55 = vld [vmem:[#allocation2 + $0x34] sm:$0xff] }
 0x511   : > { %10409 = vmatpush3.msra.mxu1 %v6316_v5  ;;  %v5615_v5 = vld [vmem:[#allocation2 + $0x83] sm:$0xff] }
 0x512   : > { %10274 = vmatmul.mubr.f32.gmra.mxu1 %v5612_v1  ;;  %10612 = vmatmul.mubr.f32.gmra.mxu0 %v6944_v22  ;;  %v14573_v1 = vpop.f32.mrf.mxu0  ;;  %v14575_v22 = vpop.f32.mrf.mxu1 }
 0x513   : > { %10276 = vmatprep.mubr.f32.mxu1 %v5613_v35  ;;  %10614 = vmatprep.mubr.f32.mxu0 %v6945_v60  ;;  %15731 = vst [vmem:[#allocation40_spill] sm:$0xff] %v14573_v1  ;;  %15732 = vst [vmem:[#allocation41_spill] sm:$0xff] %v14575_v22  ;;  %v6313_v35 = vld [vmem:[#allocation8 + $0x338] sm:$0xff]  ;;  %v5616_v60 = vld [vmem:[#allocation2 + $0x8b] sm:$0xff] }
 0x514   : > { %10410 = vmatprep.subr.mxu1 %v6315_v27  ;;  %v14577_v56 = vpop.f32.mrf.mxu0 }
 0x515   : > { %10411 = vmatpush3.msra.mxu1 %v6315_v27  ;;  %15733 = vst [vmem:[#allocation42_spill] sm:$0xff] %v14577_v56  ;;  %v5617_v27 = vld [vmem:[#allocation2 + $0x93] sm:$0xff]  ;;  %v6309_v56 = vld [vmem:[#allocation8 + $0x318] sm:$0xff] }
 0x516   : > { %10277 = vmatmul.mubr.f32.gmra.mxu1 %v5614_v59  ;;  %10615 = vmatmul.mubr.f32.gmra.mxu0 %v6946_v38  ;;  %v6312_v59 = vld [vmem:[#allocation8 + $0x330] sm:$0xff]  ;;  %v14579_v38 = vpop.f32.mrf.mxu1  ;;  %v14581_v1 = vpop.f32.mrf.mxu0 }
 0x517   : > { %10279 = vmatprep.mubr.f32.mxu1 %v5615_v5  ;;  %10617 = vmatprep.mubr.f32.mxu0 %v6947_v20  ;;  %15734 = vst [vmem:[#allocation43_spill] sm:$0xff] %v14579_v38  ;;  %v5618_v20 = vld [vmem:[#allocation2 + $0x9b] sm:$0xff]  ;;  %v6311_v5 = vld [vmem:[#allocation8 + $0x328] sm:$0xff]  ;;  %15735 = vst [vmem:[#allocation44_spill] sm:$0xff] %v14581_v1 }
 0x518   : > { %10412 = vmatprep.subr.mxu1 %v6314_v34  ;;  %v6308_v1 = vld [vmem:[#allocation8 + $0x310] sm:$0xff]  ;;  %v6269_v38 = vld [vmem:[#allocation2 + $0x24] sm:$0xff] }
 0x519   : > { %10413 = vmatpush3.msra.mxu1 %v6314_v34  ;;  %v5619_v34 = vld [vmem:[#allocation2 + $0xa3] sm:$0xff] }
 0x51a   : > { %10280 = vmatmul.mubr.f32.gmra.mxu1 %v5616_v60  ;;  %10618 = vmatmul.mubr.f32.gmra.mxu0 %v6948_v18  ;;  %v14583_v8 = vpop.f32.mrf.mxu1  ;;  %v6310_v60 = vld [vmem:[#allocation8 + $0x320] sm:$0xff] }
 0x51b   : > { %10282 = vmatprep.mubr.f32.mxu1 %v5617_v27  ;;  %10414 = vmatprep.subr.mxu1 %v6313_v35  ;;  %15736 = vst [vmem:[#allocation45_spill] sm:$0xff] %v14583_v8  ;;  %v14585_v18 = vpop.f32.mrf.mxu0  ;;  %v5620_v27 = vld [vmem:[#allocation2 + $0xab] sm:$0xff] }
 0x51c   : > { %10415 = vmatpush3.msra.mxu1 %v6313_v35  ;;  %15737 = vst [vmem:[#allocation46_spill] sm:$0xff] %v14585_v18  ;;  %v14587_v47 = vpop.f32.mrf.mxu1  ;;  %v5621_v35 = vld [vmem:[#allocation2 + $0xb3] sm:$0xff] }
 0x51d   : > { %10416 = vmatprep.subr.mxu1 %v6312_v59  ;;  %15738 = vst [vmem:[#allocation47_spill] sm:$0xff] %v14587_v47  ;;  %v14589_v24 = vpop.f32.mrf.mxu0  ;;  %v5635_v47 = vld [vmem:[#allocation2 + $0x123] sm:$0xff] }
 0x51e   : > { %10283 = vmatmul.mubr.f32.gmra.mxu1 %v5618_v20  ;;  %15739 = vst [vmem:[#allocation48_spill] sm:$0xff] %v14589_v24 }
 0x51f   : > { %10285 = vmatprep.mubr.f32.mxu1 %v5619_v34  ;;  %10417 = vmatpush3.msra.mxu1 %v6312_v59  ;;  %v5622_v59 = vld [vmem:[#allocation2 + $0xbb] sm:$0xff]  ;;  %v6307_v34 = vld [vmem:[#allocation8 + $0x308] sm:$0xff] }
 0x520   : > { %10418 = vmatprep.subr.mxu1 %v6311_v5 }
 0x521   : > { %10419 = vmatpush3.msra.mxu1 %v6311_v5  ;;  %v5623_v5 = vld [vmem:[#allocation2 + $0xc3] sm:$0xff] }
 0x522   : > { %10286 = vmatmul.mubr.f32.gmra.mxu1 %v5620_v27  ;;  %10420 = vmatprep.subr.mxu1 %v6310_v60  ;;  %v14591_v20 = vpop.f32.mrf.mxu1  ;;  %v6306_v27 = vld [vmem:[#allocation8 + $0x300] sm:$0xff] }
 0x523   : > { %10288 = vmatprep.mubr.f32.mxu1 %v5621_v35  ;;  %10421 = vmatpush3.msra.mxu1 %v6310_v60  ;;  %15740 = vst [vmem:[#allocation49_spill] sm:$0xff] %v14591_v20  ;;  %v14593_v18 = vpop.f32.mrf.mxu0  ;;  %v5624_v60 = vld [vmem:[#allocation2 + $0xcb] sm:$0xff] }
 0x524   : > { %10422 = vmatprep.subr.mxu1 %v6309_v56  ;;  %15741 = vst [vmem:[#allocation50_spill] sm:$0xff] %v14593_v18  ;;  %v14595_v7 = vpop.f32.mrf.mxu1 }
 0x525   : > { %10423 = vmatpush3.msra.mxu1 %v6309_v56  ;;  %15742 = vst [vmem:[#allocation51_spill] sm:$0xff] %v14595_v7  ;;  %v14597_v35 = vpop.f32.mrf.mxu0  ;;  %v5625_v56 = vld [vmem:[#allocation2 + $0xd3] sm:$0xff] }
 0x526   : > { %10289 = vmatmul.mubr.f32.gmra.mxu1 %v5622_v59  ;;  %10424 = vmatprep.subr.mxu1 %v6308_v1  ;;  %15743 = vst [vmem:[#allocation52_spill] sm:$0xff] %v14597_v35  ;;  %v5633_v7 = vld [vmem:[#allocation2 + $0x113] sm:$0xff] }
 0x527   : > { %10291 = vmatprep.mubr.f32.mxu1 %v5623_v5  ;;  %10425 = vmatpush3.msra.mxu1 %v6308_v1  ;;  %v5626_v1 = vld [vmem:[#allocation2 + $0xdb] sm:$0xff] }
 0x528   : > { %10426 = vmatprep.subr.mxu1 %v6307_v34 }
 0x529   : > { %10427 = vmatpush3.msra.mxu1 %v6307_v34  ;;  %v5627_v34 = vld [vmem:[#allocation2 + $0xe3] sm:$0xff] }
 0x52a   : > { %v14599_v24 = vpop.f32.mrf.mxu1  ;;  %10292 = vmatmul.mubr.f32.gmra.mxu1 %v5624_v60  ;;  %10428 = vmatprep.subr.mxu1 %v6306_v27  ;;  %v5628_v60 = vld [vmem:[#allocation2 + $0xeb] sm:$0xff] }
 0x52b   : > { %15744 = vst [vmem:[#allocation53_spill] sm:$0xff] %v14599_v24  ;;  %10294 = vmatprep.mubr.f32.mxu1 %v5625_v56  ;;  %10429 = vmatpush3.msra.mxu1 %v6306_v27  ;;  %v14601_v59 = vpop.f32.mrf.mxu0  ;;  %v5629_v56 = vld [vmem:[#allocation2 + $0xf3] sm:$0xff] }
 0x52c   : > { %15745 = vst [vmem:[#allocation54_spill] sm:$0xff] %v14601_v59  ;;  %v14603_v18 = vpop.f32.mrf.mxu1  ;;  %10656 = vmatprep.subr.mxu1 %v14403_v49 }
 0x52d   : > { %15746 = vst [vmem:[#allocation55_spill] sm:$0xff] %v14603_v18  ;;  %v14608_v35 = vpop.f32.mrf.mxu0 }
 0x52e   : > { %v14606_v5 = vpop.f32.mrf.mxu1  ;;  %10295 = vmatmul.mubr.f32.gmra.mxu1 %v5626_v1  ;;  %15747 = vst [vmem:[#allocation56_spill] sm:$0xff] %v14608_v35  ;;  %v5631_v35 = vld [vmem:[#allocation2 + $0x103] sm:$0xff] }
 0x52f   : > { %10297 = vmatprep.mubr.f32.mxu1 %v5627_v34 }
 0x530   : > { %v14610_v41 = vpop.f32.mrf.mxu1 }
 0x532   : > { %v14612_v33 = vpop.f32.mrf.mxu1  ;;  %v14614_v27 = vpop.f32.mrf.mxu0  ;;  %10298 = vmatmul.mubr.f32.gmra.mxu1 %v5628_v60 }
 0x533   : > { %15748 = vst [vmem:[#allocation57_spill] sm:$0xff] %v14614_v27  ;;  %10300 = vmatprep.mubr.f32.mxu1 %v5629_v56  ;;  %v5632_v27 = vld [vmem:[#allocation2 + $0x10b] sm:$0xff] }
 0x534   : > { %v14616_v59 = vpop.f32.mrf.mxu1  ;;  %v14618_v52 = vpop.f32.mrf.mxu0 }
 0x535   : > { %15749 = vst [vmem:[#allocation58_spill] sm:$0xff] %v14618_v52 }
 0x536   : > { %v14620_v1 = vpop.f32.mrf.mxu1  ;;  %10301 = vmatmul.mubr.f32.gmra.mxu1 %v5630_v58  ;;  %v14622_v34 = vpop.f32.mrf.mxu0  ;;  %v5634_v58 = vld [vmem:[#allocation2 + $0x11b] sm:$0xff] }
 0x537   : > { %15750 = vst [vmem:[#allocation59_spill] sm:$0xff] %v14622_v34  ;;  %10303 = vmatprep.mubr.f32.mxu1 %v5631_v35 }
 0x538   : > { %v14624_v18 = vpop.f32.mrf.mxu1  ;;  %v14626_v24 = vpop.f32.mrf.mxu0 }
 0x539   : > { %15751 = vst [vmem:[#allocation60_spill] sm:$0xff] %v14626_v24 }
 0x53a   : > { %v14628_v60 = vpop.f32.mrf.mxu1  ;;  %10304 = vmatmul.mubr.f32.gmra.mxu1 %v5632_v27  ;;  %v14630_v56 = vpop.f32.mrf.mxu0  ;;  %v5636_v27 = vld [vmem:[#allocation2 + $0x12b] sm:$0xff] }
 0x53b   : > { %15752 = vst [vmem:[#allocation61_spill] sm:$0xff] %v14630_v56  ;;  %10306 = vmatprep.mubr.f32.mxu1 %v5633_v7 }
 0x53c   : > { %v14632_v52 = vpop.f32.mrf.mxu1  ;;  %v14634_v20 = vpop.f32.mrf.mxu0 }
 0x53d   : > { %15753 = vst [vmem:[#allocation62_spill] sm:$0xff] %v14634_v20 }
 0x53e   : > { %v14636_v34 = vpop.f32.mrf.mxu1  ;;  %10307 = vmatmul.mubr.f32.gmra.mxu1 %v5634_v58  ;;  %v14638_v35 = vpop.f32.mrf.mxu0  ;;  %v6270_v58 = vld [vmem:[#allocation2 + $0x2c] sm:$0xff] }
 0x53f   : > { %15754 = vst [vmem:[#allocation63_spill] sm:$0xff] %v14638_v35  ;;  %10309 = vmatprep.mubr.f32.mxu1 %v5635_v47 }
 0x540   : > { %v14640_v24 = vpop.f32.mrf.mxu1  ;;  %v14642_v8 = vpop.f32.mrf.mxu0 }
 0x541   : > { %15755 = vst [vmem:[#allocation64_spill] sm:$0xff] %v14642_v8 }
 0x542   : > { %v14644_v56 = vpop.f32.mrf.mxu1  ;;  %10310 = vmatmul.mubr.f32.gmra.mxu1 %v5636_v27  ;;  %v14646_v7 = vpop.f32.mrf.mxu0 }
 0x543   : > { %15756 = vst [vmem:[#allocation65_spill] sm:$0xff] %v14646_v7  ;;  %10430 = vmatprep.mubr.f32.mxu1 %v6269_v38  ;;  %v6272_v38 = vld [vmem:[#allocation2 + $0x3c] sm:$0xff] }
 0x544   : > { %v14648_v20 = vpop.f32.mrf.mxu1  ;;  %v14650_v22 = vpop.f32.mrf.mxu0 }
 0x545   : > { %15757 = vst [vmem:[#allocation66_spill] sm:$0xff] %v14650_v22 }
 0x546   : > { %v14652_v35 = vpop.f32.mrf.mxu1  ;;  %v14654_v47 = vpop.f32.mrf.mxu0  ;;  %10431 = vmatmul.mubr.f32.vlgmr.msra.gmra.mxu1 %v6270_v58  ;;  %v6274_v58 = vld [vmem:[#allocation2 + $0x4c] sm:$0xff] }
 0x547   : > { %15758 = vst [vmem:[#allocation67_spill] sm:$0xff] %v14654_v47  ;;  %10433 = vmatprep.mubr.f32.mxu1 %v6271_v55  ;;  %10672 = vmatpush3.msra.mxu1 %v14403_v49  ;;  %v6273_v47 = vld [vmem:[#allocation2 + $0x44] sm:$0xff] }
 0x548   : > { %v14657_v8 = vpop.f32.mrf.mxu1  ;;  %v14659_v27 = vpop.f32.mrf.mxu0  ;;  %10657 = vmatprep.subr.mxu1 %v14406_v42 }
 0x549   : > { %15759 = vst [vmem:[#allocation68_spill] sm:$0xff] %v14659_v27  ;;  %10673 = vmatpush3.msra.mxu1 %v14406_v42 }
 0x54a   : > { %v14663_v22 = vpop.f32.mrf.mxu1  ;;  %v14665_v7 = vpop.f32.mrf.mxu0  ;;  %10434 = vmatmul.mubr.f32.gmra.mxu1 %v6272_v38  ;;  %10658 = vmatprep.subr.mxu1 %v14410_v17  ;;  %v6275_v38 = vld [vmem:[#allocation2 + $0x54] sm:$0xff] }
 0x54b   : > { %15760 = vst [vmem:[#allocation69_spill] sm:$0xff] %v14665_v7  ;;  %10436 = vmatprep.mubr.f32.mxu1 %v6273_v47  ;;  %10674 = vmatpush3.msra.mxu1 %v14410_v17 }
 0x54c   : > { %v14669_v49 = vpop.f32.mrf.mxu1  ;;  %v14671_v55 = vpop.f32.mrf.mxu0  ;;  %10659 = vmatprep.subr.mxu1 %v14416_v57 }
 0x54d   : > { %15761 = vst [vmem:[#allocation70_spill] sm:$0xff] %v14671_v55  ;;  %10675 = vmatpush3.msra.mxu1 %v14416_v57  ;;  %v6276_v55 = vld [vmem:[#allocation2 + $0x5c] sm:$0xff] }
 0x54e   : > { %v14675_v42 = vpop.f32.mrf.mxu1  ;;  %v14677_v27 = vpop.f32.mrf.mxu0  ;;  %10437 = vmatmul.mubr.f32.gmra.mxu1 %v6274_v58  ;;  %10660 = vmatprep.subr.mxu1 %v14424_v36  ;;  %v6277_v58 = vld [vmem:[#allocation2 + $0x64] sm:$0xff] }
 0x54f   : > { %15762 = vst [vmem:[#allocation71_spill] sm:$0xff] %v14677_v27  ;;  %10439 = vmatprep.mubr.f32.mxu1 %v6275_v38  ;;  %10676 = vmatpush3.msra.mxu1 %v14424_v36 }
 0x550   : > { %v14681_v17 = vpop.f32.mrf.mxu1  ;;  %v14683_v47 = vpop.f32.mrf.mxu0  ;;  %10661 = vmatprep.subr.mxu1 %v14432_v45 }
 0x551   : > { %15763 = vst [vmem:[#allocation72_spill] sm:$0xff] %v14683_v47  ;;  %10677 = vmatpush3.msra.mxu1 %v14432_v45  ;;  %v6278_v47 = vld [vmem:[#allocation2 + $0x6c] sm:$0xff] }
 0x552   : > { %v14687_v57 = vpop.f32.mrf.mxu1  ;;  %v14689_v7 = vpop.f32.mrf.mxu0  ;;  %10440 = vmatmul.mubr.f32.gmra.mxu1 %v6276_v55  ;;  %10662 = vmatprep.subr.mxu1 %v14442_v3  ;;  %v6279_v55 = vld [vmem:[#allocation2 + $0x74] sm:$0xff] }
 0x553   : > { %15764 = vst [vmem:[#allocation73_spill] sm:$0xff] %v14689_v7  ;;  %10442 = vmatprep.mubr.f32.mxu1 %v6277_v58  ;;  %10678 = vmatpush3.msra.mxu1 %v14442_v3 }
 0x554   : > { %v14693_v36 = vpop.f32.mrf.mxu1  ;;  %v14695_v38 = vpop.f32.mrf.mxu0  ;;  %10663 = vmatprep.subr.mxu1 %v14452_v39 }
 0x555   : > { %15765 = vst [vmem:[#allocation74_spill] sm:$0xff] %v14695_v38  ;;  %10679 = vmatpush3.msra.mxu1 %v14452_v39  ;;  %v6280_v38 = vld [vmem:[#allocation2 + $0x7c] sm:$0xff] }
 0x556   : > { %v14699_v45 = vpop.f32.mrf.mxu1  ;;  %v14701_v27 = vpop.f32.mrf.mxu0  ;;  %10443 = vmatmul.mubr.f32.gmra.mxu1 %v6278_v47  ;;  %10664 = vmatprep.subr.mxu1 %v14460_v61  ;;  %v6281_v47 = vld [vmem:[#allocation2 + $0x84] sm:$0xff] }
 0x557   : > { %15766 = vst [vmem:[#allocation75_spill] sm:$0xff] %v14701_v27  ;;  %10445 = vmatprep.mubr.f32.mxu1 %v6279_v55  ;;  %10680 = vmatpush3.msra.mxu1 %v14460_v61 }
 0x558   : > { %v14705_v3 = vpop.f32.mrf.mxu1  ;;  %v14707_v58 = vpop.f32.mrf.mxu0  ;;  %10665 = vmatprep.subr.mxu1 %v14470_v48 }
 0x559   : > { %15767 = vst [vmem:[#allocation76_spill] sm:$0xff] %v14707_v58  ;;  %10681 = vmatpush3.msra.mxu1 %v14470_v48  ;;  %v6282_v58 = vld [vmem:[#allocation2 + $0x8c] sm:$0xff] }
 0x55a   : > { %v14711_v39 = vpop.f32.mrf.mxu1  ;;  %v14713_v7 = vpop.f32.mrf.mxu0  ;;  %10446 = vmatmul.mubr.f32.gmra.mxu1 %v6280_v38  ;;  %10666 = vmatprep.subr.mxu1 %v14480_v43  ;;  %v6283_v38 = vld [vmem:[#allocation2 + $0x94] sm:$0xff] }
 0x55b   : > { %15768 = vst [vmem:[#allocation77_spill] sm:$0xff] %v14713_v7  ;;  %10448 = vmatprep.mubr.f32.mxu1 %v6281_v47  ;;  %10682 = vmatpush3.msra.mxu1 %v14480_v43 }
 0x55c   : > { %v14717_v61 = vpop.f32.mrf.mxu1  ;;  %v14719_v55 = vpop.f32.mrf.mxu0  ;;  %10667 = vmatprep.subr.mxu1 %v14488_v14 }
 0x55d   : > { %15769 = vst [vmem:[#allocation78_spill] sm:$0xff] %v14719_v55  ;;  %10683 = vmatpush3.msra.mxu1 %v14488_v14  ;;  %v6284_v55 = vld [vmem:[#allocation2 + $0x9c] sm:$0xff] }
 0x55e   : > { %v14723_v48 = vpop.f32.mrf.mxu1  ;;  %v14725_v27 = vpop.f32.mrf.mxu0  ;;  %10449 = vmatmul.mubr.f32.gmra.mxu1 %v6282_v58  ;;  %10668 = vmatprep.subr.mxu1 %v14498_v6  ;;  %v6285_v58 = vld [vmem:[#allocation2 + $0xa4] sm:$0xff] }
 0x55f   : > { %15770 = vst [vmem:[#allocation79_spill] sm:$0xff] %v14725_v27  ;;  %10451 = vmatprep.mubr.f32.mxu1 %v6283_v38  ;;  %10684 = vmatpush3.msra.mxu1 %v14498_v6 }
 0x560   : > { %v14729_v43 = vpop.f32.mrf.mxu1  ;;  %v14731_v47 = vpop.f32.mrf.mxu0  ;;  %10669 = vmatprep.subr.mxu1 %v14508_v50 }
 0x561   : > { %15771 = vst [vmem:[#allocation80_spill] sm:$0xff] %v14731_v47  ;;  %10685 = vmatpush3.msra.mxu1 %v14508_v50  ;;  %v6286_v47 = vld [vmem:[#allocation2 + $0xac] sm:$0xff] }
 0x562   : > { %v14735_v14 = vpop.f32.mrf.mxu1  ;;  %v14737_v7 = vpop.f32.mrf.mxu0  ;;  %10452 = vmatmul.mubr.f32.gmra.mxu1 %v6284_v55  ;;  %10670 = vmatprep.subr.mxu1 %v14516_v12  ;;  %v6287_v55 = vld [vmem:[#allocation2 + $0xb4] sm:$0xff] }
 0x563   : > { %15772 = vst [vmem:[#allocation81_spill] sm:$0xff] %v14735_v14  ;;  %15773 = vst [vmem:[#allocation82_spill] sm:$0xff] %v14737_v7  ;;  %10454 = vmatprep.mubr.f32.mxu1 %v6285_v58  ;;  %10686 = vmatpush3.msra.mxu1 %v14516_v12  ;;  %v6288_v12 = vld [vmem:[#allocation2 + $0xbc] sm:$0xff]  ;;  %v6289_v14 = vld [vmem:[#allocation2 + $0xc4] sm:$0xff] }
 0x564   : > { %v14741_v6 = vpop.f32.mrf.mxu1  ;;  %v14743_v38 = vpop.f32.mrf.mxu0  ;;  %10671 = vmatprep.subr.mxu1 %v14526_v63 }
 0x565   : > { %15774 = vst [vmem:[#allocation83_spill] sm:$0xff] %v14741_v6  ;;  %15775 = vst [vmem:[#allocation84_spill] sm:$0xff] %v14743_v38  ;;  %10687 = vmatpush3.msra.mxu1 %v14526_v63 }
 0x566   : > { %v14747_v50 = vpop.f32.mrf.mxu1  ;;  %v14749_v27 = vpop.f32.mrf.mxu0  ;;  %10455 = vmatmul.mubr.f32.gmra.mxu1 %v6286_v47 }
 0x567   : > { %15776 = vst [vmem:[#allocation85_spill] sm:$0xff] %v14747_v50  ;;  %15777 = vst [vmem:[#allocation86_spill] sm:$0xff] %v14749_v27  ;;  %10457 = vmatprep.mubr.f32.mxu1 %v6287_v55  ;;  %v6290_v27 = vld [vmem:[#allocation2 + $0xcc] sm:$0xff] }
 0x568   : > { %v14751_v7 = vpop.f32.mrf.mxu1  ;;  %v14753_v58 = vpop.f32.mrf.mxu0 }
 0x569   : > { %15778 = vst [vmem:[#allocation87_spill] sm:$0xff] %v14751_v7  ;;  %15779 = vst [vmem:[#allocation88_spill] sm:$0xff] %v14753_v58  ;;  %v6291_v7 = vld [vmem:[#allocation2 + $0xd4] sm:$0xff] }
 0x56a   : > { %v14755_v6 = vpop.f32.mrf.mxu1  ;;  %v14757_v38 = vpop.f32.mrf.mxu0  ;;  %10458 = vmatmul.mubr.f32.gmra.mxu1 %v6288_v12 }
 0x56b   : > { %15780 = vst [vmem:[#allocation89_spill] sm:$0xff] %v14755_v6  ;;  %15781 = vst [vmem:[#allocation90_spill] sm:$0xff] %v14757_v38  ;;  %10460 = vmatprep.mubr.f32.mxu1 %v6289_v14  ;;  %v6292_v38 = vld [vmem:[#allocation2 + $0xdc] sm:$0xff] }
 0x56c   : > { %v14759_v63 = vpop.f32.mrf.mxu1  ;;  %v14761_v50 = vpop.f32.mrf.mxu0 }
 0x56d   : > { %15782 = vst [vmem:[#allocation91_spill] sm:$0xff] %v14759_v63  ;;  %15783 = vst [vmem:[#allocation92_spill] sm:$0xff] %v14761_v50  ;;  %v6293_v63 = vld [vmem:[#allocation2 + $0xe4] sm:$0xff] }
 0x56e   : > { %v14763_v47 = vpop.f32.mrf.mxu1  ;;  %v14765_v55 = vpop.f32.mrf.mxu0  ;;  %10461 = vmatmul.mubr.f32.gmra.mxu1 %v6290_v27  ;;  %v4760_v27 = vadd.f32 %v14606_v5, %v14412_v10  ;;  %v6296_v10 = vld [vmem:[#allocation2 + $0xfc] sm:$0xff] }
 0x56f   : > { %15784 = vst [vmem:[#allocation93_spill] sm:$0xff] %v14763_v47  ;;  %15785 = vst [vmem:[#allocation94_spill] sm:$0xff] %v14765_v55  ;;  %10463 = vmatprep.mubr.f32.mxu1 %v6291_v7  ;;  %v6294_v7 = vld [vmem:[#allocation2 + $0xec] sm:$0xff] }
 0x570   : > { %v14767_v58 = vpop.f32.mrf.mxu1  ;;  %v14769_v6 = vpop.f32.mrf.mxu0 }
 0x571   : > { %15786 = vst [vmem:[#allocation95_spill] sm:$0xff] %v14767_v58  ;;  %15787 = vst [vmem:[#allocation96_spill] sm:$0xff] %v14769_v6  ;;  %v6295_v6 = vld [vmem:[#allocation2 + $0xf4] sm:$0xff] }
 0x572   : > { %v14771_v12 = vpop.f32.mrf.mxu1  ;;  %v14773_v14 = vpop.f32.mrf.mxu0  ;;  %10464 = vmatmul.mubr.f32.gmra.mxu1 %v6292_v38 }
 0x573   : > { %15788 = vst [vmem:[#allocation97_spill] sm:$0xff] %v14771_v12  ;;  %15789 = vst [vmem:[#allocation98_spill] sm:$0xff] %v14773_v14  ;;  %10466 = vmatprep.mubr.f32.mxu1 %v6293_v63  ;;  %v4755_v12 = vadd.f32 %v14610_v41, %v14418_v31  ;;  %v4765_v31 = vadd.f32 %v14616_v59, %v14430_v40  ;;  %v4775_v40 = vadd.f32 %v14624_v18, %v14444_v23 }
 0x574   : > { %v14775_v50 = vpop.f32.mrf.mxu1  ;;  %v14777_v47 = vpop.f32.mrf.mxu0  ;;  %v4785_v23 = vadd.f32 %v14632_v52, %v14458_v29  ;;  %v4795_v52 = vadd.f32 %v14640_v24, %v14472_v53  ;;  %v4805_v24 = vadd.f32 %v14648_v20, %v14486_v4  ;;  %v4815_v4 = vadd.f32 %v14657_v8, %v14500_v11 }
 0x575   : > { %15790 = vst [vmem:[#allocation99_spill] sm:$0xff] %v14775_v50  ;;  %15791 = vst [vmem:[#allocation100_spill] sm:$0xff] %v14777_v47  ;;  %v4770_v47 = vadd.f32 %v14612_v33, %v14422_v15  ;;  %v4780_v15 = vadd.f32 %v14620_v1, %v14436_v26  ;;  %v4790_v26 = vadd.f32 %v14628_v60, %v14450_v28 }
 0x576   : > { %v10088_v55 = vpop.f32.mrf.mxu1  ;;  %v14781_v58 = vpop.f32.mrf.mxu0  ;;  %10467 = vmatmul.mubr.f32.gmra.mxu1 %v6294_v7  ;;  %v6297_v7 = vld [vmem:[#allocation2 + $0x104] sm:$0xff]  ;;  %v4800_v28 = vadd.f32 %v14636_v34, %v14464_v62  ;;  %v4810_v62 = vadd.f32 %v14644_v56, %v14478_v16  ;;  %v4820_v16 = vadd.f32 %v14652_v35, %v14492_v0  ;;  %v4830_v0 = vadd.f32 %v14663_v22, %v14506_v51 }
 0x577   : > { %15792 = vst [vmem:[#allocation101_spill] sm:$0xff] %v14781_v58  ;;  %v14785_v14 = vadd.f32 %v10088_v55, %v4760_v27  ;;  %10469 = vmatprep.mubr.f32.mxu1 %v6295_v6  ;;  %v4825_v8 = vadd.f32 %v14669_v49, %v14514_v32  ;;  %v4840_v51 = vadd.f32 %v14675_v42, %v14520_v2 }
 0x578   : > { %v5052_v38 = vpop.f32.mrf.mxu1  ;;  %v14787_v63 = vpop.f32.mrf.mxu0  ;;  %v4835_v32 = vadd.f32 %v14681_v17, %v14528_v37  ;;  %v4850_v2 = vadd.f32 %v14687_v57, %v14534_v30  ;;  %v6958_v30 = vld [vmem:[#allocation2 + $0xce] sm:$0xff] }
 0x579   : > { %15793 = vst [vmem:[#allocation102_spill] sm:$0xff] %v14787_v63  ;;  %v14791_v50 = vadd.f32 %v5052_v38, %v4755_v12  ;;  %v6298_v12 = vld [vmem:[#allocation2 + $0x10c] sm:$0xff] }
 0x57a   : > { %v10091_v5 = vpop.f32.mrf.mxu1  ;;  %v14793_v21 = vpop.f32.mrf.mxu0  ;;  %10470 = vmatmul.mubr.f32.gmra.mxu1 %v6296_v10  ;;  %v6299_v10 = vld [vmem:[#allocation2 + $0x114] sm:$0xff] }
 0x57b   : > { %15794 = vst [vmem:[#allocation103_spill] sm:$0xff] %v14793_v21  ;;  %v14797_v41 = vadd.f32 %v10091_v5, %v4770_v47  ;;  %10472 = vmatprep.mubr.f32.mxu1 %v6297_v7  ;;  %v6300_v7 = vld [vmem:[#allocation2 + $0x11c] sm:$0xff] }
 0x57c   : > { %v5062_v6 = vpop.f32.mrf.mxu1  ;;  %v14799_v55 = vpop.f32.mrf.mxu0 }
 0x57d   : > { %15795 = vst [vmem:[#allocation104_spill] sm:$0xff] %v14799_v55  ;;  %v14803_v33 = vadd.f32 %v5062_v6, %v4765_v31 }
 0x57e   : > { %v10094_v27 = vpop.f32.mrf.mxu1  ;;  %10473 = vmatmul.mubr.f32.gmra.mxu1 %v6298_v12  ;;  %v14805_v38 = vpop.f32.mrf.mxu0  ;;  %v6301_v12 = vld [vmem:[#allocation2 + $0x124] sm:$0xff] }
 0x57f   : > { %v14809_v59 = vadd.f32 %v10094_v27, %v4780_v15  ;;  %10475 = vmatprep.mubr.f32.mxu1 %v6299_v10  ;;  %v6302_v10 = vld [vmem:[#allocation2 + $0x12c] sm:$0xff] }
 0x580   : > { %v5072_v47 = vpop.f32.mrf.mxu1  ;;  %v14811_v5 = vpop.f32.mrf.mxu0 }
 0x581   : > { %v14815_v1 = vadd.f32 %v5072_v47, %v4775_v40 }
 0x582   : > { %v10097_v31 = vpop.f32.mrf.mxu1  ;;  %10476 = vmatmul.mubr.f32.gmra.mxu1 %v6300_v7  ;;  %v14817_v6 = vpop.f32.mrf.mxu0  ;;  %v6303_v7 = vld [vmem:[#allocation2 + $0x134] sm:$0xff] }
 0x583   : > { %v14821_v18 = vadd.f32 %v10097_v31, %v4790_v26  ;;  %10478 = vmatprep.mubr.f32.mxu1 %v6301_v12  ;;  %v6304_v12 = vld [vmem:[#allocation2 + $0x13c] sm:$0xff] }
 0x584   : > { %v5082_v15 = vpop.f32.mrf.mxu1  ;;  %v14823_v27 = vpop.f32.mrf.mxu0 }
 0x585   : > { %v14827_v60 = vadd.f32 %v5082_v15, %v4785_v23 }
 0x586   : > { %v10100_v40 = vpop.f32.mrf.mxu1  ;;  %10479 = vmatmul.mubr.f32.gmra.mxu1 %v6302_v10  ;;  %v14829_v47 = vpop.f32.mrf.mxu0  ;;  %v6949_v10 = vld [vmem:[#allocation2 + $0x86] sm:$0xff] }
 0x587   : > { %v14833_v29 = vadd.f32 %v10100_v40, %v4800_v28  ;;  %10481 = vmatprep.mubr.f32.mxu1 %v6303_v7  ;;  %v6950_v7 = vld [vmem:[#allocation2 + $0x8e] sm:$0xff] }
 0x588   : > { %v5092_v26 = vpop.f32.mrf.mxu1  ;;  %v14835_v31 = vpop.f32.mrf.mxu0 }
 0x589   : > { %v14839_v34 = vadd.f32 %v5092_v26, %v4795_v52 }
 0x58a   : > { %v10103_v23 = vpop.f32.mrf.mxu1  ;;  %10482 = vmatmul.mubr.f32.gmra.mxu1 %v6304_v12  ;;  %v14841_v15 = vpop.f32.mrf.mxu0  ;;  %v6951_v12 = vld [vmem:[#allocation2 + $0x96] sm:$0xff] }
 0x58b   : > { %v14845_v53 = vadd.f32 %v10103_v23, %v4810_v62  ;;  %10620 = vmatprep.mubr.f32.mxu1 %v6949_v10  ;;  %v6952_v10 = vld [vmem:[#allocation2 + $0x9e] sm:$0xff] }
 0x58c   : > { %v5102_v28 = vpop.f32.mrf.mxu1  ;;  %v14847_v40 = vpop.f32.mrf.mxu0 }
 0x58d   : > { %v14851_v56 = vadd.f32 %v5102_v28, %v4805_v24 }
 0x58e   : > { %v10106_v52 = vpop.f32.mrf.mxu1  ;;  %v14853_v26 = vpop.f32.mrf.mxu0  ;;  %10621 = vmatmul.mubr.f32.vlgmr.msra.gmra.mxu1 %v6950_v7  ;;  %v6953_v7 = vld [vmem:[#allocation2 + $0xa6] sm:$0xff] }
 0x58f   : > { %v14857_v20 = vadd.f32 %v10106_v52, %v4820_v16  ;;  %10623 = vmatprep.mubr.f32.mxu1 %v6951_v12  ;;  %v6954_v12 = vld [vmem:[#allocation2 + $0xae] sm:$0xff] }
 0x590   : > { %v5112_v62 = vpop.f32.mrf.mxu1  ;;  %v14859_v23 = vpop.f32.mrf.mxu0 }
 0x591   : > { %v14863_v35 = vadd.f32 %v5112_v62, %v4815_v4 }
 0x592   : > { %v10109_v24 = vpop.f32.mrf.mxu1  ;;  %v14865_v28 = vpop.f32.mrf.mxu0  ;;  %10624 = vmatmul.mubr.f32.gmra.mxu1 %v6952_v10  ;;  %v6955_v10 = vld [vmem:[#allocation2 + $0xb6] sm:$0xff] }
 0x593   : > { %v14869_v11 = vadd.f32 %v10109_v24, %v4830_v0  ;;  %10626 = vmatprep.mubr.f32.mxu1 %v6953_v7  ;;  %v6956_v7 = vld [vmem:[#allocation2 + $0xbe] sm:$0xff] }
 0x594   : > { %v5122_v16 = vpop.f32.mrf.mxu1  ;;  %v14871_v52 = vpop.f32.mrf.mxu0 }
 0x595   : > { %v14875_v22 = vadd.f32 %v5122_v16, %v4825_v8  ;;  %v6957_v16 = vld [vmem:[#allocation2 + $0xc6] sm:$0xff] }
 0x596   : > { %v10112_v4 = vpop.f32.mrf.mxu1  ;;  %v14877_v62 = vpop.f32.mrf.mxu0  ;;  %10627 = vmatmul.mubr.f32.gmra.mxu1 %v6954_v12  ;;  %v4845_v12 = vadd.f32 %v14693_v36, %v14539_v46 }
 0x597   : > { %v14881_v49 = vadd.f32 %v10112_v4, %v4840_v51  ;;  %10629 = vmatprep.mubr.f32.mxu1 %v6955_v10  ;;  %v4860_v51 = vadd.f32 %v14699_v45, %v14543_v25  ;;  %v6959_v10 = vld [vmem:[#allocation2 + $0xd6] sm:$0xff]  ;;  %v6960_v25 = vld [vmem:[#allocation2 + $0xde] sm:$0xff] }
 0x598   : > { %v5132_v0 = vpop.f32.mrf.mxu1  ;;  %v14883_v24 = vpop.f32.mrf.mxu0 }
 0x599   : > { %15796 = vst [vmem:[#allocation105_spill] sm:$0xff] %v14883_v24  ;;  %v14887_v42 = vadd.f32 %v5132_v0, %v4835_v32  ;;  %v4855_v32 = vadd.f32 %v14705_v3, %v14547_v44 }
 0x59a   : > { %v10115_v8 = vpop.f32.mrf.mxu1  ;;  %10630 = vmatmul.mubr.f32.gmra.mxu1 %v6956_v7  ;;  %v14893_v37 = vpop.f32.mrf.mxu0 }
 0x59b   : > { %v14891_v55 = vadd.f32 %v10115_v8, %v4850_v2  ;;  %10632 = vmatprep.mubr.f32.mxu1 %v6957_v16  ;;  %15797 = vst [vmem:[#allocation106_spill] sm:$0xff] %v14893_v37  ;;  %v4870_v2 = vadd.f32 %v14711_v39, %v14551_v9  ;;  %v6961_v8 = vld [vmem:[#allocation2 + $0xe6] sm:$0xff]  ;;  %v4865_v16 = vadd.f32 %v14717_v61, %v14555_v19  ;;  %v6962_v9 = vld [vmem:[#allocation2 + $0xee] sm:$0xff] }
 0x59c   : > { %v5142_v17 = vpop.f32.mrf.mxu1  ;;  %v14903_v46 = vpop.f32.mrf.mxu0 }
 0x59d   : > { %v14897_v4 = vadd.f32 %v5142_v17, %v4845_v12  ;;  %15798 = vst [vmem:[#allocation107_spill] sm:$0xff] %v14903_v46  ;;  %v4880_v17 = vadd.f32 %v14723_v48, %v14559_v13  ;;  %v6964_v13 = vld [vmem:[#allocation2 + $0xfe] sm:$0xff] }
 0x59e   : > { %v10118_v57 = vpop.f32.mrf.mxu1  ;;  %10633 = vmatmul.mubr.f32.gmra.mxu1 %v6958_v30  ;;  %v14913_v44 = vpop.f32.mrf.mxu0  ;;  %v6963_v30 = vld [vmem:[#allocation2 + $0xf6] sm:$0xff] }
 0x59f   : > { %v14901_v0 = vadd.f32 %v10118_v57, %v4860_v51  ;;  %10635 = vmatprep.mubr.f32.mxu1 %v6959_v10  ;;  %15799 = vst [vmem:[#allocation108_spill] sm:$0xff] %v14913_v44  ;;  %v4875_v57 = vadd.f32 %v14729_v43, %v14563_v54 }
 0x5a0   : > { %v5152_v36 = vpop.f32.mrf.mxu1  ;;  %v14923_v19 = vpop.f32.mrf.mxu0 }
 0x5a1   : > { %v14907_v7 = vadd.f32 %v5152_v36, %v4855_v32  ;;  %15800 = vst [vmem:[#allocation109_spill] sm:$0xff] %v14923_v19  ;;  %v15801_v32 = vld [vmem:[#allocation37_spill] sm:$0xff] }
 0x5a2   : > { %v10121_v45 = vpop.f32.mrf.mxu1  ;;  %10636 = vmatmul.mubr.f32.gmra.mxu1 %v6960_v25  ;;  %v15802_v36 = vld [vmem:[#allocation81_spill] sm:$0xff]  ;;  %v14933_v54 = vpop.f32.mrf.mxu0 }
 0x5a3   : > { %v14911_v12 = vadd.f32 %v10121_v45, %v4870_v2  ;;  %10638 = vmatprep.mubr.f32.mxu1 %v6961_v8  ;;  %v4890_v2 = vadd.f32 %v15802_v36, %v15801_v32  ;;  %v6965_v45 = vld [vmem:[#allocation2 + $0x106] sm:$0xff]  ;;  %v15803_v8 = vld [vmem:[#allocation39_spill] sm:$0xff]  ;;  %15805 = vst [vmem:[#allocation37_spill] sm:$0xff] %v14933_v54 }
 0x5a4   : > { %v5162_v3 = vpop.f32.mrf.mxu1  ;;  %v6967_v32 = vld [vmem:[#allocation2 + $0x116] sm:$0xff] }
 0x5a5   : > { %v14917_v51 = vadd.f32 %v5162_v3, %v4865_v16  ;;  %v15804_v16 = vld [vmem:[#allocation83_spill] sm:$0xff] }
 0x5a6   : > { %v10124_v39 = vpop.f32.mrf.mxu1  ;;  %10639 = vmatmul.mubr.f32.gmra.mxu1 %v6962_v9  ;;  %v4885_v3 = vadd.f32 %v15804_v16, %v15803_v8  ;;  %v15808_v36 = vld [vmem:[#allocation43_spill] sm:$0xff]  ;;  %v15812_v8 = vld [vmem:[#allocation89_spill] sm:$0xff] }
 0x5a7   : > { %v14921_v10 = vadd.f32 %v10124_v39, %v4880_v17  ;;  %10641 = vmatprep.mubr.f32.mxu1 %v6963_v30  ;;  %v15806_v17 = vld [vmem:[#allocation41_spill] sm:$0xff] }
 0x5a8   : > { %v5172_v61 = vpop.f32.mrf.mxu1  ;;  %v15807_v39 = vld [vmem:[#allocation85_spill] sm:$0xff] }
 0x5a9   : > { %v14927_v25 = vadd.f32 %v5172_v61, %v4875_v57  ;;  %v4900_v30 = vadd.f32 %v15807_v39, %v15806_v17  ;;  %v6966_v57 = vld [vmem:[#allocation2 + $0x10e] sm:$0xff]  ;;  %v6969_v17 = vld [vmem:[#allocation2 + $0x126] sm:$0xff]  ;;  %v15813_v39 = vld [vmem:[#allocation47_spill] sm:$0xff] }
 0x5aa   : > { %v10127_v48 = vpop.f32.mrf.mxu1  ;;  %10642 = vmatmul.mubr.f32.gmra.mxu1 %v6964_v13  ;;  %v15809_v13 = vld [vmem:[#allocation87_spill] sm:$0xff] }
 0x5ab   : > { %v14931_v9 = vadd.f32 %v10127_v48, %v4890_v2  ;;  %10644 = vmatprep.mubr.f32.mxu1 %v6965_v45  ;;  %v4895_v63 = vadd.f32 %v15809_v13, %v15808_v36  ;;  %v14943_v2 = vpop.f32.mrf.mxu0  ;;  %v15811_v45 = vld [vmem:[#allocation45_spill] sm:$0xff] }
 0x5ac   : > { %v5182_v43 = vpop.f32.mrf.mxu1  ;;  %15810 = vst [vmem:[#allocation81_spill] sm:$0xff] %v14943_v2  ;;  %v4910_v16 = vadd.f32 %v15812_v8, %v15811_v45  ;;  %v15817_v36 = vld [vmem:[#allocation93_spill] sm:$0xff]  ;;  %v6971_v45 = vld [vmem:[#allocation2 + $0x136] sm:$0xff] }
 0x5ad   : > { %v14937_v21 = vadd.f32 %v5182_v43, %v4885_v3  ;;  %v6968_v3 = vld [vmem:[#allocation2 + $0x11e] sm:$0xff] }
 0x5ae   : > { %v10130_v61 = vpop.f32.mrf.mxu1  ;;  %10645 = vmatmul.mubr.f32.gmra.mxu1 %v6966_v57  ;;  %v15814_v57 = vld [vmem:[#allocation91_spill] sm:$0xff] }
 0x5af   : > { %v14941_v58 = vadd.f32 %v10130_v61, %v4900_v30  ;;  %10647 = vmatprep.mubr.f32.mxu1 %v6967_v32  ;;  %v4905_v19 = vadd.f32 %v15814_v57, %v15813_v39  ;;  %v14953_v30 = vpop.f32.mrf.mxu0  ;;  %v15816_v32 = vld [vmem:[#allocation49_spill] sm:$0xff]  ;;  %v15818_v8 = vld [vmem:[#allocation51_spill] sm:$0xff] }
 0x5b0   : > { %v5192_v48 = vpop.f32.mrf.mxu1  ;;  %15815 = vst [vmem:[#allocation39_spill] sm:$0xff] %v14953_v30  ;;  %v4920_v13 = vadd.f32 %v15817_v36, %v15816_v32  ;;  %v15822_v39 = vld [vmem:[#allocation97_spill] sm:$0xff]  ;;  %v15823_v32 = vld [vmem:[#allocation55_spill] sm:$0xff] }
 0x5b1   : > { %v14947_v54 = vadd.f32 %v5192_v48, %v4895_v63  ;;  %v6970_v63 = vld [vmem:[#allocation2 + $0x12e] sm:$0xff]  ;;  %v15824_v36 = vld [vmem:[#allocation99_spill] sm:$0xff] }
 0x5b2   : > { %v10133_v43 = vpop.f32.mrf.mxu1  ;;  %10648 = vmatmul.mubr.f32.gmra.mxu1 %v6968_v3  ;;  %v15819_v3 = vld [vmem:[#allocation95_spill] sm:$0xff] }
 0x5b3   : > { %v14951_v44 = vadd.f32 %v10133_v43, %v4910_v16  ;;  %10650 = vmatprep.mubr.f32.mxu1 %v6969_v17  ;;  %v4915_v46 = vadd.f32 %v15819_v3, %v15818_v8  ;;  %v14963_v16 = vpop.f32.mrf.mxu0  ;;  %v15821_v17 = vld [vmem:[#allocation53_spill] sm:$0xff] }
 0x5b4   : > { %v5202_v61 = vpop.f32.mrf.mxu1  ;;  %15820 = vst [vmem:[#allocation83_spill] sm:$0xff] %v14963_v16  ;;  %v4930_v57 = vadd.f32 %v15822_v39, %v15821_v17 }
 0x5b5   : > { %v14957_v2 = vadd.f32 %v5202_v61, %v4905_v19  ;;  %v6972_v19 = vld [vmem:[#allocation2 + $0x13e] sm:$0xff]  ;;  %v14973_v8 = vpop.f32.mrf.mxu0 }
 0x5b6   : > { %v10136_v48 = vpop.f32.mrf.mxu1  ;;  %10651 = vmatmul.mubr.f32.gmra.mxu1 %v6970_v63  ;;  %v4925_v63 = vadd.f32 %v15824_v36, %v15823_v32  ;;  %15825 = vst [vmem:[#allocation41_spill] sm:$0xff] %v14973_v8 }
 0x5b7   : > { %v14961_v37 = vadd.f32 %v10136_v48, %v4920_v13  ;;  %10653 = vmatprep.mubr.f32.mxu1 %v6971_v45  ;;  %v15826_v45 = vld [vmem:[#allocation13_spill] sm:$0xff]  ;;  %v14983_v39 = vpop.f32.mrf.mxu0 }
 0x5b8   : > { %v5212_v43 = vpop.f32.mrf.mxu1  ;;  %v5566_v3 = vadd.f32 %v15826_v45, %v14785_v14  ;;  %15828 = vst [vmem:[#allocation85_spill] sm:$0xff] %v14983_v39 }
 0x5b9   : > { %v14967_v30 = vadd.f32 %v5212_v43, %v4915_v46  ;;  %v15827_v46 = vld [vmem:[#allocation14_spill] sm:$0xff]  ;;  %v14993_v45 = vpop.f32.mrf.mxu0 }
 0x5ba   : > { %v10139_v61 = vpop.f32.mrf.mxu1  ;;  %10654 = vmatmul.mubr.f32.gmra.mxu1 %v6972_v19  ;;  %v5565_v43 = vadd.f32 %v15827_v46, %v14791_v50  ;;  %15831 = vst [vmem:[#allocation43_spill] sm:$0xff] %v14993_v45  ;;  %v15832_v50 = vld [vmem:[#allocation17_spill] sm:$0xff] }
 0x5bb   : > { %v14971_v24 = vadd.f32 %v10139_v61, %v4930_v57  ;;  %v15829_v57 = vld [vmem:[#allocation15_spill] sm:$0xff]  ;;  %v5570_v46 = vadd.f32 %v15832_v50, %v14809_v59 }
 0x5bc   : > { %v5222_v13 = vpop.f32.mrf.mxu1  ;;  %v5568_v61 = vadd.f32 %v15829_v57, %v14797_v41  ;;  %v15003_v57 = vpop.f32.mrf.mxu0 }
 0x5bd   : > { %v14975_v48 = vadd.f32 %v5222_v13, %v4925_v63  ;;  %v15830_v13 = vld [vmem:[#allocation16_spill] sm:$0xff]  ;;  %15834 = vst [vmem:[#allocation87_spill] sm:$0xff] %v15003_v57 }
 0x5be   : > { %v10260_v16 = vpop.f32.mrf.mxu1  ;;  %v5567_v14 = vadd.f32 %v15830_v13, %v14803_v33  ;;  %v15835_v33 = vld [vmem:[#allocation19_spill] sm:$0xff]  ;;  %v15013_v50 = vpop.f32.mrf.mxu0 }
 0x5bf   : > { %v14979_v17 = vadd.f32 %v10260_v16, %v5566_v3  ;;  %v5572_v13 = vadd.f32 %v15835_v33, %v14821_v18  ;;  %15837 = vst [vmem:[#allocation45_spill] sm:$0xff] %v15013_v50 }
 0x5c0   : > { %v5720_v19 = vpop.f32.mrf.mxu1  ;;  %v15023_v33 = vpop.f32.mrf.mxu0 }
 0x5c1   : > { %v14985_v32 = vadd.f32 %v5720_v19, %v5565_v43  ;;  %v15833_v19 = vld [vmem:[#allocation18_spill] sm:$0xff]  ;;  %15840 = vst [vmem:[#allocation89_spill] sm:$0xff] %v15023_v33 }
 0x5c2   : > { %v10263_v36 = vpop.f32.mrf.mxu1  ;;  %v5569_v41 = vadd.f32 %v15833_v19, %v14815_v1  ;;  %v15838_v1 = vld [vmem:[#allocation21_spill] sm:$0xff] }
 0x5c3   : > { %v14989_v63 = vadd.f32 %v10263_v36, %v5568_v61  ;;  %v5574_v19 = vadd.f32 %v15838_v1, %v14833_v29  ;;  %v15033_v1 = vpop.f32.mrf.mxu0 }
 0x5c4   : > { %v5730_v16 = vpop.f32.mrf.mxu1  ;;  %15843 = vst [vmem:[#allocation47_spill] sm:$0xff] %v15033_v1 }
 0x5c5   : > { %v14995_v3 = vadd.f32 %v5730_v16, %v5567_v14  ;;  %v15836_v16 = vld [vmem:[#allocation20_spill] sm:$0xff] }
 0x5c6   : > { %v10266_v39 = vpop.f32.mrf.mxu1  ;;  %v5571_v59 = vadd.f32 %v15836_v16, %v14827_v60  ;;  %v15841_v60 = vld [vmem:[#allocation23_spill] sm:$0xff] }
 0x5c7   : > { %v14999_v43 = vadd.f32 %v10266_v39, %v5570_v46  ;;  %v5576_v16 = vadd.f32 %v15841_v60, %v14845_v53  ;;  %v15043_v60 = vpop.f32.mrf.mxu0 }
 0x5c8   : > { %v5740_v61 = vpop.f32.mrf.mxu1  ;;  %15846 = vst [vmem:[#allocation91_spill] sm:$0xff] %v15043_v60 }
 0x5c9   : > { %v15005_v36 = vadd.f32 %v5740_v61, %v5569_v41  ;;  %v15839_v61 = vld [vmem:[#allocation22_spill] sm:$0xff] }
 0x5ca   : > { %v10269_v45 = vpop.f32.mrf.mxu1  ;;  %v5573_v18 = vadd.f32 %v15839_v61, %v14839_v34  ;;  %v15844_v34 = vld [vmem:[#allocation25_spill] sm:$0xff] }
 0x5cb   : > { %v15009_v14 = vadd.f32 %v10269_v45, %v5572_v13  ;;  %v5578_v61 = vadd.f32 %v15844_v34, %v14857_v20  ;;  %v15053_v34 = vpop.f32.mrf.mxu0 }
 0x5cc   : > { %v5750_v39 = vpop.f32.mrf.mxu1  ;;  %15849 = vst [vmem:[#allocation49_spill] sm:$0xff] %v15053_v34 }
 0x5cd   : > { %v15015_v46 = vadd.f32 %v5750_v39, %v5571_v59  ;;  %v15842_v39 = vld [vmem:[#allocation24_spill] sm:$0xff] }
 0x5ce   : > { %v10272_v57 = vpop.f32.mrf.mxu1  ;;  %v5575_v29 = vadd.f32 %v15842_v39, %v14851_v56  ;;  %v15847_v56 = vld [vmem:[#allocation27_spill] sm:$0xff] }
 0x5cf   : > { %v15019_v41 = vadd.f32 %v10272_v57, %v5574_v19  ;;  %v5580_v39 = vadd.f32 %v15847_v56, %v14869_v11  ;;  %v15063_v56 = vpop.f32.mrf.mxu0 }
 0x5d0   : > { %v5760_v45 = vpop.f32.mrf.mxu1  ;;  %15852 = vst [vmem:[#allocation93_spill] sm:$0xff] %v15063_v56 }
 0x5d1   : > { %v15025_v13 = vadd.f32 %v5760_v45, %v5573_v18  ;;  %v15845_v45 = vld [vmem:[#allocation26_spill] sm:$0xff] }
 0x5d2   : > { %v10275_v50 = vpop.f32.mrf.mxu1  ;;  %v5577_v53 = vadd.f32 %v15845_v45, %v14863_v35  ;;  %v15850_v35 = vld [vmem:[#allocation29_spill] sm:$0xff] }
 0x5d3   : > { %v15029_v59 = vadd.f32 %v10275_v50, %v5576_v16  ;;  %v5582_v45 = vadd.f32 %v15850_v35, %v14881_v49  ;;  %v15073_v35 = vpop.f32.mrf.mxu0 }
 0x5d4   : > { %v5770_v57 = vpop.f32.mrf.mxu1  ;;  %15855 = vst [vmem:[#allocation51_spill] sm:$0xff] %v15073_v35 }
 0x5d5   : > { %v15035_v19 = vadd.f32 %v5770_v57, %v5575_v29  ;;  %v15848_v57 = vld [vmem:[#allocation28_spill] sm:$0xff] }
 0x5d6   : > { %v10278_v33 = vpop.f32.mrf.mxu1  ;;  %v5579_v20 = vadd.f32 %v15848_v57, %v14875_v22  ;;  %v15853_v22 = vld [vmem:[#allocation31_spill] sm:$0xff] }
 0x5d7   : > { %v15039_v18 = vadd.f32 %v10278_v33, %v5578_v61  ;;  %v5584_v57 = vadd.f32 %v15853_v22, %v14891_v55  ;;  %v15083_v22 = vpop.f32.mrf.mxu0 }
 0x5d8   : > { %v5780_v50 = vpop.f32.mrf.mxu1  ;;  %15858 = vst [vmem:[#allocation95_spill] sm:$0xff] %v15083_v22 }
 0x5d9   : > { %v15045_v16 = vadd.f32 %v5780_v50, %v5577_v53  ;;  %v15851_v50 = vld [vmem:[#allocation30_spill] sm:$0xff] }
 0x5da   : > { %v10281_v1 = vpop.f32.mrf.mxu1  ;;  %v5581_v11 = vadd.f32 %v15851_v50, %v14887_v42  ;;  %v15856_v42 = vld [vmem:[#allocation33_spill] sm:$0xff] }
 0x5db   : > { %v15049_v29 = vadd.f32 %v10281_v1, %v5580_v39  ;;  %v5586_v50 = vadd.f32 %v15856_v42, %v14901_v0  ;;  %v15093_v42 = vpop.f32.mrf.mxu0 }
 0x5dc   : > { %v5790_v33 = vpop.f32.mrf.mxu1  ;;  %15861 = vst [vmem:[#allocation53_spill] sm:$0xff] %v15093_v42 }
 0x5dd   : > { %v15055_v61 = vadd.f32 %v5790_v33, %v5579_v20  ;;  %v15854_v33 = vld [vmem:[#allocation32_spill] sm:$0xff] }
 0x5de   : > { %v10284_v60 = vpop.f32.mrf.mxu1  ;;  %v5583_v49 = vadd.f32 %v15854_v33, %v14897_v4  ;;  %v15859_v4 = vld [vmem:[#allocation35_spill] sm:$0xff] }
 0x5df   : > { %v15059_v53 = vadd.f32 %v10284_v60, %v5582_v45  ;;  %v5588_v33 = vadd.f32 %v15859_v4, %v14911_v12  ;;  %v15103_v4 = vpop.f32.mrf.mxu0 }
 0x5e0   : > { %v5800_v1 = vpop.f32.mrf.mxu1  ;;  %15864 = vst [vmem:[#allocation97_spill] sm:$0xff] %v15103_v4 }
 0x5e1   : > { %v15065_v39 = vadd.f32 %v5800_v1, %v5581_v11  ;;  %v15857_v1 = vld [vmem:[#allocation34_spill] sm:$0xff] }
 0x5e2   : > { %v10287_v34 = vpop.f32.mrf.mxu1  ;;  %v5585_v55 = vadd.f32 %v15857_v1, %v14907_v7  ;;  %v15862_v7 = vld [vmem:[#allocation38_spill] sm:$0xff] }
 0x5e3   : > { %v15069_v20 = vadd.f32 %v10287_v34, %v5584_v57  ;;  %v5590_v1 = vadd.f32 %v15862_v7, %v14921_v10  ;;  %v10604_v7 = vpop.f32.mrf.mxu0 }
 0x5e4   : > { %v5810_v60 = vpop.f32.mrf.mxu1 }
 0x5e5   : > { %v15075_v45 = vadd.f32 %v5810_v60, %v5583_v49  ;;  %v15860_v60 = vld [vmem:[#allocation36_spill] sm:$0xff] }
 0x5e6   : > { %v10290_v56 = vpop.f32.mrf.mxu1  ;;  %v5587_v0 = vadd.f32 %v15860_v60, %v14917_v51  ;;  %v15865_v51 = vld [vmem:[#allocation42_spill] sm:$0xff] }
 0x5e7   : > { %v15079_v11 = vadd.f32 %v10290_v56, %v5586_v50  ;;  %v5592_v60 = vadd.f32 %v15865_v51, %v14931_v9  ;;  %v7056_v9 = vpop.f32.mrf.mxu0 }
 0x5e8   : > { %v5820_v34 = vpop.f32.mrf.mxu1 }
 0x5e9   : > { %v15085_v57 = vadd.f32 %v5820_v34, %v5585_v55  ;;  %v15863_v34 = vld [vmem:[#allocation40_spill] sm:$0xff] }
 0x5ea   : > { %v10293_v35 = vpop.f32.mrf.mxu1  ;;  %v5589_v12 = vadd.f32 %v15863_v34, %v14927_v25  ;;  %v15868_v25 = vld [vmem:[#allocation46_spill] sm:$0xff] }
 0x5eb   : > { %v15089_v49 = vadd.f32 %v10293_v35, %v5588_v33  ;;  %v5594_v34 = vadd.f32 %v15868_v25, %v14941_v58  ;;  %v10607_v58 = vpop.f32.mrf.mxu0 }
 0x5ec   : > { %v5830_v56 = vpop.f32.mrf.mxu1 }
 0x5ed   : > { %v15095_v50 = vadd.f32 %v5830_v56, %v5587_v0  ;;  %v15867_v56 = vld [vmem:[#allocation44_spill] sm:$0xff] }
 0x5ee   : > { %v10296_v22 = vpop.f32.mrf.mxu1  ;;  %v5591_v10 = vadd.f32 %v15867_v56, %v14937_v21 }
 0x5ef   : > { %v15099_v55 = vadd.f32 %v10296_v22, %v5590_v1 }
 0x5f0   : > { %v5840_v35 = vpop.f32.mrf.mxu1 }
 0x5f1   : > { %v15105_v33 = vadd.f32 %v5840_v35, %v5589_v12  ;;  %v15870_v12 = vld [vmem:[#allocation48_spill] sm:$0xff] }
 0x5f2   : > { %v10299_v42 = vpop.f32.mrf.mxu1  ;;  %v5593_v35 = vadd.f32 %v15870_v12, %v14947_v54 }
 0x5f3   : > { %v15109_v0 = vadd.f32 %v10299_v42, %v5592_v60  ;;  %v15871_v60 = vld [vmem:[#allocation50_spill] sm:$0xff] }
 0x5f4   : > { %v5850_v22 = vpop.f32.mrf.mxu1  ;;  %v5596_v21 = vadd.f32 %v15871_v60, %v14951_v44  ;;  %v7066_v44 = vpop.f32.mrf.mxu0 }
 0x5f5   : > { %15866 = vst [vmem:[#allocation55_spill] sm:$0xff] %v15109_v0  ;;  %v15113_v1 = vadd.f32 %v5850_v22, %v5591_v10  ;;  %v15872_v10 = vld [vmem:[#allocation52_spill] sm:$0xff] }
 0x5f6   : > { %v10302_v4 = vpop.f32.mrf.mxu1  ;;  %v5595_v22 = vadd.f32 %v15872_v10, %v14957_v2 }
 0x5f7   : > { %v15117_v8 = vadd.f32 %v10302_v4, %v5594_v34  ;;  %v15873_v34 = vld [vmem:[#allocation54_spill] sm:$0xff] }
 0x5f8   : > { %v5860_v51 = vpop.f32.mrf.mxu1  ;;  %v5598_v54 = vadd.f32 %v15873_v34, %v14961_v37  ;;  %v10610_v34 = vpop.f32.mrf.mxu0 }
 0x5f9   : > { %15869 = vst [vmem:[#allocation99_spill] sm:$0xff] %v15117_v8  ;;  %v15121_v42 = vadd.f32 %v5860_v51, %v5593_v35  ;;  %v15875_v35 = vld [vmem:[#allocation56_spill] sm:$0xff] }
 0x5fa   : > { %v10305_v56 = vpop.f32.mrf.mxu1  ;;  %v5597_v51 = vadd.f32 %v15875_v35, %v14967_v30  ;;  %v15881_v30 = vld [vmem:[#allocation59_spill] sm:$0xff] }
 0x5fb   : > { %v15125_v0 = vadd.f32 %v10305_v56, %v5596_v21  ;;  %v15877_v56 = vld [vmem:[#allocation57_spill] sm:$0xff]  ;;  %v6234_v35 = vadd.f32 %v15881_v30, %v14979_v17 }
 0x5fc   : > { %v5870_v25 = vpop.f32.mrf.mxu1  ;;  %v5600_v2 = vadd.f32 %v15877_v56, %v14971_v24  ;;  %v7076_v24 = vpop.f32.mrf.mxu0 }
 0x5fd   : > { %v15129_v4 = vadd.f32 %v5870_v25, %v5595_v22  ;;  %v15879_v25 = vld [vmem:[#allocation58_spill] sm:$0xff] }
 0x5fe   : > { %v10308_v12 = vpop.f32.mrf.mxu1  ;;  %v5599_v37 = vadd.f32 %v15879_v25, %v14975_v48  ;;  %v15158_v25 = vld [vmem:[%s15434_s4] ss:$0 sm:$0xff] }
 0x5ff   : > { %v15133_v8 = vadd.f32 %v10308_v12, %v5598_v54 }
 0x600   : > { %v5880_v60 = vpop.f32.mrf.mxu1 }
 0x601   : > { %15874 = vst [vmem:[#allocation13_spill] sm:$0xff] %v15133_v8  ;;  %v15137_v21 = vadd.f32 %v5880_v60, %v5597_v51  ;;  %v15882_v60 = vld [vmem:[#allocation60_spill] sm:$0xff] }
 0x602   : > { %v10311_v10 = vpop.f32.mrf.mxu1 }
 0x603   : > { %15876 = vst [vmem:[#allocation14_spill] sm:$0xff] %v15137_v21  ;;  %v15141_v22 = vadd.f32 %v10311_v10, %v5600_v2  ;;  %v6233_v21 = vadd.f32 %v15882_v60, %v14985_v32  ;;  %v15884_v32 = vld [vmem:[#allocation62_spill] sm:$0xff]  ;;  %v15885_v60 = vld [vmem:[#allocation63_spill] sm:$0xff] }
 0x604   : > { %v5890_v54 = vpop.f32.mrf.mxu1  ;;  %v6235_v30 = vadd.f32 %v15884_v32, %v14995_v3 }
 0x605   : > { %15878 = vst [vmem:[#allocation15_spill] sm:$0xff] %v15141_v22  ;;  %v15145_v12 = vadd.f32 %v5890_v54, %v5599_v37  ;;  %v15883_v22 = vld [vmem:[#allocation61_spill] sm:$0xff] }
 0x606   : > { %v10432_v8 = vpop.f32.mrf.mxu1  ;;  %v6236_v48 = vadd.f32 %v15883_v22, %v14989_v63 }
 0x607   : > { %15880 = vst [vmem:[#allocation16_spill] sm:$0xff] %v15145_v12  ;;  %v6568_v51 = vadd.f32 %v10432_v8, %v6234_v35  ;;  %v10613_v35 = vpop.f32.mrf.mxu0 }
 0x608   : > { %v6388_v56 = vpop.f32.mrf.mxu1 }
 0x609   : > { %v6902_v2 = vadd.f32 %v14805_v38, %v6568_v51  ;;  %v6567_v10 = vadd.f32 %v6388_v56, %v6233_v21  ;;  %v6238_v56 = vadd.f32 %v15885_v60, %v14999_v43 }
 0x60a   : > { %v10435_v17 = vpop.f32.mrf.mxu1 }
 0x60b   : > { %v7236_v37 = vadd.f32 %v10604_v7, %v6902_v2  ;;  %v6901_v8 = vadd.f32 %v14811_v5, %v6567_v10  ;;  %v6570_v54 = vadd.f32 %v10435_v17, %v6236_v48  ;;  %v15886_v7 = vld [vmem:[#allocation64_spill] sm:$0xff]  ;;  %v7086_v17 = vpop.f32.mrf.mxu0 }
 0x60c   : > { %v6398_v38 = vpop.f32.mrf.mxu1  ;;  %v6237_v2 = vadd.f32 %v15886_v7, %v15005_v36 }
 0x60d   : > { %v7279_v21 = vadd.f32 %v15158_v25, %v7236_v37  ;;  %v7235_v51 = vadd.f32 %v7056_v9, %v6901_v8  ;;  %v6904_v63 = vadd.f32 %v14817_v6, %v6570_v54  ;;  %v6569_v22 = vadd.f32 %v6398_v38, %v6235_v30  ;;  %v15887_v9 = vld [vmem:[#allocation65_spill] sm:$0xff] }
 0x60e   : > { %v10438_v12 = vpop.f32.mrf.mxu1  ;;  %v6240_v6 = vadd.f32 %v15887_v9, %v15009_v14 }
 0x60f   : > { %v7315_v5 = vmax.f32 %v7279_v21, 0.0  ;;  %v7278_v10 = vadd.f32 %v15158_v25, %v7235_v51  ;;  %v7238_v48 = vadd.f32 %v10607_v58, %v6904_v63  ;;  %v6903_v3 = vadd.f32 %v14823_v27, %v6569_v22  ;;  %v10616_v63 = vpop.f32.mrf.mxu0 }
 0x610   : > { %v6572_v32 = vadd.f32 %v10438_v12, %v6238_v56  ;;  %v6408_v37 = vpop.f32.mrf.mxu1  ;;  %v15888_v12 = vld [vmem:[#allocation66_spill] sm:$0xff] }
 0x611   : > { %7351 = vst [vmem:[%s15173_s12 + $0x8] sm:$0xff] %v7315_v5  ;;  %v7314_v43 = vmax.f32 %v7278_v10, 0.0  ;;  %v7281_v36 = vadd.f32 %v15158_v25, %v7238_v48  ;;  %v7237_v8 = vadd.f32 %v7066_v44, %v6903_v3  ;;  %v6571_v54 = vadd.f32 %v6408_v37, %v6237_v2  ;;  %v15889_v44 = vld [vmem:[#allocation67_spill] sm:$0xff]  ;;  %v15890_v37 = vld [vmem:[#allocation68_spill] sm:$0xff] }
 0x612   : > { %v6906_v58 = vadd.f32 %v14829_v47, %v6572_v32  ;;  %v10441_v27 = vpop.f32.mrf.mxu1  ;;  %v6239_v30 = vadd.f32 %v15888_v12, %v15015_v46  ;;  %v6242_v56 = vadd.f32 %v15889_v44, %v15019_v41  ;;  %v7096_v32 = vpop.f32.mrf.mxu0 }
 0x613   : > { %7350 = vst [vmem:[%s15173_s12] sm:$0xff] %v7314_v43  ;;  %v7317_v14 = vmax.f32 %v7281_v36, 0.0  ;;  %v7280_v38 = vadd.f32 %v15158_v25, %v7237_v8  ;;  %v6905_v21 = vadd.f32 %v14835_v31, %v6571_v54  ;;  %v6574_v51 = vadd.f32 %v10441_v27, %v6240_v6 }
 0x614   : > { %v7240_v22 = vadd.f32 %v10610_v34, %v6906_v58  ;;  %v6418_v60 = vpop.f32.mrf.mxu1  ;;  %v15892_v58 = vld [vmem:[#allocation70_spill] sm:$0xff] }
 0x615   : > { %7353 = vst [vmem:[%s15173_s12 + $0x18] sm:$0xff] %v7317_v14  ;;  %v7316_v47 = vmax.f32 %v7280_v38, 0.0  ;;  %v7239_v7 = vadd.f32 %v7076_v24, %v6905_v21  ;;  %v6908_v2 = vadd.f32 %v14841_v15, %v6574_v51  ;;  %v6573_v46 = vadd.f32 %v6418_v60, %v6239_v30  ;;  %v15891_v15 = vld [vmem:[#allocation69_spill] sm:$0xff]  ;;  %v10619_v14 = vpop.f32.mrf.mxu0 }
 0x616   : > { %v7283_v5 = vadd.f32 %v15158_v25, %v7240_v22  ;;  %v10444_v10 = vpop.f32.mrf.mxu1  ;;  %v6241_v24 = vadd.f32 %v15890_v37, %v15025_v13  ;;  %v6244_v6 = vadd.f32 %v15891_v15, %v15029_v59  ;;  %v6243_v27 = vadd.f32 %v15892_v58, %v15035_v19 }
 0x617   : > { %7352 = vst [vmem:[%s15173_s12 + $0x10] sm:$0xff] %v7316_v47  ;;  %v7282_v31 = vadd.f32 %v15158_v25, %v7239_v7  ;;  %v7242_v48 = vadd.f32 %v10613_v35, %v6908_v2  ;;  %v6907_v34 = vadd.f32 %v14847_v40, %v6573_v46  ;;  %v6576_v3 = vadd.f32 %v10444_v10, %v6242_v56 }
 0x618   : > { %v7319_v41 = vmax.f32 %v7283_v5, 0.0  ;;  %v6428_v9 = vpop.f32.mrf.mxu1 }
 0x619   : > { %v7318_v43 = vmax.f32 %v7282_v31, 0.0  ;;  %v7285_v36 = vadd.f32 %v15158_v25, %v7242_v48  ;;  %v7241_v8 = vadd.f32 %v7086_v17, %v6907_v34  ;;  %v6910_v35 = vadd.f32 %v14853_v26, %v6576_v3 }
 0x61a   : > { %7355 = vst [vmem:[%s15173_s12 + $0x28] sm:$0xff] %v7319_v41  ;;  %v6575_v54 = vadd.f32 %v6428_v9, %v6241_v24  ;;  %v10447_v40 = vpop.f32.mrf.mxu1 }
 0x61b   : > { %7354 = vst [vmem:[%s15173_s12 + $0x20] sm:$0xff] %v7318_v43  ;;  %v7321_v13 = vmax.f32 %v7285_v36, 0.0  ;;  %v7284_v12 = vadd.f32 %v15158_v25, %v7241_v8  ;;  %v7244_v30 = vadd.f32 %v10616_v63, %v6910_v35  ;;  %v6578_v59 = vadd.f32 %v10447_v40, %v6244_v6 }
 0x61c   : > { %v6909_v38 = vadd.f32 %v14859_v23, %v6575_v54  ;;  %v6438_v17 = vpop.f32.mrf.mxu1  ;;  %v7106_v23 = vpop.f32.mrf.mxu0 }
 0x61d   : > { %7357 = vst [vmem:[%s15173_s12 + $0x38] sm:$0xff] %v7321_v13  ;;  %v7320_v26 = vmax.f32 %v7284_v12, 0.0  ;;  %v7287_v21 = vadd.f32 %v15158_v25, %v7244_v30  ;;  %v6912_v51 = vadd.f32 %v14865_v28, %v6578_v59  ;;  %v6577_v22 = vadd.f32 %v6438_v17, %v6243_v27  ;;  %v15893_v13 = vld [vmem:[#allocation71_spill] sm:$0xff] }
 0x61e   : > { %v7243_v19 = vadd.f32 %v7096_v32, %v6909_v38  ;;  %v10450_v60 = vpop.f32.mrf.mxu1  ;;  %v6246_v12 = vadd.f32 %v15893_v13, %v15039_v18  ;;  %v15901_v13 = vld [vmem:[#allocation77_spill] sm:$0xff] }
 0x61f   : > { %7356 = vst [vmem:[%s15173_s12 + $0x30] sm:$0xff] %v7320_v26  ;;  %v7323_v44 = vmax.f32 %v7287_v21, 0.0  ;;  %v7246_v63 = vadd.f32 %v10619_v14, %v6912_v51  ;;  %v6911_v56 = vadd.f32 %v14871_v52, %v6577_v22  ;;  %v15894_v14 = vld [vmem:[#allocation72_spill] sm:$0xff]  ;;  %v15895_v21 = vld [vmem:[#allocation73_spill] sm:$0xff] }
 0x620   : > { %v7286_v47 = vadd.f32 %v15158_v25, %v7243_v19  ;;  %v6448_v7 = vpop.f32.mrf.mxu1  ;;  %v6580_v59 = vadd.f32 %v10450_v60, %v6246_v12  ;;  %v6245_v38 = vadd.f32 %v15894_v14, %v15045_v16  ;;  %v6248_v51 = vadd.f32 %v15895_v21, %v15049_v29  ;;  %v15902_v14 = vld [vmem:[#allocation107_spill] sm:$0xff] }
 0x621   : > { %7359 = vst [vmem:[%s15173_s12 + $0x48] sm:$0xff] %v7323_v44  ;;  %v7289_v2 = vadd.f32 %v15158_v25, %v7246_v63  ;;  %v7245_v46 = vadd.f32 %v7106_v23, %v6911_v56  ;;  %v15896_v44 = vld [vmem:[#allocation74_spill] sm:$0xff]  ;;  %v15897_v56 = vld [vmem:[#allocation75_spill] sm:$0xff] }
 0x622   : > { %v7322_v28 = vmax.f32 %v7286_v47, 0.0  ;;  %v10453_v5 = vpop.f32.mrf.mxu1  ;;  %v6579_v26 = vadd.f32 %v6448_v7, %v6245_v38  ;;  %v6247_v63 = vadd.f32 %v15896_v44, %v15055_v61  ;;  %v6914_v18 = vadd.f32 %v14877_v62, %v6580_v59  ;;  %v15900_v61 = vld [vmem:[#allocation106_spill] sm:$0xff] }
 0x623   : > { %v7325_v10 = vmax.f32 %v7289_v2, 0.0  ;;  %v7288_v31 = vadd.f32 %v15158_v25, %v7245_v46  ;;  %v6582_v19 = vadd.f32 %v10453_v5, %v6248_v51  ;;  %v6250_v60 = vadd.f32 %v15897_v56, %v15059_v53  ;;  %v15898_v2 = vld [vmem:[#allocation105_spill] sm:$0xff]  ;;  %v15904_v51 = vld [vmem:[#allocation108_spill] sm:$0xff] }
 0x624   : > { %7358 = vst [vmem:[%s15173_s12 + $0x40] sm:$0xff] %v7322_v28  ;;  %v6458_v48 = vpop.f32.mrf.mxu1  ;;  %v6913_v46 = vadd.f32 %v15898_v2, %v6579_v26  ;;  %v15899_v28 = vld [vmem:[#allocation76_spill] sm:$0xff]  ;;  %v6252_v53 = vadd.f32 %v15901_v13, %v15069_v20 }
 0x625   : > { %7361 = vst [vmem:[%s15173_s12 + $0x58] sm:$0xff] %v7325_v10  ;;  %v7324_v34 = vmax.f32 %v7288_v31, 0.0  ;;  %v6581_v47 = vadd.f32 %v6458_v48, %v6247_v63  ;;  %v6249_v29 = vadd.f32 %v15899_v28, %v15065_v39  ;;  %v15903_v39 = vld [vmem:[#allocation78_spill] sm:$0xff] }
 0x626   : > { %v10456_v3 = vpop.f32.mrf.mxu1  ;;  %v6251_v26 = vadd.f32 %v15903_v39, %v15075_v45 }
 0x627   : > { %7360 = vst [vmem:[%s15173_s12 + $0x50] sm:$0xff] %v7324_v34  ;;  %v6584_v7 = vadd.f32 %v10456_v3, %v6250_v60  ;;  %v6916_v34 = vadd.f32 %v15900_v61, %v6582_v19  ;;  %v6915_v38 = vadd.f32 %v15902_v14, %v6581_v47 }
 0x628   : > { %v6468_v52 = vpop.f32.mrf.mxu1 }
 0x629   : > { %v6583_v62 = vadd.f32 %v6468_v52, %v6249_v29  ;;  %v6918_v44 = vadd.f32 %v15904_v51, %v6584_v7  ;;  %v15907_v7 = vld [vmem:[#allocation80_spill] sm:$0xff]  ;;  %v15913_v51 = vld [vmem:[#allocation86_spill] sm:$0xff] }
 0x62a   : > { %v10459_v32 = vpop.f32.mrf.mxu1  ;;  %v6253_v28 = vadd.f32 %v15907_v7, %v15085_v57  ;;  %v15918_v7 = vld [vmem:[#allocation90_spill] sm:$0xff] }
 0x62b   : > { %v6586_v63 = vadd.f32 %v10459_v32, %v6252_v53 }
 0x62c   : > { %v6478_v41 = vpop.f32.mrf.mxu1 }
 0x62d   : > { %v6585_v47 = vadd.f32 %v6478_v41, %v6251_v26 }
 0x62e   : > { %v10462_v37 = vpop.f32.mrf.mxu1 }
 0x630   : > { %v15215_v24 = vpop.f32.mrf.mxu1 }
 0x631   : > { %v6587_v41 = vadd.f32 %v15215_v24, %v6253_v28 }
 0x632   : > { %v15217_v9 = vpop.f32.mrf.mxu1 }
 0x634   : > { %v15219_v15 = vpop.f32.mrf.mxu1 }
 0x636   : > { %v15221_v6 = vpop.f32.mrf.mxu1 }
 0x638   : > { %v15223_v43 = vpop.f32.mrf.mxu1 }
 0x63a   : > { %v15225_v36 = vpop.f32.mrf.mxu1 }
 0x63c   : > { %v15227_v8 = vpop.f32.mrf.mxu1 }
 0x63e   : > { %v15229_v35 = vpop.f32.mrf.mxu1 }
 0x640   : > { %v15231_v54 = vpop.f32.mrf.mxu1 }
 0x642   : > { %v15233_v40 = vpop.f32.mrf.mxu1 }
 0x644   : > { %v15235_v58 = vpop.f32.mrf.mxu1 }
 0x646   : > { %v15237_v27 = vpop.f32.mrf.mxu1 }
 0x648   : > { %v15241_v30 = vpop.f32.mrf.mxu1 }
 0x64a   : > { %v15245_v17 = vpop.f32.mrf.mxu1 }
 0x64c   : > { %v15249_v22 = vpop.f32.mrf.mxu1 }
 0x64e   : > { %v10622_v23 = vpop.f32.mrf.mxu1 }
 0x64f   : > { %v7248_v16 = vadd.f32 %v10622_v23, %v6914_v18  ;;  %v15905_v18 = vld [vmem:[#allocation79_spill] sm:$0xff]  ;;  %v15906_v23 = vld [vmem:[#allocation109_spill] sm:$0xff] }
 0x650   : > { %v7116_v10 = vpop.f32.mrf.mxu1  ;;  %v6254_v56 = vadd.f32 %v15905_v18, %v15079_v11 }
 0x651   : > { %v7291_v5 = vadd.f32 %v15158_v25, %v7248_v16  ;;  %v7247_v31 = vadd.f32 %v7116_v10, %v6913_v46  ;;  %v6917_v16 = vadd.f32 %v15906_v23, %v6583_v62 }
 0x652   : > { %v10625_v12 = vpop.f32.mrf.mxu1  ;;  %v6588_v32 = vadd.f32 %v10462_v37, %v6254_v56 }
 0x653   : > { %v7327_v48 = vmax.f32 %v7291_v5, 0.0  ;;  %v7290_v59 = vadd.f32 %v15158_v25, %v7247_v31  ;;  %v7250_v3 = vadd.f32 %v10625_v12, %v6916_v34  ;;  %v15908_v31 = vld [vmem:[#allocation37_spill] sm:$0xff]  ;;  %v15909_v34 = vld [vmem:[#allocation82_spill] sm:$0xff] }
 0x654   : > { %v7126_v21 = vpop.f32.mrf.mxu1  ;;  %v6920_v61 = vadd.f32 %v15908_v31, %v6586_v63  ;;  %v6256_v62 = vadd.f32 %v15909_v34, %v15089_v49  ;;  %v15910_v12 = vld [vmem:[#allocation81_spill] sm:$0xff]  ;;  %v15920_v31 = vld [vmem:[#allocation92_spill] sm:$0xff]  ;;  %v15921_v34 = vld [vmem:[#allocation43_spill] sm:$0xff] }
 0x655   : > { %7363 = vst [vmem:[%s15173_s12 + $0x68] sm:$0xff] %v7327_v48  ;;  %v7326_v52 = vmax.f32 %v7290_v59, 0.0  ;;  %v7293_v20 = vadd.f32 %v15158_v25, %v7250_v3  ;;  %v7249_v19 = vadd.f32 %v7126_v21, %v6915_v38  ;;  %v6919_v48 = vadd.f32 %v15910_v12, %v6585_v47  ;;  %v15911_v59 = vld [vmem:[#allocation84_spill] sm:$0xff]  ;;  %v15912_v38 = vld [vmem:[#allocation39_spill] sm:$0xff]  ;;  %v15923_v12 = vld [vmem:[#allocation94_spill] sm:$0xff] }
 0x656   : > { %v10628_v60 = vpop.f32.mrf.mxu1  ;;  %v6255_v3 = vadd.f32 %v15911_v59, %v15095_v50  ;;  %v6922_v39 = vadd.f32 %v15912_v38, %v6588_v32  ;;  %v6590_v24 = vadd.f32 %v15217_v9, %v6256_v62  ;;  %v15917_v32 = vld [vmem:[#allocation55_spill] sm:$0xff] }
 0x657   : > { %7362 = vst [vmem:[%s15173_s12 + $0x60] sm:$0xff] %v7326_v52  ;;  %v7329_v45 = vmax.f32 %v7293_v20, 0.0  ;;  %v7292_v2 = vadd.f32 %v15158_v25, %v7249_v19  ;;  %v7252_v46 = vadd.f32 %v10628_v60, %v6918_v44  ;;  %v6258_v44 = vadd.f32 %v15913_v51, %v15099_v55  ;;  %v15914_v52 = vld [vmem:[#allocation83_spill] sm:$0xff]  ;;  %v15915_v60 = vld [vmem:[#allocation88_spill] sm:$0xff] }
 0x658   : > { %v7136_v29 = vpop.f32.mrf.mxu1  ;;  %v6921_v20 = vadd.f32 %v15914_v52, %v6587_v41  ;;  %v6589_v19 = vadd.f32 %v15219_v15, %v6255_v3  ;;  %v6257_v23 = vadd.f32 %v15915_v60, %v15105_v33  ;;  %v6260_v28 = vadd.f32 %v15918_v7, %v15917_v32  ;;  %v15924_v3 = vld [vmem:[#allocation87_spill] sm:$0xff]  ;;  %v15926_v52 = vld [vmem:[#allocation45_spill] sm:$0xff] }
 0x659   : > { %7365 = vst [vmem:[%s15173_s12 + $0x78] sm:$0xff] %v7329_v45  ;;  %v7328_v10 = vmax.f32 %v7292_v2, 0.0  ;;  %v7295_v11 = vadd.f32 %v15158_v25, %v7252_v46  ;;  %v7251_v5 = vadd.f32 %v7136_v29, %v6917_v16  ;;  %v6592_v56 = vadd.f32 %v15221_v6, %v6258_v44  ;;  %v15916_v2 = vld [vmem:[#allocation41_spill] sm:$0xff] }
 0x65a   : > { %v10631_v13 = vpop.f32.mrf.mxu1  ;;  %v6924_v15 = vadd.f32 %v15916_v2, %v6590_v24  ;;  %v6591_v46 = vadd.f32 %v15223_v43, %v6257_v23  ;;  %v6594_v43 = vadd.f32 %v15225_v36, %v6260_v28  ;;  %v15929_v23 = vld [vmem:[#allocation100_spill] sm:$0xff]  ;;  %v15932_v32 = vld [vmem:[#allocation101_spill] sm:$0xff] }
 0x65b   : > { %7364 = vst [vmem:[%s15173_s12 + $0x70] sm:$0xff] %v7328_v10  ;;  %v7331_v37 = vmax.f32 %v7295_v11, 0.0  ;;  %v7294_v57 = vadd.f32 %v15158_v25, %v7251_v5  ;;  %v7254_v53 = vadd.f32 %v10631_v13, %v6920_v61  ;;  %v15919_v11 = vld [vmem:[#allocation85_spill] sm:$0xff]  ;;  %v6259_v61 = vadd.f32 %v15920_v31, %v15113_v1  ;;  %v15935_v31 = vld [vmem:[#allocation102_spill] sm:$0xff] }
 0x65c   : > { %v7146_v14 = vpop.f32.mrf.mxu1  ;;  %v6923_v5 = vadd.f32 %v15919_v11, %v6589_v19  ;;  %v6926_v62 = vadd.f32 %v15921_v34, %v6592_v56  ;;  %v15927_v19 = vld [vmem:[#allocation98_spill] sm:$0xff]  ;;  %v15928_v56 = vld [vmem:[#allocation89_spill] sm:$0xff] }
 0x65d   : > { %7367 = vst [vmem:[%s15173_s12 + $0x88] sm:$0xff] %v7331_v37  ;;  %v7330_v49 = vmax.f32 %v7294_v57, 0.0  ;;  %v7297_v26 = vadd.f32 %v15158_v25, %v7254_v53  ;;  %v7253_v21 = vadd.f32 %v7146_v14, %v6919_v48  ;;  %v15922_v53 = vld [vmem:[#allocation99_spill] sm:$0xff]  ;;  %v6925_v14 = vadd.f32 %v15924_v3, %v6591_v46  ;;  %v15931_v46 = vld [vmem:[#allocation13_spill] sm:$0xff] }
 0x65e   : > { %v10634_v63 = vpop.f32.mrf.mxu1  ;;  %v6262_v48 = vadd.f32 %v15923_v12, %v15922_v53  ;;  %v6593_v38 = vadd.f32 %v15227_v8, %v6259_v61  ;;  %v6928_v8 = vadd.f32 %v15926_v52, %v6594_v43  ;;  %v6266_v7 = vadd.f32 %v15932_v32, %v15931_v46  ;;  %v15938_v53 = vld [vmem:[#allocation103_spill] sm:$0xff] }
 0x65f   : > { %7366 = vst [vmem:[%s15173_s12 + $0x80] sm:$0xff] %v7330_v49  ;;  %v7333_v50 = vmax.f32 %v7297_v26, 0.0  ;;  %v7296_v18 = vadd.f32 %v15158_v25, %v7253_v21  ;;  %v7256_v9 = vadd.f32 %v10634_v63, %v6922_v39  ;;  %v15925_v49 = vld [vmem:[#allocation96_spill] sm:$0xff]  ;;  %v15943_v52 = vld [vmem:[#allocation95_spill] sm:$0xff] }
 0x660   : > { %v7156_v16 = vpop.f32.mrf.mxu1  ;;  %v6596_v24 = vadd.f32 %v15229_v35, %v6262_v48  ;;  %v6261_v26 = vadd.f32 %v15925_v49, %v15121_v42  ;;  %v6927_v60 = vadd.f32 %v15928_v56, %v6593_v38  ;;  %v6600_v11 = vadd.f32 %v15237_v27, %v6266_v7  ;;  %v15942_v49 = vld [vmem:[#allocation51_spill] sm:$0xff]  ;;  %v15944_v56 = vld [vmem:[#allocation53_spill] sm:$0xff] }
 0x661   : > { %7369 = vst [vmem:[%s15173_s12 + $0x98] sm:$0xff] %v7333_v50  ;;  %v7332_v47 = vmax.f32 %v7296_v18, 0.0  ;;  %v7299_v55 = vadd.f32 %v15158_v25, %v7256_v9  ;;  %v7255_v45 = vadd.f32 %v7156_v16, %v6921_v20  ;;  %v6264_v50 = vadd.f32 %v15927_v19, %v15125_v0 }
 0x662   : > { %v10637_v29 = vpop.f32.mrf.mxu1  ;;  %v6595_v20 = vadd.f32 %v15231_v54, %v6261_v26  ;;  %v6263_v16 = vadd.f32 %v15929_v23, %v15129_v4  ;;  %v6934_v26 = vadd.f32 %v15942_v49, %v6600_v11 }
 0x663   : > { %7368 = vst [vmem:[%s15173_s12 + $0x90] sm:$0xff] %v7332_v47  ;;  %v7335_v6 = vmax.f32 %v7299_v55, 0.0  ;;  %v7298_v33 = vadd.f32 %v15158_v25, %v7255_v45  ;;  %v7258_v10 = vadd.f32 %v10637_v29, %v6924_v15  ;;  %v15930_v55 = vld [vmem:[#allocation47_spill] sm:$0xff]  ;;  %v6598_v54 = vadd.f32 %v15233_v40, %v6264_v50 }
 0x664   : > { %v7166_v41 = vpop.f32.mrf.mxu1  ;;  %v6930_v45 = vadd.f32 %v15930_v55, %v6596_v24  ;;  %v15933_v29 = vld [vmem:[#allocation91_spill] sm:$0xff]  ;;  %v15945_v55 = vld [vmem:[#allocation97_spill] sm:$0xff] }
 0x665   : > { %7371 = vst [vmem:[%s15173_s12 + $0xa8] sm:$0xff] %v7335_v6  ;;  %v7334_v13 = vmax.f32 %v7298_v33, 0.0  ;;  %v7301_v37 = vadd.f32 %v15158_v25, %v7258_v10  ;;  %v7257_v57 = vadd.f32 %v7166_v41, %v6923_v5  ;;  %v6929_v6 = vadd.f32 %v15933_v29, %v6595_v20  ;;  %v15934_v5 = vld [vmem:[#allocation14_spill] sm:$0xff] }
 0x666   : > { %v10640_v59 = vpop.f32.mrf.mxu1  ;;  %v6597_v33 = vadd.f32 %v15235_v58, %v6263_v16  ;;  %v6265_v61 = vadd.f32 %v15935_v31, %v15934_v5 }
 0x667   : > { %7370 = vst [vmem:[%s15173_s12 + $0xa0] sm:$0xff] %v7334_v13  ;;  %v7337_v1 = vmax.f32 %v7301_v37, 0.0  ;;  %v7300_v39 = vadd.f32 %v15158_v25, %v7257_v57  ;;  %v7260_v36 = vadd.f32 %v10640_v59, %v6926_v62  ;;  %v15936_v13 = vld [vmem:[#allocation49_spill] sm:$0xff]  ;;  %v15937_v57 = vld [vmem:[#allocation15_spill] sm:$0xff] }
 0x668   : > { %v7176_v21 = vpop.f32.mrf.mxu1  ;;  %v6932_v58 = vadd.f32 %v15936_v13, %v6598_v54  ;;  %v6599_v37 = vadd.f32 %v15241_v30, %v6265_v61  ;;  %v6268_v12 = vadd.f32 %v15938_v53, %v15937_v57 }
 0x669   : > { %7373 = vst [vmem:[%s15173_s12 + $0xb8] sm:$0xff] %v7337_v1  ;;  %v7336_v51 = vmax.f32 %v7300_v39, 0.0  ;;  %v7303_v44 = vadd.f32 %v15158_v25, %v7260_v36  ;;  %v7259_v63 = vadd.f32 %v7176_v21, %v6925_v14  ;;  %v15939_v14 = vld [vmem:[#allocation93_spill] sm:$0xff]  ;;  %v15940_v1 = vld [vmem:[#allocation16_spill] sm:$0xff] }
 0x66a   : > { %v10643_v18 = vpop.f32.mrf.mxu1  ;;  %v6931_v38 = vadd.f32 %v15939_v14, %v6597_v33  ;;  %v15941_v39 = vld [vmem:[#allocation104_spill] sm:$0xff]  ;;  %v6602_v30 = vadd.f32 %v15245_v17, %v6268_v12 }
 0x66b   : > { %7372 = vst [vmem:[%s15173_s12 + $0xb0] sm:$0xff] %v7336_v51  ;;  %v7339_v35 = vmax.f32 %v7303_v44, 0.0  ;;  %v7302_v42 = vadd.f32 %v15158_v25, %v7259_v63  ;;  %v7262_v9 = vadd.f32 %v10643_v18, %v6928_v8  ;;  %v6267_v36 = vadd.f32 %v15941_v39, %v15940_v1 }
 0x66c   : > { %v7186_v47 = vpop.f32.mrf.mxu1  ;;  %v6933_v8 = vadd.f32 %v15943_v52, %v6599_v37 }
 0x66d   : > { %7375 = vst [vmem:[%s15173_s12 + $0xc8] sm:$0xff] %v7339_v35  ;;  %v7338_v0 = vmax.f32 %v7302_v42, 0.0  ;;  %v7305_v2 = vadd.f32 %v15158_v25, %v7262_v9  ;;  %v7261_v15 = vadd.f32 %v7186_v47, %v6927_v60  ;;  %v6601_v20 = vadd.f32 %v15249_v22, %v6267_v36 }
 0x66e   : > { %v10646_v28 = vpop.f32.mrf.mxu1  ;;  %v6936_v60 = vadd.f32 %v15944_v56, %v6602_v30 }
 0x66f   : > { %7374 = vst [vmem:[%s15173_s12 + $0xc0] sm:$0xff] %v7338_v0  ;;  %v7341_v4 = vmax.f32 %v7305_v2, 0.0  ;;  %v7304_v10 = vadd.f32 %v15158_v25, %v7261_v15  ;;  %v7264_v40 = vadd.f32 %v10646_v28, %v6930_v45  ;;  %v6935_v45 = vadd.f32 %v15945_v55, %v6601_v20 }
 0x670   : > { %v7196_v41 = vpop.f32.mrf.mxu1 }
 0x671   : > { %7377 = vst [vmem:[%s15173_s12 + $0xd8] sm:$0xff] %v7341_v4  ;;  %v7340_v34 = vmax.f32 %v7304_v10, 0.0  ;;  %v7307_v62 = vadd.f32 %v15158_v25, %v7264_v40  ;;  %v7263_v43 = vadd.f32 %v7196_v41, %v6929_v6 }
 0x672   : > { %v10649_v48 = vpop.f32.mrf.mxu1 }
 0x673   : > { %7376 = vst [vmem:[%s15173_s12 + $0xd0] sm:$0xff] %v7340_v34  ;;  %v7343_v27 = vmax.f32 %v7307_v62, 0.0  ;;  %v7306_v59 = vadd.f32 %v15158_v25, %v7263_v43  ;;  %v7266_v3 = vadd.f32 %v10649_v48, %v6932_v58 }
 0x674   : > { %v7206_v24 = vpop.f32.mrf.mxu1 }
 0x675   : > { %7379 = vst [vmem:[%s15173_s12 + $0xe8] sm:$0xff] %v7343_v27  ;;  %v7342_v21 = vmax.f32 %v7306_v59, 0.0  ;;  %v7309_v51 = vadd.f32 %v15158_v25, %v7266_v3  ;;  %v7265_v44 = vadd.f32 %v7206_v24, %v6931_v38 }
 0x676   : > { %v10652_v63 = vpop.f32.mrf.mxu1 }
 0x677   : > { %7378 = vst [vmem:[%s15173_s12 + $0xe0] sm:$0xff] %v7342_v21  ;;  %v7345_v19 = vmax.f32 %v7309_v51, 0.0  ;;  %v7308_v50 = vadd.f32 %v15158_v25, %v7265_v44  ;;  %v7268_v18 = vadd.f32 %v10652_v63, %v6934_v26 }
 0x678   : > { %v7216_v35 = vpop.f32.mrf.mxu1 }
 0x679   : > { %7381 = vst [vmem:[%s15173_s12 + $0xf8] sm:$0xff] %v7345_v19  ;;  %v7344_v17 = vmax.f32 %v7308_v50, 0.0  ;;  %v7311_v42 = vadd.f32 %v15158_v25, %v7268_v18  ;;  %v7267_v9 = vadd.f32 %v7216_v35, %v6933_v8 }
 0x67a   : > { %v10655_v23 = vpop.f32.mrf.mxu1 }
 0x67b   : > { %7380 = vst [vmem:[%s15173_s12 + $0xf0] sm:$0xff] %v7344_v17  ;;  %v7347_v22 = vmax.f32 %v7311_v42, 0.0  ;;  %v7310_v16 = vadd.f32 %v15158_v25, %v7267_v9  ;;  %v7270_v47 = vadd.f32 %v10655_v23, %v6936_v60 }
 0x67c   : > { %v7226_v54 = vpop.f32.mrf.mxu1 }
 0x67d   : > { %7383 = vst [vmem:[%s15173_s12 + $0x108] sm:$0xff] %v7347_v22  ;;  %v7346_v0 = vmax.f32 %v7310_v16, 0.0  ;;  %v7313_v2 = vadd.f32 %v15158_v25, %v7270_v47  ;;  %v7269_v15 = vadd.f32 %v7226_v54, %v6935_v45 }
 0x67f   : > { %7382 = vst [vmem:[%s15173_s12 + $0x100] sm:$0xff] %v7346_v0  ;;  %v7349_v46 = vmax.f32 %v7313_v2, 0.0  ;;  %v7312_v32 = vadd.f32 %v15158_v25, %v7269_v15 }
 0x681   : > { %7385 = vst [vmem:[%s15173_s12 + $0x118] sm:$0xff] %v7349_v46  ;;  %v7348_v7 = vmax.f32 %v7312_v32, 0.0 }
 0x683   : > { %7384 = vst [vmem:[%s15173_s12 + $0x110] sm:$0xff] %v7348_v7 }
 0x684   : > { %10868 = shalt.err (!%p10865_p3)
}
 0x685   : > { %s10869_s11 = scalar_lea.hbm %s15383_s10, 4608  ;;  %s10873_s28 = scalar_lea.hbm %s15435_s5, 9216 }
 0x686   : > { %p10870_p2 = scmp.ne.s32.totalorder %s15383_s10, %s10869_s11  ;;  %p10874_p4 = scmp.lt.s32.totalorder %s15383_s10, %s15435_s5 }
 0x687   : > { %p10875_p6 = scmp.lt.s32.totalorder %s10873_s28, %s10869_s11 }
 0x688   : > { %p10871_p9 = pnand %p10870_p2, %p15946_p11 }
 0x689   : > { %p10876_p8 = por %p10875_p6, %p10874_p4 }
 0x68a   : > { %p10872_p1 = pneg %p10871_p9 }
 0x68c   : > { %p10877_p5 = pnand %p10876_p8, %p10872_p1 }
 0x68e   : > { %10880 = shalt.err (!%p10877_p5)
}
 0x68f   : > { %s10933_s17 = smov 128   ;;  %s10934_s7 = smov 8  }
 0x690   : > { %10703 = dma.vmem_to_hbm [thread:$0]  (%p15946_p11), %s15386_s8, 4608, %s15383_s10, %s7387_s22, %s10933_s17, %s10933_s17, %s10934_s7  }
 0x691 PF: > { %s7415_s30 = sand.u32 1, %s10911_s18   ;;  %p15947_p7 = scmp.ne.s32.totalorder %s15451_s25, 0 }
 0x692   : > { %p15948_p12 = scmp.ge.s32.totalorder %s10923_s21, 2  ;;  %s7416_s24 = scalar_lea.sflag [#allocation5], %s7415_s30 }
 0x694   : > { %p10717_p13 = pnand %p15948_p12, %p15947_p7 }
 0x696   : > { %p10718_p0 = pneg %p10717_p13 }
 0x698   : > { %10906 = dma.done.wait (%p10718_p0), %s7416_s24, 4608  }
 0x699   : > { %10908 = vsyncadd (%p10718_p0), %s7416_s24, 4294962688  ;;  %p19_p10 = scmp.ge.s32.totalorder %s11043_s15, 4   ;;  %s15949_s18 = smov %s10915_s19 }
 0x69a   : > { %s15950_s19 = smov %s10919_s20  ;;  %s15951_s20 = smov %s11059_s27 }
 0x69b   : > { %s15952_s21 = smov %s11043_s15  ;;  %21 = sbr.rel (!%p19_p10) target bundleno = 6 (0x6), region = 109 }
 0x6a0   :  { %7421 = vsyncpa [#allocation4], 1 }
 0x6a1   :  { %7423 = vsyncpa [#allocation4 + $0x1], 1 }
 0x6a2   :  { %7424 = vsyncpa [#allocation7], 1 }
 0x6a3   :  { %7425 = vsyncpa [#allocation5], 1 }
 0x6a4   :  { %7427 = vsyncpa [#allocation5 + $0x1], 1 }

</bundles_post_ra>
